<compile_context>
chip_gen: v7x
topology: tpu7x:2x2x1
jax: 0.10.0
libtpu: 0.0.40
codegen_flags: <defaults>
</compile_context>

<pallas_src>
import functools

import jax
import jax.numpy as jnp
from jax import lax
from jax.experimental import pallas as pl
from jax.experimental.pallas import tpu as pltpu


def round_up(x, m):
    return ((x + m - 1) // m) * m


# ----------------------------- fused two-tower GRU kernel -----------------------------

def make_two_tower_kernel(tower_specs, b_pad, proj_dtype=jnp.float32):
    """Build the fused kernel.

    Ref order: per tower x (T, B_pad, E_pad);
               per tower, per layer: w_ih^T (in_pad, 3*H_pad), w_hh^T (H_pad, 3*H_pad),
                                     b_ih_folded (1, 3*H_pad), b_hh_n (1, H_pad);
               per tower out (B_pad, H_pad);
               per tower scratch gi (T, B_pad, 3*H_pad).
    Emits only the final hidden state of each tower's top layer (== hidden[-1]).
    """
    n_towers = len(tower_specs)

    def kernel(*refs):
        # ---- parse refs ----
        x_refs = refs[:n_towers]
        pos = n_towers
        layer_refs = []                       # layer_refs[tower][layer] = (wih, whh, bih, bhh_n)
        for spec in tower_specs:
            per_layer = []
            for _ in range(spec["num_layers"]):
                per_layer.append(refs[pos:pos + 4])
                pos += 4
            layer_refs.append(per_layer)
        out_refs = refs[pos:pos + n_towers]
        pos += n_towers
        gi_refs = refs[pos:pos + n_towers]    # VMEM scratch: hoisted layer-0 projections

        # ---- phase 1: hoisted layer-0 input projections (one big MXU matmul per tower) ----
        for ti, spec in enumerate(tower_specs):
            T, Hp = spec["T"], spec["h_pad"]
            wih_ref, _, bih_ref, _ = layer_refs[ti][0]
            xin = x_refs[ti][...]                                # (T, B_pad, E_pad)
            lhs = xin.reshape(T * b_pad, xin.shape[-1])          # free reshape (B_pad % 8 == 0)
            rhs = wih_ref[...]
            if proj_dtype != jnp.float32:                        # bf16 operands on v6e/v7x
                lhs = lhs.astype(proj_dtype)
                rhs = rhs.astype(proj_dtype)
            gi = jnp.dot(lhs, rhs, preferred_element_type=jnp.float32) + bih_ref[...]
            gi_refs[ti][...] = gi.reshape(T, b_pad, 3 * Hp)

        # ---- phase 2: statically scheduled wavefront over all (tower, layer) chains ----
        chains = []
        for ti, spec in enumerate(tower_specs):
            for l in range(spec["num_layers"]):
                chains.append(dict(tower=ti, layer=l, start=l, T=spec["T"], Hp=spec["h_pad"]))
        cidx = {(c["tower"], c["layer"]): i for i, c in enumerate(chains)}
        n_steps = max(c["start"] + c["T"] for c in chains)

        # Per-chain carried hidden state + hoisted bias broadcasts.
        h_state, bih_b, bhhn_b = {}, {}, {}
        for i, c in enumerate(chains):
            Hp = c["Hp"]
            _, _, bih_ref, bhhn_ref = layer_refs[c["tower"]][c["layer"]]
            h_state[i] = jnp.zeros((b_pad, Hp), jnp.float32)
            bhhn_b[i] = jnp.broadcast_to(bhhn_ref[...], (b_pad, Hp))
            if c["layer"] > 0:
                bih_b[i] = jnp.broadcast_to(bih_ref[...], (b_pad, 3 * Hp))

        for g in range(n_steps):
            feed = dict(h_state)              # all chain states as of the END of step g-1
            for i, c in enumerate(chains):
                t = g - c["start"]
                if t < 0 or t >= c["T"]:
                    continue
                ti, l, Hp = c["tower"], c["layer"], c["Hp"]
                wih_ref, whh_ref, _, _ = layer_refs[ti][l]
                if l == 0:
                    gi_t = gi_refs[ti][t]     # (B_pad, 3*Hp) from the hoisted projection
                else:
                    # Wavefront: consume layer l-1's output for time t (produced at step g-1).
                    x_t = feed[cidx[(ti, l - 1)]]
                    gi_t = jnp.dot(x_t, wih_ref[...],
                                   preferred_element_type=jnp.float32) + bih_b[i]
                h_prev = feed[i]
                # W_hh^T is deliberately re-read from VMEM every step (vld slots have slack);
                # hoisting it as a value would pin ~48 vregs across the unrolled loop.
                gh = jnp.dot(h_prev, whh_ref[...], preferred_element_type=jnp.float32)
                r = jax.nn.sigmoid(gi_t[:, 0:Hp] + gh[:, 0:Hp])
                z = jax.nn.sigmoid(gi_t[:, Hp:2 * Hp] + gh[:, Hp:2 * Hp])
                n = jnp.tanh(gi_t[:, 2 * Hp:3 * Hp] + r * (gh[:, 2 * Hp:3 * Hp] + bhhn_b[i]))
                h_state[i] = (1.0 - z) * n + z * h_prev

        # ---- emit only the top layer's final hidden state per tower ----
        for ti, spec in enumerate(tower_specs):
            out_refs[ti][...] = h_state[cidx[(ti, spec["num_layers"] - 1)]]

    return kernel


def two_tower_gru_pallas(x_list, padded_towers, hidden_sizes, proj_dtype=jnp.float32):
    """Run both GRU towers in ONE fused pallas_call.

    x_list: time-major (T, B, E) per tower. Returns hidden[-1] per tower, sliced to (B, H)."""
    B = x_list[0].shape[1]
    b_pad = max(8, round_up(B, 8))

    tower_specs, padded_x, flat_params = [], [], []
    for x, layers in zip(x_list, padded_towers):
        T, _, E = x.shape
        e_pad = layers[0][0].shape[0]        # w_ih^T (layer 0): (E_pad, 3*H_pad)
        h_pad = layers[0][1].shape[0]        # w_hh^T:           (H_pad, 3*H_pad)
        padded_x.append(jnp.pad(x, ((0, 0), (0, b_pad - B), (0, e_pad - E))))
        tower_specs.append(dict(T=T, num_layers=len(layers), h_pad=h_pad))
        flat_params.extend(p for lp in layers for p in lp)

    kernel = make_two_tower_kernel(tower_specs, b_pad, proj_dtype)
    n_inputs = len(padded_x) + len(flat_params)
    outs = pl.pallas_call(
        kernel,
        out_shape=tuple(jax.ShapeDtypeStruct((b_pad, s["h_pad"]), jnp.float32)
                        for s in tower_specs),
        in_specs=[pl.BlockSpec(memory_space=pltpu.MemorySpace.VMEM)] * n_inputs,
        out_specs=tuple(pl.BlockSpec(memory_space=pltpu.MemorySpace.VMEM)
                        for _ in tower_specs),
        scratch_shapes=[pltpu.VMEM((s["T"], b_pad, 3 * s["h_pad"]), jnp.float32)
                        for s in tower_specs],
    )(*padded_x, *flat_params)
    return tuple(o[:B, :h] for o, h in zip(outs, hidden_sizes))


# ----------------------------- parameter padding (done once at init) -----------------------------

def pad_gru_layer_params(w_ih, w_hh, b_ih, b_hh, h_pad, in_pad):
    """Transpose + zero-pad PyTorch-layout GRU params into lane-aligned gate blocks.

    Gate g (r=0, z=1, n=2) occupies columns [g*h_pad, g*h_pad + H).  The reset/update
    blocks of b_hh are folded into b_ih (they are only ever summed with it); only the
    `new` block of b_hh is kept separately, since it sits inside the r * (...) term."""
    H = w_hh.shape[1]
    E = w_ih.shape[1]
    wih_p = jnp.zeros((in_pad, 3 * h_pad), jnp.float32)
    whh_p = jnp.zeros((h_pad, 3 * h_pad), jnp.float32)
    bih_p = jnp.zeros((1, 3 * h_pad), jnp.float32)
    bhhn_p = jnp.zeros((1, h_pad), jnp.float32)
    for g in range(3):
        wih_p = wih_p.at[:E, g * h_pad:g * h_pad + H].set(w_ih[g * H:(g + 1) * H, :].T)
        whh_p = whh_p.at[:H, g * h_pad:g * h_pad + H].set(w_hh[g * H:(g + 1) * H, :].T)
        b = b_ih[g * H:(g + 1) * H]
        if g < 2:                                     # fold b_hh_r / b_hh_z into b_ih
            b = b + b_hh[g * H:(g + 1) * H]
        bih_p = bih_p.at[0, g * h_pad:g * h_pad + H].set(b)
    bhhn_p = bhhn_p.at[0, :H].set(b_hh[2 * H:3 * H])
    return (wih_p, whh_p, bih_p, bhhn_p)


def pad_gru_tower_params(layers, h_pad, e_pad):
    padded = []
    for i, (w_ih, w_hh, b_ih, b_hh) in enumerate(layers):
        in_pad = e_pad if i == 0 else h_pad
        padded.append(pad_gru_layer_params(w_ih, w_hh, b_ih, b_hh, h_pad, in_pad))
    return padded


# ----------------------------- TwoTowerNN forward (glue) -----------------------------

def two_tower_forward(params, query_input, doc_input, *, query_hidden_size, doc_hidden_size):
    """Mirrors TwoTowerNN.forward with fine_tune=True and both inputs present."""
    # Embedding lookups gathered directly in time-major layout (plain XLA glue).
    xq = params["query_embedding"][query_input.T]      # (Tq, B, E)
    xd = params["doc_embedding"][doc_input.T]          # (Td, B, E)
    q_emb, d_emb = two_tower_gru_pallas(
        [xq, xd],
        [params["query_tower"], params["doc_tower"]],
        [query_hidden_size, doc_hidden_size])
    return q_emb, d_emb


# ----------------------------- deterministic parameter init -----------------------------

def init_gru_params(key, input_size, hidden_size, num_layers):
    """PyTorch-style GRU params: per layer (w_ih (3H,in), w_hh (3H,H), b_ih (3H,), b_hh (3H,))."""
    layers = []
    k = 1.0 / jnp.sqrt(hidden_size)
    for layer in range(num_layers):
        in_dim = input_size if layer == 0 else hidden_size
        key, k1, k2, k3, k4 = jax.random.split(key, 5)
        w_ih = jax.random.uniform(k1, (3 * hidden_size, in_dim), jnp.float32, -k, k)
        w_hh = jax.random.uniform(k2, (3 * hidden_size, hidden_size), jnp.float32, -k, k)
        b_ih = jax.random.uniform(k3, (3 * hidden_size,), jnp.float32, -k, k)
        b_hh = jax.random.uniform(k4, (3 * hidden_size,), jnp.float32, -k, k)
        layers.append((w_ih, w_hh, b_ih, b_hh))
    return layers, key


# ----------------------------- pure-JAX reference (for correctness check) -----------------------------

def ref_gru_layer(x_tbe, w_ih, w_hh, b_ih, b_hh):
    H = w_hh.shape[1]
    B = x_tbe.shape[1]

    def step(h_prev, x_t):
        gi = x_t @ w_ih.T + b_ih
        gh = h_prev @ w_hh.T + b_hh
        i_r, i_z, i_n = gi[:, :H], gi[:, H:2 * H], gi[:, 2 * H:]
        h_r, h_z, h_n = gh[:, :H], gh[:, H:2 * H], gh[:, 2 * H:]
        r = jax.nn.sigmoid(i_r + h_r)
        z = jax.nn.sigmoid(i_z + h_z)
        n = jnp.tanh(i_n + r * h_n)
        h_new = (1.0 - z) * n + z * h_prev
        return h_new, h_new

    h0 = jnp.zeros((B, H), jnp.float32)
    _, ys = lax.scan(step, h0, x_tbe)
    return ys


def ref_two_tower_forward(params, query_input, doc_input):
    def tower(x_bte, layer_params):
        x = jnp.transpose(x_bte, (1, 0, 2))
        for (w_ih, w_hh, b_ih, b_hh) in layer_params:
            x = ref_gru_layer(x, w_ih, w_hh, b_ih, b_hh)
        return x[-1]

    q = tower(params["query_embedding"][query_input], params["query_tower"])
    d = tower(params["doc_embedding"][doc_input], params["doc_tower"])
    return q, d


# ----------------------------- main -----------------------------

if __name__ == "__main__":
    key = jax.random.PRNGKey(0)

    # Module hyper-parameters (small, consistent with the PyTorch __init__ signature)
    vocab_size = 64
    embedding_dim = 32
    query_hidden_size = 32
    doc_hidden_size = 32
    query_num_layers = 1
    doc_num_layers = 2

    batch = 2
    query_len = 8
    doc_len = 16

    # Raw (PyTorch-layout) parameters
    key, ke1, ke2 = jax.random.split(key, 3)
    query_emb_table = jax.random.normal(ke1, (vocab_size, embedding_dim), jnp.float32)
    doc_emb_table = jax.random.normal(ke2, (vocab_size, embedding_dim), jnp.float32)
    query_layers, key = init_gru_params(key, embedding_dim, query_hidden_size, query_num_layers)
    doc_layers, key = init_gru_params(key, embedding_dim, doc_hidden_size, doc_num_layers)

    # Pre-pad / pre-transpose once at init time (lane-aligned gate blocks for the kernel).
    q_h_pad = round_up(query_hidden_size, 128)
    d_h_pad = round_up(doc_hidden_size, 128)
    e_pad = round_up(embedding_dim, 128)
    params_pallas = {
        "query_embedding": query_emb_table,
        "doc_embedding": doc_emb_table,
        "query_tower": pad_gru_tower_params(query_layers, q_h_pad, e_pad),
        "doc_tower": pad_gru_tower_params(doc_layers, d_h_pad, e_pad),
    }
    params_ref = {
        "query_embedding": query_emb_table,
        "doc_embedding": doc_emb_table,
        "query_tower": query_layers,
        "doc_tower": doc_layers,
    }

    # Inputs (token ids, as in fine_tune=True)
    key, ki1, ki2 = jax.random.split(key, 3)
    query_input = jax.random.randint(ki1, (batch, query_len), 0, vocab_size, dtype=jnp.int32)
    doc_input = jax.random.randint(ki2, (batch, doc_len), 0, vocab_size, dtype=jnp.int32)

    fwd = jax.jit(functools.partial(
        two_tower_forward,
        query_hidden_size=query_hidden_size,
        doc_hidden_size=doc_hidden_size))
    q_emb, d_emb = fwd(params_pallas, query_input, doc_input)
    jax.block_until_ready((q_emb, d_emb))

    assert q_emb.shape == (batch, query_hidden_size)
    assert d_emb.shape == (batch, doc_hidden_size)

    # Compare against pure-JAX reference
    q_ref, d_ref = jax.jit(ref_two_tower_forward)(params_ref, query_input, doc_input)
    jax.block_until_ready((q_ref, d_ref))
    assert jnp.allclose(q_emb, q_ref, rtol=1e-3, atol=1e-3), "query tower mismatch"
    assert jnp.allclose(d_emb, d_ref, rtol=1e-3, atol=1e-3), "doc tower mismatch"

    print("KERNEL_OK")
</pallas_src>

<mosaic_0001>
module attributes {stable_mosaic.version = 11 : i64} {
  func.func @kernel(%arg0: memref<8x8x128xf32, #tpu.memory_space<vmem>>, %arg1: memref<16x8x128xf32, #tpu.memory_space<vmem>>, %arg2: memref<128x384xf32, #tpu.memory_space<vmem>>, %arg3: memref<128x384xf32, #tpu.memory_space<vmem>>, %arg4: memref<1x384xf32, #tpu.memory_space<vmem>>, %arg5: memref<1x128xf32, #tpu.memory_space<vmem>>, %arg6: memref<128x384xf32, #tpu.memory_space<vmem>>, %arg7: memref<128x384xf32, #tpu.memory_space<vmem>>, %arg8: memref<1x384xf32, #tpu.memory_space<vmem>>, %arg9: memref<1x128xf32, #tpu.memory_space<vmem>>, %arg10: memref<128x384xf32, #tpu.memory_space<vmem>>, %arg11: memref<128x384xf32, #tpu.memory_space<vmem>>, %arg12: memref<1x384xf32, #tpu.memory_space<vmem>>, %arg13: memref<1x128xf32, #tpu.memory_space<vmem>>, %arg14: memref<8x128xf32, #tpu.memory_space<vmem>>, %arg15: memref<8x128xf32, #tpu.memory_space<vmem>>, %arg16: memref<8x8x384xf32, #tpu.memory_space<vmem>>, %arg17: memref<16x8x384xf32, #tpu.memory_space<vmem>>) attributes {dimension_semantics = [], scalar_prefetch = 0 : i64, scratch_operands = 2 : i64, tpu.core_type = #tpu.core_type<tc>} {
    %c0 = arith.constant 0 : index
    %c0_0 = arith.constant 0 : index
    %c0_1 = arith.constant 0 : index
    %0 = vector.load %arg0[%c0, %c0_0, %c0_1] : memref<8x8x128xf32, #tpu.memory_space<vmem>>, vector<8x8x128xf32>
    %1 = vector.shape_cast %0 : vector<8x8x128xf32> to vector<64x128xf32>
    %c0_2 = arith.constant 0 : index
    %c0_3 = arith.constant 0 : index
    %2 = vector.load %arg2[%c0_2, %c0_3] : memref<128x384xf32, #tpu.memory_space<vmem>>, vector<128x384xf32>
    %cst = arith.constant dense<0.000000e+00> : vector<64x384xf32>
    %3 = tpu.matmul %1, %2, %cst {dimension_numbers = #tpu.dot_dimension_numbers<[1], [0], [0], [1], [0, 0, 1, 1], [], []>} : vector<64x128xf32>, vector<128x384xf32>, vector<64x384xf32> -> vector<64x384xf32>
    %c0_4 = arith.constant 0 : index
    %c0_5 = arith.constant 0 : index
    %4 = vector.load %arg4[%c0_4, %c0_5] : memref<1x384xf32, #tpu.memory_space<vmem>>, vector<1x384xf32>
    %5 = vector.broadcast %4 : vector<1x384xf32> to vector<64x384xf32>
    %6 = arith.addf %3, %5 : vector<64x384xf32>
    %7 = vector.shape_cast %6 : vector<64x384xf32> to vector<8x8x384xf32>
    %c0_6 = arith.constant 0 : index
    %c0_7 = arith.constant 0 : index
    %c0_8 = arith.constant 0 : index
    %8 = vector.load %arg16[%c0_6, %c0_7, %c0_8] : memref<8x8x384xf32, #tpu.memory_space<vmem>>, vector<8x8x384xf32>
    tpu.vector_store %arg16[%c0_6, %c0_7, %c0_8], %7 {strides = array<i32>} : memref<8x8x384xf32, #tpu.memory_space<vmem>>, vector<8x8x384xf32>,
    %c0_9 = arith.constant 0 : index
    %c0_10 = arith.constant 0 : index
    %c0_11 = arith.constant 0 : index
    %9 = vector.load %arg1[%c0_9, %c0_10, %c0_11] : memref<16x8x128xf32, #tpu.memory_space<vmem>>, vector<16x8x128xf32>
    %10 = vector.shape_cast %9 : vector<16x8x128xf32> to vector<128x128xf32>
    %c0_12 = arith.constant 0 : index
    %c0_13 = arith.constant 0 : index
    %11 = vector.load %arg6[%c0_12, %c0_13] : memref<128x384xf32, #tpu.memory_space<vmem>>, vector<128x384xf32>
    %cst_14 = arith.constant dense<0.000000e+00> : vector<128x384xf32>
    %12 = tpu.matmul %10, %11, %cst_14 {dimension_numbers = #tpu.dot_dimension_numbers<[1], [0], [0], [1], [0, 0, 1, 1], [], []>} : vector<128x128xf32>, vector<128x384xf32>, vector<128x384xf32> -> vector<128x384xf32>
    %c0_15 = arith.constant 0 : index
    %c0_16 = arith.constant 0 : index
    %13 = vector.load %arg8[%c0_15, %c0_16] : memref<1x384xf32, #tpu.memory_space<vmem>>, vector<1x384xf32>
    %14 = vector.broadcast %13 : vector<1x384xf32> to vector<128x384xf32>
    %15 = arith.addf %12, %14 : vector<128x384xf32>
    %16 = vector.shape_cast %15 : vector<128x384xf32> to vector<16x8x384xf32>
    %c0_17 = arith.constant 0 : index
    %c0_18 = arith.constant 0 : index
    %c0_19 = arith.constant 0 : index
    %17 = vector.load %arg17[%c0_17, %c0_18, %c0_19] : memref<16x8x384xf32, #tpu.memory_space<vmem>>, vector<16x8x384xf32>
    tpu.vector_store %arg17[%c0_17, %c0_18, %c0_19], %16 {strides = array<i32>} : memref<16x8x384xf32, #tpu.memory_space<vmem>>, vector<16x8x384xf32>,
    %cst_20 = arith.constant 0.000000e+00 : f32
    %18 = vector.broadcast %cst_20 : f32 to vector<8x128xf32>
    %c0_21 = arith.constant 0 : index
    %c0_22 = arith.constant 0 : index
    %19 = vector.load %arg5[%c0_21, %c0_22] : memref<1x128xf32, #tpu.memory_space<vmem>>, vector<1x128xf32>
    %20 = vector.shape_cast %19 : vector<1x128xf32> to vector<1x128xf32>
    %21 = vector.broadcast %20 : vector<1x128xf32> to vector<8x128xf32>
    %cst_23 = arith.constant 0.000000e+00 : f32
    %22 = vector.broadcast %cst_23 : f32 to vector<8x128xf32>
    %c0_24 = arith.constant 0 : index
    %c0_25 = arith.constant 0 : index
    %23 = vector.load %arg9[%c0_24, %c0_25] : memref<1x128xf32, #tpu.memory_space<vmem>>, vector<1x128xf32>
    %24 = vector.shape_cast %23 : vector<1x128xf32> to vector<1x128xf32>
    %25 = vector.broadcast %24 : vector<1x128xf32> to vector<8x128xf32>
    %cst_26 = arith.constant 0.000000e+00 : f32
    %26 = vector.broadcast %cst_26 : f32 to vector<8x128xf32>
    %c0_27 = arith.constant 0 : index
    %c0_28 = arith.constant 0 : index
    %27 = vector.load %arg13[%c0_27, %c0_28] : memref<1x128xf32, #tpu.memory_space<vmem>>, vector<1x128xf32>
    %28 = vector.shape_cast %27 : vector<1x128xf32> to vector<1x128xf32>
    %29 = vector.broadcast %28 : vector<1x128xf32> to vector<8x128xf32>
    %c0_29 = arith.constant 0 : index
    %c0_30 = arith.constant 0 : index
    %30 = vector.load %arg12[%c0_29, %c0_30] : memref<1x384xf32, #tpu.memory_space<vmem>>, vector<1x384xf32>
    %31 = vector.shape_cast %30 : vector<1x384xf32> to vector<1x384xf32>
    %32 = vector.broadcast %31 : vector<1x384xf32> to vector<8x384xf32>
    %c0_31 = arith.constant 0 : index
    %c0_32 = arith.constant 0 : index
    %c0_33 = arith.constant 0 : index
    %33 = vector.load %arg16[%c0_31, %c0_32, %c0_33] : memref<8x8x384xf32, #tpu.memory_space<vmem>>, vector<1x8x384xf32>
    %34 = vector.shape_cast %33 : vector<1x8x384xf32> to vector<8x384xf32>
    %c0_34 = arith.constant 0 : index
    %c0_35 = arith.constant 0 : index
    %35 = vector.load %arg3[%c0_34, %c0_35] : memref<128x384xf32, #tpu.memory_space<vmem>>, vector<128x384xf32>
    %cst_36 = arith.constant dense<0.000000e+00> : vector<8x384xf32>
    %36 = tpu.matmul %18, %35, %cst_36 {dimension_numbers = #tpu.dot_dimension_numbers<[1], [0], [0], [1], [0, 0, 1, 1], [], []>} : vector<8x128xf32>, vector<128x384xf32>, vector<8x384xf32> -> vector<8x384xf32>
    %37 = vector.extract_strided_slice %34 {offsets = [0, 0], sizes = [8, 128], strides = [1, 1]} : vector<8x384xf32> to vector<8x128xf32>
    %38 = vector.extract_strided_slice %36 {offsets = [0, 0], sizes = [8, 128], strides = [1, 1]} : vector<8x384xf32> to vector<8x128xf32>
    %39 = arith.addf %37, %38 : vector<8x128xf32>
    %40 = arith.negf %39 : vector<8x128xf32>
    %41 = math.exp %40 : vector<8x128xf32>
    %cst_37 = arith.constant 1.000000e+00 : f32
    %42 = vector.broadcast %cst_37 : f32 to vector<8x128xf32>
    %43 = arith.addf %42, %41 : vector<8x128xf32>
    %44 = arith.divf %42, %43 : vector<8x128xf32>
    %45 = vector.extract_strided_slice %34 {offsets = [0, 128], sizes = [8, 128], strides = [1, 1]} : vector<8x384xf32> to vector<8x128xf32>
    %46 = vector.extract_strided_slice %36 {offsets = [0, 128], sizes = [8, 128], strides = [1, 1]} : vector<8x384xf32> to vector<8x128xf32>
    %47 = arith.addf %45, %46 : vector<8x128xf32>
    %48 = arith.negf %47 : vector<8x128xf32>
    %49 = math.exp %48 : vector<8x128xf32>
    %cst_38 = arith.constant 1.000000e+00 : f32
    %50 = vector.broadcast %cst_38 : f32 to vector<8x128xf32>
    %51 = arith.addf %50, %49 : vector<8x128xf32>
    %52 = arith.divf %50, %51 : vector<8x128xf32>
    %53 = vector.extract_strided_slice %34 {offsets = [0, 256], sizes = [8, 128], strides = [1, 1]} : vector<8x384xf32> to vector<8x128xf32>
    %54 = vector.extract_strided_slice %36 {offsets = [0, 256], sizes = [8, 128], strides = [1, 1]} : vector<8x384xf32> to vector<8x128xf32>
    %55 = arith.addf %54, %21 : vector<8x128xf32>
    %56 = arith.mulf %44, %55 : vector<8x128xf32>
    %57 = arith.addf %53, %56 : vector<8x128xf32>
    %58 = math.tanh %57 : vector<8x128xf32>
    %cst_39 = arith.constant 1.000000e+00 : f32
    %59 = vector.broadcast %cst_39 : f32 to vector<8x128xf32>
    %60 = arith.subf %59, %52 : vector<8x128xf32>
    %61 = arith.mulf %60, %58 : vector<8x128xf32>
    %62 = arith.mulf %52, %18 : vector<8x128xf32>
    %63 = arith.addf %61, %62 : vector<8x128xf32>
    %c0_40 = arith.constant 0 : index
    %c0_41 = arith.constant 0 : index
    %c0_42 = arith.constant 0 : index
    %64 = vector.load %arg17[%c0_40, %c0_41, %c0_42] : memref<16x8x384xf32, #tpu.memory_space<vmem>>, vector<1x8x384xf32>
    %65 = vector.shape_cast %64 : vector<1x8x384xf32> to vector<8x384xf32>
    %c0_43 = arith.constant 0 : index
    %c0_44 = arith.constant 0 : index
    %66 = vector.load %arg7[%c0_43, %c0_44] : memref<128x384xf32, #tpu.memory_space<vmem>>, vector<128x384xf32>
    %cst_45 = arith.constant dense<0.000000e+00> : vector<8x384xf32>
    %67 = tpu.matmul %22, %66, %cst_45 {dimension_numbers = #tpu.dot_dimension_numbers<[1], [0], [0], [1], [0, 0, 1, 1], [], []>} : vector<8x128xf32>, vector<128x384xf32>, vector<8x384xf32> -> vector<8x384xf32>
    %68 = vector.extract_strided_slice %65 {offsets = [0, 0], sizes = [8, 128], strides = [1, 1]} : vector<8x384xf32> to vector<8x128xf32>
    %69 = vector.extract_strided_slice %67 {offsets = [0, 0], sizes = [8, 128], strides = [1, 1]} : vector<8x384xf32> to vector<8x128xf32>
    %70 = arith.addf %68, %69 : vector<8x128xf32>
    %71 = arith.negf %70 : vector<8x128xf32>
    %72 = math.exp %71 : vector<8x128xf32>
    %cst_46 = arith.constant 1.000000e+00 : f32
    %73 = vector.broadcast %cst_46 : f32 to vector<8x128xf32>
    %74 = arith.addf %73, %72 : vector<8x128xf32>
    %75 = arith.divf %73, %74 : vector<8x128xf32>
    %76 = vector.extract_strided_slice %65 {offsets = [0, 128], sizes = [8, 128], strides = [1, 1]} : vector<8x384xf32> to vector<8x128xf32>
    %77 = vector.extract_strided_slice %67 {offsets = [0, 128], sizes = [8, 128], strides = [1, 1]} : vector<8x384xf32> to vector<8x128xf32>
    %78 = arith.addf %76, %77 : vector<8x128xf32>
    %79 = arith.negf %78 : vector<8x128xf32>
    %80 = math.exp %79 : vector<8x128xf32>
    %cst_47 = arith.constant 1.000000e+00 : f32
    %81 = vector.broadcast %cst_47 : f32 to vector<8x128xf32>
    %82 = arith.addf %81, %80 : vector<8x128xf32>
    %83 = arith.divf %81, %82 : vector<8x128xf32>
    %84 = vector.extract_strided_slice %65 {offsets = [0, 256], sizes = [8, 128], strides = [1, 1]} : vector<8x384xf32> to vector<8x128xf32>
    %85 = vector.extract_strided_slice %67 {offsets = [0, 256], sizes = [8, 128], strides = [1, 1]} : vector<8x384xf32> to vector<8x128xf32>
    %86 = arith.addf %85, %25 : vector<8x128xf32>
    %87 = arith.mulf %75, %86 : vector<8x128xf32>
    %88 = arith.addf %84, %87 : vector<8x128xf32>
    %89 = math.tanh %88 : vector<8x128xf32>
    %cst_48 = arith.constant 1.000000e+00 : f32
    %90 = vector.broadcast %cst_48 : f32 to vector<8x128xf32>
    %91 = arith.subf %90, %83 : vector<8x128xf32>
    %92 = arith.mulf %91, %89 : vector<8x128xf32>
    %93 = arith.mulf %83, %22 : vector<8x128xf32>
    %94 = arith.addf %92, %93 : vector<8x128xf32>
    %c1 = arith.constant 1 : index
    %c0_49 = arith.constant 0 : index
    %c0_50 = arith.constant 0 : index
    %95 = vector.load %arg16[%c1, %c0_49, %c0_50] : memref<8x8x384xf32, #tpu.memory_space<vmem>>, vector<1x8x384xf32>
    %96 = vector.shape_cast %95 : vector<1x8x384xf32> to vector<8x384xf32>
    %c0_51 = arith.constant 0 : index
    %c0_52 = arith.constant 0 : index
    %97 = vector.load %arg3[%c0_51, %c0_52] : memref<128x384xf32, #tpu.memory_space<vmem>>, vector<128x384xf32>
    %cst_53 = arith.constant dense<0.000000e+00> : vector<8x384xf32>
    %98 = tpu.matmul %63, %97, %cst_53 {dimension_numbers = #tpu.dot_dimension_numbers<[1], [0], [0], [1], [0, 0, 1, 1], [], []>} : vector<8x128xf32>, vector<128x384xf32>, vector<8x384xf32> -> vector<8x384xf32>
    %99 = vector.extract_strided_slice %96 {offsets = [0, 0], sizes = [8, 128], strides = [1, 1]} : vector<8x384xf32> to vector<8x128xf32>
    %100 = vector.extract_strided_slice %98 {offsets = [0, 0], sizes = [8, 128], strides = [1, 1]} : vector<8x384xf32> to vector<8x128xf32>
    %101 = arith.addf %99, %100 : vector<8x128xf32>
    %102 = arith.negf %101 : vector<8x128xf32>
    %103 = math.exp %102 : vector<8x128xf32>
    %cst_54 = arith.constant 1.000000e+00 : f32
    %104 = vector.broadcast %cst_54 : f32 to vector<8x128xf32>
    %105 = arith.addf %104, %103 : vector<8x128xf32>
    %106 = arith.divf %104, %105 : vector<8x128xf32>
    %107 = vector.extract_strided_slice %96 {offsets = [0, 128], sizes = [8, 128], strides = [1, 1]} : vector<8x384xf32> to vector<8x128xf32>
    %108 = vector.extract_strided_slice %98 {offsets = [0, 128], sizes = [8, 128], strides = [1, 1]} : vector<8x384xf32> to vector<8x128xf32>
    %109 = arith.addf %107, %108 : vector<8x128xf32>
    %110 = arith.negf %109 : vector<8x128xf32>
    %111 = math.exp %110 : vector<8x128xf32>
    %cst_55 = arith.constant 1.000000e+00 : f32
    %112 = vector.broadcast %cst_55 : f32 to vector<8x128xf32>
    %113 = arith.addf %112, %111 : vector<8x128xf32>
    %114 = arith.divf %112, %113 : vector<8x128xf32>
    %115 = vector.extract_strided_slice %96 {offsets = [0, 256], sizes = [8, 128], strides = [1, 1]} : vector<8x384xf32> to vector<8x128xf32>
    %116 = vector.extract_strided_slice %98 {offsets = [0, 256], sizes = [8, 128], strides = [1, 1]} : vector<8x384xf32> to vector<8x128xf32>
    %117 = arith.addf %116, %21 : vector<8x128xf32>
    %118 = arith.mulf %106, %117 : vector<8x128xf32>
    %119 = arith.addf %115, %118 : vector<8x128xf32>
    %120 = math.tanh %119 : vector<8x128xf32>
    %cst_56 = arith.constant 1.000000e+00 : f32
    %121 = vector.broadcast %cst_56 : f32 to vector<8x128xf32>
    %122 = arith.subf %121, %114 : vector<8x128xf32>
    %123 = arith.mulf %122, %120 : vector<8x128xf32>
    %124 = arith.mulf %114, %63 : vector<8x128xf32>
    %125 = arith.addf %123, %124 : vector<8x128xf32>
    %c1_57 = arith.constant 1 : index
    %c0_58 = arith.constant 0 : index
    %c0_59 = arith.constant 0 : index
    %126 = vector.load %arg17[%c1_57, %c0_58, %c0_59] : memref<16x8x384xf32, #tpu.memory_space<vmem>>, vector<1x8x384xf32>
    %127 = vector.shape_cast %126 : vector<1x8x384xf32> to vector<8x384xf32>
    %c0_60 = arith.constant 0 : index
    %c0_61 = arith.constant 0 : index
    %128 = vector.load %arg7[%c0_60, %c0_61] : memref<128x384xf32, #tpu.memory_space<vmem>>, vector<128x384xf32>
    %cst_62 = arith.constant dense<0.000000e+00> : vector<8x384xf32>
    %129 = tpu.matmul %94, %128, %cst_62 {dimension_numbers = #tpu.dot_dimension_numbers<[1], [0], [0], [1], [0, 0, 1, 1], [], []>} : vector<8x128xf32>, vector<128x384xf32>, vector<8x384xf32> -> vector<8x384xf32>
    %130 = vector.extract_strided_slice %127 {offsets = [0, 0], sizes = [8, 128], strides = [1, 1]} : vector<8x384xf32> to vector<8x128xf32>
    %131 = vector.extract_strided_slice %129 {offsets = [0, 0], sizes = [8, 128], strides = [1, 1]} : vector<8x384xf32> to vector<8x128xf32>
    %132 = arith.addf %130, %131 : vector<8x128xf32>
    %133 = arith.negf %132 : vector<8x128xf32>
    %134 = math.exp %133 : vector<8x128xf32>
    %cst_63 = arith.constant 1.000000e+00 : f32
    %135 = vector.broadcast %cst_63 : f32 to vector<8x128xf32>
    %136 = arith.addf %135, %134 : vector<8x128xf32>
    %137 = arith.divf %135, %136 : vector<8x128xf32>
    %138 = vector.extract_strided_slice %127 {offsets = [0, 128], sizes = [8, 128], strides = [1, 1]} : vector<8x384xf32> to vector<8x128xf32>
    %139 = vector.extract_strided_slice %129 {offsets = [0, 128], sizes = [8, 128], strides = [1, 1]} : vector<8x384xf32> to vector<8x128xf32>
    %140 = arith.addf %138, %139 : vector<8x128xf32>
    %141 = arith.negf %140 : vector<8x128xf32>
    %142 = math.exp %141 : vector<8x128xf32>
    %cst_64 = arith.constant 1.000000e+00 : f32
    %143 = vector.broadcast %cst_64 : f32 to vector<8x128xf32>
    %144 = arith.addf %143, %142 : vector<8x128xf32>
    %145 = arith.divf %143, %144 : vector<8x128xf32>
    %146 = vector.extract_strided_slice %127 {offsets = [0, 256], sizes = [8, 128], strides = [1, 1]} : vector<8x384xf32> to vector<8x128xf32>
    %147 = vector.extract_strided_slice %129 {offsets = [0, 256], sizes = [8, 128], strides = [1, 1]} : vector<8x384xf32> to vector<8x128xf32>
    %148 = arith.addf %147, %25 : vector<8x128xf32>
    %149 = arith.mulf %137, %148 : vector<8x128xf32>
    %150 = arith.addf %146, %149 : vector<8x128xf32>
    %151 = math.tanh %150 : vector<8x128xf32>
    %cst_65 = arith.constant 1.000000e+00 : f32
    %152 = vector.broadcast %cst_65 : f32 to vector<8x128xf32>
    %153 = arith.subf %152, %145 : vector<8x128xf32>
    %154 = arith.mulf %153, %151 : vector<8x128xf32>
    %155 = arith.mulf %145, %94 : vector<8x128xf32>
    %156 = arith.addf %154, %155 : vector<8x128xf32>
    %c0_66 = arith.constant 0 : index
    %c0_67 = arith.constant 0 : index
    %157 = vector.load %arg10[%c0_66, %c0_67] : memref<128x384xf32, #tpu.memory_space<vmem>>, vector<128x384xf32>
    %cst_68 = arith.constant dense<0.000000e+00> : vector<8x384xf32>
    %158 = tpu.matmul %94, %157, %cst_68 {dimension_numbers = #tpu.dot_dimension_numbers<[1], [0], [0], [1], [0, 0, 1, 1], [], []>} : vector<8x128xf32>, vector<128x384xf32>, vector<8x384xf32> -> vector<8x384xf32>
    %159 = arith.addf %158, %32 : vector<8x384xf32>
    %c0_69 = arith.constant 0 : index
    %c0_70 = arith.constant 0 : index
    %160 = vector.load %arg11[%c0_69, %c0_70] : memref<128x384xf32, #tpu.memory_space<vmem>>, vector<128x384xf32>
    %cst_71 = arith.constant dense<0.000000e+00> : vector<8x384xf32>
    %161 = tpu.matmul %26, %160, %cst_71 {dimension_numbers = #tpu.dot_dimension_numbers<[1], [0], [0], [1], [0, 0, 1, 1], [], []>} : vector<8x128xf32>, vector<128x384xf32>, vector<8x384xf32> -> vector<8x384xf32>
    %162 = vector.extract_strided_slice %159 {offsets = [0, 0], sizes = [8, 128], strides = [1, 1]} : vector<8x384xf32> to vector<8x128xf32>
    %163 = vector.extract_strided_slice %161 {offsets = [0, 0], sizes = [8, 128], strides = [1, 1]} : vector<8x384xf32> to vector<8x128xf32>
    %164 = arith.addf %162, %163 : vector<8x128xf32>
    %165 = arith.negf %164 : vector<8x128xf32>
    %166 = math.exp %165 : vector<8x128xf32>
    %cst_72 = arith.constant 1.000000e+00 : f32
    %167 = vector.broadcast %cst_72 : f32 to vector<8x128xf32>
    %168 = arith.addf %167, %166 : vector<8x128xf32>
    %169 = arith.divf %167, %168 : vector<8x128xf32>
    %170 = vector.extract_strided_slice %159 {offsets = [0, 128], sizes = [8, 128], strides = [1, 1]} : vector<8x384xf32> to vector<8x128xf32>
    %171 = vector.extract_strided_slice %161 {offsets = [0, 128], sizes = [8, 128], strides = [1, 1]} : vector<8x384xf32> to vector<8x128xf32>
    %172 = arith.addf %170, %171 : vector<8x128xf32>
    %173 = arith.negf %172 : vector<8x128xf32>
    %174 = math.exp %173 : vector<8x128xf32>
    %cst_73 = arith.constant 1.000000e+00 : f32
    %175 = vector.broadcast %cst_73 : f32 to vector<8x128xf32>
    %176 = arith.addf %175, %174 : vector<8x128xf32>
    %177 = arith.divf %175, %176 : vector<8x128xf32>
    %178 = vector.extract_strided_slice %159 {offsets = [0, 256], sizes = [8, 128], strides = [1, 1]} : vector<8x384xf32> to vector<8x128xf32>
    %179 = vector.extract_strided_slice %161 {offsets = [0, 256], sizes = [8, 128], strides = [1, 1]} : vector<8x384xf32> to vector<8x128xf32>
    %180 = arith.addf %179, %29 : vector<8x128xf32>
    %181 = arith.mulf %169, %180 : vector<8x128xf32>
    %182 = arith.addf %178, %181 : vector<8x128xf32>
    %183 = math.tanh %182 : vector<8x128xf32>
    %cst_74 = arith.constant 1.000000e+00 : f32
    %184 = vector.broadcast %cst_74 : f32 to vector<8x128xf32>
    %185 = arith.subf %184, %177 : vector<8x128xf32>
    %186 = arith.mulf %185, %183 : vector<8x128xf32>
    %187 = arith.mulf %177, %26 : vector<8x128xf32>
    %188 = arith.addf %186, %187 : vector<8x128xf32>
    %c2 = arith.constant 2 : index
    %c0_75 = arith.constant 0 : index
    %c0_76 = arith.constant 0 : index
    %189 = vector.load %arg16[%c2, %c0_75, %c0_76] : memref<8x8x384xf32, #tpu.memory_space<vmem>>, vector<1x8x384xf32>
    %190 = vector.shape_cast %189 : vector<1x8x384xf32> to vector<8x384xf32>
    %c0_77 = arith.constant 0 : index
    %c0_78 = arith.constant 0 : index
    %191 = vector.load %arg3[%c0_77, %c0_78] : memref<128x384xf32, #tpu.memory_space<vmem>>, vector<128x384xf32>
    %cst_79 = arith.constant dense<0.000000e+00> : vector<8x384xf32>
    %192 = tpu.matmul %125, %191, %cst_79 {dimension_numbers = #tpu.dot_dimension_numbers<[1], [0], [0], [1], [0, 0, 1, 1], [], []>} : vector<8x128xf32>, vector<128x384xf32>, vector<8x384xf32> -> vector<8x384xf32>
    %193 = vector.extract_strided_slice %190 {offsets = [0, 0], sizes = [8, 128], strides = [1, 1]} : vector<8x384xf32> to vector<8x128xf32>
    %194 = vector.extract_strided_slice %192 {offsets = [0, 0], sizes = [8, 128], strides = [1, 1]} : vector<8x384xf32> to vector<8x128xf32>
    %195 = arith.addf %193, %194 : vector<8x128xf32>
    %196 = arith.negf %195 : vector<8x128xf32>
    %197 = math.exp %196 : vector<8x128xf32>
    %cst_80 = arith.constant 1.000000e+00 : f32
    %198 = vector.broadcast %cst_80 : f32 to vector<8x128xf32>
    %199 = arith.addf %198, %197 : vector<8x128xf32>
    %200 = arith.divf %198, %199 : vector<8x128xf32>
    %201 = vector.extract_strided_slice %190 {offsets = [0, 128], sizes = [8, 128], strides = [1, 1]} : vector<8x384xf32> to vector<8x128xf32>
    %202 = vector.extract_strided_slice %192 {offsets = [0, 128], sizes = [8, 128], strides = [1, 1]} : vector<8x384xf32> to vector<8x128xf32>
    %203 = arith.addf %201, %202 : vector<8x128xf32>
    %204 = arith.negf %203 : vector<8x128xf32>
    %205 = math.exp %204 : vector<8x128xf32>
    %cst_81 = arith.constant 1.000000e+00 : f32
    %206 = vector.broadcast %cst_81 : f32 to vector<8x128xf32>
    %207 = arith.addf %206, %205 : vector<8x128xf32>
    %208 = arith.divf %206, %207 : vector<8x128xf32>
    %209 = vector.extract_strided_slice %190 {offsets = [0, 256], sizes = [8, 128], strides = [1, 1]} : vector<8x384xf32> to vector<8x128xf32>
    %210 = vector.extract_strided_slice %192 {offsets = [0, 256], sizes = [8, 128], strides = [1, 1]} : vector<8x384xf32> to vector<8x128xf32>
    %211 = arith.addf %210, %21 : vector<8x128xf32>
    %212 = arith.mulf %200, %211 : vector<8x128xf32>
    %213 = arith.addf %209, %212 : vector<8x128xf32>
    %214 = math.tanh %213 : vector<8x128xf32>
    %cst_82 = arith.constant 1.000000e+00 : f32
    %215 = vector.broadcast %cst_82 : f32 to vector<8x128xf32>
    %216 = arith.subf %215, %208 : vector<8x128xf32>
    %217 = arith.mulf %216, %214 : vector<8x128xf32>
    %218 = arith.mulf %208, %125 : vector<8x128xf32>
    %219 = arith.addf %217, %218 : vector<8x128xf32>
    %c2_83 = arith.constant 2 : index
    %c0_84 = arith.constant 0 : index
    %c0_85 = arith.constant 0 : index
    %220 = vector.load %arg17[%c2_83, %c0_84, %c0_85] : memref<16x8x384xf32, #tpu.memory_space<vmem>>, vector<1x8x384xf32>
    %221 = vector.shape_cast %220 : vector<1x8x384xf32> to vector<8x384xf32>
    %c0_86 = arith.constant 0 : index
    %c0_87 = arith.constant 0 : index
    %222 = vector.load %arg7[%c0_86, %c0_87] : memref<128x384xf32, #tpu.memory_space<vmem>>, vector<128x384xf32>
    %cst_88 = arith.constant dense<0.000000e+00> : vector<8x384xf32>
    %223 = tpu.matmul %156, %222, %cst_88 {dimension_numbers = #tpu.dot_dimension_numbers<[1], [0], [0], [1], [0, 0, 1, 1], [], []>} : vector<8x128xf32>, vector<128x384xf32>, vector<8x384xf32> -> vector<8x384xf32>
    %224 = vector.extract_strided_slice %221 {offsets = [0, 0], sizes = [8, 128], strides = [1, 1]} : vector<8x384xf32> to vector<8x128xf32>
    %225 = vector.extract_strided_slice %223 {offsets = [0, 0], sizes = [8, 128], strides = [1, 1]} : vector<8x384xf32> to vector<8x128xf32>
    %226 = arith.addf %224, %225 : vector<8x128xf32>
    %227 = arith.negf %226 : vector<8x128xf32>
    %228 = math.exp %227 : vector<8x128xf32>
    %cst_89 = arith.constant 1.000000e+00 : f32
    %229 = vector.broadcast %cst_89 : f32 to vector<8x128xf32>
    %230 = arith.addf %229, %228 : vector<8x128xf32>
    %231 = arith.divf %229, %230 : vector<8x128xf32>
    %232 = vector.extract_strided_slice %221 {offsets = [0, 128], sizes = [8, 128], strides = [1, 1]} : vector<8x384xf32> to vector<8x128xf32>
    %233 = vector.extract_strided_slice %223 {offsets = [0, 128], sizes = [8, 128], strides = [1, 1]} : vector<8x384xf32> to vector<8x128xf32>
    %234 = arith.addf %232, %233 : vector<8x128xf32>
    %235 = arith.negf %234 : vector<8x128xf32>
    %236 = math.exp %235 : vector<8x128xf32>
    %cst_90 = arith.constant 1.000000e+00 : f32
    %237 = vector.broadcast %cst_90 : f32 to vector<8x128xf32>
    %238 = arith.addf %237, %236 : vector<8x128xf32>
    %239 = arith.divf %237, %238 : vector<8x128xf32>
    %240 = vector.extract_strided_slice %221 {offsets = [0, 256], sizes = [8, 128], strides = [1, 1]} : vector<8x384xf32> to vector<8x128xf32>
    %241 = vector.extract_strided_slice %223 {offsets = [0, 256], sizes = [8, 128], strides = [1, 1]} : vector<8x384xf32> to vector<8x128xf32>
    %242 = arith.addf %241, %25 : vector<8x128xf32>
    %243 = arith.mulf %231, %242 : vector<8x128xf32>
    %244 = arith.addf %240, %243 : vector<8x128xf32>
    %245 = math.tanh %244 : vector<8x128xf32>
    %cst_91 = arith.constant 1.000000e+00 : f32
    %246 = vector.broadcast %cst_91 : f32 to vector<8x128xf32>
    %247 = arith.subf %246, %239 : vector<8x128xf32>
    %248 = arith.mulf %247, %245 : vector<8x128xf32>
    %249 = arith.mulf %239, %156 : vector<8x128xf32>
    %250 = arith.addf %248, %249 : vector<8x128xf32>
    %c0_92 = arith.constant 0 : index
    %c0_93 = arith.constant 0 : index
    %251 = vector.load %arg10[%c0_92, %c0_93] : memref<128x384xf32, #tpu.memory_space<vmem>>, vector<128x384xf32>
    %cst_94 = arith.constant dense<0.000000e+00> : vector<8x384xf32>
    %252 = tpu.matmul %156, %251, %cst_94 {dimension_numbers = #tpu.dot_dimension_numbers<[1], [0], [0], [1], [0, 0, 1, 1], [], []>} : vector<8x128xf32>, vector<128x384xf32>, vector<8x384xf32> -> vector<8x384xf32>
    %253 = arith.addf %252, %32 : vector<8x384xf32>
    %c0_95 = arith.constant 0 : index
    %c0_96 = arith.constant 0 : index
    %254 = vector.load %arg11[%c0_95, %c0_96] : memref<128x384xf32, #tpu.memory_space<vmem>>, vector<128x384xf32>
    %cst_97 = arith.constant dense<0.000000e+00> : vector<8x384xf32>
    %255 = tpu.matmul %188, %254, %cst_97 {dimension_numbers = #tpu.dot_dimension_numbers<[1], [0], [0], [1], [0, 0, 1, 1], [], []>} : vector<8x128xf32>, vector<128x384xf32>, vector<8x384xf32> -> vector<8x384xf32>
    %256 = vector.extract_strided_slice %253 {offsets = [0, 0], sizes = [8, 128], strides = [1, 1]} : vector<8x384xf32> to vector<8x128xf32>
    %257 = vector.extract_strided_slice %255 {offsets = [0, 0], sizes = [8, 128], strides = [1, 1]} : vector<8x384xf32> to vector<8x128xf32>
    %258 = arith.addf %256, %257 : vector<8x128xf32>
    %259 = arith.negf %258 : vector<8x128xf32>
    %260 = math.exp %259 : vector<8x128xf32>
    %cst_98 = arith.constant 1.000000e+00 : f32
    %261 = vector.broadcast %cst_98 : f32 to vector<8x128xf32>
    %262 = arith.addf %261, %260 : vector<8x128xf32>
    %263 = arith.divf %261, %262 : vector<8x128xf32>
    %264 = vector.extract_strided_slice %253 {offsets = [0, 128], sizes = [8, 128], strides = [1, 1]} : vector<8x384xf32> to vector<8x128xf32>
    %265 = vector.extract_strided_slice %255 {offsets = [0, 128], sizes = [8, 128], strides = [1, 1]} : vector<8x384xf32> to vector<8x128xf32>
    %266 = arith.addf %264, %265 : vector<8x128xf32>
    %267 = arith.negf %266 : vector<8x128xf32>
    %268 = math.exp %267 : vector<8x128xf32>
    %cst_99 = arith.constant 1.000000e+00 : f32
    %269 = vector.broadcast %cst_99 : f32 to vector<8x128xf32>
    %270 = arith.addf %269, %268 : vector<8x128xf32>
    %271 = arith.divf %269, %270 : vector<8x128xf32>
    %272 = vector.extract_strided_slice %253 {offsets = [0, 256], sizes = [8, 128], strides = [1, 1]} : vector<8x384xf32> to vector<8x128xf32>
    %273 = vector.extract_strided_slice %255 {offsets = [0, 256], sizes = [8, 128], strides = [1, 1]} : vector<8x384xf32> to vector<8x128xf32>
    %274 = arith.addf %273, %29 : vector<8x128xf32>
    %275 = arith.mulf %263, %274 : vector<8x128xf32>
    %276 = arith.addf %272, %275 : vector<8x128xf32>
    %277 = math.tanh %276 : vector<8x128xf32>
    %cst_100 = arith.constant 1.000000e+00 : f32
    %278 = vector.broadcast %cst_100 : f32 to vector<8x128xf32>
    %279 = arith.subf %278, %271 : vector<8x128xf32>
    %280 = arith.mulf %279, %277 : vector<8x128xf32>
    %281 = arith.mulf %271, %188 : vector<8x128xf32>
    %282 = arith.addf %280, %281 : vector<8x128xf32>
    %c3 = arith.constant 3 : index
    %c0_101 = arith.constant 0 : index
    %c0_102 = arith.constant 0 : index
    %283 = vector.load %arg16[%c3, %c0_101, %c0_102] : memref<8x8x384xf32, #tpu.memory_space<vmem>>, vector<1x8x384xf32>
    %284 = vector.shape_cast %283 : vector<1x8x384xf32> to vector<8x384xf32>
    %c0_103 = arith.constant 0 : index
    %c0_104 = arith.constant 0 : index
    %285 = vector.load %arg3[%c0_103, %c0_104] : memref<128x384xf32, #tpu.memory_space<vmem>>, vector<128x384xf32>
    %cst_105 = arith.constant dense<0.000000e+00> : vector<8x384xf32>
    %286 = tpu.matmul %219, %285, %cst_105 {dimension_numbers = #tpu.dot_dimension_numbers<[1], [0], [0], [1], [0, 0, 1, 1], [], []>} : vector<8x128xf32>, vector<128x384xf32>, vector<8x384xf32> -> vector<8x384xf32>
    %287 = vector.extract_strided_slice %284 {offsets = [0, 0], sizes = [8, 128], strides = [1, 1]} : vector<8x384xf32> to vector<8x128xf32>
    %288 = vector.extract_strided_slice %286 {offsets = [0, 0], sizes = [8, 128], strides = [1, 1]} : vector<8x384xf32> to vector<8x128xf32>
    %289 = arith.addf %287, %288 : vector<8x128xf32>
    %290 = arith.negf %289 : vector<8x128xf32>
    %291 = math.exp %290 : vector<8x128xf32>
    %cst_106 = arith.constant 1.000000e+00 : f32
    %292 = vector.broadcast %cst_106 : f32 to vector<8x128xf32>
    %293 = arith.addf %292, %291 : vector<8x128xf32>
    %294 = arith.divf %292, %293 : vector<8x128xf32>
    %295 = vector.extract_strided_slice %284 {offsets = [0, 128], sizes = [8, 128], strides = [1, 1]} : vector<8x384xf32> to vector<8x128xf32>
    %296 = vector.extract_strided_slice %286 {offsets = [0, 128], sizes = [8, 128], strides = [1, 1]} : vector<8x384xf32> to vector<8x128xf32>
    %297 = arith.addf %295, %296 : vector<8x128xf32>
    %298 = arith.negf %297 : vector<8x128xf32>
    %299 = math.exp %298 : vector<8x128xf32>
    %cst_107 = arith.constant 1.000000e+00 : f32
    %300 = vector.broadcast %cst_107 : f32 to vector<8x128xf32>
    %301 = arith.addf %300, %299 : vector<8x128xf32>
    %302 = arith.divf %300, %301 : vector<8x128xf32>
    %303 = vector.extract_strided_slice %284 {offsets = [0, 256], sizes = [8, 128], strides = [1, 1]} : vector<8x384xf32> to vector<8x128xf32>
    %304 = vector.extract_strided_slice %286 {offsets = [0, 256], sizes = [8, 128], strides = [1, 1]} : vector<8x384xf32> to vector<8x128xf32>
    %305 = arith.addf %304, %21 : vector<8x128xf32>
    %306 = arith.mulf %294, %305 : vector<8x128xf32>
    %307 = arith.addf %303, %306 : vector<8x128xf32>
    %308 = math.tanh %307 : vector<8x128xf32>
    %cst_108 = arith.constant 1.000000e+00 : f32
    %309 = vector.broadcast %cst_108 : f32 to vector<8x128xf32>
    %310 = arith.subf %309, %302 : vector<8x128xf32>
    %311 = arith.mulf %310, %308 : vector<8x128xf32>
    %312 = arith.mulf %302, %219 : vector<8x128xf32>
    %313 = arith.addf %311, %312 : vector<8x128xf32>
    %c3_109 = arith.constant 3 : index
    %c0_110 = arith.constant 0 : index
    %c0_111 = arith.constant 0 : index
    %314 = vector.load %arg17[%c3_109, %c0_110, %c0_111] : memref<16x8x384xf32, #tpu.memory_space<vmem>>, vector<1x8x384xf32>
    %315 = vector.shape_cast %314 : vector<1x8x384xf32> to vector<8x384xf32>
    %c0_112 = arith.constant 0 : index
    %c0_113 = arith.constant 0 : index
    %316 = vector.load %arg7[%c0_112, %c0_113] : memref<128x384xf32, #tpu.memory_space<vmem>>, vector<128x384xf32>
    %cst_114 = arith.constant dense<0.000000e+00> : vector<8x384xf32>
    %317 = tpu.matmul %250, %316, %cst_114 {dimension_numbers = #tpu.dot_dimension_numbers<[1], [0], [0], [1], [0, 0, 1, 1], [], []>} : vector<8x128xf32>, vector<128x384xf32>, vector<8x384xf32> -> vector<8x384xf32>
    %318 = vector.extract_strided_slice %315 {offsets = [0, 0], sizes = [8, 128], strides = [1, 1]} : vector<8x384xf32> to vector<8x128xf32>
    %319 = vector.extract_strided_slice %317 {offsets = [0, 0], sizes = [8, 128], strides = [1, 1]} : vector<8x384xf32> to vector<8x128xf32>
    %320 = arith.addf %318, %319 : vector<8x128xf32>
    %321 = arith.negf %320 : vector<8x128xf32>
    %322 = math.exp %321 : vector<8x128xf32>
    %cst_115 = arith.constant 1.000000e+00 : f32
    %323 = vector.broadcast %cst_115 : f32 to vector<8x128xf32>
    %324 = arith.addf %323, %322 : vector<8x128xf32>
    %325 = arith.divf %323, %324 : vector<8x128xf32>
    %326 = vector.extract_strided_slice %315 {offsets = [0, 128], sizes = [8, 128], strides = [1, 1]} : vector<8x384xf32> to vector<8x128xf32>
    %327 = vector.extract_strided_slice %317 {offsets = [0, 128], sizes = [8, 128], strides = [1, 1]} : vector<8x384xf32> to vector<8x128xf32>
    %328 = arith.addf %326, %327 : vector<8x128xf32>
    %329 = arith.negf %328 : vector<8x128xf32>
    %330 = math.exp %329 : vector<8x128xf32>
    %cst_116 = arith.constant 1.000000e+00 : f32
    %331 = vector.broadcast %cst_116 : f32 to vector<8x128xf32>
    %332 = arith.addf %331, %330 : vector<8x128xf32>
    %333 = arith.divf %331, %332 : vector<8x128xf32>
    %334 = vector.extract_strided_slice %315 {offsets = [0, 256], sizes = [8, 128], strides = [1, 1]} : vector<8x384xf32> to vector<8x128xf32>
    %335 = vector.extract_strided_slice %317 {offsets = [0, 256], sizes = [8, 128], strides = [1, 1]} : vector<8x384xf32> to vector<8x128xf32>
    %336 = arith.addf %335, %25 : vector<8x128xf32>
    %337 = arith.mulf %325, %336 : vector<8x128xf32>
    %338 = arith.addf %334, %337 : vector<8x128xf32>
    %339 = math.tanh %338 : vector<8x128xf32>
    %cst_117 = arith.constant 1.000000e+00 : f32
    %340 = vector.broadcast %cst_117 : f32 to vector<8x128xf32>
    %341 = arith.subf %340, %333 : vector<8x128xf32>
    %342 = arith.mulf %341, %339 : vector<8x128xf32>
    %343 = arith.mulf %333, %250 : vector<8x128xf32>
    %344 = arith.addf %342, %343 : vector<8x128xf32>
    %c0_118 = arith.constant 0 : index
    %c0_119 = arith.constant 0 : index
    %345 = vector.load %arg10[%c0_118, %c0_119] : memref<128x384xf32, #tpu.memory_space<vmem>>, vector<128x384xf32>
    %cst_120 = arith.constant dense<0.000000e+00> : vector<8x384xf32>
    %346 = tpu.matmul %250, %345, %cst_120 {dimension_numbers = #tpu.dot_dimension_numbers<[1], [0], [0], [1], [0, 0, 1, 1], [], []>} : vector<8x128xf32>, vector<128x384xf32>, vector<8x384xf32> -> vector<8x384xf32>
    %347 = arith.addf %346, %32 : vector<8x384xf32>
    %c0_121 = arith.constant 0 : index
    %c0_122 = arith.constant 0 : index
    %348 = vector.load %arg11[%c0_121, %c0_122] : memref<128x384xf32, #tpu.memory_space<vmem>>, vector<128x384xf32>
    %cst_123 = arith.constant dense<0.000000e+00> : vector<8x384xf32>
    %349 = tpu.matmul %282, %348, %cst_123 {dimension_numbers = #tpu.dot_dimension_numbers<[1], [0], [0], [1], [0, 0, 1, 1], [], []>} : vector<8x128xf32>, vector<128x384xf32>, vector<8x384xf32> -> vector<8x384xf32>
    %350 = vector.extract_strided_slice %347 {offsets = [0, 0], sizes = [8, 128], strides = [1, 1]} : vector<8x384xf32> to vector<8x128xf32>
    %351 = vector.extract_strided_slice %349 {offsets = [0, 0], sizes = [8, 128], strides = [1, 1]} : vector<8x384xf32> to vector<8x128xf32>
    %352 = arith.addf %350, %351 : vector<8x128xf32>
    %353 = arith.negf %352 : vector<8x128xf32>
    %354 = math.exp %353 : vector<8x128xf32>
    %cst_124 = arith.constant 1.000000e+00 : f32
    %355 = vector.broadcast %cst_124 : f32 to vector<8x128xf32>
    %356 = arith.addf %355, %354 : vector<8x128xf32>
    %357 = arith.divf %355, %356 : vector<8x128xf32>
    %358 = vector.extract_strided_slice %347 {offsets = [0, 128], sizes = [8, 128], strides = [1, 1]} : vector<8x384xf32> to vector<8x128xf32>
    %359 = vector.extract_strided_slice %349 {offsets = [0, 128], sizes = [8, 128], strides = [1, 1]} : vector<8x384xf32> to vector<8x128xf32>
    %360 = arith.addf %358, %359 : vector<8x128xf32>
    %361 = arith.negf %360 : vector<8x128xf32>
    %362 = math.exp %361 : vector<8x128xf32>
    %cst_125 = arith.constant 1.000000e+00 : f32
    %363 = vector.broadcast %cst_125 : f32 to vector<8x128xf32>
    %364 = arith.addf %363, %362 : vector<8x128xf32>
    %365 = arith.divf %363, %364 : vector<8x128xf32>
    %366 = vector.extract_strided_slice %347 {offsets = [0, 256], sizes = [8, 128], strides = [1, 1]} : vector<8x384xf32> to vector<8x128xf32>
    %367 = vector.extract_strided_slice %349 {offsets = [0, 256], sizes = [8, 128], strides = [1, 1]} : vector<8x384xf32> to vector<8x128xf32>
    %368 = arith.addf %367, %29 : vector<8x128xf32>
    %369 = arith.mulf %357, %368 : vector<8x128xf32>
    %370 = arith.addf %366, %369 : vector<8x128xf32>
    %371 = math.tanh %370 : vector<8x128xf32>
    %cst_126 = arith.constant 1.000000e+00 : f32
    %372 = vector.broadcast %cst_126 : f32 to vector<8x128xf32>
    %373 = arith.subf %372, %365 : vector<8x128xf32>
    %374 = arith.mulf %373, %371 : vector<8x128xf32>
    %375 = arith.mulf %365, %282 : vector<8x128xf32>
    %376 = arith.addf %374, %375 : vector<8x128xf32>
    %c4 = arith.constant 4 : index
    %c0_127 = arith.constant 0 : index
    %c0_128 = arith.constant 0 : index
    %377 = vector.load %arg16[%c4, %c0_127, %c0_128] : memref<8x8x384xf32, #tpu.memory_space<vmem>>, vector<1x8x384xf32>
    %378 = vector.shape_cast %377 : vector<1x8x384xf32> to vector<8x384xf32>
    %c0_129 = arith.constant 0 : index
    %c0_130 = arith.constant 0 : index
    %379 = vector.load %arg3[%c0_129, %c0_130] : memref<128x384xf32, #tpu.memory_space<vmem>>, vector<128x384xf32>
    %cst_131 = arith.constant dense<0.000000e+00> : vector<8x384xf32>
    %380 = tpu.matmul %313, %379, %cst_131 {dimension_numbers = #tpu.dot_dimension_numbers<[1], [0], [0], [1], [0, 0, 1, 1], [], []>} : vector<8x128xf32>, vector<128x384xf32>, vector<8x384xf32> -> vector<8x384xf32>
    %381 = vector.extract_strided_slice %378 {offsets = [0, 0], sizes = [8, 128], strides = [1, 1]} : vector<8x384xf32> to vector<8x128xf32>
    %382 = vector.extract_strided_slice %380 {offsets = [0, 0], sizes = [8, 128], strides = [1, 1]} : vector<8x384xf32> to vector<8x128xf32>
    %383 = arith.addf %381, %382 : vector<8x128xf32>
    %384 = arith.negf %383 : vector<8x128xf32>
    %385 = math.exp %384 : vector<8x128xf32>
    %cst_132 = arith.constant 1.000000e+00 : f32
    %386 = vector.broadcast %cst_132 : f32 to vector<8x128xf32>
    %387 = arith.addf %386, %385 : vector<8x128xf32>
    %388 = arith.divf %386, %387 : vector<8x128xf32>
    %389 = vector.extract_strided_slice %378 {offsets = [0, 128], sizes = [8, 128], strides = [1, 1]} : vector<8x384xf32> to vector<8x128xf32>
    %390 = vector.extract_strided_slice %380 {offsets = [0, 128], sizes = [8, 128], strides = [1, 1]} : vector<8x384xf32> to vector<8x128xf32>
    %391 = arith.addf %389, %390 : vector<8x128xf32>
    %392 = arith.negf %391 : vector<8x128xf32>
    %393 = math.exp %392 : vector<8x128xf32>
    %cst_133 = arith.constant 1.000000e+00 : f32
    %394 = vector.broadcast %cst_133 : f32 to vector<8x128xf32>
    %395 = arith.addf %394, %393 : vector<8x128xf32>
    %396 = arith.divf %394, %395 : vector<8x128xf32>
    %397 = vector.extract_strided_slice %378 {offsets = [0, 256], sizes = [8, 128], strides = [1, 1]} : vector<8x384xf32> to vector<8x128xf32>
    %398 = vector.extract_strided_slice %380 {offsets = [0, 256], sizes = [8, 128], strides = [1, 1]} : vector<8x384xf32> to vector<8x128xf32>
    %399 = arith.addf %398, %21 : vector<8x128xf32>
    %400 = arith.mulf %388, %399 : vector<8x128xf32>
    %401 = arith.addf %397, %400 : vector<8x128xf32>
    %402 = math.tanh %401 : vector<8x128xf32>
    %cst_134 = arith.constant 1.000000e+00 : f32
    %403 = vector.broadcast %cst_134 : f32 to vector<8x128xf32>
    %404 = arith.subf %403, %396 : vector<8x128xf32>
    %405 = arith.mulf %404, %402 : vector<8x128xf32>
    %406 = arith.mulf %396, %313 : vector<8x128xf32>
    %407 = arith.addf %405, %406 : vector<8x128xf32>
    %c4_135 = arith.constant 4 : index
    %c0_136 = arith.constant 0 : index
    %c0_137 = arith.constant 0 : index
    %408 = vector.load %arg17[%c4_135, %c0_136, %c0_137] : memref<16x8x384xf32, #tpu.memory_space<vmem>>, vector<1x8x384xf32>
    %409 = vector.shape_cast %408 : vector<1x8x384xf32> to vector<8x384xf32>
    %c0_138 = arith.constant 0 : index
    %c0_139 = arith.constant 0 : index
    %410 = vector.load %arg7[%c0_138, %c0_139] : memref<128x384xf32, #tpu.memory_space<vmem>>, vector<128x384xf32>
    %cst_140 = arith.constant dense<0.000000e+00> : vector<8x384xf32>
    %411 = tpu.matmul %344, %410, %cst_140 {dimension_numbers = #tpu.dot_dimension_numbers<[1], [0], [0], [1], [0, 0, 1, 1], [], []>} : vector<8x128xf32>, vector<128x384xf32>, vector<8x384xf32> -> vector<8x384xf32>
    %412 = vector.extract_strided_slice %409 {offsets = [0, 0], sizes = [8, 128], strides = [1, 1]} : vector<8x384xf32> to vector<8x128xf32>
    %413 = vector.extract_strided_slice %411 {offsets = [0, 0], sizes = [8, 128], strides = [1, 1]} : vector<8x384xf32> to vector<8x128xf32>
    %414 = arith.addf %412, %413 : vector<8x128xf32>
    %415 = arith.negf %414 : vector<8x128xf32>
    %416 = math.exp %415 : vector<8x128xf32>
    %cst_141 = arith.constant 1.000000e+00 : f32
    %417 = vector.broadcast %cst_141 : f32 to vector<8x128xf32>
    %418 = arith.addf %417, %416 : vector<8x128xf32>
    %419 = arith.divf %417, %418 : vector<8x128xf32>
    %420 = vector.extract_strided_slice %409 {offsets = [0, 128], sizes = [8, 128], strides = [1, 1]} : vector<8x384xf32> to vector<8x128xf32>
    %421 = vector.extract_strided_slice %411 {offsets = [0, 128], sizes = [8, 128], strides = [1, 1]} : vector<8x384xf32> to vector<8x128xf32>
    %422 = arith.addf %420, %421 : vector<8x128xf32>
    %423 = arith.negf %422 : vector<8x128xf32>
    %424 = math.exp %423 : vector<8x128xf32>
    %cst_142 = arith.constant 1.000000e+00 : f32
    %425 = vector.broadcast %cst_142 : f32 to vector<8x128xf32>
    %426 = arith.addf %425, %424 : vector<8x128xf32>
    %427 = arith.divf %425, %426 : vector<8x128xf32>
    %428 = vector.extract_strided_slice %409 {offsets = [0, 256], sizes = [8, 128], strides = [1, 1]} : vector<8x384xf32> to vector<8x128xf32>
    %429 = vector.extract_strided_slice %411 {offsets = [0, 256], sizes = [8, 128], strides = [1, 1]} : vector<8x384xf32> to vector<8x128xf32>
    %430 = arith.addf %429, %25 : vector<8x128xf32>
    %431 = arith.mulf %419, %430 : vector<8x128xf32>
    %432 = arith.addf %428, %431 : vector<8x128xf32>
    %433 = math.tanh %432 : vector<8x128xf32>
    %cst_143 = arith.constant 1.000000e+00 : f32
    %434 = vector.broadcast %cst_143 : f32 to vector<8x128xf32>
    %435 = arith.subf %434, %427 : vector<8x128xf32>
    %436 = arith.mulf %435, %433 : vector<8x128xf32>
    %437 = arith.mulf %427, %344 : vector<8x128xf32>
    %438 = arith.addf %436, %437 : vector<8x128xf32>
    %c0_144 = arith.constant 0 : index
    %c0_145 = arith.constant 0 : index
    %439 = vector.load %arg10[%c0_144, %c0_145] : memref<128x384xf32, #tpu.memory_space<vmem>>, vector<128x384xf32>
    %cst_146 = arith.constant dense<0.000000e+00> : vector<8x384xf32>
    %440 = tpu.matmul %344, %439, %cst_146 {dimension_numbers = #tpu.dot_dimension_numbers<[1], [0], [0], [1], [0, 0, 1, 1], [], []>} : vector<8x128xf32>, vector<128x384xf32>, vector<8x384xf32> -> vector<8x384xf32>
    %441 = arith.addf %440, %32 : vector<8x384xf32>
    %c0_147 = arith.constant 0 : index
    %c0_148 = arith.constant 0 : index
    %442 = vector.load %arg11[%c0_147, %c0_148] : memref<128x384xf32, #tpu.memory_space<vmem>>, vector<128x384xf32>
    %cst_149 = arith.constant dense<0.000000e+00> : vector<8x384xf32>
    %443 = tpu.matmul %376, %442, %cst_149 {dimension_numbers = #tpu.dot_dimension_numbers<[1], [0], [0], [1], [0, 0, 1, 1], [], []>} : vector<8x128xf32>, vector<128x384xf32>, vector<8x384xf32> -> vector<8x384xf32>
    %444 = vector.extract_strided_slice %441 {offsets = [0, 0], sizes = [8, 128], strides = [1, 1]} : vector<8x384xf32> to vector<8x128xf32>
    %445 = vector.extract_strided_slice %443 {offsets = [0, 0], sizes = [8, 128], strides = [1, 1]} : vector<8x384xf32> to vector<8x128xf32>
    %446 = arith.addf %444, %445 : vector<8x128xf32>
    %447 = arith.negf %446 : vector<8x128xf32>
    %448 = math.exp %447 : vector<8x128xf32>
    %cst_150 = arith.constant 1.000000e+00 : f32
    %449 = vector.broadcast %cst_150 : f32 to vector<8x128xf32>
    %450 = arith.addf %449, %448 : vector<8x128xf32>
    %451 = arith.divf %449, %450 : vector<8x128xf32>
    %452 = vector.extract_strided_slice %441 {offsets = [0, 128], sizes = [8, 128], strides = [1, 1]} : vector<8x384xf32> to vector<8x128xf32>
    %453 = vector.extract_strided_slice %443 {offsets = [0, 128], sizes = [8, 128], strides = [1, 1]} : vector<8x384xf32> to vector<8x128xf32>
    %454 = arith.addf %452, %453 : vector<8x128xf32>
    %455 = arith.negf %454 : vector<8x128xf32>
    %456 = math.exp %455 : vector<8x128xf32>
    %cst_151 = arith.constant 1.000000e+00 : f32
    %457 = vector.broadcast %cst_151 : f32 to vector<8x128xf32>
    %458 = arith.addf %457, %456 : vector<8x128xf32>
    %459 = arith.divf %457, %458 : vector<8x128xf32>
    %460 = vector.extract_strided_slice %441 {offsets = [0, 256], sizes = [8, 128], strides = [1, 1]} : vector<8x384xf32> to vector<8x128xf32>
    %461 = vector.extract_strided_slice %443 {offsets = [0, 256], sizes = [8, 128], strides = [1, 1]} : vector<8x384xf32> to vector<8x128xf32>
    %462 = arith.addf %461, %29 : vector<8x128xf32>
    %463 = arith.mulf %451, %462 : vector<8x128xf32>
    %464 = arith.addf %460, %463 : vector<8x128xf32>
    %465 = math.tanh %464 : vector<8x128xf32>
    %cst_152 = arith.constant 1.000000e+00 : f32
    %466 = vector.broadcast %cst_152 : f32 to vector<8x128xf32>
    %467 = arith.subf %466, %459 : vector<8x128xf32>
    %468 = arith.mulf %467, %465 : vector<8x128xf32>
    %469 = arith.mulf %459, %376 : vector<8x128xf32>
    %470 = arith.addf %468, %469 : vector<8x128xf32>
    %c5 = arith.constant 5 : index
    %c0_153 = arith.constant 0 : index
    %c0_154 = arith.constant 0 : index
    %471 = vector.load %arg16[%c5, %c0_153, %c0_154] : memref<8x8x384xf32, #tpu.memory_space<vmem>>, vector<1x8x384xf32>
    %472 = vector.shape_cast %471 : vector<1x8x384xf32> to vector<8x384xf32>
    %c0_155 = arith.constant 0 : index
    %c0_156 = arith.constant 0 : index
    %473 = vector.load %arg3[%c0_155, %c0_156] : memref<128x384xf32, #tpu.memory_space<vmem>>, vector<128x384xf32>
    %cst_157 = arith.constant dense<0.000000e+00> : vector<8x384xf32>
    %474 = tpu.matmul %407, %473, %cst_157 {dimension_numbers = #tpu.dot_dimension_numbers<[1], [0], [0], [1], [0, 0, 1, 1], [], []>} : vector<8x128xf32>, vector<128x384xf32>, vector<8x384xf32> -> vector<8x384xf32>
    %475 = vector.extract_strided_slice %472 {offsets = [0, 0], sizes = [8, 128], strides = [1, 1]} : vector<8x384xf32> to vector<8x128xf32>
    %476 = vector.extract_strided_slice %474 {offsets = [0, 0], sizes = [8, 128], strides = [1, 1]} : vector<8x384xf32> to vector<8x128xf32>
    %477 = arith.addf %475, %476 : vector<8x128xf32>
    %478 = arith.negf %477 : vector<8x128xf32>
    %479 = math.exp %478 : vector<8x128xf32>
    %cst_158 = arith.constant 1.000000e+00 : f32
    %480 = vector.broadcast %cst_158 : f32 to vector<8x128xf32>
    %481 = arith.addf %480, %479 : vector<8x128xf32>
    %482 = arith.divf %480, %481 : vector<8x128xf32>
    %483 = vector.extract_strided_slice %472 {offsets = [0, 128], sizes = [8, 128], strides = [1, 1]} : vector<8x384xf32> to vector<8x128xf32>
    %484 = vector.extract_strided_slice %474 {offsets = [0, 128], sizes = [8, 128], strides = [1, 1]} : vector<8x384xf32> to vector<8x128xf32>
    %485 = arith.addf %483, %484 : vector<8x128xf32>
    %486 = arith.negf %485 : vector<8x128xf32>
    %487 = math.exp %486 : vector<8x128xf32>
    %cst_159 = arith.constant 1.000000e+00 : f32
    %488 = vector.broadcast %cst_159 : f32 to vector<8x128xf32>
    %489 = arith.addf %488, %487 : vector<8x128xf32>
    %490 = arith.divf %488, %489 : vector<8x128xf32>
    %491 = vector.extract_strided_slice %472 {offsets = [0, 256], sizes = [8, 128], strides = [1, 1]} : vector<8x384xf32> to vector<8x128xf32>
    %492 = vector.extract_strided_slice %474 {offsets = [0, 256], sizes = [8, 128], strides = [1, 1]} : vector<8x384xf32> to vector<8x128xf32>
    %493 = arith.addf %492, %21 : vector<8x128xf32>
    %494 = arith.mulf %482, %493 : vector<8x128xf32>
    %495 = arith.addf %491, %494 : vector<8x128xf32>
    %496 = math.tanh %495 : vector<8x128xf32>
    %cst_160 = arith.constant 1.000000e+00 : f32
    %497 = vector.broadcast %cst_160 : f32 to vector<8x128xf32>
    %498 = arith.subf %497, %490 : vector<8x128xf32>
    %499 = arith.mulf %498, %496 : vector<8x128xf32>
    %500 = arith.mulf %490, %407 : vector<8x128xf32>
    %501 = arith.addf %499, %500 : vector<8x128xf32>
    %c5_161 = arith.constant 5 : index
    %c0_162 = arith.constant 0 : index
    %c0_163 = arith.constant 0 : index
    %502 = vector.load %arg17[%c5_161, %c0_162, %c0_163] : memref<16x8x384xf32, #tpu.memory_space<vmem>>, vector<1x8x384xf32>
    %503 = vector.shape_cast %502 : vector<1x8x384xf32> to vector<8x384xf32>
    %c0_164 = arith.constant 0 : index
    %c0_165 = arith.constant 0 : index
    %504 = vector.load %arg7[%c0_164, %c0_165] : memref<128x384xf32, #tpu.memory_space<vmem>>, vector<128x384xf32>
    %cst_166 = arith.constant dense<0.000000e+00> : vector<8x384xf32>
    %505 = tpu.matmul %438, %504, %cst_166 {dimension_numbers = #tpu.dot_dimension_numbers<[1], [0], [0], [1], [0, 0, 1, 1], [], []>} : vector<8x128xf32>, vector<128x384xf32>, vector<8x384xf32> -> vector<8x384xf32>
    %506 = vector.extract_strided_slice %503 {offsets = [0, 0], sizes = [8, 128], strides = [1, 1]} : vector<8x384xf32> to vector<8x128xf32>
    %507 = vector.extract_strided_slice %505 {offsets = [0, 0], sizes = [8, 128], strides = [1, 1]} : vector<8x384xf32> to vector<8x128xf32>
    %508 = arith.addf %506, %507 : vector<8x128xf32>
    %509 = arith.negf %508 : vector<8x128xf32>
    %510 = math.exp %509 : vector<8x128xf32>
    %cst_167 = arith.constant 1.000000e+00 : f32
    %511 = vector.broadcast %cst_167 : f32 to vector<8x128xf32>
    %512 = arith.addf %511, %510 : vector<8x128xf32>
    %513 = arith.divf %511, %512 : vector<8x128xf32>
    %514 = vector.extract_strided_slice %503 {offsets = [0, 128], sizes = [8, 128], strides = [1, 1]} : vector<8x384xf32> to vector<8x128xf32>
    %515 = vector.extract_strided_slice %505 {offsets = [0, 128], sizes = [8, 128], strides = [1, 1]} : vector<8x384xf32> to vector<8x128xf32>
    %516 = arith.addf %514, %515 : vector<8x128xf32>
    %517 = arith.negf %516 : vector<8x128xf32>
    %518 = math.exp %517 : vector<8x128xf32>
    %cst_168 = arith.constant 1.000000e+00 : f32
    %519 = vector.broadcast %cst_168 : f32 to vector<8x128xf32>
    %520 = arith.addf %519, %518 : vector<8x128xf32>
    %521 = arith.divf %519, %520 : vector<8x128xf32>
    %522 = vector.extract_strided_slice %503 {offsets = [0, 256], sizes = [8, 128], strides = [1, 1]} : vector<8x384xf32> to vector<8x128xf32>
    %523 = vector.extract_strided_slice %505 {offsets = [0, 256], sizes = [8, 128], strides = [1, 1]} : vector<8x384xf32> to vector<8x128xf32>
    %524 = arith.addf %523, %25 : vector<8x128xf32>
    %525 = arith.mulf %513, %524 : vector<8x128xf32>
    %526 = arith.addf %522, %525 : vector<8x128xf32>
    %527 = math.tanh %526 : vector<8x128xf32>
    %cst_169 = arith.constant 1.000000e+00 : f32
    %528 = vector.broadcast %cst_169 : f32 to vector<8x128xf32>
    %529 = arith.subf %528, %521 : vector<8x128xf32>
    %530 = arith.mulf %529, %527 : vector<8x128xf32>
    %531 = arith.mulf %521, %438 : vector<8x128xf32>
    %532 = arith.addf %530, %531 : vector<8x128xf32>
    %c0_170 = arith.constant 0 : index
    %c0_171 = arith.constant 0 : index
    %533 = vector.load %arg10[%c0_170, %c0_171] : memref<128x384xf32, #tpu.memory_space<vmem>>, vector<128x384xf32>
    %cst_172 = arith.constant dense<0.000000e+00> : vector<8x384xf32>
    %534 = tpu.matmul %438, %533, %cst_172 {dimension_numbers = #tpu.dot_dimension_numbers<[1], [0], [0], [1], [0, 0, 1, 1], [], []>} : vector<8x128xf32>, vector<128x384xf32>, vector<8x384xf32> -> vector<8x384xf32>
    %535 = arith.addf %534, %32 : vector<8x384xf32>
    %c0_173 = arith.constant 0 : index
    %c0_174 = arith.constant 0 : index
    %536 = vector.load %arg11[%c0_173, %c0_174] : memref<128x384xf32, #tpu.memory_space<vmem>>, vector<128x384xf32>
    %cst_175 = arith.constant dense<0.000000e+00> : vector<8x384xf32>
    %537 = tpu.matmul %470, %536, %cst_175 {dimension_numbers = #tpu.dot_dimension_numbers<[1], [0], [0], [1], [0, 0, 1, 1], [], []>} : vector<8x128xf32>, vector<128x384xf32>, vector<8x384xf32> -> vector<8x384xf32>
    %538 = vector.extract_strided_slice %535 {offsets = [0, 0], sizes = [8, 128], strides = [1, 1]} : vector<8x384xf32> to vector<8x128xf32>
    %539 = vector.extract_strided_slice %537 {offsets = [0, 0], sizes = [8, 128], strides = [1, 1]} : vector<8x384xf32> to vector<8x128xf32>
    %540 = arith.addf %538, %539 : vector<8x128xf32>
    %541 = arith.negf %540 : vector<8x128xf32>
    %542 = math.exp %541 : vector<8x128xf32>
    %cst_176 = arith.constant 1.000000e+00 : f32
    %543 = vector.broadcast %cst_176 : f32 to vector<8x128xf32>
    %544 = arith.addf %543, %542 : vector<8x128xf32>
    %545 = arith.divf %543, %544 : vector<8x128xf32>
    %546 = vector.extract_strided_slice %535 {offsets = [0, 128], sizes = [8, 128], strides = [1, 1]} : vector<8x384xf32> to vector<8x128xf32>
    %547 = vector.extract_strided_slice %537 {offsets = [0, 128], sizes = [8, 128], strides = [1, 1]} : vector<8x384xf32> to vector<8x128xf32>
    %548 = arith.addf %546, %547 : vector<8x128xf32>
    %549 = arith.negf %548 : vector<8x128xf32>
    %550 = math.exp %549 : vector<8x128xf32>
    %cst_177 = arith.constant 1.000000e+00 : f32
    %551 = vector.broadcast %cst_177 : f32 to vector<8x128xf32>
    %552 = arith.addf %551, %550 : vector<8x128xf32>
    %553 = arith.divf %551, %552 : vector<8x128xf32>
    %554 = vector.extract_strided_slice %535 {offsets = [0, 256], sizes = [8, 128], strides = [1, 1]} : vector<8x384xf32> to vector<8x128xf32>
    %555 = vector.extract_strided_slice %537 {offsets = [0, 256], sizes = [8, 128], strides = [1, 1]} : vector<8x384xf32> to vector<8x128xf32>
    %556 = arith.addf %555, %29 : vector<8x128xf32>
    %557 = arith.mulf %545, %556 : vector<8x128xf32>
    %558 = arith.addf %554, %557 : vector<8x128xf32>
    %559 = math.tanh %558 : vector<8x128xf32>
    %cst_178 = arith.constant 1.000000e+00 : f32
    %560 = vector.broadcast %cst_178 : f32 to vector<8x128xf32>
    %561 = arith.subf %560, %553 : vector<8x128xf32>
    %562 = arith.mulf %561, %559 : vector<8x128xf32>
    %563 = arith.mulf %553, %470 : vector<8x128xf32>
    %564 = arith.addf %562, %563 : vector<8x128xf32>
    %c6 = arith.constant 6 : index
    %c0_179 = arith.constant 0 : index
    %c0_180 = arith.constant 0 : index
    %565 = vector.load %arg16[%c6, %c0_179, %c0_180] : memref<8x8x384xf32, #tpu.memory_space<vmem>>, vector<1x8x384xf32>
    %566 = vector.shape_cast %565 : vector<1x8x384xf32> to vector<8x384xf32>
    %c0_181 = arith.constant 0 : index
    %c0_182 = arith.constant 0 : index
    %567 = vector.load %arg3[%c0_181, %c0_182] : memref<128x384xf32, #tpu.memory_space<vmem>>, vector<128x384xf32>
    %cst_183 = arith.constant dense<0.000000e+00> : vector<8x384xf32>
    %568 = tpu.matmul %501, %567, %cst_183 {dimension_numbers = #tpu.dot_dimension_numbers<[1], [0], [0], [1], [0, 0, 1, 1], [], []>} : vector<8x128xf32>, vector<128x384xf32>, vector<8x384xf32> -> vector<8x384xf32>
    %569 = vector.extract_strided_slice %566 {offsets = [0, 0], sizes = [8, 128], strides = [1, 1]} : vector<8x384xf32> to vector<8x128xf32>
    %570 = vector.extract_strided_slice %568 {offsets = [0, 0], sizes = [8, 128], strides = [1, 1]} : vector<8x384xf32> to vector<8x128xf32>
    %571 = arith.addf %569, %570 : vector<8x128xf32>
    %572 = arith.negf %571 : vector<8x128xf32>
    %573 = math.exp %572 : vector<8x128xf32>
    %cst_184 = arith.constant 1.000000e+00 : f32
    %574 = vector.broadcast %cst_184 : f32 to vector<8x128xf32>
    %575 = arith.addf %574, %573 : vector<8x128xf32>
    %576 = arith.divf %574, %575 : vector<8x128xf32>
    %577 = vector.extract_strided_slice %566 {offsets = [0, 128], sizes = [8, 128], strides = [1, 1]} : vector<8x384xf32> to vector<8x128xf32>
    %578 = vector.extract_strided_slice %568 {offsets = [0, 128], sizes = [8, 128], strides = [1, 1]} : vector<8x384xf32> to vector<8x128xf32>
    %579 = arith.addf %577, %578 : vector<8x128xf32>
    %580 = arith.negf %579 : vector<8x128xf32>
    %581 = math.exp %580 : vector<8x128xf32>
    %cst_185 = arith.constant 1.000000e+00 : f32
    %582 = vector.broadcast %cst_185 : f32 to vector<8x128xf32>
    %583 = arith.addf %582, %581 : vector<8x128xf32>
    %584 = arith.divf %582, %583 : vector<8x128xf32>
    %585 = vector.extract_strided_slice %566 {offsets = [0, 256], sizes = [8, 128], strides = [1, 1]} : vector<8x384xf32> to vector<8x128xf32>
    %586 = vector.extract_strided_slice %568 {offsets = [0, 256], sizes = [8, 128], strides = [1, 1]} : vector<8x384xf32> to vector<8x128xf32>
    %587 = arith.addf %586, %21 : vector<8x128xf32>
    %588 = arith.mulf %576, %587 : vector<8x128xf32>
    %589 = arith.addf %585, %588 : vector<8x128xf32>
    %590 = math.tanh %589 : vector<8x128xf32>
    %cst_186 = arith.constant 1.000000e+00 : f32
    %591 = vector.broadcast %cst_186 : f32 to vector<8x128xf32>
    %592 = arith.subf %591, %584 : vector<8x128xf32>
    %593 = arith.mulf %592, %590 : vector<8x128xf32>
    %594 = arith.mulf %584, %501 : vector<8x128xf32>
    %595 = arith.addf %593, %594 : vector<8x128xf32>
    %c6_187 = arith.constant 6 : index
    %c0_188 = arith.constant 0 : index
    %c0_189 = arith.constant 0 : index
    %596 = vector.load %arg17[%c6_187, %c0_188, %c0_189] : memref<16x8x384xf32, #tpu.memory_space<vmem>>, vector<1x8x384xf32>
    %597 = vector.shape_cast %596 : vector<1x8x384xf32> to vector<8x384xf32>
    %c0_190 = arith.constant 0 : index
    %c0_191 = arith.constant 0 : index
    %598 = vector.load %arg7[%c0_190, %c0_191] : memref<128x384xf32, #tpu.memory_space<vmem>>, vector<128x384xf32>
    %cst_192 = arith.constant dense<0.000000e+00> : vector<8x384xf32>
    %599 = tpu.matmul %532, %598, %cst_192 {dimension_numbers = #tpu.dot_dimension_numbers<[1], [0], [0], [1], [0, 0, 1, 1], [], []>} : vector<8x128xf32>, vector<128x384xf32>, vector<8x384xf32> -> vector<8x384xf32>
    %600 = vector.extract_strided_slice %597 {offsets = [0, 0], sizes = [8, 128], strides = [1, 1]} : vector<8x384xf32> to vector<8x128xf32>
    %601 = vector.extract_strided_slice %599 {offsets = [0, 0], sizes = [8, 128], strides = [1, 1]} : vector<8x384xf32> to vector<8x128xf32>
    %602 = arith.addf %600, %601 : vector<8x128xf32>
    %603 = arith.negf %602 : vector<8x128xf32>
    %604 = math.exp %603 : vector<8x128xf32>
    %cst_193 = arith.constant 1.000000e+00 : f32
    %605 = vector.broadcast %cst_193 : f32 to vector<8x128xf32>
    %606 = arith.addf %605, %604 : vector<8x128xf32>
    %607 = arith.divf %605, %606 : vector<8x128xf32>
    %608 = vector.extract_strided_slice %597 {offsets = [0, 128], sizes = [8, 128], strides = [1, 1]} : vector<8x384xf32> to vector<8x128xf32>
    %609 = vector.extract_strided_slice %599 {offsets = [0, 128], sizes = [8, 128], strides = [1, 1]} : vector<8x384xf32> to vector<8x128xf32>
    %610 = arith.addf %608, %609 : vector<8x128xf32>
    %611 = arith.negf %610 : vector<8x128xf32>
    %612 = math.exp %611 : vector<8x128xf32>
    %cst_194 = arith.constant 1.000000e+00 : f32
    %613 = vector.broadcast %cst_194 : f32 to vector<8x128xf32>
    %614 = arith.addf %613, %612 : vector<8x128xf32>
    %615 = arith.divf %613, %614 : vector<8x128xf32>
    %616 = vector.extract_strided_slice %597 {offsets = [0, 256], sizes = [8, 128], strides = [1, 1]} : vector<8x384xf32> to vector<8x128xf32>
    %617 = vector.extract_strided_slice %599 {offsets = [0, 256], sizes = [8, 128], strides = [1, 1]} : vector<8x384xf32> to vector<8x128xf32>
    %618 = arith.addf %617, %25 : vector<8x128xf32>
    %619 = arith.mulf %607, %618 : vector<8x128xf32>
    %620 = arith.addf %616, %619 : vector<8x128xf32>
    %621 = math.tanh %620 : vector<8x128xf32>
    %cst_195 = arith.constant 1.000000e+00 : f32
    %622 = vector.broadcast %cst_195 : f32 to vector<8x128xf32>
    %623 = arith.subf %622, %615 : vector<8x128xf32>
    %624 = arith.mulf %623, %621 : vector<8x128xf32>
    %625 = arith.mulf %615, %532 : vector<8x128xf32>
    %626 = arith.addf %624, %625 : vector<8x128xf32>
    %c0_196 = arith.constant 0 : index
    %c0_197 = arith.constant 0 : index
    %627 = vector.load %arg10[%c0_196, %c0_197] : memref<128x384xf32, #tpu.memory_space<vmem>>, vector<128x384xf32>
    %cst_198 = arith.constant dense<0.000000e+00> : vector<8x384xf32>
    %628 = tpu.matmul %532, %627, %cst_198 {dimension_numbers = #tpu.dot_dimension_numbers<[1], [0], [0], [1], [0, 0, 1, 1], [], []>} : vector<8x128xf32>, vector<128x384xf32>, vector<8x384xf32> -> vector<8x384xf32>
    %629 = arith.addf %628, %32 : vector<8x384xf32>
    %c0_199 = arith.constant 0 : index
    %c0_200 = arith.constant 0 : index
    %630 = vector.load %arg11[%c0_199, %c0_200] : memref<128x384xf32, #tpu.memory_space<vmem>>, vector<128x384xf32>
    %cst_201 = arith.constant dense<0.000000e+00> : vector<8x384xf32>
    %631 = tpu.matmul %564, %630, %cst_201 {dimension_numbers = #tpu.dot_dimension_numbers<[1], [0], [0], [1], [0, 0, 1, 1], [], []>} : vector<8x128xf32>, vector<128x384xf32>, vector<8x384xf32> -> vector<8x384xf32>
    %632 = vector.extract_strided_slice %629 {offsets = [0, 0], sizes = [8, 128], strides = [1, 1]} : vector<8x384xf32> to vector<8x128xf32>
    %633 = vector.extract_strided_slice %631 {offsets = [0, 0], sizes = [8, 128], strides = [1, 1]} : vector<8x384xf32> to vector<8x128xf32>
    %634 = arith.addf %632, %633 : vector<8x128xf32>
    %635 = arith.negf %634 : vector<8x128xf32>
    %636 = math.exp %635 : vector<8x128xf32>
    %cst_202 = arith.constant 1.000000e+00 : f32
    %637 = vector.broadcast %cst_202 : f32 to vector<8x128xf32>
    %638 = arith.addf %637, %636 : vector<8x128xf32>
    %639 = arith.divf %637, %638 : vector<8x128xf32>
    %640 = vector.extract_strided_slice %629 {offsets = [0, 128], sizes = [8, 128], strides = [1, 1]} : vector<8x384xf32> to vector<8x128xf32>
    %641 = vector.extract_strided_slice %631 {offsets = [0, 128], sizes = [8, 128], strides = [1, 1]} : vector<8x384xf32> to vector<8x128xf32>
    %642 = arith.addf %640, %641 : vector<8x128xf32>
    %643 = arith.negf %642 : vector<8x128xf32>
    %644 = math.exp %643 : vector<8x128xf32>
    %cst_203 = arith.constant 1.000000e+00 : f32
    %645 = vector.broadcast %cst_203 : f32 to vector<8x128xf32>
    %646 = arith.addf %645, %644 : vector<8x128xf32>
    %647 = arith.divf %645, %646 : vector<8x128xf32>
    %648 = vector.extract_strided_slice %629 {offsets = [0, 256], sizes = [8, 128], strides = [1, 1]} : vector<8x384xf32> to vector<8x128xf32>
    %649 = vector.extract_strided_slice %631 {offsets = [0, 256], sizes = [8, 128], strides = [1, 1]} : vector<8x384xf32> to vector<8x128xf32>
    %650 = arith.addf %649, %29 : vector<8x128xf32>
    %651 = arith.mulf %639, %650 : vector<8x128xf32>
    %652 = arith.addf %648, %651 : vector<8x128xf32>
    %653 = math.tanh %652 : vector<8x128xf32>
    %cst_204 = arith.constant 1.000000e+00 : f32
    %654 = vector.broadcast %cst_204 : f32 to vector<8x128xf32>
    %655 = arith.subf %654, %647 : vector<8x128xf32>
    %656 = arith.mulf %655, %653 : vector<8x128xf32>
    %657 = arith.mulf %647, %564 : vector<8x128xf32>
    %658 = arith.addf %656, %657 : vector<8x128xf32>
    %c7 = arith.constant 7 : index
    %c0_205 = arith.constant 0 : index
    %c0_206 = arith.constant 0 : index
    %659 = vector.load %arg16[%c7, %c0_205, %c0_206] : memref<8x8x384xf32, #tpu.memory_space<vmem>>, vector<1x8x384xf32>
    %660 = vector.shape_cast %659 : vector<1x8x384xf32> to vector<8x384xf32>
    %c0_207 = arith.constant 0 : index
    %c0_208 = arith.constant 0 : index
    %661 = vector.load %arg3[%c0_207, %c0_208] : memref<128x384xf32, #tpu.memory_space<vmem>>, vector<128x384xf32>
    %cst_209 = arith.constant dense<0.000000e+00> : vector<8x384xf32>
    %662 = tpu.matmul %595, %661, %cst_209 {dimension_numbers = #tpu.dot_dimension_numbers<[1], [0], [0], [1], [0, 0, 1, 1], [], []>} : vector<8x128xf32>, vector<128x384xf32>, vector<8x384xf32> -> vector<8x384xf32>
    %663 = vector.extract_strided_slice %660 {offsets = [0, 0], sizes = [8, 128], strides = [1, 1]} : vector<8x384xf32> to vector<8x128xf32>
    %664 = vector.extract_strided_slice %662 {offsets = [0, 0], sizes = [8, 128], strides = [1, 1]} : vector<8x384xf32> to vector<8x128xf32>
    %665 = arith.addf %663, %664 : vector<8x128xf32>
    %666 = arith.negf %665 : vector<8x128xf32>
    %667 = math.exp %666 : vector<8x128xf32>
    %cst_210 = arith.constant 1.000000e+00 : f32
    %668 = vector.broadcast %cst_210 : f32 to vector<8x128xf32>
    %669 = arith.addf %668, %667 : vector<8x128xf32>
    %670 = arith.divf %668, %669 : vector<8x128xf32>
    %671 = vector.extract_strided_slice %660 {offsets = [0, 128], sizes = [8, 128], strides = [1, 1]} : vector<8x384xf32> to vector<8x128xf32>
    %672 = vector.extract_strided_slice %662 {offsets = [0, 128], sizes = [8, 128], strides = [1, 1]} : vector<8x384xf32> to vector<8x128xf32>
    %673 = arith.addf %671, %672 : vector<8x128xf32>
    %674 = arith.negf %673 : vector<8x128xf32>
    %675 = math.exp %674 : vector<8x128xf32>
    %cst_211 = arith.constant 1.000000e+00 : f32
    %676 = vector.broadcast %cst_211 : f32 to vector<8x128xf32>
    %677 = arith.addf %676, %675 : vector<8x128xf32>
    %678 = arith.divf %676, %677 : vector<8x128xf32>
    %679 = vector.extract_strided_slice %660 {offsets = [0, 256], sizes = [8, 128], strides = [1, 1]} : vector<8x384xf32> to vector<8x128xf32>
    %680 = vector.extract_strided_slice %662 {offsets = [0, 256], sizes = [8, 128], strides = [1, 1]} : vector<8x384xf32> to vector<8x128xf32>
    %681 = arith.addf %680, %21 : vector<8x128xf32>
    %682 = arith.mulf %670, %681 : vector<8x128xf32>
    %683 = arith.addf %679, %682 : vector<8x128xf32>
    %684 = math.tanh %683 : vector<8x128xf32>
    %cst_212 = arith.constant 1.000000e+00 : f32
    %685 = vector.broadcast %cst_212 : f32 to vector<8x128xf32>
    %686 = arith.subf %685, %678 : vector<8x128xf32>
    %687 = arith.mulf %686, %684 : vector<8x128xf32>
    %688 = arith.mulf %678, %595 : vector<8x128xf32>
    %689 = arith.addf %687, %688 : vector<8x128xf32>
    %c7_213 = arith.constant 7 : index
    %c0_214 = arith.constant 0 : index
    %c0_215 = arith.constant 0 : index
    %690 = vector.load %arg17[%c7_213, %c0_214, %c0_215] : memref<16x8x384xf32, #tpu.memory_space<vmem>>, vector<1x8x384xf32>
    %691 = vector.shape_cast %690 : vector<1x8x384xf32> to vector<8x384xf32>
    %c0_216 = arith.constant 0 : index
    %c0_217 = arith.constant 0 : index
    %692 = vector.load %arg7[%c0_216, %c0_217] : memref<128x384xf32, #tpu.memory_space<vmem>>, vector<128x384xf32>
    %cst_218 = arith.constant dense<0.000000e+00> : vector<8x384xf32>
    %693 = tpu.matmul %626, %692, %cst_218 {dimension_numbers = #tpu.dot_dimension_numbers<[1], [0], [0], [1], [0, 0, 1, 1], [], []>} : vector<8x128xf32>, vector<128x384xf32>, vector<8x384xf32> -> vector<8x384xf32>
    %694 = vector.extract_strided_slice %691 {offsets = [0, 0], sizes = [8, 128], strides = [1, 1]} : vector<8x384xf32> to vector<8x128xf32>
    %695 = vector.extract_strided_slice %693 {offsets = [0, 0], sizes = [8, 128], strides = [1, 1]} : vector<8x384xf32> to vector<8x128xf32>
    %696 = arith.addf %694, %695 : vector<8x128xf32>
    %697 = arith.negf %696 : vector<8x128xf32>
    %698 = math.exp %697 : vector<8x128xf32>
    %cst_219 = arith.constant 1.000000e+00 : f32
    %699 = vector.broadcast %cst_219 : f32 to vector<8x128xf32>
    %700 = arith.addf %699, %698 : vector<8x128xf32>
    %701 = arith.divf %699, %700 : vector<8x128xf32>
    %702 = vector.extract_strided_slice %691 {offsets = [0, 128], sizes = [8, 128], strides = [1, 1]} : vector<8x384xf32> to vector<8x128xf32>
    %703 = vector.extract_strided_slice %693 {offsets = [0, 128], sizes = [8, 128], strides = [1, 1]} : vector<8x384xf32> to vector<8x128xf32>
    %704 = arith.addf %702, %703 : vector<8x128xf32>
    %705 = arith.negf %704 : vector<8x128xf32>
    %706 = math.exp %705 : vector<8x128xf32>
    %cst_220 = arith.constant 1.000000e+00 : f32
    %707 = vector.broadcast %cst_220 : f32 to vector<8x128xf32>
    %708 = arith.addf %707, %706 : vector<8x128xf32>
    %709 = arith.divf %707, %708 : vector<8x128xf32>
    %710 = vector.extract_strided_slice %691 {offsets = [0, 256], sizes = [8, 128], strides = [1, 1]} : vector<8x384xf32> to vector<8x128xf32>
    %711 = vector.extract_strided_slice %693 {offsets = [0, 256], sizes = [8, 128], strides = [1, 1]} : vector<8x384xf32> to vector<8x128xf32>
    %712 = arith.addf %711, %25 : vector<8x128xf32>
    %713 = arith.mulf %701, %712 : vector<8x128xf32>
    %714 = arith.addf %710, %713 : vector<8x128xf32>
    %715 = math.tanh %714 : vector<8x128xf32>
    %cst_221 = arith.constant 1.000000e+00 : f32
    %716 = vector.broadcast %cst_221 : f32 to vector<8x128xf32>
    %717 = arith.subf %716, %709 : vector<8x128xf32>
    %718 = arith.mulf %717, %715 : vector<8x128xf32>
    %719 = arith.mulf %709, %626 : vector<8x128xf32>
    %720 = arith.addf %718, %719 : vector<8x128xf32>
    %c0_222 = arith.constant 0 : index
    %c0_223 = arith.constant 0 : index
    %721 = vector.load %arg10[%c0_222, %c0_223] : memref<128x384xf32, #tpu.memory_space<vmem>>, vector<128x384xf32>
    %cst_224 = arith.constant dense<0.000000e+00> : vector<8x384xf32>
    %722 = tpu.matmul %626, %721, %cst_224 {dimension_numbers = #tpu.dot_dimension_numbers<[1], [0], [0], [1], [0, 0, 1, 1], [], []>} : vector<8x128xf32>, vector<128x384xf32>, vector<8x384xf32> -> vector<8x384xf32>
    %723 = arith.addf %722, %32 : vector<8x384xf32>
    %c0_225 = arith.constant 0 : index
    %c0_226 = arith.constant 0 : index
    %724 = vector.load %arg11[%c0_225, %c0_226] : memref<128x384xf32, #tpu.memory_space<vmem>>, vector<128x384xf32>
    %cst_227 = arith.constant dense<0.000000e+00> : vector<8x384xf32>
    %725 = tpu.matmul %658, %724, %cst_227 {dimension_numbers = #tpu.dot_dimension_numbers<[1], [0], [0], [1], [0, 0, 1, 1], [], []>} : vector<8x128xf32>, vector<128x384xf32>, vector<8x384xf32> -> vector<8x384xf32>
    %726 = vector.extract_strided_slice %723 {offsets = [0, 0], sizes = [8, 128], strides = [1, 1]} : vector<8x384xf32> to vector<8x128xf32>
    %727 = vector.extract_strided_slice %725 {offsets = [0, 0], sizes = [8, 128], strides = [1, 1]} : vector<8x384xf32> to vector<8x128xf32>
    %728 = arith.addf %726, %727 : vector<8x128xf32>
    %729 = arith.negf %728 : vector<8x128xf32>
    %730 = math.exp %729 : vector<8x128xf32>
    %cst_228 = arith.constant 1.000000e+00 : f32
    %731 = vector.broadcast %cst_228 : f32 to vector<8x128xf32>
    %732 = arith.addf %731, %730 : vector<8x128xf32>
    %733 = arith.divf %731, %732 : vector<8x128xf32>
    %734 = vector.extract_strided_slice %723 {offsets = [0, 128], sizes = [8, 128], strides = [1, 1]} : vector<8x384xf32> to vector<8x128xf32>
    %735 = vector.extract_strided_slice %725 {offsets = [0, 128], sizes = [8, 128], strides = [1, 1]} : vector<8x384xf32> to vector<8x128xf32>
    %736 = arith.addf %734, %735 : vector<8x128xf32>
    %737 = arith.negf %736 : vector<8x128xf32>
    %738 = math.exp %737 : vector<8x128xf32>
    %cst_229 = arith.constant 1.000000e+00 : f32
    %739 = vector.broadcast %cst_229 : f32 to vector<8x128xf32>
    %740 = arith.addf %739, %738 : vector<8x128xf32>
    %741 = arith.divf %739, %740 : vector<8x128xf32>
    %742 = vector.extract_strided_slice %723 {offsets = [0, 256], sizes = [8, 128], strides = [1, 1]} : vector<8x384xf32> to vector<8x128xf32>
    %743 = vector.extract_strided_slice %725 {offsets = [0, 256], sizes = [8, 128], strides = [1, 1]} : vector<8x384xf32> to vector<8x128xf32>
    %744 = arith.addf %743, %29 : vector<8x128xf32>
    %745 = arith.mulf %733, %744 : vector<8x128xf32>
    %746 = arith.addf %742, %745 : vector<8x128xf32>
    %747 = math.tanh %746 : vector<8x128xf32>
    %cst_230 = arith.constant 1.000000e+00 : f32
    %748 = vector.broadcast %cst_230 : f32 to vector<8x128xf32>
    %749 = arith.subf %748, %741 : vector<8x128xf32>
    %750 = arith.mulf %749, %747 : vector<8x128xf32>
    %751 = arith.mulf %741, %658 : vector<8x128xf32>
    %752 = arith.addf %750, %751 : vector<8x128xf32>
    %c8 = arith.constant 8 : index
    %c0_231 = arith.constant 0 : index
    %c0_232 = arith.constant 0 : index
    %753 = vector.load %arg17[%c8, %c0_231, %c0_232] : memref<16x8x384xf32, #tpu.memory_space<vmem>>, vector<1x8x384xf32>
    %754 = vector.shape_cast %753 : vector<1x8x384xf32> to vector<8x384xf32>
    %c0_233 = arith.constant 0 : index
    %c0_234 = arith.constant 0 : index
    %755 = vector.load %arg7[%c0_233, %c0_234] : memref<128x384xf32, #tpu.memory_space<vmem>>, vector<128x384xf32>
    %cst_235 = arith.constant dense<0.000000e+00> : vector<8x384xf32>
    %756 = tpu.matmul %720, %755, %cst_235 {dimension_numbers = #tpu.dot_dimension_numbers<[1], [0], [0], [1], [0, 0, 1, 1], [], []>} : vector<8x128xf32>, vector<128x384xf32>, vector<8x384xf32> -> vector<8x384xf32>
    %757 = vector.extract_strided_slice %754 {offsets = [0, 0], sizes = [8, 128], strides = [1, 1]} : vector<8x384xf32> to vector<8x128xf32>
    %758 = vector.extract_strided_slice %756 {offsets = [0, 0], sizes = [8, 128], strides = [1, 1]} : vector<8x384xf32> to vector<8x128xf32>
    %759 = arith.addf %757, %758 : vector<8x128xf32>
    %760 = arith.negf %759 : vector<8x128xf32>
    %761 = math.exp %760 : vector<8x128xf32>
    %cst_236 = arith.constant 1.000000e+00 : f32
    %762 = vector.broadcast %cst_236 : f32 to vector<8x128xf32>
    %763 = arith.addf %762, %761 : vector<8x128xf32>
    %764 = arith.divf %762, %763 : vector<8x128xf32>
    %765 = vector.extract_strided_slice %754 {offsets = [0, 128], sizes = [8, 128], strides = [1, 1]} : vector<8x384xf32> to vector<8x128xf32>
    %766 = vector.extract_strided_slice %756 {offsets = [0, 128], sizes = [8, 128], strides = [1, 1]} : vector<8x384xf32> to vector<8x128xf32>
    %767 = arith.addf %765, %766 : vector<8x128xf32>
    %768 = arith.negf %767 : vector<8x128xf32>
    %769 = math.exp %768 : vector<8x128xf32>
    %cst_237 = arith.constant 1.000000e+00 : f32
    %770 = vector.broadcast %cst_237 : f32 to vector<8x128xf32>
    %771 = arith.addf %770, %769 : vector<8x128xf32>
    %772 = arith.divf %770, %771 : vector<8x128xf32>
    %773 = vector.extract_strided_slice %754 {offsets = [0, 256], sizes = [8, 128], strides = [1, 1]} : vector<8x384xf32> to vector<8x128xf32>
    %774 = vector.extract_strided_slice %756 {offsets = [0, 256], sizes = [8, 128], strides = [1, 1]} : vector<8x384xf32> to vector<8x128xf32>
    %775 = arith.addf %774, %25 : vector<8x128xf32>
    %776 = arith.mulf %764, %775 : vector<8x128xf32>
    %777 = arith.addf %773, %776 : vector<8x128xf32>
    %778 = math.tanh %777 : vector<8x128xf32>
    %cst_238 = arith.constant 1.000000e+00 : f32
    %779 = vector.broadcast %cst_238 : f32 to vector<8x128xf32>
    %780 = arith.subf %779, %772 : vector<8x128xf32>
    %781 = arith.mulf %780, %778 : vector<8x128xf32>
    %782 = arith.mulf %772, %720 : vector<8x128xf32>
    %783 = arith.addf %781, %782 : vector<8x128xf32>
    %c0_239 = arith.constant 0 : index
    %c0_240 = arith.constant 0 : index
    %784 = vector.load %arg10[%c0_239, %c0_240] : memref<128x384xf32, #tpu.memory_space<vmem>>, vector<128x384xf32>
    %cst_241 = arith.constant dense<0.000000e+00> : vector<8x384xf32>
    %785 = tpu.matmul %720, %784, %cst_241 {dimension_numbers = #tpu.dot_dimension_numbers<[1], [0], [0], [1], [0, 0, 1, 1], [], []>} : vector<8x128xf32>, vector<128x384xf32>, vector<8x384xf32> -> vector<8x384xf32>
    %786 = arith.addf %785, %32 : vector<8x384xf32>
    %c0_242 = arith.constant 0 : index
    %c0_243 = arith.constant 0 : index
    %787 = vector.load %arg11[%c0_242, %c0_243] : memref<128x384xf32, #tpu.memory_space<vmem>>, vector<128x384xf32>
    %cst_244 = arith.constant dense<0.000000e+00> : vector<8x384xf32>
    %788 = tpu.matmul %752, %787, %cst_244 {dimension_numbers = #tpu.dot_dimension_numbers<[1], [0], [0], [1], [0, 0, 1, 1], [], []>} : vector<8x128xf32>, vector<128x384xf32>, vector<8x384xf32> -> vector<8x384xf32>
    %789 = vector.extract_strided_slice %786 {offsets = [0, 0], sizes = [8, 128], strides = [1, 1]} : vector<8x384xf32> to vector<8x128xf32>
    %790 = vector.extract_strided_slice %788 {offsets = [0, 0], sizes = [8, 128], strides = [1, 1]} : vector<8x384xf32> to vector<8x128xf32>
    %791 = arith.addf %789, %790 : vector<8x128xf32>
    %792 = arith.negf %791 : vector<8x128xf32>
    %793 = math.exp %792 : vector<8x128xf32>
    %cst_245 = arith.constant 1.000000e+00 : f32
    %794 = vector.broadcast %cst_245 : f32 to vector<8x128xf32>
    %795 = arith.addf %794, %793 : vector<8x128xf32>
    %796 = arith.divf %794, %795 : vector<8x128xf32>
    %797 = vector.extract_strided_slice %786 {offsets = [0, 128], sizes = [8, 128], strides = [1, 1]} : vector<8x384xf32> to vector<8x128xf32>
    %798 = vector.extract_strided_slice %788 {offsets = [0, 128], sizes = [8, 128], strides = [1, 1]} : vector<8x384xf32> to vector<8x128xf32>
    %799 = arith.addf %797, %798 : vector<8x128xf32>
    %800 = arith.negf %799 : vector<8x128xf32>
    %801 = math.exp %800 : vector<8x128xf32>
    %cst_246 = arith.constant 1.000000e+00 : f32
    %802 = vector.broadcast %cst_246 : f32 to vector<8x128xf32>
    %803 = arith.addf %802, %801 : vector<8x128xf32>
    %804 = arith.divf %802, %803 : vector<8x128xf32>
    %805 = vector.extract_strided_slice %786 {offsets = [0, 256], sizes = [8, 128], strides = [1, 1]} : vector<8x384xf32> to vector<8x128xf32>
    %806 = vector.extract_strided_slice %788 {offsets = [0, 256], sizes = [8, 128], strides = [1, 1]} : vector<8x384xf32> to vector<8x128xf32>
    %807 = arith.addf %806, %29 : vector<8x128xf32>
    %808 = arith.mulf %796, %807 : vector<8x128xf32>
    %809 = arith.addf %805, %808 : vector<8x128xf32>
    %810 = math.tanh %809 : vector<8x128xf32>
    %cst_247 = arith.constant 1.000000e+00 : f32
    %811 = vector.broadcast %cst_247 : f32 to vector<8x128xf32>
    %812 = arith.subf %811, %804 : vector<8x128xf32>
    %813 = arith.mulf %812, %810 : vector<8x128xf32>
    %814 = arith.mulf %804, %752 : vector<8x128xf32>
    %815 = arith.addf %813, %814 : vector<8x128xf32>
    %c9 = arith.constant 9 : index
    %c0_248 = arith.constant 0 : index
    %c0_249 = arith.constant 0 : index
    %816 = vector.load %arg17[%c9, %c0_248, %c0_249] : memref<16x8x384xf32, #tpu.memory_space<vmem>>, vector<1x8x384xf32>
    %817 = vector.shape_cast %816 : vector<1x8x384xf32> to vector<8x384xf32>
    %c0_250 = arith.constant 0 : index
    %c0_251 = arith.constant 0 : index
    %818 = vector.load %arg7[%c0_250, %c0_251] : memref<128x384xf32, #tpu.memory_space<vmem>>, vector<128x384xf32>
    %cst_252 = arith.constant dense<0.000000e+00> : vector<8x384xf32>
    %819 = tpu.matmul %783, %818, %cst_252 {dimension_numbers = #tpu.dot_dimension_numbers<[1], [0], [0], [1], [0, 0, 1, 1], [], []>} : vector<8x128xf32>, vector<128x384xf32>, vector<8x384xf32> -> vector<8x384xf32>
    %820 = vector.extract_strided_slice %817 {offsets = [0, 0], sizes = [8, 128], strides = [1, 1]} : vector<8x384xf32> to vector<8x128xf32>
    %821 = vector.extract_strided_slice %819 {offsets = [0, 0], sizes = [8, 128], strides = [1, 1]} : vector<8x384xf32> to vector<8x128xf32>
    %822 = arith.addf %820, %821 : vector<8x128xf32>
    %823 = arith.negf %822 : vector<8x128xf32>
    %824 = math.exp %823 : vector<8x128xf32>
    %cst_253 = arith.constant 1.000000e+00 : f32
    %825 = vector.broadcast %cst_253 : f32 to vector<8x128xf32>
    %826 = arith.addf %825, %824 : vector<8x128xf32>
    %827 = arith.divf %825, %826 : vector<8x128xf32>
    %828 = vector.extract_strided_slice %817 {offsets = [0, 128], sizes = [8, 128], strides = [1, 1]} : vector<8x384xf32> to vector<8x128xf32>
    %829 = vector.extract_strided_slice %819 {offsets = [0, 128], sizes = [8, 128], strides = [1, 1]} : vector<8x384xf32> to vector<8x128xf32>
    %830 = arith.addf %828, %829 : vector<8x128xf32>
    %831 = arith.negf %830 : vector<8x128xf32>
    %832 = math.exp %831 : vector<8x128xf32>
    %cst_254 = arith.constant 1.000000e+00 : f32
    %833 = vector.broadcast %cst_254 : f32 to vector<8x128xf32>
    %834 = arith.addf %833, %832 : vector<8x128xf32>
    %835 = arith.divf %833, %834 : vector<8x128xf32>
    %836 = vector.extract_strided_slice %817 {offsets = [0, 256], sizes = [8, 128], strides = [1, 1]} : vector<8x384xf32> to vector<8x128xf32>
    %837 = vector.extract_strided_slice %819 {offsets = [0, 256], sizes = [8, 128], strides = [1, 1]} : vector<8x384xf32> to vector<8x128xf32>
    %838 = arith.addf %837, %25 : vector<8x128xf32>
    %839 = arith.mulf %827, %838 : vector<8x128xf32>
    %840 = arith.addf %836, %839 : vector<8x128xf32>
    %841 = math.tanh %840 : vector<8x128xf32>
    %cst_255 = arith.constant 1.000000e+00 : f32
    %842 = vector.broadcast %cst_255 : f32 to vector<8x128xf32>
    %843 = arith.subf %842, %835 : vector<8x128xf32>
    %844 = arith.mulf %843, %841 : vector<8x128xf32>
    %845 = arith.mulf %835, %783 : vector<8x128xf32>
    %846 = arith.addf %844, %845 : vector<8x128xf32>
    %c0_256 = arith.constant 0 : index
    %c0_257 = arith.constant 0 : index
    %847 = vector.load %arg10[%c0_256, %c0_257] : memref<128x384xf32, #tpu.memory_space<vmem>>, vector<128x384xf32>
    %cst_258 = arith.constant dense<0.000000e+00> : vector<8x384xf32>
    %848 = tpu.matmul %783, %847, %cst_258 {dimension_numbers = #tpu.dot_dimension_numbers<[1], [0], [0], [1], [0, 0, 1, 1], [], []>} : vector<8x128xf32>, vector<128x384xf32>, vector<8x384xf32> -> vector<8x384xf32>
    %849 = arith.addf %848, %32 : vector<8x384xf32>
    %c0_259 = arith.constant 0 : index
    %c0_260 = arith.constant 0 : index
    %850 = vector.load %arg11[%c0_259, %c0_260] : memref<128x384xf32, #tpu.memory_space<vmem>>, vector<128x384xf32>
    %cst_261 = arith.constant dense<0.000000e+00> : vector<8x384xf32>
    %851 = tpu.matmul %815, %850, %cst_261 {dimension_numbers = #tpu.dot_dimension_numbers<[1], [0], [0], [1], [0, 0, 1, 1], [], []>} : vector<8x128xf32>, vector<128x384xf32>, vector<8x384xf32> -> vector<8x384xf32>
    %852 = vector.extract_strided_slice %849 {offsets = [0, 0], sizes = [8, 128], strides = [1, 1]} : vector<8x384xf32> to vector<8x128xf32>
    %853 = vector.extract_strided_slice %851 {offsets = [0, 0], sizes = [8, 128], strides = [1, 1]} : vector<8x384xf32> to vector<8x128xf32>
    %854 = arith.addf %852, %853 : vector<8x128xf32>
    %855 = arith.negf %854 : vector<8x128xf32>
    %856 = math.exp %855 : vector<8x128xf32>
    %cst_262 = arith.constant 1.000000e+00 : f32
    %857 = vector.broadcast %cst_262 : f32 to vector<8x128xf32>
    %858 = arith.addf %857, %856 : vector<8x128xf32>
    %859 = arith.divf %857, %858 : vector<8x128xf32>
    %860 = vector.extract_strided_slice %849 {offsets = [0, 128], sizes = [8, 128], strides = [1, 1]} : vector<8x384xf32> to vector<8x128xf32>
    %861 = vector.extract_strided_slice %851 {offsets = [0, 128], sizes = [8, 128], strides = [1, 1]} : vector<8x384xf32> to vector<8x128xf32>
    %862 = arith.addf %860, %861 : vector<8x128xf32>
    %863 = arith.negf %862 : vector<8x128xf32>
    %864 = math.exp %863 : vector<8x128xf32>
    %cst_263 = arith.constant 1.000000e+00 : f32
    %865 = vector.broadcast %cst_263 : f32 to vector<8x128xf32>
    %866 = arith.addf %865, %864 : vector<8x128xf32>
    %867 = arith.divf %865, %866 : vector<8x128xf32>
    %868 = vector.extract_strided_slice %849 {offsets = [0, 256], sizes = [8, 128], strides = [1, 1]} : vector<8x384xf32> to vector<8x128xf32>
    %869 = vector.extract_strided_slice %851 {offsets = [0, 256], sizes = [8, 128], strides = [1, 1]} : vector<8x384xf32> to vector<8x128xf32>
    %870 = arith.addf %869, %29 : vector<8x128xf32>
    %871 = arith.mulf %859, %870 : vector<8x128xf32>
    %872 = arith.addf %868, %871 : vector<8x128xf32>
    %873 = math.tanh %872 : vector<8x128xf32>
    %cst_264 = arith.constant 1.000000e+00 : f32
    %874 = vector.broadcast %cst_264 : f32 to vector<8x128xf32>
    %875 = arith.subf %874, %867 : vector<8x128xf32>
    %876 = arith.mulf %875, %873 : vector<8x128xf32>
    %877 = arith.mulf %867, %815 : vector<8x128xf32>
    %878 = arith.addf %876, %877 : vector<8x128xf32>
    %c10 = arith.constant 10 : index
    %c0_265 = arith.constant 0 : index
    %c0_266 = arith.constant 0 : index
    %879 = vector.load %arg17[%c10, %c0_265, %c0_266] : memref<16x8x384xf32, #tpu.memory_space<vmem>>, vector<1x8x384xf32>
    %880 = vector.shape_cast %879 : vector<1x8x384xf32> to vector<8x384xf32>
    %c0_267 = arith.constant 0 : index
    %c0_268 = arith.constant 0 : index
    %881 = vector.load %arg7[%c0_267, %c0_268] : memref<128x384xf32, #tpu.memory_space<vmem>>, vector<128x384xf32>
    %cst_269 = arith.constant dense<0.000000e+00> : vector<8x384xf32>
    %882 = tpu.matmul %846, %881, %cst_269 {dimension_numbers = #tpu.dot_dimension_numbers<[1], [0], [0], [1], [0, 0, 1, 1], [], []>} : vector<8x128xf32>, vector<128x384xf32>, vector<8x384xf32> -> vector<8x384xf32>
    %883 = vector.extract_strided_slice %880 {offsets = [0, 0], sizes = [8, 128], strides = [1, 1]} : vector<8x384xf32> to vector<8x128xf32>
    %884 = vector.extract_strided_slice %882 {offsets = [0, 0], sizes = [8, 128], strides = [1, 1]} : vector<8x384xf32> to vector<8x128xf32>
    %885 = arith.addf %883, %884 : vector<8x128xf32>
    %886 = arith.negf %885 : vector<8x128xf32>
    %887 = math.exp %886 : vector<8x128xf32>
    %cst_270 = arith.constant 1.000000e+00 : f32
    %888 = vector.broadcast %cst_270 : f32 to vector<8x128xf32>
    %889 = arith.addf %888, %887 : vector<8x128xf32>
    %890 = arith.divf %888, %889 : vector<8x128xf32>
    %891 = vector.extract_strided_slice %880 {offsets = [0, 128], sizes = [8, 128], strides = [1, 1]} : vector<8x384xf32> to vector<8x128xf32>
    %892 = vector.extract_strided_slice %882 {offsets = [0, 128], sizes = [8, 128], strides = [1, 1]} : vector<8x384xf32> to vector<8x128xf32>
    %893 = arith.addf %891, %892 : vector<8x128xf32>
    %894 = arith.negf %893 : vector<8x128xf32>
    %895 = math.exp %894 : vector<8x128xf32>
    %cst_271 = arith.constant 1.000000e+00 : f32
    %896 = vector.broadcast %cst_271 : f32 to vector<8x128xf32>
    %897 = arith.addf %896, %895 : vector<8x128xf32>
    %898 = arith.divf %896, %897 : vector<8x128xf32>
    %899 = vector.extract_strided_slice %880 {offsets = [0, 256], sizes = [8, 128], strides = [1, 1]} : vector<8x384xf32> to vector<8x128xf32>
    %900 = vector.extract_strided_slice %882 {offsets = [0, 256], sizes = [8, 128], strides = [1, 1]} : vector<8x384xf32> to vector<8x128xf32>
    %901 = arith.addf %900, %25 : vector<8x128xf32>
    %902 = arith.mulf %890, %901 : vector<8x128xf32>
    %903 = arith.addf %899, %902 : vector<8x128xf32>
    %904 = math.tanh %903 : vector<8x128xf32>
    %cst_272 = arith.constant 1.000000e+00 : f32
    %905 = vector.broadcast %cst_272 : f32 to vector<8x128xf32>
    %906 = arith.subf %905, %898 : vector<8x128xf32>
    %907 = arith.mulf %906, %904 : vector<8x128xf32>
    %908 = arith.mulf %898, %846 : vector<8x128xf32>
    %909 = arith.addf %907, %908 : vector<8x128xf32>
    %c0_273 = arith.constant 0 : index
    %c0_274 = arith.constant 0 : index
    %910 = vector.load %arg10[%c0_273, %c0_274] : memref<128x384xf32, #tpu.memory_space<vmem>>, vector<128x384xf32>
    %cst_275 = arith.constant dense<0.000000e+00> : vector<8x384xf32>
    %911 = tpu.matmul %846, %910, %cst_275 {dimension_numbers = #tpu.dot_dimension_numbers<[1], [0], [0], [1], [0, 0, 1, 1], [], []>} : vector<8x128xf32>, vector<128x384xf32>, vector<8x384xf32> -> vector<8x384xf32>
    %912 = arith.addf %911, %32 : vector<8x384xf32>
    %c0_276 = arith.constant 0 : index
    %c0_277 = arith.constant 0 : index
    %913 = vector.load %arg11[%c0_276, %c0_277] : memref<128x384xf32, #tpu.memory_space<vmem>>, vector<128x384xf32>
    %cst_278 = arith.constant dense<0.000000e+00> : vector<8x384xf32>
    %914 = tpu.matmul %878, %913, %cst_278 {dimension_numbers = #tpu.dot_dimension_numbers<[1], [0], [0], [1], [0, 0, 1, 1], [], []>} : vector<8x128xf32>, vector<128x384xf32>, vector<8x384xf32> -> vector<8x384xf32>
    %915 = vector.extract_strided_slice %912 {offsets = [0, 0], sizes = [8, 128], strides = [1, 1]} : vector<8x384xf32> to vector<8x128xf32>
    %916 = vector.extract_strided_slice %914 {offsets = [0, 0], sizes = [8, 128], strides = [1, 1]} : vector<8x384xf32> to vector<8x128xf32>
    %917 = arith.addf %915, %916 : vector<8x128xf32>
    %918 = arith.negf %917 : vector<8x128xf32>
    %919 = math.exp %918 : vector<8x128xf32>
    %cst_279 = arith.constant 1.000000e+00 : f32
    %920 = vector.broadcast %cst_279 : f32 to vector<8x128xf32>
    %921 = arith.addf %920, %919 : vector<8x128xf32>
    %922 = arith.divf %920, %921 : vector<8x128xf32>
    %923 = vector.extract_strided_slice %912 {offsets = [0, 128], sizes = [8, 128], strides = [1, 1]} : vector<8x384xf32> to vector<8x128xf32>
    %924 = vector.extract_strided_slice %914 {offsets = [0, 128], sizes = [8, 128], strides = [1, 1]} : vector<8x384xf32> to vector<8x128xf32>
    %925 = arith.addf %923, %924 : vector<8x128xf32>
    %926 = arith.negf %925 : vector<8x128xf32>
    %927 = math.exp %926 : vector<8x128xf32>
    %cst_280 = arith.constant 1.000000e+00 : f32
    %928 = vector.broadcast %cst_280 : f32 to vector<8x128xf32>
    %929 = arith.addf %928, %927 : vector<8x128xf32>
    %930 = arith.divf %928, %929 : vector<8x128xf32>
    %931 = vector.extract_strided_slice %912 {offsets = [0, 256], sizes = [8, 128], strides = [1, 1]} : vector<8x384xf32> to vector<8x128xf32>
    %932 = vector.extract_strided_slice %914 {offsets = [0, 256], sizes = [8, 128], strides = [1, 1]} : vector<8x384xf32> to vector<8x128xf32>
    %933 = arith.addf %932, %29 : vector<8x128xf32>
    %934 = arith.mulf %922, %933 : vector<8x128xf32>
    %935 = arith.addf %931, %934 : vector<8x128xf32>
    %936 = math.tanh %935 : vector<8x128xf32>
    %cst_281 = arith.constant 1.000000e+00 : f32
    %937 = vector.broadcast %cst_281 : f32 to vector<8x128xf32>
    %938 = arith.subf %937, %930 : vector<8x128xf32>
    %939 = arith.mulf %938, %936 : vector<8x128xf32>
    %940 = arith.mulf %930, %878 : vector<8x128xf32>
    %941 = arith.addf %939, %940 : vector<8x128xf32>
    %c11 = arith.constant 11 : index
    %c0_282 = arith.constant 0 : index
    %c0_283 = arith.constant 0 : index
    %942 = vector.load %arg17[%c11, %c0_282, %c0_283] : memref<16x8x384xf32, #tpu.memory_space<vmem>>, vector<1x8x384xf32>
    %943 = vector.shape_cast %942 : vector<1x8x384xf32> to vector<8x384xf32>
    %c0_284 = arith.constant 0 : index
    %c0_285 = arith.constant 0 : index
    %944 = vector.load %arg7[%c0_284, %c0_285] : memref<128x384xf32, #tpu.memory_space<vmem>>, vector<128x384xf32>
    %cst_286 = arith.constant dense<0.000000e+00> : vector<8x384xf32>
    %945 = tpu.matmul %909, %944, %cst_286 {dimension_numbers = #tpu.dot_dimension_numbers<[1], [0], [0], [1], [0, 0, 1, 1], [], []>} : vector<8x128xf32>, vector<128x384xf32>, vector<8x384xf32> -> vector<8x384xf32>
    %946 = vector.extract_strided_slice %943 {offsets = [0, 0], sizes = [8, 128], strides = [1, 1]} : vector<8x384xf32> to vector<8x128xf32>
    %947 = vector.extract_strided_slice %945 {offsets = [0, 0], sizes = [8, 128], strides = [1, 1]} : vector<8x384xf32> to vector<8x128xf32>
    %948 = arith.addf %946, %947 : vector<8x128xf32>
    %949 = arith.negf %948 : vector<8x128xf32>
    %950 = math.exp %949 : vector<8x128xf32>
    %cst_287 = arith.constant 1.000000e+00 : f32
    %951 = vector.broadcast %cst_287 : f32 to vector<8x128xf32>
    %952 = arith.addf %951, %950 : vector<8x128xf32>
    %953 = arith.divf %951, %952 : vector<8x128xf32>
    %954 = vector.extract_strided_slice %943 {offsets = [0, 128], sizes = [8, 128], strides = [1, 1]} : vector<8x384xf32> to vector<8x128xf32>
    %955 = vector.extract_strided_slice %945 {offsets = [0, 128], sizes = [8, 128], strides = [1, 1]} : vector<8x384xf32> to vector<8x128xf32>
    %956 = arith.addf %954, %955 : vector<8x128xf32>
    %957 = arith.negf %956 : vector<8x128xf32>
    %958 = math.exp %957 : vector<8x128xf32>
    %cst_288 = arith.constant 1.000000e+00 : f32
    %959 = vector.broadcast %cst_288 : f32 to vector<8x128xf32>
    %960 = arith.addf %959, %958 : vector<8x128xf32>
    %961 = arith.divf %959, %960 : vector<8x128xf32>
    %962 = vector.extract_strided_slice %943 {offsets = [0, 256], sizes = [8, 128], strides = [1, 1]} : vector<8x384xf32> to vector<8x128xf32>
    %963 = vector.extract_strided_slice %945 {offsets = [0, 256], sizes = [8, 128], strides = [1, 1]} : vector<8x384xf32> to vector<8x128xf32>
    %964 = arith.addf %963, %25 : vector<8x128xf32>
    %965 = arith.mulf %953, %964 : vector<8x128xf32>
    %966 = arith.addf %962, %965 : vector<8x128xf32>
    %967 = math.tanh %966 : vector<8x128xf32>
    %cst_289 = arith.constant 1.000000e+00 : f32
    %968 = vector.broadcast %cst_289 : f32 to vector<8x128xf32>
    %969 = arith.subf %968, %961 : vector<8x128xf32>
    %970 = arith.mulf %969, %967 : vector<8x128xf32>
    %971 = arith.mulf %961, %909 : vector<8x128xf32>
    %972 = arith.addf %970, %971 : vector<8x128xf32>
    %c0_290 = arith.constant 0 : index
    %c0_291 = arith.constant 0 : index
    %973 = vector.load %arg10[%c0_290, %c0_291] : memref<128x384xf32, #tpu.memory_space<vmem>>, vector<128x384xf32>
    %cst_292 = arith.constant dense<0.000000e+00> : vector<8x384xf32>
    %974 = tpu.matmul %909, %973, %cst_292 {dimension_numbers = #tpu.dot_dimension_numbers<[1], [0], [0], [1], [0, 0, 1, 1], [], []>} : vector<8x128xf32>, vector<128x384xf32>, vector<8x384xf32> -> vector<8x384xf32>
    %975 = arith.addf %974, %32 : vector<8x384xf32>
    %c0_293 = arith.constant 0 : index
    %c0_294 = arith.constant 0 : index
    %976 = vector.load %arg11[%c0_293, %c0_294] : memref<128x384xf32, #tpu.memory_space<vmem>>, vector<128x384xf32>
    %cst_295 = arith.constant dense<0.000000e+00> : vector<8x384xf32>
    %977 = tpu.matmul %941, %976, %cst_295 {dimension_numbers = #tpu.dot_dimension_numbers<[1], [0], [0], [1], [0, 0, 1, 1], [], []>} : vector<8x128xf32>, vector<128x384xf32>, vector<8x384xf32> -> vector<8x384xf32>
    %978 = vector.extract_strided_slice %975 {offsets = [0, 0], sizes = [8, 128], strides = [1, 1]} : vector<8x384xf32> to vector<8x128xf32>
    %979 = vector.extract_strided_slice %977 {offsets = [0, 0], sizes = [8, 128], strides = [1, 1]} : vector<8x384xf32> to vector<8x128xf32>
    %980 = arith.addf %978, %979 : vector<8x128xf32>
    %981 = arith.negf %980 : vector<8x128xf32>
    %982 = math.exp %981 : vector<8x128xf32>
    %cst_296 = arith.constant 1.000000e+00 : f32
    %983 = vector.broadcast %cst_296 : f32 to vector<8x128xf32>
    %984 = arith.addf %983, %982 : vector<8x128xf32>
    %985 = arith.divf %983, %984 : vector<8x128xf32>
    %986 = vector.extract_strided_slice %975 {offsets = [0, 128], sizes = [8, 128], strides = [1, 1]} : vector<8x384xf32> to vector<8x128xf32>
    %987 = vector.extract_strided_slice %977 {offsets = [0, 128], sizes = [8, 128], strides = [1, 1]} : vector<8x384xf32> to vector<8x128xf32>
    %988 = arith.addf %986, %987 : vector<8x128xf32>
    %989 = arith.negf %988 : vector<8x128xf32>
    %990 = math.exp %989 : vector<8x128xf32>
    %cst_297 = arith.constant 1.000000e+00 : f32
    %991 = vector.broadcast %cst_297 : f32 to vector<8x128xf32>
    %992 = arith.addf %991, %990 : vector<8x128xf32>
    %993 = arith.divf %991, %992 : vector<8x128xf32>
    %994 = vector.extract_strided_slice %975 {offsets = [0, 256], sizes = [8, 128], strides = [1, 1]} : vector<8x384xf32> to vector<8x128xf32>
    %995 = vector.extract_strided_slice %977 {offsets = [0, 256], sizes = [8, 128], strides = [1, 1]} : vector<8x384xf32> to vector<8x128xf32>
    %996 = arith.addf %995, %29 : vector<8x128xf32>
    %997 = arith.mulf %985, %996 : vector<8x128xf32>
    %998 = arith.addf %994, %997 : vector<8x128xf32>
    %999 = math.tanh %998 : vector<8x128xf32>
    %cst_298 = arith.constant 1.000000e+00 : f32
    %1000 = vector.broadcast %cst_298 : f32 to vector<8x128xf32>
    %1001 = arith.subf %1000, %993 : vector<8x128xf32>
    %1002 = arith.mulf %1001, %999 : vector<8x128xf32>
    %1003 = arith.mulf %993, %941 : vector<8x128xf32>
    %1004 = arith.addf %1002, %1003 : vector<8x128xf32>
    %c12 = arith.constant 12 : index
    %c0_299 = arith.constant 0 : index
    %c0_300 = arith.constant 0 : index
    %1005 = vector.load %arg17[%c12, %c0_299, %c0_300] : memref<16x8x384xf32, #tpu.memory_space<vmem>>, vector<1x8x384xf32>
    %1006 = vector.shape_cast %1005 : vector<1x8x384xf32> to vector<8x384xf32>
    %c0_301 = arith.constant 0 : index
    %c0_302 = arith.constant 0 : index
    %1007 = vector.load %arg7[%c0_301, %c0_302] : memref<128x384xf32, #tpu.memory_space<vmem>>, vector<128x384xf32>
    %cst_303 = arith.constant dense<0.000000e+00> : vector<8x384xf32>
    %1008 = tpu.matmul %972, %1007, %cst_303 {dimension_numbers = #tpu.dot_dimension_numbers<[1], [0], [0], [1], [0, 0, 1, 1], [], []>} : vector<8x128xf32>, vector<128x384xf32>, vector<8x384xf32> -> vector<8x384xf32>
    %1009 = vector.extract_strided_slice %1006 {offsets = [0, 0], sizes = [8, 128], strides = [1, 1]} : vector<8x384xf32> to vector<8x128xf32>
    %1010 = vector.extract_strided_slice %1008 {offsets = [0, 0], sizes = [8, 128], strides = [1, 1]} : vector<8x384xf32> to vector<8x128xf32>
    %1011 = arith.addf %1009, %1010 : vector<8x128xf32>
    %1012 = arith.negf %1011 : vector<8x128xf32>
    %1013 = math.exp %1012 : vector<8x128xf32>
    %cst_304 = arith.constant 1.000000e+00 : f32
    %1014 = vector.broadcast %cst_304 : f32 to vector<8x128xf32>
    %1015 = arith.addf %1014, %1013 : vector<8x128xf32>
    %1016 = arith.divf %1014, %1015 : vector<8x128xf32>
    %1017 = vector.extract_strided_slice %1006 {offsets = [0, 128], sizes = [8, 128], strides = [1, 1]} : vector<8x384xf32> to vector<8x128xf32>
    %1018 = vector.extract_strided_slice %1008 {offsets = [0, 128], sizes = [8, 128], strides = [1, 1]} : vector<8x384xf32> to vector<8x128xf32>
    %1019 = arith.addf %1017, %1018 : vector<8x128xf32>
    %1020 = arith.negf %1019 : vector<8x128xf32>
    %1021 = math.exp %1020 : vector<8x128xf32>
    %cst_305 = arith.constant 1.000000e+00 : f32
    %1022 = vector.broadcast %cst_305 : f32 to vector<8x128xf32>
    %1023 = arith.addf %1022, %1021 : vector<8x128xf32>
    %1024 = arith.divf %1022, %1023 : vector<8x128xf32>
    %1025 = vector.extract_strided_slice %1006 {offsets = [0, 256], sizes = [8, 128], strides = [1, 1]} : vector<8x384xf32> to vector<8x128xf32>
    %1026 = vector.extract_strided_slice %1008 {offsets = [0, 256], sizes = [8, 128], strides = [1, 1]} : vector<8x384xf32> to vector<8x128xf32>
    %1027 = arith.addf %1026, %25 : vector<8x128xf32>
    %1028 = arith.mulf %1016, %1027 : vector<8x128xf32>
    %1029 = arith.addf %1025, %1028 : vector<8x128xf32>
    %1030 = math.tanh %1029 : vector<8x128xf32>
    %cst_306 = arith.constant 1.000000e+00 : f32
    %1031 = vector.broadcast %cst_306 : f32 to vector<8x128xf32>
    %1032 = arith.subf %1031, %1024 : vector<8x128xf32>
    %1033 = arith.mulf %1032, %1030 : vector<8x128xf32>
    %1034 = arith.mulf %1024, %972 : vector<8x128xf32>
    %1035 = arith.addf %1033, %1034 : vector<8x128xf32>
    %c0_307 = arith.constant 0 : index
    %c0_308 = arith.constant 0 : index
    %1036 = vector.load %arg10[%c0_307, %c0_308] : memref<128x384xf32, #tpu.memory_space<vmem>>, vector<128x384xf32>
    %cst_309 = arith.constant dense<0.000000e+00> : vector<8x384xf32>
    %1037 = tpu.matmul %972, %1036, %cst_309 {dimension_numbers = #tpu.dot_dimension_numbers<[1], [0], [0], [1], [0, 0, 1, 1], [], []>} : vector<8x128xf32>, vector<128x384xf32>, vector<8x384xf32> -> vector<8x384xf32>
    %1038 = arith.addf %1037, %32 : vector<8x384xf32>
    %c0_310 = arith.constant 0 : index
    %c0_311 = arith.constant 0 : index
    %1039 = vector.load %arg11[%c0_310, %c0_311] : memref<128x384xf32, #tpu.memory_space<vmem>>, vector<128x384xf32>
    %cst_312 = arith.constant dense<0.000000e+00> : vector<8x384xf32>
    %1040 = tpu.matmul %1004, %1039, %cst_312 {dimension_numbers = #tpu.dot_dimension_numbers<[1], [0], [0], [1], [0, 0, 1, 1], [], []>} : vector<8x128xf32>, vector<128x384xf32>, vector<8x384xf32> -> vector<8x384xf32>
    %1041 = vector.extract_strided_slice %1038 {offsets = [0, 0], sizes = [8, 128], strides = [1, 1]} : vector<8x384xf32> to vector<8x128xf32>
    %1042 = vector.extract_strided_slice %1040 {offsets = [0, 0], sizes = [8, 128], strides = [1, 1]} : vector<8x384xf32> to vector<8x128xf32>
    %1043 = arith.addf %1041, %1042 : vector<8x128xf32>
    %1044 = arith.negf %1043 : vector<8x128xf32>
    %1045 = math.exp %1044 : vector<8x128xf32>
    %cst_313 = arith.constant 1.000000e+00 : f32
    %1046 = vector.broadcast %cst_313 : f32 to vector<8x128xf32>
    %1047 = arith.addf %1046, %1045 : vector<8x128xf32>
    %1048 = arith.divf %1046, %1047 : vector<8x128xf32>
    %1049 = vector.extract_strided_slice %1038 {offsets = [0, 128], sizes = [8, 128], strides = [1, 1]} : vector<8x384xf32> to vector<8x128xf32>
    %1050 = vector.extract_strided_slice %1040 {offsets = [0, 128], sizes = [8, 128], strides = [1, 1]} : vector<8x384xf32> to vector<8x128xf32>
    %1051 = arith.addf %1049, %1050 : vector<8x128xf32>
    %1052 = arith.negf %1051 : vector<8x128xf32>
    %1053 = math.exp %1052 : vector<8x128xf32>
    %cst_314 = arith.constant 1.000000e+00 : f32
    %1054 = vector.broadcast %cst_314 : f32 to vector<8x128xf32>
    %1055 = arith.addf %1054, %1053 : vector<8x128xf32>
    %1056 = arith.divf %1054, %1055 : vector<8x128xf32>
    %1057 = vector.extract_strided_slice %1038 {offsets = [0, 256], sizes = [8, 128], strides = [1, 1]} : vector<8x384xf32> to vector<8x128xf32>
    %1058 = vector.extract_strided_slice %1040 {offsets = [0, 256], sizes = [8, 128], strides = [1, 1]} : vector<8x384xf32> to vector<8x128xf32>
    %1059 = arith.addf %1058, %29 : vector<8x128xf32>
    %1060 = arith.mulf %1048, %1059 : vector<8x128xf32>
    %1061 = arith.addf %1057, %1060 : vector<8x128xf32>
    %1062 = math.tanh %1061 : vector<8x128xf32>
    %cst_315 = arith.constant 1.000000e+00 : f32
    %1063 = vector.broadcast %cst_315 : f32 to vector<8x128xf32>
    %1064 = arith.subf %1063, %1056 : vector<8x128xf32>
    %1065 = arith.mulf %1064, %1062 : vector<8x128xf32>
    %1066 = arith.mulf %1056, %1004 : vector<8x128xf32>
    %1067 = arith.addf %1065, %1066 : vector<8x128xf32>
    %c13 = arith.constant 13 : index
    %c0_316 = arith.constant 0 : index
    %c0_317 = arith.constant 0 : index
    %1068 = vector.load %arg17[%c13, %c0_316, %c0_317] : memref<16x8x384xf32, #tpu.memory_space<vmem>>, vector<1x8x384xf32>
    %1069 = vector.shape_cast %1068 : vector<1x8x384xf32> to vector<8x384xf32>
    %c0_318 = arith.constant 0 : index
    %c0_319 = arith.constant 0 : index
    %1070 = vector.load %arg7[%c0_318, %c0_319] : memref<128x384xf32, #tpu.memory_space<vmem>>, vector<128x384xf32>
    %cst_320 = arith.constant dense<0.000000e+00> : vector<8x384xf32>
    %1071 = tpu.matmul %1035, %1070, %cst_320 {dimension_numbers = #tpu.dot_dimension_numbers<[1], [0], [0], [1], [0, 0, 1, 1], [], []>} : vector<8x128xf32>, vector<128x384xf32>, vector<8x384xf32> -> vector<8x384xf32>
    %1072 = vector.extract_strided_slice %1069 {offsets = [0, 0], sizes = [8, 128], strides = [1, 1]} : vector<8x384xf32> to vector<8x128xf32>
    %1073 = vector.extract_strided_slice %1071 {offsets = [0, 0], sizes = [8, 128], strides = [1, 1]} : vector<8x384xf32> to vector<8x128xf32>
    %1074 = arith.addf %1072, %1073 : vector<8x128xf32>
    %1075 = arith.negf %1074 : vector<8x128xf32>
    %1076 = math.exp %1075 : vector<8x128xf32>
    %cst_321 = arith.constant 1.000000e+00 : f32
    %1077 = vector.broadcast %cst_321 : f32 to vector<8x128xf32>
    %1078 = arith.addf %1077, %1076 : vector<8x128xf32>
    %1079 = arith.divf %1077, %1078 : vector<8x128xf32>
    %1080 = vector.extract_strided_slice %1069 {offsets = [0, 128], sizes = [8, 128], strides = [1, 1]} : vector<8x384xf32> to vector<8x128xf32>
    %1081 = vector.extract_strided_slice %1071 {offsets = [0, 128], sizes = [8, 128], strides = [1, 1]} : vector<8x384xf32> to vector<8x128xf32>
    %1082 = arith.addf %1080, %1081 : vector<8x128xf32>
    %1083 = arith.negf %1082 : vector<8x128xf32>
    %1084 = math.exp %1083 : vector<8x128xf32>
    %cst_322 = arith.constant 1.000000e+00 : f32
    %1085 = vector.broadcast %cst_322 : f32 to vector<8x128xf32>
    %1086 = arith.addf %1085, %1084 : vector<8x128xf32>
    %1087 = arith.divf %1085, %1086 : vector<8x128xf32>
    %1088 = vector.extract_strided_slice %1069 {offsets = [0, 256], sizes = [8, 128], strides = [1, 1]} : vector<8x384xf32> to vector<8x128xf32>
    %1089 = vector.extract_strided_slice %1071 {offsets = [0, 256], sizes = [8, 128], strides = [1, 1]} : vector<8x384xf32> to vector<8x128xf32>
    %1090 = arith.addf %1089, %25 : vector<8x128xf32>
    %1091 = arith.mulf %1079, %1090 : vector<8x128xf32>
    %1092 = arith.addf %1088, %1091 : vector<8x128xf32>
    %1093 = math.tanh %1092 : vector<8x128xf32>
    %cst_323 = arith.constant 1.000000e+00 : f32
    %1094 = vector.broadcast %cst_323 : f32 to vector<8x128xf32>
    %1095 = arith.subf %1094, %1087 : vector<8x128xf32>
    %1096 = arith.mulf %1095, %1093 : vector<8x128xf32>
    %1097 = arith.mulf %1087, %1035 : vector<8x128xf32>
    %1098 = arith.addf %1096, %1097 : vector<8x128xf32>
    %c0_324 = arith.constant 0 : index
    %c0_325 = arith.constant 0 : index
    %1099 = vector.load %arg10[%c0_324, %c0_325] : memref<128x384xf32, #tpu.memory_space<vmem>>, vector<128x384xf32>
    %cst_326 = arith.constant dense<0.000000e+00> : vector<8x384xf32>
    %1100 = tpu.matmul %1035, %1099, %cst_326 {dimension_numbers = #tpu.dot_dimension_numbers<[1], [0], [0], [1], [0, 0, 1, 1], [], []>} : vector<8x128xf32>, vector<128x384xf32>, vector<8x384xf32> -> vector<8x384xf32>
    %1101 = arith.addf %1100, %32 : vector<8x384xf32>
    %c0_327 = arith.constant 0 : index
    %c0_328 = arith.constant 0 : index
    %1102 = vector.load %arg11[%c0_327, %c0_328] : memref<128x384xf32, #tpu.memory_space<vmem>>, vector<128x384xf32>
    %cst_329 = arith.constant dense<0.000000e+00> : vector<8x384xf32>
    %1103 = tpu.matmul %1067, %1102, %cst_329 {dimension_numbers = #tpu.dot_dimension_numbers<[1], [0], [0], [1], [0, 0, 1, 1], [], []>} : vector<8x128xf32>, vector<128x384xf32>, vector<8x384xf32> -> vector<8x384xf32>
    %1104 = vector.extract_strided_slice %1101 {offsets = [0, 0], sizes = [8, 128], strides = [1, 1]} : vector<8x384xf32> to vector<8x128xf32>
    %1105 = vector.extract_strided_slice %1103 {offsets = [0, 0], sizes = [8, 128], strides = [1, 1]} : vector<8x384xf32> to vector<8x128xf32>
    %1106 = arith.addf %1104, %1105 : vector<8x128xf32>
    %1107 = arith.negf %1106 : vector<8x128xf32>
    %1108 = math.exp %1107 : vector<8x128xf32>
    %cst_330 = arith.constant 1.000000e+00 : f32
    %1109 = vector.broadcast %cst_330 : f32 to vector<8x128xf32>
    %1110 = arith.addf %1109, %1108 : vector<8x128xf32>
    %1111 = arith.divf %1109, %1110 : vector<8x128xf32>
    %1112 = vector.extract_strided_slice %1101 {offsets = [0, 128], sizes = [8, 128], strides = [1, 1]} : vector<8x384xf32> to vector<8x128xf32>
    %1113 = vector.extract_strided_slice %1103 {offsets = [0, 128], sizes = [8, 128], strides = [1, 1]} : vector<8x384xf32> to vector<8x128xf32>
    %1114 = arith.addf %1112, %1113 : vector<8x128xf32>
    %1115 = arith.negf %1114 : vector<8x128xf32>
    %1116 = math.exp %1115 : vector<8x128xf32>
    %cst_331 = arith.constant 1.000000e+00 : f32
    %1117 = vector.broadcast %cst_331 : f32 to vector<8x128xf32>
    %1118 = arith.addf %1117, %1116 : vector<8x128xf32>
    %1119 = arith.divf %1117, %1118 : vector<8x128xf32>
    %1120 = vector.extract_strided_slice %1101 {offsets = [0, 256], sizes = [8, 128], strides = [1, 1]} : vector<8x384xf32> to vector<8x128xf32>
    %1121 = vector.extract_strided_slice %1103 {offsets = [0, 256], sizes = [8, 128], strides = [1, 1]} : vector<8x384xf32> to vector<8x128xf32>
    %1122 = arith.addf %1121, %29 : vector<8x128xf32>
    %1123 = arith.mulf %1111, %1122 : vector<8x128xf32>
    %1124 = arith.addf %1120, %1123 : vector<8x128xf32>
    %1125 = math.tanh %1124 : vector<8x128xf32>
    %cst_332 = arith.constant 1.000000e+00 : f32
    %1126 = vector.broadcast %cst_332 : f32 to vector<8x128xf32>
    %1127 = arith.subf %1126, %1119 : vector<8x128xf32>
    %1128 = arith.mulf %1127, %1125 : vector<8x128xf32>
    %1129 = arith.mulf %1119, %1067 : vector<8x128xf32>
    %1130 = arith.addf %1128, %1129 : vector<8x128xf32>
    %c14 = arith.constant 14 : index
    %c0_333 = arith.constant 0 : index
    %c0_334 = arith.constant 0 : index
    %1131 = vector.load %arg17[%c14, %c0_333, %c0_334] : memref<16x8x384xf32, #tpu.memory_space<vmem>>, vector<1x8x384xf32>
    %1132 = vector.shape_cast %1131 : vector<1x8x384xf32> to vector<8x384xf32>
    %c0_335 = arith.constant 0 : index
    %c0_336 = arith.constant 0 : index
    %1133 = vector.load %arg7[%c0_335, %c0_336] : memref<128x384xf32, #tpu.memory_space<vmem>>, vector<128x384xf32>
    %cst_337 = arith.constant dense<0.000000e+00> : vector<8x384xf32>
    %1134 = tpu.matmul %1098, %1133, %cst_337 {dimension_numbers = #tpu.dot_dimension_numbers<[1], [0], [0], [1], [0, 0, 1, 1], [], []>} : vector<8x128xf32>, vector<128x384xf32>, vector<8x384xf32> -> vector<8x384xf32>
    %1135 = vector.extract_strided_slice %1132 {offsets = [0, 0], sizes = [8, 128], strides = [1, 1]} : vector<8x384xf32> to vector<8x128xf32>
    %1136 = vector.extract_strided_slice %1134 {offsets = [0, 0], sizes = [8, 128], strides = [1, 1]} : vector<8x384xf32> to vector<8x128xf32>
    %1137 = arith.addf %1135, %1136 : vector<8x128xf32>
    %1138 = arith.negf %1137 : vector<8x128xf32>
    %1139 = math.exp %1138 : vector<8x128xf32>
    %cst_338 = arith.constant 1.000000e+00 : f32
    %1140 = vector.broadcast %cst_338 : f32 to vector<8x128xf32>
    %1141 = arith.addf %1140, %1139 : vector<8x128xf32>
    %1142 = arith.divf %1140, %1141 : vector<8x128xf32>
    %1143 = vector.extract_strided_slice %1132 {offsets = [0, 128], sizes = [8, 128], strides = [1, 1]} : vector<8x384xf32> to vector<8x128xf32>
    %1144 = vector.extract_strided_slice %1134 {offsets = [0, 128], sizes = [8, 128], strides = [1, 1]} : vector<8x384xf32> to vector<8x128xf32>
    %1145 = arith.addf %1143, %1144 : vector<8x128xf32>
    %1146 = arith.negf %1145 : vector<8x128xf32>
    %1147 = math.exp %1146 : vector<8x128xf32>
    %cst_339 = arith.constant 1.000000e+00 : f32
    %1148 = vector.broadcast %cst_339 : f32 to vector<8x128xf32>
    %1149 = arith.addf %1148, %1147 : vector<8x128xf32>
    %1150 = arith.divf %1148, %1149 : vector<8x128xf32>
    %1151 = vector.extract_strided_slice %1132 {offsets = [0, 256], sizes = [8, 128], strides = [1, 1]} : vector<8x384xf32> to vector<8x128xf32>
    %1152 = vector.extract_strided_slice %1134 {offsets = [0, 256], sizes = [8, 128], strides = [1, 1]} : vector<8x384xf32> to vector<8x128xf32>
    %1153 = arith.addf %1152, %25 : vector<8x128xf32>
    %1154 = arith.mulf %1142, %1153 : vector<8x128xf32>
    %1155 = arith.addf %1151, %1154 : vector<8x128xf32>
    %1156 = math.tanh %1155 : vector<8x128xf32>
    %cst_340 = arith.constant 1.000000e+00 : f32
    %1157 = vector.broadcast %cst_340 : f32 to vector<8x128xf32>
    %1158 = arith.subf %1157, %1150 : vector<8x128xf32>
    %1159 = arith.mulf %1158, %1156 : vector<8x128xf32>
    %1160 = arith.mulf %1150, %1098 : vector<8x128xf32>
    %1161 = arith.addf %1159, %1160 : vector<8x128xf32>
    %c0_341 = arith.constant 0 : index
    %c0_342 = arith.constant 0 : index
    %1162 = vector.load %arg10[%c0_341, %c0_342] : memref<128x384xf32, #tpu.memory_space<vmem>>, vector<128x384xf32>
    %cst_343 = arith.constant dense<0.000000e+00> : vector<8x384xf32>
    %1163 = tpu.matmul %1098, %1162, %cst_343 {dimension_numbers = #tpu.dot_dimension_numbers<[1], [0], [0], [1], [0, 0, 1, 1], [], []>} : vector<8x128xf32>, vector<128x384xf32>, vector<8x384xf32> -> vector<8x384xf32>
    %1164 = arith.addf %1163, %32 : vector<8x384xf32>
    %c0_344 = arith.constant 0 : index
    %c0_345 = arith.constant 0 : index
    %1165 = vector.load %arg11[%c0_344, %c0_345] : memref<128x384xf32, #tpu.memory_space<vmem>>, vector<128x384xf32>
    %cst_346 = arith.constant dense<0.000000e+00> : vector<8x384xf32>
    %1166 = tpu.matmul %1130, %1165, %cst_346 {dimension_numbers = #tpu.dot_dimension_numbers<[1], [0], [0], [1], [0, 0, 1, 1], [], []>} : vector<8x128xf32>, vector<128x384xf32>, vector<8x384xf32> -> vector<8x384xf32>
    %1167 = vector.extract_strided_slice %1164 {offsets = [0, 0], sizes = [8, 128], strides = [1, 1]} : vector<8x384xf32> to vector<8x128xf32>
    %1168 = vector.extract_strided_slice %1166 {offsets = [0, 0], sizes = [8, 128], strides = [1, 1]} : vector<8x384xf32> to vector<8x128xf32>
    %1169 = arith.addf %1167, %1168 : vector<8x128xf32>
    %1170 = arith.negf %1169 : vector<8x128xf32>
    %1171 = math.exp %1170 : vector<8x128xf32>
    %cst_347 = arith.constant 1.000000e+00 : f32
    %1172 = vector.broadcast %cst_347 : f32 to vector<8x128xf32>
    %1173 = arith.addf %1172, %1171 : vector<8x128xf32>
    %1174 = arith.divf %1172, %1173 : vector<8x128xf32>
    %1175 = vector.extract_strided_slice %1164 {offsets = [0, 128], sizes = [8, 128], strides = [1, 1]} : vector<8x384xf32> to vector<8x128xf32>
    %1176 = vector.extract_strided_slice %1166 {offsets = [0, 128], sizes = [8, 128], strides = [1, 1]} : vector<8x384xf32> to vector<8x128xf32>
    %1177 = arith.addf %1175, %1176 : vector<8x128xf32>
    %1178 = arith.negf %1177 : vector<8x128xf32>
    %1179 = math.exp %1178 : vector<8x128xf32>
    %cst_348 = arith.constant 1.000000e+00 : f32
    %1180 = vector.broadcast %cst_348 : f32 to vector<8x128xf32>
    %1181 = arith.addf %1180, %1179 : vector<8x128xf32>
    %1182 = arith.divf %1180, %1181 : vector<8x128xf32>
    %1183 = vector.extract_strided_slice %1164 {offsets = [0, 256], sizes = [8, 128], strides = [1, 1]} : vector<8x384xf32> to vector<8x128xf32>
    %1184 = vector.extract_strided_slice %1166 {offsets = [0, 256], sizes = [8, 128], strides = [1, 1]} : vector<8x384xf32> to vector<8x128xf32>
    %1185 = arith.addf %1184, %29 : vector<8x128xf32>
    %1186 = arith.mulf %1174, %1185 : vector<8x128xf32>
    %1187 = arith.addf %1183, %1186 : vector<8x128xf32>
    %1188 = math.tanh %1187 : vector<8x128xf32>
    %cst_349 = arith.constant 1.000000e+00 : f32
    %1189 = vector.broadcast %cst_349 : f32 to vector<8x128xf32>
    %1190 = arith.subf %1189, %1182 : vector<8x128xf32>
    %1191 = arith.mulf %1190, %1188 : vector<8x128xf32>
    %1192 = arith.mulf %1182, %1130 : vector<8x128xf32>
    %1193 = arith.addf %1191, %1192 : vector<8x128xf32>
    %c15 = arith.constant 15 : index
    %c0_350 = arith.constant 0 : index
    %c0_351 = arith.constant 0 : index
    %1194 = vector.load %arg17[%c15, %c0_350, %c0_351] : memref<16x8x384xf32, #tpu.memory_space<vmem>>, vector<1x8x384xf32>
    %1195 = vector.shape_cast %1194 : vector<1x8x384xf32> to vector<8x384xf32>
    %c0_352 = arith.constant 0 : index
    %c0_353 = arith.constant 0 : index
    %1196 = vector.load %arg7[%c0_352, %c0_353] : memref<128x384xf32, #tpu.memory_space<vmem>>, vector<128x384xf32>
    %cst_354 = arith.constant dense<0.000000e+00> : vector<8x384xf32>
    %1197 = tpu.matmul %1161, %1196, %cst_354 {dimension_numbers = #tpu.dot_dimension_numbers<[1], [0], [0], [1], [0, 0, 1, 1], [], []>} : vector<8x128xf32>, vector<128x384xf32>, vector<8x384xf32> -> vector<8x384xf32>
    %1198 = vector.extract_strided_slice %1195 {offsets = [0, 0], sizes = [8, 128], strides = [1, 1]} : vector<8x384xf32> to vector<8x128xf32>
    %1199 = vector.extract_strided_slice %1197 {offsets = [0, 0], sizes = [8, 128], strides = [1, 1]} : vector<8x384xf32> to vector<8x128xf32>
    %1200 = arith.addf %1198, %1199 : vector<8x128xf32>
    %1201 = arith.negf %1200 : vector<8x128xf32>
    %1202 = math.exp %1201 : vector<8x128xf32>
    %cst_355 = arith.constant 1.000000e+00 : f32
    %1203 = vector.broadcast %cst_355 : f32 to vector<8x128xf32>
    %1204 = arith.addf %1203, %1202 : vector<8x128xf32>
    %1205 = arith.divf %1203, %1204 : vector<8x128xf32>
    %1206 = vector.extract_strided_slice %1195 {offsets = [0, 128], sizes = [8, 128], strides = [1, 1]} : vector<8x384xf32> to vector<8x128xf32>
    %1207 = vector.extract_strided_slice %1197 {offsets = [0, 128], sizes = [8, 128], strides = [1, 1]} : vector<8x384xf32> to vector<8x128xf32>
    %1208 = arith.addf %1206, %1207 : vector<8x128xf32>
    %1209 = arith.negf %1208 : vector<8x128xf32>
    %1210 = math.exp %1209 : vector<8x128xf32>
    %cst_356 = arith.constant 1.000000e+00 : f32
    %1211 = vector.broadcast %cst_356 : f32 to vector<8x128xf32>
    %1212 = arith.addf %1211, %1210 : vector<8x128xf32>
    %1213 = arith.divf %1211, %1212 : vector<8x128xf32>
    %1214 = vector.extract_strided_slice %1195 {offsets = [0, 256], sizes = [8, 128], strides = [1, 1]} : vector<8x384xf32> to vector<8x128xf32>
    %1215 = vector.extract_strided_slice %1197 {offsets = [0, 256], sizes = [8, 128], strides = [1, 1]} : vector<8x384xf32> to vector<8x128xf32>
    %1216 = arith.addf %1215, %25 : vector<8x128xf32>
    %1217 = arith.mulf %1205, %1216 : vector<8x128xf32>
    %1218 = arith.addf %1214, %1217 : vector<8x128xf32>
    %1219 = math.tanh %1218 : vector<8x128xf32>
    %cst_357 = arith.constant 1.000000e+00 : f32
    %1220 = vector.broadcast %cst_357 : f32 to vector<8x128xf32>
    %1221 = arith.subf %1220, %1213 : vector<8x128xf32>
    %1222 = arith.mulf %1221, %1219 : vector<8x128xf32>
    %1223 = arith.mulf %1213, %1161 : vector<8x128xf32>
    %1224 = arith.addf %1222, %1223 : vector<8x128xf32>
    %c0_358 = arith.constant 0 : index
    %c0_359 = arith.constant 0 : index
    %1225 = vector.load %arg10[%c0_358, %c0_359] : memref<128x384xf32, #tpu.memory_space<vmem>>, vector<128x384xf32>
    %cst_360 = arith.constant dense<0.000000e+00> : vector<8x384xf32>
    %1226 = tpu.matmul %1161, %1225, %cst_360 {dimension_numbers = #tpu.dot_dimension_numbers<[1], [0], [0], [1], [0, 0, 1, 1], [], []>} : vector<8x128xf32>, vector<128x384xf32>, vector<8x384xf32> -> vector<8x384xf32>
    %1227 = arith.addf %1226, %32 : vector<8x384xf32>
    %c0_361 = arith.constant 0 : index
    %c0_362 = arith.constant 0 : index
    %1228 = vector.load %arg11[%c0_361, %c0_362] : memref<128x384xf32, #tpu.memory_space<vmem>>, vector<128x384xf32>
    %cst_363 = arith.constant dense<0.000000e+00> : vector<8x384xf32>
    %1229 = tpu.matmul %1193, %1228, %cst_363 {dimension_numbers = #tpu.dot_dimension_numbers<[1], [0], [0], [1], [0, 0, 1, 1], [], []>} : vector<8x128xf32>, vector<128x384xf32>, vector<8x384xf32> -> vector<8x384xf32>
    %1230 = vector.extract_strided_slice %1227 {offsets = [0, 0], sizes = [8, 128], strides = [1, 1]} : vector<8x384xf32> to vector<8x128xf32>
    %1231 = vector.extract_strided_slice %1229 {offsets = [0, 0], sizes = [8, 128], strides = [1, 1]} : vector<8x384xf32> to vector<8x128xf32>
    %1232 = arith.addf %1230, %1231 : vector<8x128xf32>
    %1233 = arith.negf %1232 : vector<8x128xf32>
    %1234 = math.exp %1233 : vector<8x128xf32>
    %cst_364 = arith.constant 1.000000e+00 : f32
    %1235 = vector.broadcast %cst_364 : f32 to vector<8x128xf32>
    %1236 = arith.addf %1235, %1234 : vector<8x128xf32>
    %1237 = arith.divf %1235, %1236 : vector<8x128xf32>
    %1238 = vector.extract_strided_slice %1227 {offsets = [0, 128], sizes = [8, 128], strides = [1, 1]} : vector<8x384xf32> to vector<8x128xf32>
    %1239 = vector.extract_strided_slice %1229 {offsets = [0, 128], sizes = [8, 128], strides = [1, 1]} : vector<8x384xf32> to vector<8x128xf32>
    %1240 = arith.addf %1238, %1239 : vector<8x128xf32>
    %1241 = arith.negf %1240 : vector<8x128xf32>
    %1242 = math.exp %1241 : vector<8x128xf32>
    %cst_365 = arith.constant 1.000000e+00 : f32
    %1243 = vector.broadcast %cst_365 : f32 to vector<8x128xf32>
    %1244 = arith.addf %1243, %1242 : vector<8x128xf32>
    %1245 = arith.divf %1243, %1244 : vector<8x128xf32>
    %1246 = vector.extract_strided_slice %1227 {offsets = [0, 256], sizes = [8, 128], strides = [1, 1]} : vector<8x384xf32> to vector<8x128xf32>
    %1247 = vector.extract_strided_slice %1229 {offsets = [0, 256], sizes = [8, 128], strides = [1, 1]} : vector<8x384xf32> to vector<8x128xf32>
    %1248 = arith.addf %1247, %29 : vector<8x128xf32>
    %1249 = arith.mulf %1237, %1248 : vector<8x128xf32>
    %1250 = arith.addf %1246, %1249 : vector<8x128xf32>
    %1251 = math.tanh %1250 : vector<8x128xf32>
    %cst_366 = arith.constant 1.000000e+00 : f32
    %1252 = vector.broadcast %cst_366 : f32 to vector<8x128xf32>
    %1253 = arith.subf %1252, %1245 : vector<8x128xf32>
    %1254 = arith.mulf %1253, %1251 : vector<8x128xf32>
    %1255 = arith.mulf %1245, %1193 : vector<8x128xf32>
    %1256 = arith.addf %1254, %1255 : vector<8x128xf32>
    %c0_367 = arith.constant 0 : index
    %c0_368 = arith.constant 0 : index
    %1257 = vector.load %arg10[%c0_367, %c0_368] : memref<128x384xf32, #tpu.memory_space<vmem>>, vector<128x384xf32>
    %cst_369 = arith.constant dense<0.000000e+00> : vector<8x384xf32>
    %1258 = tpu.matmul %1224, %1257, %cst_369 {dimension_numbers = #tpu.dot_dimension_numbers<[1], [0], [0], [1], [0, 0, 1, 1], [], []>} : vector<8x128xf32>, vector<128x384xf32>, vector<8x384xf32> -> vector<8x384xf32>
    %1259 = arith.addf %1258, %32 : vector<8x384xf32>
    %c0_370 = arith.constant 0 : index
    %c0_371 = arith.constant 0 : index
    %1260 = vector.load %arg11[%c0_370, %c0_371] : memref<128x384xf32, #tpu.memory_space<vmem>>, vector<128x384xf32>
    %cst_372 = arith.constant dense<0.000000e+00> : vector<8x384xf32>
    %1261 = tpu.matmul %1256, %1260, %cst_372 {dimension_numbers = #tpu.dot_dimension_numbers<[1], [0], [0], [1], [0, 0, 1, 1], [], []>} : vector<8x128xf32>, vector<128x384xf32>, vector<8x384xf32> -> vector<8x384xf32>
    %1262 = vector.extract_strided_slice %1259 {offsets = [0, 0], sizes = [8, 128], strides = [1, 1]} : vector<8x384xf32> to vector<8x128xf32>
    %1263 = vector.extract_strided_slice %1261 {offsets = [0, 0], sizes = [8, 128], strides = [1, 1]} : vector<8x384xf32> to vector<8x128xf32>
    %1264 = arith.addf %1262, %1263 : vector<8x128xf32>
    %1265 = arith.negf %1264 : vector<8x128xf32>
    %1266 = math.exp %1265 : vector<8x128xf32>
    %cst_373 = arith.constant 1.000000e+00 : f32
    %1267 = vector.broadcast %cst_373 : f32 to vector<8x128xf32>
    %1268 = arith.addf %1267, %1266 : vector<8x128xf32>
    %1269 = arith.divf %1267, %1268 : vector<8x128xf32>
    %1270 = vector.extract_strided_slice %1259 {offsets = [0, 128], sizes = [8, 128], strides = [1, 1]} : vector<8x384xf32> to vector<8x128xf32>
    %1271 = vector.extract_strided_slice %1261 {offsets = [0, 128], sizes = [8, 128], strides = [1, 1]} : vector<8x384xf32> to vector<8x128xf32>
    %1272 = arith.addf %1270, %1271 : vector<8x128xf32>
    %1273 = arith.negf %1272 : vector<8x128xf32>
    %1274 = math.exp %1273 : vector<8x128xf32>
    %cst_374 = arith.constant 1.000000e+00 : f32
    %1275 = vector.broadcast %cst_374 : f32 to vector<8x128xf32>
    %1276 = arith.addf %1275, %1274 : vector<8x128xf32>
    %1277 = arith.divf %1275, %1276 : vector<8x128xf32>
    %1278 = vector.extract_strided_slice %1259 {offsets = [0, 256], sizes = [8, 128], strides = [1, 1]} : vector<8x384xf32> to vector<8x128xf32>
    %1279 = vector.extract_strided_slice %1261 {offsets = [0, 256], sizes = [8, 128], strides = [1, 1]} : vector<8x384xf32> to vector<8x128xf32>
    %1280 = arith.addf %1279, %29 : vector<8x128xf32>
    %1281 = arith.mulf %1269, %1280 : vector<8x128xf32>
    %1282 = arith.addf %1278, %1281 : vector<8x128xf32>
    %1283 = math.tanh %1282 : vector<8x128xf32>
    %cst_375 = arith.constant 1.000000e+00 : f32
    %1284 = vector.broadcast %cst_375 : f32 to vector<8x128xf32>
    %1285 = arith.subf %1284, %1277 : vector<8x128xf32>
    %1286 = arith.mulf %1285, %1283 : vector<8x128xf32>
    %1287 = arith.mulf %1277, %1256 : vector<8x128xf32>
    %1288 = arith.addf %1286, %1287 : vector<8x128xf32>
    %c0_376 = arith.constant 0 : index
    %c0_377 = arith.constant 0 : index
    %1289 = vector.load %arg14[%c0_376, %c0_377] : memref<8x128xf32, #tpu.memory_space<vmem>>, vector<8x128xf32>
    tpu.vector_store %arg14[%c0_376, %c0_377], %689 {strides = array<i32>} : memref<8x128xf32, #tpu.memory_space<vmem>>, vector<8x128xf32>,
    %c0_378 = arith.constant 0 : index
    %c0_379 = arith.constant 0 : index
    %1290 = vector.load %arg15[%c0_378, %c0_379] : memref<8x128xf32, #tpu.memory_space<vmem>>, vector<8x128xf32>
    tpu.vector_store %arg15[%c0_378, %c0_379], %1288 {strides = array<i32>} : memref<8x128xf32, #tpu.memory_space<vmem>>, vector<8x128xf32>,
    return
  }
}

</mosaic_0001>

<bundles_post_ra>
// kernel: two_tower_forward.1
= control target key start
LH: loop header
LB: loop body
LE: loop exit
PB: predicated region body
PF: predicated region fallthrough
CT: control target
= control target key end

     0   :  { %21 = vsyncpa [#allocation5], 0  ;;  %s20381_s0 = inlined_call_operand.vmem [shape: f32[8,8,128], index: 0, kind: input, shape index: {}]   ;;  %s20382_s1 = inlined_call_operand.vmem [shape: f32[16,8,128], index: 1, kind: input, shape index: {}]   ;;  %s20383_s2 = inlined_call_operand.vmem [shape: f32[128,384], index: 2, kind: input, shape index: {}]   ;;  %s20384_s3 = inlined_call_operand.vmem [shape: f32[128,384], index: 3, kind: input, shape index: {}]   ;;  %s20385_s4 = inlined_call_operand.vmem [shape: f32[1,384], index: 4, kind: input, shape index: {}]   ;;  %s20386_s5 = inlined_call_operand.vmem [shape: f32[1,128], index: 5, kind: input, shape index: {}]   ;;  %s20387_s6 = inlined_call_operand.hbm [shape: f32[128,384], index: 6, kind: input, shape index: {}]   ;;  %s20388_s7 = inlined_call_operand.hbm [shape: f32[128,384], index: 7, kind: input, shape index: {}]   ;;  %s20389_s8 = inlined_call_operand.vmem [shape: f32[1,384], index: 8, kind: input, shape index: {}]   ;;  %s20390_s9 = inlined_call_operand.vmem [shape: f32[1,128], index: 9, kind: input, shape index: {}]   ;;  %s20391_s10 = inlined_call_operand.hbm [shape: f32[128,384], index: 10, kind: input, shape index: {}]   ;;  %s20392_s11 = inlined_call_operand.hbm [shape: f32[128,384], index: 11, kind: input, shape index: {}]   ;;  %s20393_s12 = inlined_call_operand.vmem [shape: f32[1,384], index: 12, kind: input, shape index: {}]   ;;  %s20394_s13 = inlined_call_operand.vmem [shape: f32[1,128], index: 13, kind: input, shape index: {}]   ;;  %s20395_s14 = inlined_call_operand.vmem [shape: f32[8,128], index: 14, kind: output, shape index: {0}]   ;;  %s20396_s15 = inlined_call_operand.vmem [shape: f32[8,128], index: 15, kind: output, shape index: {1}]  }
   0x1   :  { %22 = vsyncpa [#allocation7], 0 }
   0x2   :  { %23 = vsyncpa [#allocation10], 0  ;;  %s17055_s18 = smov [#allocation6]   ;;  %s17056_s20 = smov [#allocation4]  }
   0x3   :  { %s53_s19 = sshll.u32 %s17055_s18, 4  ;;  %s41_s21 = sshll.u32 %s17056_s20, 4  ;;  %s54_s19 = int_to_ptr.vmem [resolvable:$true] %s53_s19  ;;  %s17144_s21 = int_to_ptr.vmem [resolvable:$true] %s41_s21 }
   0x4   :  { %s16961_s24 = scalar_lea.hbm %s20388_s7, 6144 }
   0x5   :  { %p16962_p0 = scmp.ne.s32.totalorder %s20388_s7, %s16961_s24  ;;  %p16965_p1 = scmp.lt.u32.totalorder %s16961_s24, %s20388_s7 }
   0x7   :  { %p16967_p2 = pnand %p16965_p1, %p16962_p0 }
   0x9   :  { %16970 = shalt.err (!%p16967_p2)
}
   0xa   :  { %s16971_s29 = scalar_lea.vmem %s54_s19, 6144  ;;  %p16976_p4 = scmp.lt.s32.totalorder %s54_s19, %s54_s19 }
   0xb   :  { %p16972_p3 = scmp.ne.s32.totalorder %s54_s19, %s16971_s29  ;;  %p16977_p5 = scmp.lt.s32.totalorder %s16971_s29, %s16971_s29 }
   0xd   :  { %p16978_p6 = por %p16977_p5, %p16976_p4 }
   0xf   :  { %p16979_p7 = pnand %p16978_p6, %p16972_p3 }
  0x11   :  { %16982 = shalt.err (!%p16979_p7)
}
  0x12   :  { %s17057_s30 = smov 384   ;;  %s17058_s16 = smov 24  }
  0x13   :  { %59 = dma.hbm_to_vmem [thread:$0]  %s20388_s7, 6144, %s54_s19, [#allocation7], %s17057_s30, %s17057_s30, %s17058_s16  }
  0x14   :  { %s16983_s23 = scalar_lea.hbm %s20387_s6, 6144 }
  0x15   :  { %p16984_p8 = scmp.ne.s32.totalorder %s20387_s6, %s16983_s23  ;;  %p16987_p9 = scmp.lt.u32.totalorder %s16983_s23, %s20387_s6 }
  0x17   :  { %p16989_p10 = pnand %p16987_p9, %p16984_p8 }
  0x19   :  { %16992 = shalt.err (!%p16989_p10)
}
  0x1a   :  { %s16993_s28 = scalar_lea.vmem %s17144_s21, 6144  ;;  %p16998_p12 = scmp.lt.s32.totalorder %s17144_s21, %s17144_s21 }
  0x1b   :  { %p16994_p11 = scmp.ne.s32.totalorder %s17144_s21, %s16993_s28  ;;  %p16999_p13 = scmp.lt.s32.totalorder %s16993_s28, %s16993_s28 }
  0x1d   :  { %p17000_p0 = por %p16999_p13, %p16998_p12 }
  0x1f   :  { %p17001_p1 = pnand %p17000_p0, %p16994_p11 }
  0x21   :  { %17004 = shalt.err (!%p17001_p1)
}
  0x22   :  { %47 = dma.hbm_to_vmem [thread:$0]  %s20387_s6, 6144, %s17144_s21, [#allocation5], %s17057_s30, %s17057_s30, %s17058_s16  }
  0x23   :  { %s17059_s29 = smov [#allocation8]   ;;  %s17060_s18 = smov [#allocation9]  }
  0x24   :  { %s69_s17 = sshll.u32 %s17059_s29, 4  ;;  %s81_s20 = sshll.u32 %s17060_s18, 4  ;;  %s70_s17 = int_to_ptr.vmem [resolvable:$true] %s69_s17  ;;  %s17181_s20 = int_to_ptr.vmem [resolvable:$true] %s81_s20 }
  0x25   :  { %s17005_s24 = scalar_lea.hbm %s20391_s10, 6144 }
  0x26   :  { %p17006_p2 = scmp.ne.s32.totalorder %s20391_s10, %s17005_s24  ;;  %p17009_p3 = scmp.lt.u32.totalorder %s17005_s24, %s20391_s10 }
  0x28   :  { %p17011_p4 = pnand %p17009_p3, %p17006_p2 }
  0x2a   :  { %17014 = shalt.err (!%p17011_p4)
}
  0x2b   :  { %s17015_s6 = scalar_lea.vmem %s70_s17, 6144  ;;  %p17020_p6 = scmp.lt.s32.totalorder %s70_s17, %s70_s17 }
  0x2c   :  { %p17016_p5 = scmp.ne.s32.totalorder %s70_s17, %s17015_s6  ;;  %p17021_p7 = scmp.lt.s32.totalorder %s17015_s6, %s17015_s6 }
  0x2e   :  { %p17022_p8 = por %p17021_p7, %p17020_p6 }
  0x30   :  { %p17023_p9 = pnand %p17022_p8, %p17016_p5 }
  0x32   :  { %17026 = shalt.err (!%p17023_p9)
}
  0x33   :  { %75 = dma.hbm_to_vmem [thread:$0]  %s20391_s10, 6144, %s70_s17, [#allocation7], %s17057_s30, %s17057_s30, %s17058_s16  }
  0x34   :  { %s17027_s18 = scalar_lea.hbm %s20392_s11, 6144 }
  0x35   :  { %p17028_p10 = scmp.ne.s32.totalorder %s20392_s11, %s17027_s18  ;;  %p17031_p11 = scmp.lt.u32.totalorder %s17027_s18, %s20392_s11 }
  0x37   :  { %p17033_p12 = pnand %p17031_p11, %p17028_p10 }
  0x39   :  { %17036 = shalt.err (!%p17033_p12)
}
  0x3a   :  { %s17037_s26 = scalar_lea.vmem %s17181_s20, 6144  ;;  %p17042_p0 = scmp.lt.s32.totalorder %s17181_s20, %s17181_s20 }
  0x3b   :  { %p17038_p13 = scmp.ne.s32.totalorder %s17181_s20, %s17037_s26  ;;  %p17043_p1 = scmp.lt.s32.totalorder %s17037_s26, %s17037_s26 }
  0x3d   :  { %p17044_p2 = por %p17043_p1, %p17042_p0 }
  0x3f   :  { %p17045_p3 = pnand %p17044_p2, %p17038_p13 }
  0x41   :  { %17048 = shalt.err (!%p17045_p3)
}
  0x42   :  { %87 = dma.hbm_to_vmem [thread:$0]  %s20392_s11, 6144, %s17181_s20, [#allocation10], %s17057_s30, %s17057_s30, %s17058_s16  }
  0x43   :  { %17049 = dma.done.wait [#allocation5], 6144  }
  0x44   :  { %17050 = vsyncadd [#allocation5], 4294961152 }
  0x45   :  { %17051 = dma.done.wait [#allocation7], 12288  }
  0x46   :  { %17052 = vsyncadd [#allocation7], 4294955008 }
  0x47   :  { %17053 = dma.done.wait [#allocation10], 6144  }
  0x48   :  { %17054 = vsyncadd [#allocation10], 4294961152  ;;  %v20397_v0 = vmov 0.0   ;;  %v113_v1 = vld [vmem:[%s20383_s2 + $0x8] sm:$0xff]  ;;  %v116_v2 = vld [vmem:[%s20383_s2 + $0x20] sm:$0xff]  ;;  %vm17063_vm0 = vmmov 0  }
  0x49   :  { %241 = vmatprep.mubr.f32.mxu0 %v20397_v0  ;;  %v112_v3 = vld [vmem:[%s20383_s2] sm:$0xff]  ;;  %v13118_v4 = vpack.c.bf16 %v116_v2, %v113_v1  ;;  %v115_v5 = vld [vmem:[%s20383_s2 + $0x18] sm:$0xff]  ;;  %v122_v7 = vld [vmem:[%s20383_s2 + $0x50] sm:$0xff] }
  0x4a   :  { %v119_v6 = vld [vmem:[%s20383_s2 + $0x38] sm:$0xff]  ;;  %v13120_v8 = vpack.c.bf16 %v115_v5, %v112_v3  ;;  %v118_v10 = vld [vmem:[%s20383_s2 + $0x30] sm:$0xff]  ;;  %v121_v11 = vld [vmem:[%s20383_s2 + $0x48] sm:$0xff] }
  0x4b   :  { %v13122_v9 = vpack.c.bf16 %v122_v7, %v119_v6  ;;  %v125_v12 = vld [vmem:[%s20383_s2 + $0x68] sm:$0xff]  ;;  %13119 = vmatprep.subr.bf16.mxu0 %v13118_v4  ;;  %v128_v13 = vld [vmem:[%s20383_s2 + $0x80] sm:$0xff]  ;;  %v13124_v14 = vpack.c.bf16 %v121_v11, %v118_v10  ;;  %v127_v17 = vld [vmem:[%s20383_s2 + $0x78] sm:$0xff] }
  0x4c   :  { %13121 = vmatpush1.bf16.msra.mxu0 %v13120_v8  ;;  %v13126_v15 = vpack.c.bf16 %v128_v13, %v125_v12  ;;  %v124_v16 = vld [vmem:[%s20383_s2 + $0x60] sm:$0xff]  ;;  %v131_v18 = vld [vmem:[%s20383_s2 + $0x98] sm:$0xff]  ;;  %v134_v19 = vld [vmem:[%s20383_s2 + $0xb0] sm:$0xff] }
  0x4d   :  { %13123 = vmatprep.subr.bf16.mxu0 %v13122_v9  ;;  %v13128_v20 = vpack.c.bf16 %v127_v17, %v124_v16  ;;  %v13130_v21 = vpack.c.bf16 %v134_v19, %v131_v18  ;;  %v130_v22 = vld [vmem:[%s20383_s2 + $0x90] sm:$0xff]  ;;  %v133_v23 = vld [vmem:[%s20383_s2 + $0xa8] sm:$0xff]  ;;  %v140_v25 = vld [vmem:[%s20383_s2 + $0xe0] sm:$0xff] }
  0x4e   :  { %v137_v24 = vld [vmem:[%s20383_s2 + $0xc8] sm:$0xff]  ;;  %v17276_v26 = vld [vmem:[%s20381_s0] sm:$0xff]  ;;  %v13132_v27 = vpack.c.bf16 %v133_v23, %v130_v22  ;;  %v139_v30 = vld [vmem:[%s20383_s2 + $0xd8] sm:$0xff] }
  0x4f   :  { %11090 = vmatprep.mubr.f32.mxu1 %v17276_v26  ;;  %v13134_v28 = vpack.c.bf16 %v140_v25, %v137_v24  ;;  %v136_v29 = vld [vmem:[%s20383_s2 + $0xc0] sm:$0xff]  ;;  %v143_v31 = vld [vmem:[%s20383_s2 + $0xf8] sm:$0xff]  ;;  %v146_v32 = vld [vmem:[%s20383_s2 + $0x110] sm:$0xff] }
  0x50   :  { %13125 = vmatpush1.bf16.msra.mxu0 %v13124_v14  ;;  %v13136_v33 = vpack.c.bf16 %v139_v30, %v136_v29  ;;  %v13138_v34 = vpack.c.bf16 %v146_v32, %v143_v31  ;;  %v142_v35 = vld [vmem:[%s20383_s2 + $0xf0] sm:$0xff]  ;;  %v145_v36 = vld [vmem:[%s20383_s2 + $0x108] sm:$0xff]  ;;  %v152_v38 = vld [vmem:[%s20383_s2 + $0x140] sm:$0xff] }
  0x51   :  { %13127 = vmatprep.subr.bf16.mxu0 %v13126_v15  ;;  %v149_v37 = vld [vmem:[%s20383_s2 + $0x128] sm:$0xff]  ;;  %v13140_v39 = vpack.c.bf16 %v145_v36, %v142_v35  ;;  %v148_v41 = vld [vmem:[%s20383_s2 + $0x120] sm:$0xff]  ;;  %v151_v42 = vld [vmem:[%s20383_s2 + $0x138] sm:$0xff] }
  0x52   :  { %v13142_v40 = vpack.c.bf16 %v152_v38, %v149_v37  ;;  %v114_v43 = vld [vmem:[%s20383_s2 + $0x10] sm:$0xff]  ;;  %v155_v44 = vld [vmem:[%s20383_s2 + $0x158] sm:$0xff]  ;;  %v117_v46 = vld [vmem:[%s20383_s2 + $0x28] sm:$0xff]  ;;  %v13144_v48 = vpack.c.bf16 %v151_v42, %v148_v41 }
  0x53   :  { %v158_v45 = vld [vmem:[%s20383_s2 + $0x170] sm:$0xff]  ;;  %v13150_v47 = vpack.c.bf16 %v117_v46, %v114_v43  ;;  %v120_v49 = vld [vmem:[%s20383_s2 + $0x40] sm:$0xff]  ;;  %v123_v50 = vld [vmem:[%s20383_s2 + $0x58] sm:$0xff] }
  0x54   :  { %13129 = vmatpush1.bf16.msra.mxu0 %v13128_v20  ;;  %v13146_v51 = vpack.c.bf16 %v158_v45, %v155_v44  ;;  %v154_v52 = vld [vmem:[%s20383_s2 + $0x150] sm:$0xff]  ;;  %v157_v53 = vld [vmem:[%s20383_s2 + $0x168] sm:$0xff]  ;;  %v13154_v55 = vpack.c.bf16 %v123_v50, %v120_v49  ;;  %v439_v56 = vld [vmem:[#allocation4 + $0x20] sm:$0xff] }
  0x55   :  { %13131 = vmatprep.subr.bf16.mxu0 %v13130_v21  ;;  %v436_v54 = vld [vmem:[#allocation4 + $0x8] sm:$0xff]  ;;  %13151 = vmatprep.subr.bf16.mxu1 %v13150_v47  ;;  %v126_v57 = vld [vmem:[%s20383_s2 + $0x70] sm:$0xff]  ;;  %v13148_v60 = vpack.c.bf16 %v157_v53, %v154_v52  ;;  %v132_v61 = vld [vmem:[%s20383_s2 + $0xa0] sm:$0xff] }
  0x56   :  { %13153 = vmatpush3.bf16.msra.mxu1 %v13150_v47  ;;  %v129_v58 = vld [vmem:[%s20383_s2 + $0x88] sm:$0xff]  ;;  %v135_v62 = vld [vmem:[%s20383_s2 + $0xb8] sm:$0xff]  ;;  %v13182_v63 = vpack.c.bf16 %v439_v56, %v436_v54  ;;  %v435_v1 = vld [vmem:[#allocation4] sm:$0xff] }
  0x57   :  { %13155 = vmatprep.subr.bf16.mxu1 %v13154_v55  ;;  %v13158_v59 = vpack.c.bf16 %v129_v58, %v126_v57  ;;  %v438_v2 = vld [vmem:[#allocation4 + $0x18] sm:$0xff]  ;;  %v445_v4 = vld [vmem:[#allocation4 + $0x50] sm:$0xff]  ;;  %v13162_v5 = vpack.c.bf16 %v135_v62, %v132_v61  ;;  %v141_v8 = vld [vmem:[%s20383_s2 + $0xe8] sm:$0xff] }
  0x58   :  { %13133 = vmatpush1.bf16.msra.mxu0 %v13132_v27  ;;  %v442_v3 = vld [vmem:[#allocation4 + $0x38] sm:$0xff]  ;;  %v13184_v6 = vpack.c.bf16 %v438_v2, %v435_v1  ;;  %v138_v7 = vld [vmem:[%s20383_s2 + $0xd0] sm:$0xff]  ;;  %v444_v11 = vld [vmem:[#allocation4 + $0x48] sm:$0xff] }
  0x59   :  { %13135 = vmatprep.subr.bf16.mxu0 %v13134_v28  ;;  %v13186_v9 = vpack.c.bf16 %v445_v4, %v442_v3  ;;  %v441_v10 = vld [vmem:[#allocation4 + $0x30] sm:$0xff]  ;;  %v448_v12 = vld [vmem:[#allocation4 + $0x68] sm:$0xff]  ;;  %v451_v13 = vld [vmem:[#allocation4 + $0x80] sm:$0xff]  ;;  %v13166_v14 = vpack.c.bf16 %v141_v8, %v138_v7 }
  0x5a   :  { %13157 = vmatpush3.bf16.msra.mxu1 %v13154_v55  ;;  %v17356_v15 = vld [vmem:[%s20381_s0 + $0x8] sm:$0xff]  ;;  %v13188_v16 = vpack.c.bf16 %v444_v11, %v441_v10  ;;  %v144_v17 = vld [vmem:[%s20383_s2 + $0x100] sm:$0xff]  ;;  %v147_v18 = vld [vmem:[%s20383_s2 + $0x118] sm:$0xff]  ;;  %v13190_v19 = vpack.c.bf16 %v451_v13, %v448_v12 }
  0x5b   :  { %13159 = vmatprep.subr.bf16.mxu1 %v13158_v59  ;;  %v447_v20 = vld [vmem:[#allocation4 + $0x60] sm:$0xff]  ;;  %v450_v21 = vld [vmem:[#allocation4 + $0x78] sm:$0xff]  ;;  %v457_v23 = vld [vmem:[#allocation4 + $0xb0] sm:$0xff]  ;;  %v13170_v24 = vpack.c.bf16 %v147_v18, %v144_v17 }
  0x5c   :  { %13137 = vmatpush1.bf16.msra.mxu0 %v13136_v33  ;;  %v454_v22 = vld [vmem:[#allocation4 + $0x98] sm:$0xff]  ;;  %v17369_v25 = vld [vmem:[%s20381_s0 + $0x10] sm:$0xff]  ;;  %v153_v28 = vld [vmem:[%s20383_s2 + $0x148] sm:$0xff] }
  0x5d   :  { %13139 = vmatprep.subr.bf16.mxu0 %v13138_v34  ;;  %v150_v27 = vld [vmem:[%s20383_s2 + $0x130] sm:$0xff]  ;;  %v13194_v29 = vpack.c.bf16 %v457_v23, %v454_v22  ;;  %v456_v31 = vld [vmem:[#allocation4 + $0xa8] sm:$0xff]  ;;  %v463_v33 = vld [vmem:[#allocation4 + $0xe0] sm:$0xff] }
  0x5e   :  { %13161 = vmatpush3.bf16.msra.mxu1 %v13158_v59  ;;  %v453_v30 = vld [vmem:[#allocation4 + $0x90] sm:$0xff]  ;;  %v460_v32 = vld [vmem:[#allocation4 + $0xc8] sm:$0xff]  ;;  %v13174_v34 = vpack.c.bf16 %v153_v28, %v150_v27  ;;  %v17382_v35 = vld [vmem:[%s20381_s0 + $0x18] sm:$0xff] }
  0x5f   :  { %13163 = vmatprep.subr.bf16.mxu1 %v13162_v5  ;;  %v13196_v36 = vpack.c.bf16 %v456_v31, %v453_v30  ;;  %v156_v37 = vld [vmem:[%s20383_s2 + $0x160] sm:$0xff]  ;;  %v159_v38 = vld [vmem:[%s20383_s2 + $0x178] sm:$0xff]  ;;  %v469_v43 = vld [vmem:[#allocation4 + $0x110] sm:$0xff] }
  0x60   :  { %13141 = vmatpush1.bf16.msra.mxu0 %v13140_v39  ;;  %v13198_v39 = vpack.c.bf16 %v463_v33, %v460_v32  ;;  %v462_v41 = vld [vmem:[#allocation4 + $0xd8] sm:$0xff]  ;;  %v13178_v44 = vpack.c.bf16 %v159_v38, %v156_v37  ;;  %v108_v45 = vld [vmem:[%s20381_s0 + $0x20] sm:$0xff]  ;;  %v437_v47 = vld [vmem:[#allocation4 + $0x10] sm:$0xff] }
  0x61   :  { %13143 = vmatprep.subr.bf16.mxu0 %v13142_v40  ;;  %v459_v40 = vld [vmem:[#allocation4 + $0xc0] sm:$0xff]  ;;  %v466_v42 = vld [vmem:[#allocation4 + $0xf8] sm:$0xff]  ;;  %v465_v50 = vld [vmem:[#allocation4 + $0xf0] sm:$0xff] }
  0x62   :  { %13165 = vmatpush3.bf16.msra.mxu1 %v13162_v5  ;;  %v13200_v46 = vpack.c.bf16 %v462_v41, %v459_v40  ;;  %v13202_v49 = vpack.c.bf16 %v469_v43, %v466_v42  ;;  %v472_v52 = vld [vmem:[#allocation4 + $0x128] sm:$0xff]  ;;  %v475_v53 = vld [vmem:[#allocation4 + $0x140] sm:$0xff]  ;;  %v446_v58 = vld [vmem:[#allocation4 + $0x58] sm:$0xff] }
  0x63   :  { %13167 = vmatprep.subr.bf16.mxu1 %v13166_v14  ;;  %v109_v55 = vld [vmem:[%s20381_s0 + $0x28] sm:$0xff]  ;;  %v443_v57 = vld [vmem:[#allocation4 + $0x40] sm:$0xff]  ;;  %v13206_v59 = vpack.c.bf16 %v475_v53, %v472_v52  ;;  %v474_v61 = vld [vmem:[#allocation4 + $0x138] sm:$0xff] }
  0x64   :  { %13145 = vmatpush1.bf16.msra.mxu0 %v13144_v48  ;;  %v440_v48 = vld [vmem:[#allocation4 + $0x28] sm:$0xff]  ;;  %v478_v62 = vld [vmem:[#allocation4 + $0x158] sm:$0xff]  ;;  %v13218_v1 = vpack.c.bf16 %v446_v58, %v443_v57  ;;  %v110_v2 = vld [vmem:[%s20381_s0 + $0x30] sm:$0xff] }
  0x65   :  { %13147 = vmatprep.subr.bf16.mxu0 %v13146_v51  ;;  %v468_v51 = vld [vmem:[#allocation4 + $0x108] sm:$0xff]  ;;  %v13214_v54 = vpack.c.bf16 %v440_v48, %v437_v47  ;;  %v449_v4 = vld [vmem:[#allocation4 + $0x70] sm:$0xff]  ;;  %v899_v10 = vld [vmem:[%s20384_s3 + $0x20] sm:$0xff] }
  0x66   :  { %13169 = vmatpush3.bf16.msra.mxu1 %v13166_v14  ;;  %v13204_v56 = vpack.c.bf16 %v468_v51, %v465_v50  ;;  %v452_v5 = vld [vmem:[#allocation4 + $0x88] sm:$0xff]  ;;  %v477_v7 = vld [vmem:[#allocation4 + $0x150] sm:$0xff]  ;;  %v111_v12 = vld [vmem:[%s20381_s0 + $0x38] sm:$0xff] }
  0x67   :  { %13171 = vmatprep.subr.bf16.mxu1 %v13170_v24  ;;  %v480_v8 = vld [vmem:[#allocation4 + $0x168] sm:$0xff]  ;;  %v13222_v11 = vpack.c.bf16 %v452_v5, %v449_v4  ;;  %v455_v14 = vld [vmem:[#allocation4 + $0xa0] sm:$0xff]  ;;  %v898_v18 = vld [vmem:[%s20384_s3 + $0x18] sm:$0xff] }
  0x68   :  { %13149 = vmatpush1.bf16.msra.mxu0 %v13148_v60  ;;  %v471_v60 = vld [vmem:[#allocation4 + $0x120] sm:$0xff]  ;;  %v13212_v13 = vpack.c.bf16 %v480_v8, %v477_v7  ;;  %v901_v27 = vld [vmem:[%s20384_s3 + $0x30] sm:$0xff]  ;;  %v904_v28 = vld [vmem:[%s20384_s3 + $0x48] sm:$0xff] }
  0x69   :  { %13183 = vmatprep.subr.bf16.mxu0 %v13182_v63  ;;  %v481_v63 = vld [vmem:[#allocation4 + $0x170] sm:$0xff]  ;;  %v13208_v3 = vpack.c.bf16 %v474_v61, %v471_v60  ;;  %v895_v17 = vld [vmem:[%s20384_s3] sm:$0xff]  ;;  %v17456_v32 = vld [vmem:[%s20382_s1 + $0x8] sm:$0xff]  ;;  %v17458_v33 = vpack.c.bf16 %v904_v28, %v901_v27 }
  0x6a   :  { %13173 = vmatpush3.bf16.msra.mxu1 %v13170_v24  ;;  %v419_v22 = vld [vmem:[%s20382_s1] sm:$0xff]  ;;  %v17434_v23 = vpack.c.bf16 %v898_v18, %v895_v17  ;;  %v461_v24 = vld [vmem:[#allocation4 + $0xd0] sm:$0xff]  ;;  %v910_v38 = vld [vmem:[%s20384_s3 + $0x78] sm:$0xff]  ;;  %v20399_v17 = vmov 0.0|0.0  }
  0x6b   :  { %242 = vmatmul.mubr.f32.vlgmr.msra.gmra.mrb[0].mxu0 %v17276_v26  ;;  %v13192_v26 = vpack.c.bf16 %v450_v21, %v447_v20  ;;  %13175 = vmatprep.subr.bf16.mxu1 %v13174_v34  ;;  %v905_v20 = vld [vmem:[%s20384_s3 + $0x50] sm:$0xff]  ;;  %v911_v30 = vld [vmem:[%s20384_s3 + $0x80] sm:$0xff]  ;;  %20664 = vst [vmem:[#allocation17_spill] sm:$0xff] %v17458_v33  ;;  %v916_v48 = vld [vmem:[%s20384_s3 + $0xa8] sm:$0xff] }
  0x6c   :  { %13185 = vmatpush1.bf16.msra.mxu0 %v13184_v6  ;;  %247 = vmatprep.mubr.f32.mxu0 %v20397_v0  ;;  %v13210_v6 = vpack.c.bf16 %v481_v63, %v478_v62  ;;  %20662 = vst [vmem:[#allocation15_spill] sm:$0xff] %v17434_v23  ;;  %v907_v37 = vld [vmem:[%s20384_s3 + $0x60] sm:$0xff]  ;;  %v917_v40 = vld [vmem:[%s20384_s3 + $0xb0] sm:$0xff]  ;;  %v17505_v52 = vld [vmem:[%s20382_s1 + $0x18] sm:$0xff] }
  0x6d   :  { %13187 = vmatprep.subr.bf16.mxu0 %v13186_v9  ;;  %v896_v9 = vld [vmem:[%s20384_s3 + $0x8] sm:$0xff]  ;;  %v17480_v42 = vld [vmem:[%s20382_s1 + $0x10] sm:$0xff]  ;;  %v17483_v43 = vpack.c.bf16 %v910_v38, %v907_v37  ;;  %v923_v50 = vld [vmem:[%s20384_s3 + $0xe0] sm:$0xff] }
  0x6e   :  { %13177 = vmatpush3.bf16.msra.mxu1 %v13174_v34  ;;  %v467_v34 = vld [vmem:[#allocation4 + $0x100] sm:$0xff]  ;;  %v913_v47 = vld [vmem:[%s20384_s3 + $0x90] sm:$0xff]  ;;  %v922_v58 = vld [vmem:[%s20384_s3 + $0xd8] sm:$0xff] }
  0x6f   :  { %248 = vmatmul.mubr.f32.gmra.mrb[2].mxu0 %v17356_v15  ;;  %13179 = vmatprep.subr.bf16.mxu1 %v13178_v44  ;;  %20666 = vst [vmem:[#allocation19_spill] sm:$0xff] %v17483_v43  ;;  %v17508_v53 = vpack.c.bf16 %v916_v48, %v913_v47  ;;  %v919_v57 = vld [vmem:[%s20384_s3 + $0xc0] sm:$0xff]  ;;  %v929_v60 = vld [vmem:[%s20384_s3 + $0x110] sm:$0xff]  ;;  %v932_v4 = vld [vmem:[%s20384_s3 + $0x128] sm:$0xff] }
  0x70   :  { %13189 = vmatpush1.bf16.msra.mxu0 %v13188_v16  ;;  %253 = vmatprep.mubr.f32.mxu0 %v20397_v0  ;;  %v17415_v16 = vpack.c.bf16 %v899_v10, %v896_v9  ;;  %v423_v62 = vld [vmem:[%s20382_s1 + $0x20] sm:$0xff]  ;;  %v17531_v63 = vpack.c.bf16 %v922_v58, %v919_v57  ;;  %v900_v7 = vld [vmem:[%s20384_s3 + $0x28] sm:$0xff] }
  0x71   :  { %13191 = vmatprep.subr.bf16.mxu0 %v13190_v19  ;;  %v902_v19 = vld [vmem:[%s20384_s3 + $0x38] sm:$0xff]  ;;  %20668 = vst [vmem:[#allocation21_spill] sm:$0xff] %v17508_v53  ;;  %v935_v5 = vld [vmem:[%s20384_s3 + $0x140] sm:$0xff]  ;;  %v424_v8 = vld [vmem:[%s20382_s1 + $0x28] sm:$0xff] }
  0x72   :  { %13181 = vmatpush3.bf16.msra.mxu1 %v13178_v44  ;;  %20661 = vst [vmem:[#allocation14_spill] sm:$0xff] %v17415_v16  ;;  %v473_v44 = vld [vmem:[#allocation4 + $0x130] sm:$0xff]  ;;  %20670 = vst [vmem:[#allocation23_spill] sm:$0xff] %v17531_v63  ;;  %v17562_v10 = vpack.c.bf16 %v935_v5, %v932_v4  ;;  %v903_v18 = vld [vmem:[%s20384_s3 + $0x40] sm:$0xff] }
  0x73   :  { %254 = vmatmul.mubr.f32.gmra.mrb[4].mxu0 %v17369_v25  ;;  %13215 = vmatprep.subr.bf16.mxu1 %v13214_v54  ;;  %v1110_v28 = vld [vmem:[#allocation6 + $0x8] sm:$0xff]  ;;  %v915_v38 = vld [vmem:[%s20384_s3 + $0xa0] sm:$0xff]  ;;  %v434_v5 = vld [vmem:[%s20382_s1 + $0x78] sm:$0xff] }
  0x74   :  { %13193 = vmatpush1.bf16.msra.mxu0 %v13192_v26  ;;  %259 = vmatprep.mubr.f32.mxu0 %v20397_v0  ;;  %v17437_v26 = vpack.c.bf16 %v905_v20, %v902_v19  ;;  %20673 = vst [vmem:[#allocation26_spill] sm:$0xff] %v17562_v10  ;;  %v906_v19 = vld [vmem:[%s20384_s3 + $0x58] sm:$0xff]  ;;  %v425_v20 = vld [vmem:[%s20382_s1 + $0x30] sm:$0xff]  ;;  %v927_v48 = vld [vmem:[%s20384_s3 + $0x100] sm:$0xff] }
  0x75   :  { %13195 = vmatprep.subr.bf16.mxu0 %v13194_v29  ;;  %11091 = vmatmul.mubr.f32.vlgmr.msra.gmra.mrb[0].mxu1 %v17356_v15  ;;  %v458_v15 = vld [vmem:[#allocation4 + $0xb8] sm:$0xff]  ;;  %v908_v29 = vld [vmem:[%s20384_s3 + $0x68] sm:$0xff]  ;;  %v17604_v27 = vpack.c.bf16 %v906_v19, %v903_v18  ;;  %v431_v57 = vld [vmem:[%s20382_s1 + $0x60] sm:$0xff] }
  0x76   :  { %13217 = vmatpush3.bf16.msra.mxu1 %v13214_v54  ;;  %11093 = vmatprep.mubr.f32.mxu1 %v17369_v25  ;;  %v13226_v21 = vpack.c.bf16 %v458_v15, %v455_v14  ;;  %v464_v25 = vld [vmem:[#allocation4 + $0xe8] sm:$0xff]  ;;  %20663 = vst [vmem:[#allocation16_spill] sm:$0xff] %v17437_v26  ;;  %v479_v54 = vld [vmem:[#allocation4 + $0x160] sm:$0xff]  ;;  %v941_v14 = vld [vmem:[%s20384_s3 + $0x170] sm:$0xff] }
  0x77   :  { %260 = vmatmul.mubr.f32.gmra.mrb[6].mxu0 %v17382_v35  ;;  %13219 = vmatprep.subr.bf16.mxu1 %v13218_v1  ;;  %v13230_v31 = vpack.c.bf16 %v464_v25, %v461_v24  ;;  %v937_v24 = vld [vmem:[%s20384_s3 + $0x150] sm:$0xff]  ;;  %v940_v25 = vld [vmem:[%s20384_s3 + $0x168] sm:$0xff]  ;;  %20677 = vst [vmem:[#allocation30_spill] sm:$0xff] %v17604_v27  ;;  %v1112_v18 = vld [vmem:[#allocation6 + $0x18] sm:$0xff] }
  0x78   :  { %13197 = vmatpush1.bf16.msra.mxu0 %v13196_v36  ;;  %265 = vmatprep.mubr.f32.mxu0 %v20397_v0  ;;  %v17461_v36 = vpack.c.bf16 %v911_v30, %v908_v29  ;;  %v1113_v29 = vld [vmem:[#allocation6 + $0x20] sm:$0xff]  ;;  %v909_v30 = vld [vmem:[%s20384_s3 + $0x70] sm:$0xff]  ;;  %v1114_v4 = vld [vmem:[#allocation6 + $0x28] sm:$0xff] }
  0x79   :  { %13199 = vmatprep.subr.bf16.mxu0 %v13198_v39  ;;  %11094 = vmatmul.mubr.f32.gmra.mrb[2].mxu1 %v17382_v35  ;;  %v470_v35 = vld [vmem:[#allocation4 + $0x118] sm:$0xff] }
  0x7a   :  { %13221 = vmatpush3.bf16.msra.mxu1 %v13218_v1  ;;  %11096 = vmatprep.mubr.f32.mxu1 %v108_v45  ;;  %20665 = vst [vmem:[#allocation18_spill] sm:$0xff] %v17461_v36  ;;  %v914_v39 = vld [vmem:[%s20384_s3 + $0x98] sm:$0xff]  ;;  %v13234_v41 = vpack.c.bf16 %v470_v35, %v467_v34  ;;  %v17618_v34 = vpack.c.bf16 %v940_v25, %v937_v24  ;;  %v1129_v25 = vld [vmem:[#allocation6 + $0xa0] sm:$0xff] }
  0x7b   :  { %266 = vmatmul.mubr.f32.gmra.mrb[8].mxu0 %v108_v45  ;;  %13223 = vmatprep.subr.bf16.mxu1 %v13222_v11  ;;  %v476_v45 = vld [vmem:[#allocation4 + $0x148] sm:$0xff]  ;;  %v17622_v35 = vpack.c.bf16 %v1113_v29, %v1110_v28  ;;  %v1116_v19 = vld [vmem:[#allocation6 + $0x38] sm:$0xff] }
  0x7c   :  { %13201 = vmatpush1.bf16.msra.mxu0 %v13200_v46  ;;  %271 = vmatprep.mubr.f32.mxu0 %v20397_v0  ;;  %v17486_v46 = vpack.c.bf16 %v917_v40, %v914_v39  ;;  %v13238_v51 = vpack.c.bf16 %v476_v45, %v473_v44  ;;  %20678 = vst [vmem:[#allocation31_spill] sm:$0xff] %v17618_v34  ;;  %v918_v39 = vld [vmem:[%s20384_s3 + $0xb8] sm:$0xff]  ;;  %v427_v40 = vld [vmem:[%s20382_s1 + $0x40] sm:$0xff]  ;;  %v924_v44 = vld [vmem:[%s20384_s3 + $0xe8] sm:$0xff] }
  0x7d   :  { %13203 = vmatprep.subr.bf16.mxu0 %v13202_v49  ;;  %11097 = vmatmul.mubr.f32.gmra.mrb[4].mxu1 %v109_v55  ;;  %v920_v49 = vld [vmem:[%s20384_s3 + $0xc8] sm:$0xff]  ;;  %20679 = vst [vmem:[#allocation32_spill] sm:$0xff] %v17622_v35  ;;  %v1132_v28 = vld [vmem:[#allocation6 + $0xb8] sm:$0xff] }
  0x7e   :  { %13225 = vmatpush3.bf16.msra.mxu1 %v13222_v11  ;;  %11099 = vmatprep.mubr.f32.mxu1 %v110_v2  ;;  %20667 = vst [vmem:[#allocation20_spill] sm:$0xff] %v17486_v46  ;;  %v931_v11 = vld [vmem:[%s20384_s3 + $0x120] sm:$0xff]  ;;  %v428_v45 = vld [vmem:[%s20382_s1 + $0x48] sm:$0xff] }
  0x7f   :  { %272 = vmatmul.mubr.f32.gmra.mrb[10].mxu0 %v109_v55  ;;  %13227 = vmatprep.subr.bf16.mxu1 %v13226_v21  ;;  %v482_v55 = vld [vmem:[#allocation4 + $0x178] sm:$0xff] }
  0x80   :  { %13205 = vmatpush1.bf16.msra.mxu0 %v13204_v56  ;;  %277 = vmatprep.mubr.f32.mxu0 %v20397_v0  ;;  %v17511_v56 = vpack.c.bf16 %v923_v50, %v920_v49  ;;  %v13242_v61 = vpack.c.bf16 %v482_v55, %v479_v54  ;;  %v930_v49 = vld [vmem:[%s20384_s3 + $0x118] sm:$0xff]  ;;  %v429_v50 = vld [vmem:[%s20382_s1 + $0x50] sm:$0xff]  ;;  %v936_v54 = vld [vmem:[%s20384_s3 + $0x148] sm:$0xff] }
  0x81   :  { %13207 = vmatprep.subr.bf16.mxu0 %v13206_v59  ;;  %11100 = vmatmul.mubr.f32.gmra.mrb[6].mxu1 %v111_v12  ;;  %v926_v59 = vld [vmem:[%s20384_s3 + $0xf8] sm:$0xff] }
  0x82   :  { %13229 = vmatpush3.bf16.msra.mxu1 %v13226_v21  ;;  %11134 = vmatprep.mubr.f32.mxu1 %v419_v22  ;;  %20669 = vst [vmem:[#allocation22_spill] sm:$0xff] %v17511_v56  ;;  %v17534_v1 = vpack.c.bf16 %v929_v60, %v926_v59  ;;  %v430_v55 = vld [vmem:[%s20382_s1 + $0x58] sm:$0xff]  ;;  %v939_v59 = vld [vmem:[%s20384_s3 + $0x160] sm:$0xff] }
  0x83   :  { %278 = vmatmul.mubr.f32.gmra.mrb[12].mxu0 %v110_v2  ;;  %13231 = vmatprep.subr.bf16.mxu1 %v13230_v31  ;;  %v925_v2 = vld [vmem:[%s20384_s3 + $0xf0] sm:$0xff]  ;;  %v942_v60 = vld [vmem:[%s20384_s3 + $0x178] sm:$0xff] }
  0x84   :  { %13209 = vmatpush1.bf16.msra.mxu0 %v13208_v3  ;;  %283 = vmatprep.mubr.f32.mxu0 %v20397_v0  ;;  %20671 = vst [vmem:[#allocation24_spill] sm:$0xff] %v17534_v1  ;;  %v928_v3 = vld [vmem:[%s20384_s3 + $0x108] sm:$0xff] }
  0x85   :  { %13211 = vmatprep.subr.bf16.mxu0 %v13210_v6  ;;  %v897_v6 = vld [vmem:[%s20384_s3 + $0x10] sm:$0xff]  ;;  %v17559_v9 = vpack.c.bf16 %v928_v3, %v925_v2  ;;  %v17703_v2 = vpack.c.bf16 %v942_v60, %v939_v59  ;;  %v1144_v59 = vld [vmem:[#allocation6 + $0x118] sm:$0xff] }
  0x86   :  { %13233 = vmatpush3.bf16.msra.mxu1 %v13230_v31  ;;  %v17576_v15 = vpack.c.bf16 %v900_v7, %v897_v6  ;;  %v912_v31 = vld [vmem:[%s20384_s3 + $0x88] sm:$0xff]  ;;  %v1111_v3 = vld [vmem:[#allocation6 + $0x10] sm:$0xff]  ;;  %v1117_v7 = vld [vmem:[#allocation6 + $0x40] sm:$0xff] }
  0x87   :  { %284 = vmatmul.mubr.f32.gmra.mrb[14].mxu0 %v111_v12  ;;  %13235 = vmatprep.subr.bf16.mxu1 %v13234_v41  ;;  %20672 = vst [vmem:[#allocation25_spill] sm:$0xff] %v17559_v9  ;;  %v934_v12 = vld [vmem:[%s20384_s3 + $0x138] sm:$0xff]  ;;  %v17625_v37 = vpack.c.bf16 %v912_v31, %v909_v30  ;;  %20685 = vst [vmem:[#allocation38_spill] sm:$0xff] %v17703_v2  ;;  %v17713_v6 = vpack.c.bf16 %v1114_v4, %v1111_v3  ;;  %v1115_v31 = vld [vmem:[#allocation6 + $0x30] sm:$0xff] }
  0x88   :  { %13213 = vmatpush1.bf16.msra.mxu0 %v13212_v13  ;;  %564 = vmatprep.mubr.f32.mxu0 %v20397_v0  ;;  %v938_v13 = vld [vmem:[%s20384_s3 + $0x158] sm:$0xff]  ;;  %20674 = vst [vmem:[#allocation27_spill] sm:$0xff] %v17576_v15  ;;  %v17590_v21 = vpack.c.bf16 %v934_v12, %v931_v11  ;;  %v1123_v12 = vld [vmem:[#allocation6 + $0x70] sm:$0xff]  ;;  %v1130_v3 = vld [vmem:[#allocation6 + $0xa8] sm:$0xff] }
  0x89   :  { %13247 = vmatprep.subr.bf16.mxu0 %v17415_v16  ;;  %20680 = vst [vmem:[#allocation33_spill] sm:$0xff] %v17625_v37  ;;  %20686 = vst [vmem:[#allocation39_spill] sm:$0xff] %v17713_v6  ;;  %v1134_v4 = vld [vmem:[#allocation6 + $0xc8] sm:$0xff] }
  0x8a   :  { %13237 = vmatpush3.bf16.msra.mxu1 %v13234_v41  ;;  %20675 = vst [vmem:[#allocation28_spill] sm:$0xff] %v17590_v21  ;;  %v17641_v41 = vpack.c.bf16 %v918_v39, %v915_v38  ;;  %v1122_v38 = vld [vmem:[#allocation6 + $0x68] sm:$0xff]  ;;  %v1125_v39 = vld [vmem:[#allocation6 + $0x80] sm:$0xff] }
  0x8b   :  { %565 = vmatmul.mubr.f32.vlgmr.msra.gmra.mrb[16].mxu0 %v419_v22  ;;  %13239 = vmatprep.subr.bf16.mxu1 %v13238_v51  ;;  %v17593_v22 = vpack.c.bf16 %v941_v14, %v938_v13  ;;  %v1126_v13 = vld [vmem:[#allocation6 + $0x88] sm:$0xff]  ;;  %v1109_v14 = vld [vmem:[#allocation6] sm:$0xff] }
  0x8c   :  { %13249 = vmatpush1.bf16.msra.mxu0 %v17434_v23  ;;  %570 = vmatprep.mubr.f32.mxu0 %v20397_v0  ;;  %20681 = vst [vmem:[#allocation34_spill] sm:$0xff] %v17641_v41  ;;  %v17726_v24 = vpack.c.bf16 %v1126_v13, %v1123_v12  ;;  %v17730_v29 = vpack.c.bf16 %v1112_v18, %v1109_v14  ;;  %v1150_v12 = vld [vmem:[#allocation6 + $0x148] sm:$0xff]  ;;  %v1133_v18 = vld [vmem:[#allocation6 + $0xc0] sm:$0xff] }
  0x8d   :  { %13251 = vmatprep.subr.bf16.mxu0 %v17437_v26  ;;  %20676 = vst [vmem:[#allocation29_spill] sm:$0xff] %v17593_v22 }
  0x8e   :  { %13241 = vmatpush3.bf16.msra.mxu1 %v13238_v51  ;;  %v17669_v51 = vpack.c.bf16 %v930_v49, %v927_v48  ;;  %20688 = vst [vmem:[#allocation41_spill] sm:$0xff] %v17726_v24  ;;  %20689 = vst [vmem:[#allocation42_spill] sm:$0xff] %v17730_v29  ;;  %v17744_v48 = vpack.c.bf16 %v1125_v39, %v1122_v38  ;;  %v1121_v49 = vld [vmem:[#allocation6 + $0x60] sm:$0xff] }
  0x8f   :  { %571 = vmatmul.mubr.f32.gmra.mrb[18].mxu0 %v17456_v32  ;;  %13243 = vmatprep.subr.bf16.mxu1 %v13242_v61 }
  0x90   :  { %576 = vmatprep.mubr.f32.mxu0 %v20397_v0  ;;  %13253 = vmatpush1.bf16.msra.mxu0 %v17458_v33  ;;  %20683 = vst [vmem:[#allocation36_spill] sm:$0xff] %v17669_v51  ;;  %20693 = vst [vmem:[#allocation46_spill] sm:$0xff] %v17744_v48 }
  0x91   :  { %13255 = vmatprep.subr.bf16.mxu0 %v17461_v36 }
  0x92   :  { %13245 = vmatpush3.bf16.msra.mxu1 %v13242_v61  ;;  %v432_v61 = vld [vmem:[%s20382_s1 + $0x68] sm:$0xff] }
  0x93   :  { %577 = vmatmul.mubr.f32.gmra.mrb[20].mxu0 %v17480_v42  ;;  %13278 = vmatprep.subr.bf16.mxu1 %v20399_v17 }
  0x94   :  { %582 = vmatprep.mubr.f32.mxu0 %v20397_v0  ;;  %13257 = vmatpush1.bf16.msra.mxu0 %v17483_v43 }
  0x95   :  { %13259 = vmatprep.subr.bf16.mxu0 %v17486_v46  ;;  %11135 = vmatmul.mubr.f32.vlgmr.msra.gmra.mrb[8].mxu1 %v17456_v32  ;;  %v426_v32 = vld [vmem:[%s20382_s1 + $0x38] sm:$0xff] }
  0x96   :  { %13280 = vmatpush3.bf16.msra.mxu1 %v17576_v15  ;;  %11137 = vmatprep.mubr.f32.mxu1 %v17480_v42  ;;  %v921_v42 = vld [vmem:[%s20384_s3 + $0xd0] sm:$0xff] }
  0x97   :  { %583 = vmatmul.mubr.f32.gmra.mrb[22].mxu0 %v17505_v52  ;;  %13281 = vmatprep.subr.bf16.mxu1 %v20399_v17  ;;  %v17655_v47 = vpack.c.bf16 %v924_v44, %v921_v42  ;;  %v1135_v42 = vld [vmem:[#allocation6 + $0xd0] sm:$0xff]  ;;  %v1138_v44 = vld [vmem:[#allocation6 + $0xe8] sm:$0xff] }
  0x98   :  { %588 = vmatprep.mubr.f32.mxu0 %v20397_v0  ;;  %13261 = vmatpush1.bf16.msra.mxu0 %v17508_v53 }
  0x99   :  { %13263 = vmatprep.subr.bf16.mxu0 %v17511_v56  ;;  %11138 = vmatmul.mubr.f32.gmra.mrb[10].mxu1 %v17505_v52  ;;  %20682 = vst [vmem:[#allocation35_spill] sm:$0xff] %v17655_v47  ;;  %v933_v52 = vld [vmem:[%s20384_s3 + $0x130] sm:$0xff] }
  0x9a   :  { %13283 = vmatpush3.bf16.msra.mxu1 %v17604_v27  ;;  %11140 = vmatprep.mubr.f32.mxu1 %v423_v62  ;;  %v17686_v58 = vpack.c.bf16 %v936_v54, %v933_v52  ;;  %v1128_v52 = vld [vmem:[#allocation6 + $0x98] sm:$0xff]  ;;  %v1131_v54 = vld [vmem:[#allocation6 + $0xb0] sm:$0xff] }
  0x9b   :  { %589 = vmatmul.mubr.f32.gmra.mrb[24].mxu0 %v423_v62  ;;  %13284 = vmatprep.subr.bf16.mxu1 %v20399_v17  ;;  %v433_v62 = vld [vmem:[%s20382_s1 + $0x70] sm:$0xff] }
  0x9c   :  { %594 = vmatprep.mubr.f32.mxu0 %v20397_v0  ;;  %13265 = vmatpush1.bf16.msra.mxu0 %v17531_v63  ;;  %20684 = vst [vmem:[#allocation37_spill] sm:$0xff] %v17686_v58 }
  0x9d   :  { %13267 = vmatprep.subr.bf16.mxu0 %v17534_v1  ;;  %11141 = vmatmul.mubr.f32.gmra.mrb[12].mxu1 %v424_v8 }
  0x9e   :  { %13286 = vmatpush3.bf16.msra.mxu1 %v17625_v37  ;;  %11143 = vmatprep.mubr.f32.mxu1 %v425_v20 }
  0x9f   :  { %595 = vmatmul.mubr.f32.gmra.mrb[26].mxu0 %v424_v8  ;;  %13287 = vmatprep.subr.bf16.mxu1 %v20399_v17  ;;  %v1120_v8 = vld [vmem:[#allocation6 + $0x58] sm:$0xff] }
  0xa0   :  { %600 = vmatprep.mubr.f32.mxu0 %v20397_v0  ;;  %13269 = vmatpush1.bf16.msra.mxu0 %v17559_v9  ;;  %v17719_v11 = vpack.c.bf16 %v1120_v8, %v1117_v7  ;;  %v1147_v8 = vld [vmem:[#allocation6 + $0x130] sm:$0xff] }
  0xa1   :  { %13271 = vmatprep.subr.bf16.mxu0 %v17562_v10  ;;  %11144 = vmatmul.mubr.f32.gmra.mrb[14].mxu1 %v426_v32 }
  0xa2   :  { %13289 = vmatpush3.bf16.msra.mxu1 %v17641_v41  ;;  %11146 = vmatprep.mubr.f32.mxu1 %v427_v40  ;;  %20687 = vst [vmem:[#allocation40_spill] sm:$0xff] %v17719_v11 }
  0xa3   :  { %601 = vmatmul.mubr.f32.gmra.mrb[28].mxu0 %v425_v20  ;;  %13290 = vmatprep.subr.bf16.mxu1 %v20399_v17  ;;  %v1119_v20 = vld [vmem:[#allocation6 + $0x50] sm:$0xff] }
  0xa4   :  { %606 = vmatprep.mubr.f32.mxu0 %v20397_v0  ;;  %13273 = vmatpush1.bf16.msra.mxu0 %v17590_v21  ;;  %v17732_v30 = vpack.c.bf16 %v1119_v20, %v1116_v19  ;;  %v1136_v19 = vld [vmem:[#allocation6 + $0xd8] sm:$0xff] }
  0xa5   :  { %13275 = vmatprep.subr.bf16.mxu0 %v17593_v22  ;;  %11147 = vmatmul.mubr.f32.gmra.mrb[16].mxu1 %v428_v45  ;;  %v1140_v20 = vld [vmem:[#allocation6 + $0xf8] sm:$0xff]  ;;  %v17771_v38 = vpack.c.bf16 %v1136_v19, %v1133_v18  ;;  %v1154_v18 = vld [vmem:[#allocation6 + $0x168] sm:$0xff] }
  0xa6   :  { %13292 = vmatpush3.bf16.msra.mxu1 %v17655_v47  ;;  %11149 = vmatprep.mubr.f32.mxu1 %v429_v50  ;;  %20690 = vst [vmem:[#allocation43_spill] sm:$0xff] %v17732_v30 }
  0xa7   :  { %607 = vmatmul.mubr.f32.gmra.mrb[30].mxu0 %v426_v32  ;;  %13293 = vmatprep.subr.bf16.mxu1 %v20399_v17  ;;  %v1118_v32 = vld [vmem:[#allocation6 + $0x48] sm:$0xff]  ;;  %20701 = vst [vmem:[#allocation54_spill] sm:$0xff] %v17771_v38 }
  0xa8   :  { %612 = vmatprep.mubr.f32.mxu0 %v20397_v0  ;;  %13277 = vmatpush1.bf16.msra.mxu0 %v17618_v34 }
  0xa9   :  { %13303 = vmatprep.subr.bf16.mxu0 %v17622_v35  ;;  %11150 = vmatmul.mubr.f32.gmra.mrb[18].mxu1 %v430_v55 }
  0xaa   :  { %13295 = vmatpush3.bf16.msra.mxu1 %v17669_v51  ;;  %11152 = vmatprep.mubr.f32.mxu1 %v431_v57 }
  0xab   :  { %613 = vmatmul.mubr.f32.gmra.mrb[32].mxu0 %v427_v40  ;;  %13296 = vmatprep.subr.bf16.mxu1 %v20399_v17  ;;  %v17735_v40 = vpack.c.bf16 %v1132_v28, %v1129_v25  ;;  %v1143_v25 = vld [vmem:[#allocation6 + $0x110] sm:$0xff]  ;;  %v17767_v28 = vpack.c.bf16 %v1150_v12, %v1147_v8 }
  0xac   :  { %618 = vmatprep.mubr.f32.mxu0 %v20397_v0  ;;  %v17774_v39 = vpack.c.bf16 %v1143_v25, %v1140_v20  ;;  %v1151_v12 = vld [vmem:[#allocation6 + $0x150] sm:$0xff]  ;;  %v162_v20 = vlaneseq }
  0xad   :  { %11153 = vmatmul.mubr.f32.gmra.mrb[20].mxu1 %v432_v61  ;;  %20691 = vst [vmem:[#allocation44_spill] sm:$0xff] %v17735_v40  ;;  %20700 = vst [vmem:[#allocation53_spill] sm:$0xff] %v17767_v28  ;;  %v17800_v19 = vpack.c.bf16 %v1154_v18, %v1151_v12 }
  0xae   :  { %13298 = vmatpush3.bf16.msra.mxu1 %v17686_v58  ;;  %11155 = vmatprep.mubr.f32.mxu1 %v433_v62  ;;  %20702 = vst [vmem:[#allocation55_spill] sm:$0xff] %v17774_v39  ;;  %v163_v25 = vshrl.u32 %v162_v20, 7 }
  0xaf   :  { %619 = vmatmul.mubr.f32.gmra.mrb[34].mxu0 %v428_v45  ;;  %13299 = vmatprep.subr.bf16.mxu1 %v20399_v17  ;;  %v17740_v45 = vpack.c.bf16 %v1118_v32, %v1115_v31  ;;  %v1153_v31 = vld [vmem:[#allocation6 + $0x160] sm:$0xff]  ;;  %v1156_v32 = vld [vmem:[#allocation6 + $0x178] sm:$0xff]  ;;  %20708 = vst [vmem:[#allocation61_spill] sm:$0xff] %v17800_v19 }
  0xb0   :  { %624 = vmatprep.mubr.f32.mxu0 %v20397_v0 }
  0xb1   :  { %11156 = vmatmul.mubr.f32.gmra.mrb[22].mxu1 %v434_v5  ;;  %20692 = vst [vmem:[#allocation45_spill] sm:$0xff] %v17740_v45 }
  0xb2   :  { %13301 = vmatpush3.bf16.msra.mxu1 %v17703_v2  ;;  %11190 = vmatprep.mubr.msk.f32.mxu1 %vm17063_vm0, %v20397_v0 }
  0xb3   :  { %625 = vmatmul.mubr.f32.gmra.mrb[36].mxu0 %v429_v50  ;;  %13334 = vmatprep.subr.bf16.mxu1 %v20399_v17  ;;  %v1124_v50 = vld [vmem:[#allocation6 + $0x78] sm:$0xff] }
  0xb4   :  { %630 = vmatprep.mubr.f32.mxu0 %v20397_v0  ;;  %v17751_v60 = vpack.c.bf16 %v1124_v50, %v1121_v49  ;;  %v1146_v49 = vld [vmem:[#allocation6 + $0x128] sm:$0xff]  ;;  %v1149_v50 = vld [vmem:[#allocation6 + $0x140] sm:$0xff] }
  0xb5   :  { %11191 = vmatmul.mubr.f32.vlgmr.msra.gmra.mrb[24].mxu1 %v20397_v0 }
  0xb6   :  { %13336 = vmatpush3.bf16.msra.mxu1 %v17713_v6  ;;  %11225 = vmatprep.mubr.msk.f32.mxu1 %vm17063_vm0, %v20397_v0  ;;  %20695 = vst [vmem:[#allocation48_spill] sm:$0xff] %v17751_v60 }
  0xb7   :  { %631 = vmatmul.mubr.f32.gmra.mrb[38].mxu0 %v430_v55  ;;  %13337 = vmatprep.subr.bf16.mxu1 %v20399_v17  ;;  %v17747_v55 = vpack.c.bf16 %v1138_v44, %v1135_v42  ;;  %v1139_v42 = vld [vmem:[#allocation6 + $0xf0] sm:$0xff]  ;;  %v1142_v44 = vld [vmem:[#allocation6 + $0x108] sm:$0xff] }
  0xb8   :  { %636 = vmatprep.mubr.f32.mxu0 %v20397_v0 }
  0xb9   :  { %20694 = vst [vmem:[#allocation47_spill] sm:$0xff] %v17747_v55 }
  0xba   :  { %13339 = vmatpush3.bf16.msra.mxu1 %v17719_v11 }
  0xbb   :  { %637 = vmatmul.mubr.f32.gmra.mrb[40].mxu0 %v431_v57  ;;  %13340 = vmatprep.subr.bf16.mxu1 %v20399_v17  ;;  %v1141_v57 = vld [vmem:[#allocation6 + $0x100] sm:$0xff] }
  0xbc   :  { %642 = vmatprep.mubr.f32.mxu0 %v20397_v0  ;;  %v17757_v7 = vpack.c.bf16 %v1144_v59, %v1141_v57  ;;  %v17784_v57 = vpack.c.bf16 %v1149_v50, %v1146_v49  ;;  %v1145_v59 = vld [vmem:[#allocation6 + $0x120] sm:$0xff] }
  0xbe   :  { %13342 = vmatpush3.bf16.msra.mxu1 %v17726_v24  ;;  %20697 = vst [vmem:[#allocation50_spill] sm:$0xff] %v17757_v7  ;;  %20705 = vst [vmem:[#allocation58_spill] sm:$0xff] %v17784_v57 }
  0xbf   :  { %643 = vmatmul.mubr.f32.gmra.mrb[42].mxu0 %v432_v61  ;;  %13343 = vmatprep.subr.bf16.mxu1 %v20399_v17  ;;  %v17754_v61 = vpack.c.bf16 %v1131_v54, %v1128_v52  ;;  %v17777_v52 = vpack.c.bf16 %v1156_v32, %v1153_v31  ;;  %v17781_v54 = vpack.c.bf16 %v1142_v44, %v1139_v42  ;;  %v17837_v31 = vsub.s32 2, %v163_v25  ;;  %v160_v32 = vld [vmem:[%s20385_s4] sm:$0x7] }
  0xc0   :  { %648 = vmatprep.mubr.f32.mxu0 %v20397_v0 }
  0xc1   :  { %20696 = vst [vmem:[#allocation49_spill] sm:$0xff] %v17754_v61  ;;  %20703 = vst [vmem:[#allocation56_spill] sm:$0xff] %v17777_v52  ;;  %v17843_v42 = vrot.slane %v160_v32, %v17837_v31 }
  0xc2   :  { %13345 = vmatpush3.bf16.msra.mxu1 %v17735_v40  ;;  %20704 = vst [vmem:[#allocation57_spill] sm:$0xff] %v17781_v54  ;;  %20709 = vst [vmem:[#allocation62_spill] sm:$0xff] %v17837_v31 }
  0xc3   :  { %649 = vmatmul.mubr.f32.gmra.mrb[44].mxu0 %v433_v62  ;;  %13346 = vmatprep.subr.bf16.mxu1 %v20399_v17  ;;  %v1127_v62 = vld [vmem:[#allocation6 + $0x90] sm:$0xff] }
  0xc4   :  { %654 = vmatprep.mubr.f32.mxu0 %v20397_v0  ;;  %v17761_v13 = vpack.c.bf16 %v1130_v3, %v1127_v62  ;;  %v1148_v62 = vld [vmem:[#allocation6 + $0x138] sm:$0xff] }
  0xc5   :  { %v1152_v3 = vld [vmem:[#allocation6 + $0x158] sm:$0xff] }
  0xc6   :  { %13348 = vmatpush3.bf16.msra.mxu1 %v17747_v55  ;;  %20698 = vst [vmem:[#allocation51_spill] sm:$0xff] %v17761_v13 }
  0xc7   :  { %655 = vmatmul.mubr.f32.gmra.mrb[46].mxu0 %v434_v5  ;;  %v1137_v5 = vld [vmem:[#allocation6 + $0xe0] sm:$0xff]  ;;  %13349 = vmatprep.subr.bf16.mxu1 %v20399_v17 }
  0xc8   :  { %1007 = vmatprep.mubr.f32.mxu0 %v20397_v0  ;;  %v17764_v14 = vpack.c.bf16 %v1137_v5, %v1134_v4  ;;  %v1155_v4 = vld [vmem:[#allocation6 + $0x170] sm:$0xff]  ;;  %v17789_v5 = vpack.c.bf16 %v1148_v62, %v1145_v59 }
  0xc9   :  { %v17792_v8 = vpack.c.bf16 %v1155_v4, %v1152_v3 }
  0xca   :  { %20699 = vst [vmem:[#allocation52_spill] sm:$0xff] %v17764_v14  ;;  %13351 = vmatpush3.bf16.msra.mxu1 %v17757_v7  ;;  %20706 = vst [vmem:[#allocation59_spill] sm:$0xff] %v17789_v5 }
  0xcb   :  { %1008 = vmatmul.mubr.f32.vlgmr.msra.gmra.mrb[0].mxu0 %v20397_v0  ;;  %13352 = vmatprep.subr.bf16.mxu1 %v20399_v17  ;;  %20707 = vst [vmem:[#allocation60_spill] sm:$0xff] %v17792_v8 }
  0xcc   :  { %13305 = vmatpush1.bf16.msra.mxu0 %v17730_v29  ;;  %1221 = vmatprep.mubr.f32.mxu0 %v20397_v0 }
  0xcd   :  { %13307 = vmatprep.subr.bf16.mxu0 %v17732_v30 }
  0xce   :  { %13354 = vmatpush3.bf16.msra.mxu1 %v17767_v28 }
  0xcf   :  { %13355 = vmatprep.subr.bf16.mxu1 %v20399_v17 }
  0xd0   :  { %13309 = vmatpush1.bf16.msra.mxu0 %v17740_v45 }
  0xd1   :  { %13311 = vmatprep.subr.bf16.mxu0 %v17744_v48 }
  0xd2   :  { %13357 = vmatpush3.bf16.msra.mxu1 %v17777_v52 }
  0xd3   :  { %13390 = vmatprep.subr.bf16.mxu1 %v20399_v17 }
  0xd4   :  { %13313 = vmatpush1.bf16.msra.mxu0 %v17751_v60 }
  0xd5   :  { %13315 = vmatprep.subr.bf16.mxu0 %v17754_v61  ;;  %11226 = vmatmul.mubr.f32.vlgmr.msra.gmra.mrb[26].mxu1 %v20397_v0 }
  0xd6   :  { %13392 = vmatpush3.bf16.msra.mxu1 %v17576_v15  ;;  %11260 = vmatprep.mubr.msk.f32.mxu1 %vm17063_vm0, %v20397_v0 }
  0xd7   :  { %13393 = vmatprep.subr.bf16.mxu1 %v20399_v17 }
  0xd8   :  { %13317 = vmatpush1.bf16.msra.mxu0 %v17761_v13 }
  0xd9   :  { %13319 = vmatprep.subr.bf16.mxu0 %v17764_v14 }
  0xda   :  { %13395 = vmatpush3.bf16.msra.mxu1 %v17604_v27 }
  0xdb   :  { %13396 = vmatprep.subr.bf16.mxu1 %v20399_v17 }
  0xdc   :  { %13321 = vmatpush1.bf16.msra.mxu0 %v17771_v38 }
  0xdd   :  { %13323 = vmatprep.subr.bf16.mxu0 %v17774_v39 }
  0xde   :  { %13398 = vmatpush3.bf16.msra.mxu1 %v17625_v37 }
  0xdf   :  { %13399 = vmatprep.subr.bf16.mxu1 %v20399_v17 }
  0xe0   :  { %13325 = vmatpush1.bf16.msra.mxu0 %v17781_v54 }
  0xe1   :  { %13327 = vmatprep.subr.bf16.mxu0 %v17784_v57 }
  0xe2   :  { %13401 = vmatpush3.bf16.msra.mxu1 %v17641_v41 }
  0xe3   :  { %13402 = vmatprep.subr.bf16.mxu1 %v20399_v17 }
  0xe4   :  { %13329 = vmatpush1.bf16.msra.mxu0 %v17789_v5 }
  0xe5   :  { %13331 = vmatprep.subr.bf16.mxu0 %v17792_v8 }
  0xe6   :  { %13404 = vmatpush3.bf16.msra.mxu1 %v17655_v47 }
  0xe7   :  { %13405 = vmatprep.subr.bf16.mxu1 %v20399_v17 }
  0xe8   :  { %13333 = vmatpush1.bf16.msra.mxu0 %v17800_v19 }
  0xe9   :  { %13359 = vmatprep.subr.bf16.mxu0 %v17415_v16 }
  0xea   :  { %13407 = vmatpush3.bf16.msra.mxu1 %v17669_v51 }
  0xeb   :  { %1222 = vmatmul.mubr.f32.vlgmr.msra.gmra.mrb[16].mxu0 %v20397_v0  ;;  %13408 = vmatprep.subr.bf16.mxu1 %v20399_v17 }
  0xec   :  { %13361 = vmatpush1.bf16.msra.mxu0 %v17434_v23  ;;  %1388 = vmatprep.mubr.f32.mxu0 %v20397_v0 }
  0xed   :  { %13363 = vmatprep.subr.bf16.mxu0 %v17437_v26 }
  0xee   :  { %13410 = vmatpush3.bf16.msra.mxu1 %v17686_v58  ;;  %v17936_v58 = vld [vmem:[%s20386_s5] ss:$0 sm:$0xff] }
  0xef   :  { %13411 = vmatprep.subr.bf16.mxu1 %v20399_v17  ;;  %20736 = vst [vmem:[#allocation89_spill] sm:$0xff] %v17936_v58 }
  0xf0   :  { %13365 = vmatpush1.bf16.msra.mxu0 %v17458_v33 }
  0xf1   :  { %13367 = vmatprep.subr.bf16.mxu0 %v17461_v36 }
  0xf2   :  { %13413 = vmatpush3.bf16.msra.mxu1 %v17703_v2 }
  0xf3   :  { %13446 = vmatprep.subr.bf16.mxu1 %v20399_v17 }
  0xf4   :  { %13369 = vmatpush1.bf16.msra.mxu0 %v17483_v43 }
  0xf5   :  { %13371 = vmatprep.subr.bf16.mxu0 %v17486_v46 }
  0xf8   :  { %13373 = vmatpush1.bf16.msra.mxu0 %v17508_v53 }
  0xf9   :  { %13375 = vmatprep.subr.bf16.mxu0 %v17511_v56 }
  0xfc   :  { %13377 = vmatpush1.bf16.msra.mxu0 %v17531_v63 }
  0xfd   :  { %13379 = vmatprep.subr.bf16.mxu0 %v17534_v1 }
 0x100   :  { %13381 = vmatpush1.bf16.msra.mxu0 %v17559_v9 }
 0x101   :  { %13383 = vmatprep.subr.bf16.mxu0 %v17562_v10 }
 0x104   :  { %13385 = vmatpush1.bf16.msra.mxu0 %v17590_v21 }
 0x105   :  { %13387 = vmatprep.subr.bf16.mxu0 %v17593_v22 }
 0x108   :  { %13389 = vmatpush1.bf16.msra.mxu0 %v17618_v34 }
 0x109   :  { %13415 = vmatprep.subr.bf16.mxu0 %v17622_v35 }
 0x148   :  { %v11092_v44 = vpop.f32.mrb[0].mxu1 }
 0x149   :  { %v17846_v49 = vadd.f32 %v11092_v44, %v17843_v42  ;;  %v17848_v50 = vpop.f32.mrb[1].mxu1 }
 0x14b   :  { %20710 = vst [vmem:[#allocation63_spill] sm:$0xff] %v17846_v49 }
 0x14c   :  { %v11095_v59 = vpop.f32.mrb[2].mxu1 }
 0x14d   :  { %v17851_v62 = vadd.f32 %v11095_v59, %v17843_v42  ;;  %v366_v3 = vpop.f32.mrb[3].mxu1 }
 0x14e   :  { %v17854_v4 = vadd.f32 %v366_v3, %v17843_v42  ;;  %v483_v3 = vld [vmem:[%s20389_s8] sm:$0x7] }
 0x14f   :  { %20711 = vst [vmem:[#allocation64_spill] sm:$0xff] %v17851_v62  ;;  %v17872_v62 = vrot.slane %v483_v3, %v17837_v31 }
 0x150   :  { %20712 = vst [vmem:[#allocation65_spill] sm:$0xff] %v17854_v4  ;;  %v11098_v12 = vpop.f32.mrb[4].mxu1 }
 0x151   :  { %v17857_v18 = vadd.f32 %v11098_v12, %v17843_v42  ;;  %v376_v20 = vpop.f32.mrb[5].mxu1 }
 0x152   :  { %v17860_v0 = vadd.f32 %v376_v20, %v17843_v42 }
 0x153   :  { %20713 = vst [vmem:[#allocation66_spill] sm:$0xff] %v17857_v18 }
 0x154   :  { %20714 = vst [vmem:[#allocation67_spill] sm:$0xff] %v17860_v0  ;;  %v11101_v44 = vpop.f32.mrb[6].mxu1 }
 0x155   :  { %v17863_v17 = vadd.f32 %v11101_v44, %v17843_v42  ;;  %v386_v49 = vpop.f32.mrb[7].mxu1 }
 0x156   :  { %v17866_v59 = vadd.f32 %v386_v49, %v17843_v42 }
 0x157   :  { %20715 = vst [vmem:[#allocation68_spill] sm:$0xff] %v17863_v17 }
 0x158   :  { %20716 = vst [vmem:[#allocation69_spill] sm:$0xff] %v17866_v59 }
 0x168   :  { %v11136_v12 = vpop.f32.mrb[8].mxu1 }
 0x169   :  { %v17875_v18 = vadd.f32 %v11136_v12, %v17872_v62  ;;  %v17877_v20 = vpop.f32.mrb[9].mxu1 }
 0x16b   :  { %20717 = vst [vmem:[#allocation70_spill] sm:$0xff] %v17875_v18 }
 0x16c   :  { %v11139_v0 = vpop.f32.mrb[10].mxu1 }
 0x16d   :  { %v17880_v44 = vadd.f32 %v11139_v0, %v17872_v62  ;;  %v737_v17 = vpop.f32.mrb[11].mxu1 }
 0x16e   :  { %v17883_v49 = vadd.f32 %v737_v17, %v17872_v62 }
 0x16f   :  { %20718 = vst [vmem:[#allocation71_spill] sm:$0xff] %v17880_v44 }
 0x170   :  { %20719 = vst [vmem:[#allocation72_spill] sm:$0xff] %v17883_v49  ;;  %v11142_v59 = vpop.f32.mrb[12].mxu1 }
 0x171   :  { %v17886_v4 = vadd.f32 %v11142_v59, %v17872_v62  ;;  %v747_v31 = vpop.f32.mrb[13].mxu1 }
 0x172   :  { %v17889_v35 = vadd.f32 %v747_v31, %v17872_v62 }
 0x173   :  { %20720 = vst [vmem:[#allocation73_spill] sm:$0xff] %v17886_v4 }
 0x174   :  { %20721 = vst [vmem:[#allocation74_spill] sm:$0xff] %v17889_v35  ;;  %v11145_v12 = vpop.f32.mrb[14].mxu1 }
 0x175   :  { %v17892_v18 = vadd.f32 %v11145_v12, %v17872_v62  ;;  %v757_v2 = vpop.f32.mrb[15].mxu1 }
 0x176   :  { %v17895_v0 = vadd.f32 %v757_v2, %v17872_v62 }
 0x177   :  { %20722 = vst [vmem:[#allocation75_spill] sm:$0xff] %v17892_v18 }
 0x178   :  { %20723 = vst [vmem:[#allocation76_spill] sm:$0xff] %v17895_v0  ;;  %v11148_v44 = vpop.f32.mrb[16].mxu1 }
 0x179   :  { %v17898_v17 = vadd.f32 %v11148_v44, %v17872_v62  ;;  %v767_v49 = vpop.f32.mrb[17].mxu1 }
 0x17a   :  { %v17901_v59 = vadd.f32 %v767_v49, %v17872_v62 }
 0x17b   :  { %20724 = vst [vmem:[#allocation77_spill] sm:$0xff] %v17898_v17 }
 0x17c   :  { %20725 = vst [vmem:[#allocation78_spill] sm:$0xff] %v17901_v59  ;;  %v11151_v4 = vpop.f32.mrb[18].mxu1 }
 0x17d   :  { %v17904_v31 = vadd.f32 %v11151_v4, %v17872_v62  ;;  %v777_v35 = vpop.f32.mrb[19].mxu1 }
 0x17e   :  { %v17907_v12 = vadd.f32 %v777_v35, %v17872_v62  ;;  %v17921_v35 = vsub.s32 0, %v163_v25 }
 0x17f   :  { %20726 = vst [vmem:[#allocation79_spill] sm:$0xff] %v17904_v31 }
 0x180   :  { %20727 = vst [vmem:[#allocation80_spill] sm:$0xff] %v17907_v12  ;;  %v11154_v18 = vpop.f32.mrb[20].mxu1  ;;  %20732 = vst [vmem:[#allocation85_spill] sm:$0xff] %v17921_v35  ;;  %v17923_v12 = vsub.s32 1, %v163_v25 }
 0x181   :  { %v17910_v2 = vadd.f32 %v11154_v18, %v17872_v62  ;;  %v787_v0 = vpop.f32.mrb[21].mxu1  ;;  %v17926_v18 = vrot.slane %v160_v32, %v17921_v35 }
 0x182   :  { %v17913_v44 = vadd.f32 %v787_v0, %v17872_v62  ;;  %20733 = vst [vmem:[#allocation86_spill] sm:$0xff] %v17923_v12  ;;  %v17929_v0 = vrot.slane %v160_v32, %v17923_v12 }
 0x183   :  { %20728 = vst [vmem:[#allocation81_spill] sm:$0xff] %v17910_v2  ;;  %20734 = vst [vmem:[#allocation87_spill] sm:$0xff] %v17926_v18 }
 0x184   :  { %20729 = vst [vmem:[#allocation82_spill] sm:$0xff] %v17913_v44  ;;  %v11157_v17 = vpop.f32.mrb[22].mxu1  ;;  %20735 = vst [vmem:[#allocation88_spill] sm:$0xff] %v17929_v0 }
 0x185   :  { %v17916_v49 = vadd.f32 %v11157_v17, %v17872_v62  ;;  %v797_v59 = vpop.f32.mrb[23].mxu1 }
 0x186   :  { %v17919_v4 = vadd.f32 %v797_v59, %v17872_v62 }
 0x187   :  { %20730 = vst [vmem:[#allocation83_spill] sm:$0xff] %v17916_v49 }
 0x188   :  { %20731 = vst [vmem:[#allocation84_spill] sm:$0xff] %v17919_v4  ;;  %v1080_v31 = vpop.f32.mrb[24].mxu1 }
 0x189   :  { %v11192_v34 = vpop.f32.mrb[25].mxu1 }
 0x19e   :  { %v1009_v2 = vpop.f32.mrb[0].mxu0 }
 0x19f   :  { %v16382_v17 = vadd.f32 %v1009_v2, %v17926_v18  ;;  %v1011_v49 = vpop.f32.mrb[1].mxu0  ;;  %v1098_v2 = vadd.f32 %v17936_v58, %v1080_v31 }
 0x1a0   :  { %v16383_v59 = vadd.f32 %v1011_v49, %v17929_v0  ;;  %v17942_v49 = vrot.slane %v483_v3, %v17921_v35 }
 0x1a1   :  { %v9970_v44 = vmul.f32 -1.442695, %v16382_v17 }
 0x1a2   :  { %v9971_v4 = vmul.f32 -1.442695, %v16383_v59  ;;  %20737 = vst [vmem:[#allocation90_spill] sm:$0xff] %v17942_v49  ;;  %v17945_v59 = vrot.slane %v483_v3, %v17923_v12 }
 0x1a3   :  { %16551 = vpow2.f32 %v9970_v44  ;;  %v357_v44 = vadd.f32 %v17848_v50, %v17843_v42 }
 0x1a4   :  { %16553 = vpow2.f32 %v9971_v4  ;;  %20738 = vst [vmem:[#allocation91_spill] sm:$0xff] %v17945_v59 }
 0x1a8   :  { %v1294_v32 = vpop.f32.mrb[26].mxu1 }
 0x1a9   :  { %v11227_v21 = vpop.f32.mrb[27].mxu1 }
 0x1ad   :  { %v16552_v34 = vpop.eup %16551 }
 0x1ae   :  { %v1088_v22 = vadd.f32 1.0, %v16552_v34  ;;  %v16554_v25 = vpop.eup %16553 }
 0x1af   :  { %v1095_v10 = vadd.f32 1.0, %v16554_v25 }
 0x1b0   :  { %16555 = vrcp.f32 %v1088_v22 }
 0x1b1   :  { %16557 = vrcp.f32 %v1095_v10 }
 0x1ba   :  { %v16556_v17 = vpop.eup %16555 }
 0x1bb   :  { %v1099_v22 = vmul.f32 %v16556_v17, %v1098_v2  ;;  %v16558_v58 = vpop.eup %16557 }
 0x1bc   :  { %v1102_v50 = vsub.f32 1.0, %v16558_v58  ;;  %v1104_v2 = vmul.f32 0.0, %v16558_v58 }
 0x1bd   :  { %v1100_v4 = vadd.f32 %v1099_v22, %v357_v44  ;;  %v20740_v22 = vmov 0.0  }
 0x1be   :  { %v1223_v34 = vpop.f32.mrb[16].mxu0 }
 0x1bf   :  { %16559 = vtanh.f32 %v1100_v4  ;;  %v16398_v21 = vadd.f32 %v1223_v34, %v17942_v49  ;;  %v1225_v25 = vpop.f32.mrb[17].mxu0 }
 0x1c0   :  { %v16399_v31 = vadd.f32 %v1225_v25, %v17945_v59  ;;  %v728_v25 = vadd.f32 %v17877_v20, %v17872_v62  ;;  %v1655_v20 = vld [vmem:[#allocation8 + $0x8] sm:$0xff] }
 0x1c1   :  { %v9972_v0 = vmul.f32 -1.442695, %v16398_v21 }
 0x1c2   :  { %v9973_v42 = vmul.f32 -1.442695, %v16399_v31 }
 0x1c3   :  { %16561 = vpow2.f32 %v9972_v0  ;;  %v20739_v0 = vmov 0.0|0.0  }
 0x1c4   :  { %16563 = vpow2.f32 %v9973_v42 }
 0x1c9   :  { %v16560_v35 = vpop.eup %16559 }
 0x1ca   :  { %v1103_v10 = vmul.f32 %v16560_v35, %v1102_v50  ;;  %v17967_v35 = vld [vmem:[%s20390_s9] ss:$0 sm:$0xff] }
 0x1cb   :  { %v1312_v34 = vadd.f32 %v17967_v35, %v1294_v32  ;;  %v1658_v32 = vld [vmem:[#allocation8 + $0x20] sm:$0xff] }
 0x1cc   :  { %v17949_v17 = vadd.f32 %v1104_v2, %v1103_v10  ;;  %v1654_v50 = vld [vmem:[#allocation8] sm:$0xff]  ;;  %v17992_v2 = vpack.c.bf16 %v1658_v32, %v1655_v20  ;;  %v1663_v32 = vld [vmem:[#allocation8 + $0x48] sm:$0xff] }
 0x1cd   :  { %v16562_v3 = vpop.eup %16561 }
 0x1ce   :  { %v1302_v44 = vadd.f32 1.0, %v16562_v3  ;;  %1389 = vmatmul.mubr.f32.vlgmr.msra.gmra.mrb[2].mxu0 %v17949_v17  ;;  %11261 = vmatmul.mubr.f32.vlgmr.msra.gmra.mrb[28].mxu1 %v17949_v17  ;;  %v16564_v58 = vpop.eup %16563  ;;  %20741 = vst [vmem:[#allocation92_spill] sm:$0xff] %v17992_v2  ;;  %v1657_v3 = vld [vmem:[#allocation8 + $0x18] sm:$0xff] }
 0x1cf   :  { %13417 = vmatpush1.bf16.msra.mxu0 %v17730_v29  ;;  %13448 = vmatpush3.bf16.msra.mxu1 %v17713_v6  ;;  %v1309_v4 = vadd.f32 1.0, %v16564_v58  ;;  %v1659_v58 = vld [vmem:[#allocation8 + $0x28] sm:$0xff] }
 0x1d0   :  { %16565 = vrcp.f32 %v1302_v44  ;;  %13419 = vmatprep.subr.bf16.mxu0 %v17732_v30  ;;  %13449 = vmatprep.subr.bf16.mxu1 %v20739_v0  ;;  %v1656_v44 = vld [vmem:[#allocation8 + $0x10] sm:$0xff] }
 0x1d1   :  { %1555 = vmatprep.mubr.f32.mxu0 %v20740_v22  ;;  %11295 = vmatprep.mubr.msk.f32.mxu1 %vm17063_vm0, %v20740_v22  ;;  %16567 = vrcp.f32 %v1309_v4  ;;  %v17998_v12 = vpack.c.bf16 %v1659_v58, %v1656_v44  ;;  %v1666_v44 = vld [vmem:[#allocation8 + $0x60] sm:$0xff] }
 0x1d3   :  { %13421 = vmatpush1.bf16.msra.mxu0 %v17740_v45  ;;  %13451 = vmatpush3.bf16.msra.mxu1 %v17719_v11  ;;  %20743 = vst [vmem:[#allocation94_spill] sm:$0xff] %v17998_v12 }
 0x1d4   :  { %13423 = vmatprep.subr.bf16.mxu0 %v17744_v48  ;;  %13452 = vmatprep.subr.bf16.mxu1 %v20739_v0 }
 0x1d7   :  { %13425 = vmatpush1.bf16.msra.mxu0 %v17751_v60  ;;  %13454 = vmatpush3.bf16.msra.mxu1 %v17726_v24 }
 0x1d8   :  { %13427 = vmatprep.subr.bf16.mxu0 %v17754_v61  ;;  %13455 = vmatprep.subr.bf16.mxu1 %v20739_v0 }
 0x1da   :  { %v16566_v21 = vpop.eup %16565 }
 0x1db   :  { %v1313_v31 = vmul.f32 %v16566_v21, %v1312_v34  ;;  %13429 = vmatpush1.bf16.msra.mxu0 %v17761_v13  ;;  %13457 = vmatpush3.bf16.msra.mxu1 %v17735_v40  ;;  %v16568_v62 = vpop.eup %16567  ;;  %v1661_v34 = vld [vmem:[#allocation8 + $0x38] sm:$0xff]  ;;  %v1664_v21 = vld [vmem:[#allocation8 + $0x50] sm:$0xff] }
 0x1dc   :  { %13431 = vmatprep.subr.bf16.mxu0 %v17764_v14  ;;  %13458 = vmatprep.subr.bf16.mxu1 %v20739_v0  ;;  %v1316_v10 = vsub.f32 1.0, %v16568_v62  ;;  %v18004_v20 = vpack.c.bf16 %v1664_v21, %v1661_v34  ;;  %v1669_v34 = vld [vmem:[#allocation8 + $0x78] sm:$0xff]  ;;  %v1668_v21 = vld [vmem:[#allocation8 + $0x70] sm:$0xff] }
 0x1dd   :  { %v1314_v42 = vadd.f32 %v1313_v31, %v728_v25  ;;  %v1318_v31 = vmul.f32 0.0, %v16568_v62  ;;  %v1665_v62 = vld [vmem:[#allocation8 + $0x58] sm:$0xff] }
 0x1de   :  { %20744 = vst [vmem:[#allocation95_spill] sm:$0xff] %v18004_v20 }
 0x1df   :  { %16569 = vtanh.f32 %v1314_v42  ;;  %13433 = vmatpush1.bf16.msra.mxu0 %v17771_v38  ;;  %13460 = vmatpush3.bf16.msra.mxu1 %v17747_v55  ;;  %v17996_v42 = vpack.c.bf16 %v1657_v3, %v1654_v50 }
 0x1e0   :  { %13435 = vmatprep.subr.bf16.mxu0 %v17774_v39  ;;  %13461 = vmatprep.subr.bf16.mxu1 %v20739_v0 }
 0x1e1   :  { %20742 = vst [vmem:[#allocation93_spill] sm:$0xff] %v17996_v42 }
 0x1e3   :  { %13437 = vmatpush1.bf16.msra.mxu0 %v17781_v54  ;;  %13463 = vmatpush3.bf16.msra.mxu1 %v17757_v7 }
 0x1e4   :  { %13439 = vmatprep.subr.bf16.mxu0 %v17784_v57  ;;  %13464 = vmatprep.subr.bf16.mxu1 %v20739_v0 }
 0x1e7   :  { %13441 = vmatpush1.bf16.msra.mxu0 %v17789_v5  ;;  %13466 = vmatpush3.bf16.msra.mxu1 %v17767_v28 }
 0x1e8   :  { %13443 = vmatprep.subr.bf16.mxu0 %v17792_v8  ;;  %13467 = vmatprep.subr.bf16.mxu1 %v20739_v0  ;;  %v1660_v8 = vld [vmem:[#allocation8 + $0x30] sm:$0xff] }
 0x1e9   :  { %v16570_v4 = vpop.eup %16569  ;;  %v18010_v50 = vpack.c.bf16 %v1663_v32, %v1660_v8  ;;  %v18023_v8 = vpack.c.bf16 %v1669_v34, %v1666_v44 }
 0x1ea   :  { %v1317_v25 = vmul.f32 %v16570_v4, %v1316_v10  ;;  %v1662_v10 = vld [vmem:[#allocation8 + $0x40] sm:$0xff]  ;;  %v1667_v4 = vld [vmem:[#allocation8 + $0x68] sm:$0xff] }
 0x1eb   :  { %13445 = vmatpush1.bf16.msra.mxu0 %v17800_v19  ;;  %13469 = vmatpush3.bf16.msra.mxu1 %v17777_v52  ;;  %v1670_v19 = vld [vmem:[#allocation8 + $0x80] sm:$0xff]  ;;  %20745 = vst [vmem:[#allocation96_spill] sm:$0xff] %v18010_v50  ;;  %v18012_v3 = vpack.c.bf16 %v1665_v62, %v1662_v10  ;;  %20748 = vst [vmem:[#allocation99_spill] sm:$0xff] %v18023_v8  ;;  %v1675_v62 = vld [vmem:[#allocation8 + $0xa8] sm:$0xff] }
 0x1ec   :  { %v18000_v28 = vadd.f32 %v1318_v31, %v1317_v25  ;;  %13471 = vmatprep.subr.bf16.mxu1 %v17992_v2  ;;  %13502 = vmatprep.subr.bf16.mxu0 %v20739_v0  ;;  %v18016_v58 = vpack.c.bf16 %v1670_v19, %v1667_v4  ;;  %v1671_v25 = vld [vmem:[#allocation8 + $0x88] sm:$0xff]  ;;  %v1673_v31 = vld [vmem:[#allocation8 + $0x98] sm:$0xff]  ;;  %v1676_v2 = vld [vmem:[#allocation8 + $0xb0] sm:$0xff] }
 0x1ed   :  { %20746 = vst [vmem:[#allocation97_spill] sm:$0xff] %v18012_v3  ;;  %v18025_v32 = vpack.c.bf16 %v1671_v25, %v1668_v21  ;;  %v1672_v19 = vld [vmem:[#allocation8 + $0x90] sm:$0xff]  ;;  %v18029_v10 = vpack.c.bf16 %v1676_v2, %v1673_v31  ;;  %v1674_v4 = vld [vmem:[#allocation8 + $0xa0] sm:$0xff]  ;;  %v1681_v25 = vld [vmem:[#allocation8 + $0xd8] sm:$0xff] }
 0x1ee   :  { %1556 = vmatmul.mubr.f32.vlgmr.msra.gmra.mrb[18].mxu0 %v18000_v28  ;;  %11296 = vmatmul.mubr.f32.vlgmr.msra.gmra.mrb[30].mxu1 %v18000_v28  ;;  %20747 = vst [vmem:[#allocation98_spill] sm:$0xff] %v18016_v58  ;;  %v18033_v44 = vpack.c.bf16 %v1675_v62, %v1672_v19  ;;  %v1678_v21 = vld [vmem:[#allocation8 + $0xc0] sm:$0xff]  ;;  %v1680_v31 = vld [vmem:[#allocation8 + $0xd0] sm:$0xff] }
 0x1ef   :  { %13473 = vmatpush1.bf16.msra.mxu1 %v17996_v42  ;;  %13504 = vmatpush3.bf16.msra.mxu0 %v17998_v12  ;;  %20749 = vst [vmem:[#allocation100_spill] sm:$0xff] %v18025_v32  ;;  %20750 = vst [vmem:[#allocation101_spill] sm:$0xff] %v18029_v10  ;;  %v1679_v12 = vld [vmem:[#allocation8 + $0xc8] sm:$0xff]  ;;  %v1682_v42 = vld [vmem:[#allocation8 + $0xe0] sm:$0xff]  ;;  %v18043_v19 = vpack.c.bf16 %v1681_v25, %v1678_v21 }
 0x1f0   :  { %13475 = vmatprep.subr.bf16.mxu1 %v18004_v20  ;;  %13505 = vmatprep.subr.bf16.mxu0 %v20739_v0  ;;  %v1677_v20 = vld [vmem:[#allocation8 + $0xb8] sm:$0xff]  ;;  %20751 = vst [vmem:[#allocation102_spill] sm:$0xff] %v18033_v44  ;;  %v18039_v2 = vpack.c.bf16 %v1682_v42, %v1679_v12  ;;  %v1684_v62 = vld [vmem:[#allocation8 + $0xf0] sm:$0xff]  ;;  %v1687_v42 = vld [vmem:[#allocation8 + $0x108] sm:$0xff] }
 0x1f1   :  { %1766 = vmatprep.mubr.f32.mxu1 %v20740_v22  ;;  %11330 = vmatprep.mubr.msk.f32.mxu0 %vm17063_vm0, %v20740_v22  ;;  %v18035_v34 = vpack.c.bf16 %v1677_v20, %v1674_v4  ;;  %20754 = vst [vmem:[#allocation105_spill] sm:$0xff] %v18043_v19  ;;  %v1686_v4 = vld [vmem:[#allocation8 + $0x100] sm:$0xff]  ;;  %v18053_v21 = vpack.c.bf16 %v1687_v42, %v1684_v62  ;;  %v1696_v42 = vld [vmem:[#allocation8 + $0x150] sm:$0xff] }
 0x1f2   :  { %20753 = vst [vmem:[#allocation104_spill] sm:$0xff] %v18039_v2  ;;  %v1690_v25 = vld [vmem:[#allocation8 + $0x120] sm:$0xff] }
 0x1f3   :  { %13477 = vmatpush1.bf16.msra.mxu1 %v18010_v50  ;;  %13507 = vmatpush3.bf16.msra.mxu0 %v18012_v3  ;;  %20752 = vst [vmem:[#allocation103_spill] sm:$0xff] %v18035_v34  ;;  %v1685_v3 = vld [vmem:[#allocation8 + $0xf8] sm:$0xff]  ;;  %v1688_v50 = vld [vmem:[#allocation8 + $0x110] sm:$0xff]  ;;  %20757 = vst [vmem:[#allocation108_spill] sm:$0xff] %v18053_v21 }
 0x1f4   :  { %13479 = vmatprep.subr.bf16.mxu1 %v18016_v58  ;;  %13508 = vmatprep.subr.bf16.mxu0 %v20739_v0  ;;  %v1683_v58 = vld [vmem:[#allocation8 + $0xe8] sm:$0xff]  ;;  %v18049_v12 = vpack.c.bf16 %v1688_v50, %v1685_v3  ;;  %v1693_v3 = vld [vmem:[#allocation8 + $0x138] sm:$0xff] }
 0x1f5   :  { %v18045_v20 = vpack.c.bf16 %v1683_v58, %v1680_v31  ;;  %v1692_v31 = vld [vmem:[#allocation8 + $0x130] sm:$0xff]  ;;  %v18063_v62 = vpack.c.bf16 %v1693_v3, %v1690_v25  ;;  %v1843_v3 = vld [vmem:[#allocation9] sm:$0xff] }
 0x1f6   :  { %20756 = vst [vmem:[#allocation107_spill] sm:$0xff] %v18049_v12 }
 0x1f7   :  { %13481 = vmatpush1.bf16.msra.mxu1 %v18023_v8  ;;  %13510 = vmatpush3.bf16.msra.mxu0 %v18025_v32  ;;  %20755 = vst [vmem:[#allocation106_spill] sm:$0xff] %v18045_v20  ;;  %v1691_v32 = vld [vmem:[#allocation8 + $0x128] sm:$0xff]  ;;  %v1694_v8 = vld [vmem:[#allocation8 + $0x140] sm:$0xff]  ;;  %20760 = vst [vmem:[#allocation111_spill] sm:$0xff] %v18063_v62 }
 0x1f8   :  { %13483 = vmatprep.subr.bf16.mxu1 %v18029_v10  ;;  %13511 = vmatprep.subr.bf16.mxu0 %v20739_v0  ;;  %v1689_v10 = vld [vmem:[#allocation8 + $0x118] sm:$0xff]  ;;  %v18059_v50 = vpack.c.bf16 %v1694_v8, %v1691_v32  ;;  %v1699_v32 = vld [vmem:[#allocation8 + $0x168] sm:$0xff] }
 0x1f9   :  { %v18055_v58 = vpack.c.bf16 %v1689_v10, %v1686_v4  ;;  %v1698_v4 = vld [vmem:[#allocation8 + $0x160] sm:$0xff]  ;;  %v18073_v25 = vpack.c.bf16 %v1699_v32, %v1696_v42 }
 0x1fa   :  { %20759 = vst [vmem:[#allocation110_spill] sm:$0xff] %v18059_v50 }
 0x1fb   :  { %13485 = vmatpush1.bf16.msra.mxu1 %v18033_v44  ;;  %13513 = vmatpush3.bf16.msra.mxu0 %v18035_v34  ;;  %20758 = vst [vmem:[#allocation109_spill] sm:$0xff] %v18055_v58  ;;  %v1697_v34 = vld [vmem:[#allocation8 + $0x158] sm:$0xff]  ;;  %v1700_v44 = vld [vmem:[#allocation8 + $0x170] sm:$0xff]  ;;  %20763 = vst [vmem:[#allocation114_spill] sm:$0xff] %v18073_v25 }
 0x1fc   :  { %13487 = vmatprep.subr.bf16.mxu1 %v18039_v2  ;;  %13514 = vmatprep.subr.bf16.mxu0 %v20739_v0  ;;  %v1695_v2 = vld [vmem:[#allocation8 + $0x148] sm:$0xff]  ;;  %v18069_v8 = vpack.c.bf16 %v1700_v44, %v1697_v34  ;;  %v1846_v34 = vld [vmem:[#allocation9 + $0x18] sm:$0xff] }
 0x1fd   :  { %v18065_v10 = vpack.c.bf16 %v1695_v2, %v1692_v31  ;;  %v1845_v31 = vld [vmem:[#allocation9 + $0x10] sm:$0xff]  ;;  %v18083_v42 = vpack.c.bf16 %v1846_v34, %v1843_v3  ;;  %v1858_v34 = vld [vmem:[#allocation9 + $0x78] sm:$0xff] }
 0x1fe   :  { %20762 = vst [vmem:[#allocation113_spill] sm:$0xff] %v18069_v8 }
 0x1ff   :  { %13489 = vmatpush1.bf16.msra.mxu1 %v18043_v19  ;;  %13516 = vmatpush3.bf16.msra.mxu0 %v18045_v20  ;;  %20761 = vst [vmem:[#allocation112_spill] sm:$0xff] %v18065_v10  ;;  %v1844_v20 = vld [vmem:[#allocation9 + $0x8] sm:$0xff]  ;;  %v1847_v19 = vld [vmem:[#allocation9 + $0x20] sm:$0xff]  ;;  %20766 = vst [vmem:[#allocation117_spill] sm:$0xff] %v18083_v42 }
 0x200   :  { %13491 = vmatprep.subr.bf16.mxu1 %v18049_v12  ;;  %13517 = vmatprep.subr.bf16.mxu0 %v20739_v0  ;;  %v1701_v12 = vld [vmem:[#allocation8 + $0x178] sm:$0xff]  ;;  %v18079_v44 = vpack.c.bf16 %v1847_v19, %v1844_v20  ;;  %v1852_v19 = vld [vmem:[#allocation9 + $0x48] sm:$0xff]  ;;  %v1851_v20 = vld [vmem:[#allocation9 + $0x40] sm:$0xff] }
 0x201   :  { %v18075_v2 = vpack.c.bf16 %v1701_v12, %v1698_v4  ;;  %v1849_v12 = vld [vmem:[#allocation9 + $0x30] sm:$0xff] }
 0x202   :  { %20765 = vst [vmem:[#allocation116_spill] sm:$0xff] %v18079_v44  ;;  %v18094_v3 = vpack.c.bf16 %v1852_v19, %v1849_v12  ;;  %v1861_v12 = vld [vmem:[#allocation9 + $0x90] sm:$0xff]  ;;  %v1864_v19 = vld [vmem:[#allocation9 + $0xa8] sm:$0xff] }
 0x203   :  { %13493 = vmatpush1.bf16.msra.mxu1 %v18053_v21  ;;  %13519 = vmatpush3.bf16.msra.mxu0 %v18055_v58  ;;  %20764 = vst [vmem:[#allocation115_spill] sm:$0xff] %v18075_v2  ;;  %v1850_v58 = vld [vmem:[#allocation9 + $0x38] sm:$0xff]  ;;  %v1853_v21 = vld [vmem:[#allocation9 + $0x50] sm:$0xff] }
 0x204   :  { %13495 = vmatprep.subr.bf16.mxu1 %v18059_v50  ;;  %13520 = vmatprep.subr.bf16.mxu0 %v20739_v0  ;;  %v1848_v50 = vld [vmem:[#allocation9 + $0x28] sm:$0xff]  ;;  %v18088_v4 = vpack.c.bf16 %v1853_v21, %v1850_v58  ;;  %20769 = vst [vmem:[#allocation120_spill] sm:$0xff] %v18094_v3 }
 0x205   :  { %v18085_v32 = vpack.c.bf16 %v1848_v50, %v1845_v31  ;;  %v1855_v50 = vld [vmem:[#allocation9 + $0x60] sm:$0xff]  ;;  %v1857_v31 = vld [vmem:[#allocation9 + $0x70] sm:$0xff] }
 0x206   :  { %20768 = vst [vmem:[#allocation119_spill] sm:$0xff] %v18088_v4 }
 0x207   :  { %13497 = vmatpush1.bf16.msra.mxu1 %v18063_v62  ;;  %13522 = vmatpush3.bf16.msra.mxu0 %v18065_v10  ;;  %20767 = vst [vmem:[#allocation118_spill] sm:$0xff] %v18085_v32  ;;  %v1856_v10 = vld [vmem:[#allocation9 + $0x68] sm:$0xff]  ;;  %v1859_v62 = vld [vmem:[#allocation9 + $0x80] sm:$0xff] }
 0x208   :  { %13499 = vmatprep.subr.bf16.mxu1 %v18069_v8  ;;  %13523 = vmatprep.subr.bf16.mxu0 %v20739_v0  ;;  %v1854_v8 = vld [vmem:[#allocation9 + $0x58] sm:$0xff]  ;;  %v18100_v58 = vpack.c.bf16 %v1859_v62, %v1856_v10 }
 0x209   :  { %v18097_v21 = vpack.c.bf16 %v1854_v8, %v1851_v20  ;;  %v18107_v8 = vpack.c.bf16 %v1858_v34, %v1855_v50  ;;  %v1863_v20 = vld [vmem:[#allocation9 + $0xa0] sm:$0xff]  ;;  %v18117_v50 = vpack.c.bf16 %v1864_v19, %v1861_v12  ;;  %v1873_v19 = vld [vmem:[#allocation9 + $0xf0] sm:$0xff] }
 0x20a   :  { %20771 = vst [vmem:[#allocation122_spill] sm:$0xff] %v18100_v58  ;;  %v1867_v34 = vld [vmem:[#allocation9 + $0xc0] sm:$0xff] }
 0x20b   :  { %13501 = vmatpush1.bf16.msra.mxu1 %v18073_v25  ;;  %13525 = vmatpush3.bf16.msra.mxu0 %v18075_v2  ;;  %20770 = vst [vmem:[#allocation121_spill] sm:$0xff] %v18097_v21  ;;  %v1862_v2 = vld [vmem:[#allocation9 + $0x98] sm:$0xff]  ;;  %v1865_v25 = vld [vmem:[#allocation9 + $0xb0] sm:$0xff]  ;;  %20772 = vst [vmem:[#allocation123_spill] sm:$0xff] %v18107_v8 }
 0x20c   :  { %13527 = vmatprep.subr.bf16.mxu1 %v18079_v44  ;;  %13558 = vmatprep.subr.bf16.mxu0 %v20739_v0  ;;  %v1860_v44 = vld [vmem:[#allocation9 + $0x88] sm:$0xff]  ;;  %v18113_v10 = vpack.c.bf16 %v1865_v25, %v1862_v2  ;;  %20775 = vst [vmem:[#allocation126_spill] sm:$0xff] %v18117_v50  ;;  %v1870_v2 = vld [vmem:[#allocation9 + $0xd8] sm:$0xff] }
 0x20d   :  { %v18110_v62 = vpack.c.bf16 %v1860_v44, %v1857_v31  ;;  %v1869_v31 = vld [vmem:[#allocation9 + $0xd0] sm:$0xff]  ;;  %v18127_v12 = vpack.c.bf16 %v1870_v2, %v1867_v34  ;;  %v1879_v2 = vld [vmem:[#allocation9 + $0x120] sm:$0xff] }
 0x20e   :  { %1767 = vmatmul.mubr.f32.vlgmr.msra.gmra.mrb[32].mxu1 %v18000_v28  ;;  %11331 = vmatmul.mubr.f32.vlgmr.msra.gmra.mrb[48].mxu0 %v18000_v28  ;;  %20774 = vst [vmem:[#allocation125_spill] sm:$0xff] %v18113_v10 }
 0x20f   :  { %13529 = vmatpush1.bf16.msra.mxu1 %v18083_v42  ;;  %13560 = vmatpush3.bf16.msra.mxu0 %v18085_v32  ;;  %20773 = vst [vmem:[#allocation124_spill] sm:$0xff] %v18110_v62  ;;  %v1868_v32 = vld [vmem:[#allocation9 + $0xc8] sm:$0xff]  ;;  %v1871_v42 = vld [vmem:[#allocation9 + $0xe0] sm:$0xff]  ;;  %20778 = vst [vmem:[#allocation129_spill] sm:$0xff] %v18127_v12 }
 0x210   :  { %13531 = vmatprep.subr.bf16.mxu1 %v18088_v4  ;;  %13561 = vmatprep.subr.bf16.mxu0 %v20739_v0  ;;  %v1866_v4 = vld [vmem:[#allocation9 + $0xb8] sm:$0xff]  ;;  %v18123_v25 = vpack.c.bf16 %v1871_v42, %v1868_v32  ;;  %v1876_v32 = vld [vmem:[#allocation9 + $0x108] sm:$0xff] }
 0x211   :  { %1955 = vmatprep.mubr.f32.mxu1 %v20740_v22  ;;  %11365 = vmatprep.mubr.msk.f32.mxu0 %vm17063_vm0, %v20740_v22  ;;  %v18120_v44 = vpack.c.bf16 %v1866_v4, %v1863_v20  ;;  %v1875_v20 = vld [vmem:[#allocation9 + $0x100] sm:$0xff]  ;;  %v18137_v34 = vpack.c.bf16 %v1876_v32, %v1873_v19  ;;  %v1885_v32 = vld [vmem:[#allocation9 + $0x150] sm:$0xff] }
 0x212   :  { %20777 = vst [vmem:[#allocation128_spill] sm:$0xff] %v18123_v25 }
 0x213   :  { %13533 = vmatpush1.bf16.msra.mxu1 %v18094_v3  ;;  %13563 = vmatpush3.bf16.msra.mxu0 %v18097_v21  ;;  %20776 = vst [vmem:[#allocation127_spill] sm:$0xff] %v18120_v44  ;;  %v1874_v21 = vld [vmem:[#allocation9 + $0xf8] sm:$0xff]  ;;  %v1877_v3 = vld [vmem:[#allocation9 + $0x110] sm:$0xff]  ;;  %20781 = vst [vmem:[#allocation132_spill] sm:$0xff] %v18137_v34 }
 0x214   :  { %13535 = vmatprep.subr.bf16.mxu1 %v18100_v58  ;;  %13564 = vmatprep.subr.bf16.mxu0 %v20739_v0  ;;  %v1872_v58 = vld [vmem:[#allocation9 + $0xe8] sm:$0xff]  ;;  %v18133_v42 = vpack.c.bf16 %v1877_v3, %v1874_v21  ;;  %v1882_v21 = vld [vmem:[#allocation9 + $0x138] sm:$0xff] }
 0x215   :  { %v18130_v4 = vpack.c.bf16 %v1872_v58, %v1869_v31  ;;  %v1881_v31 = vld [vmem:[#allocation9 + $0x130] sm:$0xff]  ;;  %v18147_v19 = vpack.c.bf16 %v1882_v21, %v1879_v2  ;;  %v20793_v21 = vld [vmem:[#allocation31_spill] sm:$0xff] }
 0x216   :  { %20780 = vst [vmem:[#allocation131_spill] sm:$0xff] %v18133_v42 }
 0x217   :  { %13537 = vmatpush1.bf16.msra.mxu1 %v18107_v8  ;;  %13566 = vmatpush3.bf16.msra.mxu0 %v18110_v62  ;;  %20779 = vst [vmem:[#allocation130_spill] sm:$0xff] %v18130_v4  ;;  %v1880_v62 = vld [vmem:[#allocation9 + $0x128] sm:$0xff]  ;;  %v1883_v8 = vld [vmem:[#allocation9 + $0x140] sm:$0xff]  ;;  %20784 = vst [vmem:[#allocation135_spill] sm:$0xff] %v18147_v19 }
 0x218   :  { %13539 = vmatprep.subr.bf16.mxu1 %v18113_v10  ;;  %13567 = vmatprep.subr.bf16.mxu0 %v20739_v0  ;;  %v1878_v10 = vld [vmem:[#allocation9 + $0x118] sm:$0xff]  ;;  %v18143_v3 = vpack.c.bf16 %v1883_v8, %v1880_v62  ;;  %v1888_v62 = vld [vmem:[#allocation9 + $0x168] sm:$0xff] }
 0x219   :  { %v18140_v58 = vpack.c.bf16 %v1878_v10, %v1875_v20  ;;  %v1887_v20 = vld [vmem:[#allocation9 + $0x160] sm:$0xff] }
 0x21a   :  { %20783 = vst [vmem:[#allocation134_spill] sm:$0xff] %v18143_v3 }
 0x21b   :  { %13541 = vmatpush1.bf16.msra.mxu1 %v18117_v50  ;;  %13569 = vmatpush3.bf16.msra.mxu0 %v18120_v44  ;;  %20782 = vst [vmem:[#allocation133_spill] sm:$0xff] %v18140_v58  ;;  %v1886_v44 = vld [vmem:[#allocation9 + $0x158] sm:$0xff]  ;;  %v1889_v50 = vld [vmem:[#allocation9 + $0x170] sm:$0xff] }
 0x21c   :  { %13543 = vmatprep.subr.bf16.mxu1 %v18123_v25  ;;  %13570 = vmatprep.subr.bf16.mxu0 %v20739_v0  ;;  %v1884_v25 = vld [vmem:[#allocation9 + $0x148] sm:$0xff]  ;;  %v18153_v8 = vpack.c.bf16 %v1889_v50, %v1886_v44  ;;  %v20789_v50 = vld [vmem:[#allocation26_spill] sm:$0xff]  ;;  %v20790_v44 = vld [vmem:[#allocation28_spill] sm:$0xff] }
 0x21d   :  { %v18150_v10 = vpack.c.bf16 %v1884_v25, %v1881_v31  ;;  %v20791_v25 = vld [vmem:[#allocation37_spill] sm:$0xff]  ;;  %v20794_v31 = vld [vmem:[#allocation38_spill] sm:$0xff] }
 0x21e   :  { %20786 = vst [vmem:[#allocation137_spill] sm:$0xff] %v18153_v8 }
 0x21f   :  { %13545 = vmatpush1.bf16.msra.mxu1 %v18127_v12  ;;  %13572 = vmatpush3.bf16.msra.mxu0 %v18130_v4  ;;  %20785 = vst [vmem:[#allocation136_spill] sm:$0xff] %v18150_v10  ;;  %v18157_v4 = vpack.c.bf16 %v1888_v62, %v1885_v32  ;;  %v20795_v32 = vld [vmem:[#allocation32_spill] sm:$0xff] }
 0x220   :  { %13547 = vmatprep.subr.bf16.mxu1 %v18133_v42  ;;  %13573 = vmatprep.subr.bf16.mxu0 %v20739_v0  ;;  %v1890_v42 = vld [vmem:[#allocation9 + $0x178] sm:$0xff] }
 0x221   :  { %20787 = vst [vmem:[#allocation138_spill] sm:$0xff] %v18157_v4  ;;  %v18160_v2 = vpack.c.bf16 %v1890_v42, %v1887_v20  ;;  %v20792_v42 = vld [vmem:[#allocation29_spill] sm:$0xff] }
 0x223   :  { %13549 = vmatpush1.bf16.msra.mxu1 %v18137_v34  ;;  %13575 = vmatpush3.bf16.msra.mxu0 %v18140_v58  ;;  %20788 = vst [vmem:[#allocation139_spill] sm:$0xff] %v18160_v2 }
 0x224   :  { %13551 = vmatprep.subr.bf16.mxu1 %v18143_v3  ;;  %13576 = vmatprep.subr.bf16.mxu0 %v20739_v0 }
 0x227   :  { %13553 = vmatpush1.bf16.msra.mxu1 %v18147_v19  ;;  %13578 = vmatpush3.bf16.msra.mxu0 %v18150_v10 }
 0x228   :  { %13555 = vmatprep.subr.bf16.mxu1 %v18153_v8  ;;  %13579 = vmatprep.subr.bf16.mxu0 %v20739_v0 }
 0x22b   :  { %13557 = vmatpush1.bf16.msra.mxu1 %v18157_v4  ;;  %13581 = vmatpush3.bf16.msra.mxu0 %v18160_v2 }
 0x22c   :  { %13583 = vmatprep.subr.bf16.mxu0 %v17415_v16  ;;  %13614 = vmatprep.subr.bf16.mxu1 %v20739_v0 }
 0x22e   :  { %1956 = vmatmul.mubr.f32.vlgmr.msra.gmra.mrb[32].mxu1 %v20740_v22  ;;  %11366 = vmatmul.mubr.f32.vlgmr.msra.gmra.mrb[50].mxu0 %v20740_v22 }
 0x22f   :  { %13585 = vmatpush1.bf16.msra.mxu0 %v17434_v23  ;;  %13616 = vmatpush3.bf16.msra.mxu1 %v17576_v15 }
 0x230   :  { %13587 = vmatprep.subr.bf16.mxu0 %v17437_v26  ;;  %13617 = vmatprep.subr.bf16.mxu1 %v20739_v0 }
 0x231   :  { %2122 = vmatprep.mubr.f32.mxu0 %v20740_v22  ;;  %11400 = vmatprep.mubr.msk.f32.mxu1 %vm17063_vm0, %v20740_v22 }
 0x233   :  { %13589 = vmatpush1.bf16.msra.mxu0 %v17458_v33  ;;  %13619 = vmatpush3.bf16.msra.mxu1 %v17604_v27 }
 0x234   :  { %13591 = vmatprep.subr.bf16.mxu0 %v17461_v36  ;;  %13620 = vmatprep.subr.bf16.mxu1 %v20739_v0 }
 0x237   :  { %13593 = vmatpush1.bf16.msra.mxu0 %v17483_v43  ;;  %13622 = vmatpush3.bf16.msra.mxu1 %v17625_v37 }
 0x238   :  { %13595 = vmatprep.subr.bf16.mxu0 %v17486_v46  ;;  %13623 = vmatprep.subr.bf16.mxu1 %v20739_v0  ;;  %v20798_v46 = vld [vmem:[#allocation63_spill] sm:$0xff] }
 0x23b   :  { %13597 = vmatpush1.bf16.msra.mxu0 %v17508_v53  ;;  %13625 = vmatpush3.bf16.msra.mxu1 %v17641_v41 }
 0x23c   :  { %13599 = vmatprep.subr.bf16.mxu0 %v17511_v56  ;;  %13626 = vmatprep.subr.bf16.mxu1 %v20739_v0 }
 0x23f   :  { %13601 = vmatpush1.bf16.msra.mxu0 %v17531_v63  ;;  %13628 = vmatpush3.bf16.msra.mxu1 %v17655_v47 }
 0x240   :  { %13603 = vmatprep.subr.bf16.mxu0 %v17534_v1  ;;  %13629 = vmatprep.subr.bf16.mxu1 %v20739_v0 }
 0x243   :  { %13605 = vmatpush1.bf16.msra.mxu0 %v17559_v9  ;;  %13631 = vmatpush3.bf16.msra.mxu1 %v17669_v51 }
 0x244   :  { %13607 = vmatprep.subr.bf16.mxu0 %v20789_v50  ;;  %13632 = vmatprep.subr.bf16.mxu1 %v20739_v0 }
 0x247   :  { %13609 = vmatpush1.bf16.msra.mxu0 %v20790_v44  ;;  %13634 = vmatpush3.bf16.msra.mxu1 %v20791_v25  ;;  %v20796_v25 = vld [vmem:[#allocation88_spill] sm:$0xff] }
 0x248   :  { %13611 = vmatprep.subr.bf16.mxu0 %v20792_v42  ;;  %13635 = vmatprep.subr.bf16.mxu1 %v20739_v0 }
 0x24b   :  { %13613 = vmatpush1.bf16.msra.mxu0 %v20793_v21  ;;  %13637 = vmatpush3.bf16.msra.mxu1 %v20794_v31 }
 0x24c   :  { %13639 = vmatprep.subr.bf16.mxu0 %v20795_v32  ;;  %13670 = vmatprep.subr.bf16.mxu1 %v20739_v0  ;;  %v20797_v32 = vld [vmem:[#allocation89_spill] sm:$0xff] }
 0x2a1   :  { %v1390_v62 = vpop.f32.mrb[2].mxu0  ;;  %v1461_v20 = vpop.f32.mrb[28].mxu1 }
 0x2a2   :  { %v16384_v50 = vadd.f32 %v1390_v62, %v17926_v18  ;;  %v1392_v51 = vpop.f32.mrb[3].mxu0  ;;  %v11262_v44 = vpop.f32.mrb[29].mxu1  ;;  %v1479_v56 = vadd.f32 %v20797_v32, %v1461_v20 }
 0x2a3   :  { %v16385_v1 = vadd.f32 %v1392_v51, %v20796_v25 }
 0x2a4   :  { %v9974_v9 = vmul.f32 -1.442695, %v16384_v50 }
 0x2a5   :  { %v9975_v42 = vmul.f32 -1.442695, %v16385_v1 }
 0x2a6   :  { %16571 = vpow2.f32 %v9974_v9 }
 0x2a7   :  { %16573 = vpow2.f32 %v9975_v42 }
 0x2b0   :  { %v16572_v47 = vpop.eup %16571 }
 0x2b1   :  { %v1469_v21 = vadd.f32 1.0, %v16572_v47  ;;  %v16574_v31 = vpop.eup %16573 }
 0x2b2   :  { %v1476_v63 = vadd.f32 1.0, %v16574_v31 }
 0x2b3   :  { %16575 = vrcp.f32 %v1469_v21 }
 0x2b4   :  { %16577 = vrcp.f32 %v1476_v63 }
 0x2bd   :  { %v16576_v41 = vpop.eup %16575 }
 0x2be   :  { %v1480_v53 = vmul.f32 %v16576_v41, %v1479_v56  ;;  %v16578_v42 = vpop.eup %16577 }
 0x2bf   :  { %v1483_v31 = vsub.f32 1.0, %v16578_v42  ;;  %v1485_v63 = vmul.f32 %v16578_v42, %v17949_v17 }
 0x2c0   :  { %v1481_v62 = vadd.f32 %v1480_v53, %v20798_v46 }
 0x2c1   :  { %v1557_v18 = vpop.f32.mrb[18].mxu0  ;;  %v1628_v44 = vpop.f32.mrb[30].mxu1 }
 0x2c2   :  { %16579 = vtanh.f32 %v1481_v62  ;;  %v16400_v51 = vadd.f32 %v1557_v18, %v17942_v49  ;;  %v1559_v9 = vpop.f32.mrb[19].mxu0  ;;  %v11297_v1 = vpop.f32.mrb[31].mxu1  ;;  %v1646_v20 = vadd.f32 %v17967_v35, %v1628_v44  ;;  %v20800_v44 = vld [vmem:[#allocation53_spill] sm:$0xff] }
 0x2c3   :  { %v16401_v47 = vadd.f32 %v1559_v9, %v17945_v59  ;;  %v20799_v9 = vld [vmem:[#allocation70_spill] sm:$0xff] }
 0x2c4   :  { %v9976_v50 = vmul.f32 -1.442695, %v16400_v51 }
 0x2c5   :  { %v9977_v21 = vmul.f32 -1.442695, %v16401_v47 }
 0x2c6   :  { %16581 = vpow2.f32 %v9976_v50 }
 0x2c7   :  { %16583 = vpow2.f32 %v9977_v21  ;;  %v20801_v21 = vld [vmem:[#allocation60_spill] sm:$0xff] }
 0x2cc   :  { %v16580_v32 = vpop.eup %16579 }
 0x2cd   :  { %v1484_v56 = vmul.f32 %v16580_v32, %v1483_v31 }
 0x2cf   :  { %v18212_v46 = vadd.f32 %v1485_v63, %v1484_v56  ;;  %v20802_v63 = vld [vmem:[#allocation61_spill] sm:$0xff] }
 0x2d0   :  { %v16582_v53 = vpop.eup %16581 }
 0x2d1   :  { %v1636_v41 = vadd.f32 1.0, %v16582_v53  ;;  %2123 = vmatmul.mubr.f32.vlgmr.msra.gmra.mrb[4].mxu0 %v18212_v46  ;;  %11401 = vmatmul.mubr.f32.vlgmr.msra.gmra.mrb[34].mxu1 %v18212_v46  ;;  %v16584_v18 = vpop.eup %16583 }
 0x2d2   :  { %13641 = vmatpush1.bf16.msra.mxu0 %v17730_v29  ;;  %13672 = vmatpush3.bf16.msra.mxu1 %v17713_v6  ;;  %v1643_v17 = vadd.f32 1.0, %v16584_v18  ;;  %v20804_v18 = vld [vmem:[#allocation93_spill] sm:$0xff] }
 0x2d3   :  { %16585 = vrcp.f32 %v1636_v41  ;;  %13643 = vmatprep.subr.bf16.mxu0 %v17732_v30  ;;  %13673 = vmatprep.subr.bf16.mxu1 %v20739_v0  ;;  %v20803_v41 = vld [vmem:[#allocation92_spill] sm:$0xff] }
 0x2d4   :  { %2289 = vmatprep.mubr.f32.mxu0 %v20740_v22  ;;  %11435 = vmatprep.mubr.msk.f32.mxu1 %vm17063_vm0, %v20740_v22  ;;  %16587 = vrcp.f32 %v1643_v17  ;;  %v20805_v17 = vld [vmem:[#allocation94_spill] sm:$0xff] }
 0x2d6   :  { %13645 = vmatpush1.bf16.msra.mxu0 %v17740_v45  ;;  %13675 = vmatpush3.bf16.msra.mxu1 %v17719_v11 }
 0x2d7   :  { %13647 = vmatprep.subr.bf16.mxu0 %v17744_v48  ;;  %13676 = vmatprep.subr.bf16.mxu1 %v20739_v0 }
 0x2da   :  { %13649 = vmatpush1.bf16.msra.mxu0 %v17751_v60  ;;  %13678 = vmatpush3.bf16.msra.mxu1 %v17726_v24 }
 0x2db   :  { %13651 = vmatprep.subr.bf16.mxu0 %v17754_v61  ;;  %13679 = vmatprep.subr.bf16.mxu1 %v20739_v0 }
 0x2dd   :  { %v16586_v62 = vpop.eup %16585 }
 0x2de   :  { %v1647_v51 = vmul.f32 %v16586_v62, %v1646_v20  ;;  %13653 = vmatpush1.bf16.msra.mxu0 %v17761_v13  ;;  %13681 = vmatpush3.bf16.msra.mxu1 %v17735_v40  ;;  %v16588_v35 = vpop.eup %16587  ;;  %v20806_v20 = vld [vmem:[#allocation95_spill] sm:$0xff]  ;;  %v20808_v62 = vld [vmem:[#allocation97_spill] sm:$0xff] }
 0x2df   :  { %13655 = vmatprep.subr.bf16.mxu0 %v17764_v14  ;;  %13682 = vmatprep.subr.bf16.mxu1 %v20739_v0  ;;  %v1650_v42 = vsub.f32 1.0, %v16588_v35  ;;  %v1652_v56 = vmul.f32 %v16588_v35, %v18000_v28  ;;  %v20807_v28 = vld [vmem:[#allocation96_spill] sm:$0xff]  ;;  %v875_v35 = vld [vmem:[%s20393_s12] sm:$0x7] }
 0x2e0   :  { %v1648_v1 = vadd.f32 %v1647_v51, %v20799_v9  ;;  %v20809_v51 = vld [vmem:[#allocation98_spill] sm:$0xff]  ;;  %v20810_v9 = vld [vmem:[#allocation99_spill] sm:$0xff] }
 0x2e1   :  { %v18237_v50 = vpop.f32.mrb[48].mxu0 }
 0x2e2   :  { %16589 = vtanh.f32 %v1648_v1  ;;  %v11332_v47 = vpop.f32.mrb[49].mxu0  ;;  %13657 = vmatpush1.bf16.msra.mxu0 %v17771_v38  ;;  %13684 = vmatpush3.bf16.msra.mxu1 %v17747_v55  ;;  %v20811_v1 = vld [vmem:[#allocation100_spill] sm:$0xff] }
 0x2e3   :  { %13659 = vmatprep.subr.bf16.mxu0 %v17774_v39  ;;  %13685 = vmatprep.subr.bf16.mxu1 %v20739_v0  ;;  %v20812_v47 = vld [vmem:[#allocation101_spill] sm:$0xff] }
 0x2e6   :  { %13661 = vmatpush1.bf16.msra.mxu0 %v17781_v54  ;;  %13687 = vmatpush3.bf16.msra.mxu1 %v17757_v7 }
 0x2e7   :  { %13663 = vmatprep.subr.bf16.mxu0 %v17784_v57  ;;  %13688 = vmatprep.subr.bf16.mxu1 %v20739_v0 }
 0x2ea   :  { %13665 = vmatpush1.bf16.msra.mxu0 %v17789_v5  ;;  %13690 = vmatpush3.bf16.msra.mxu1 %v20800_v44 }
 0x2eb   :  { %13667 = vmatprep.subr.bf16.mxu0 %v20801_v21  ;;  %13691 = vmatprep.subr.bf16.mxu1 %v20739_v0 }
 0x2ec   :  { %v16590_v31 = vpop.eup %16589 }
 0x2ed   :  { %v1651_v32 = vmul.f32 %v16590_v31, %v1650_v42  ;;  %v20813_v42 = vld [vmem:[#allocation85_spill] sm:$0xff] }
 0x2ee   :  { %13669 = vmatpush1.bf16.msra.mxu0 %v20802_v63  ;;  %13693 = vmatpush3.bf16.msra.mxu1 %v17777_v52  ;;  %v18279_v31 = vrot.slane %v875_v35, %v20813_v42  ;;  %v20820_v42 = vld [vmem:[#allocation106_spill] sm:$0xff] }
 0x2ef   :  { %v18254_v53 = vadd.f32 %v1652_v56, %v1651_v32  ;;  %13695 = vmatprep.subr.bf16.mxu1 %v20803_v41  ;;  %13726 = vmatprep.subr.bf16.mxu0 %v20739_v0  ;;  %v20814_v32 = vld [vmem:[#allocation102_spill] sm:$0xff]  ;;  %v20815_v56 = vld [vmem:[#allocation103_spill] sm:$0xff]  ;;  %v20823_v41 = vld [vmem:[#allocation109_spill] sm:$0xff] }
 0x2f0   :  { %v20824_v52 = vld [vmem:[#allocation110_spill] sm:$0xff] }
 0x2f1   :  { %2290 = vmatmul.mubr.f32.vlgmr.msra.gmra.mrb[20].mxu0 %v18254_v53  ;;  %11436 = vmatmul.mubr.f32.vlgmr.msra.gmra.mrb[36].mxu1 %v18254_v53 }
 0x2f2   :  { %13697 = vmatpush1.bf16.msra.mxu1 %v20804_v18  ;;  %13728 = vmatpush3.bf16.msra.mxu0 %v20805_v17  ;;  %v20819_v17 = vld [vmem:[#allocation105_spill] sm:$0xff] }
 0x2f3   :  { %13699 = vmatprep.subr.bf16.mxu1 %v20806_v20  ;;  %13729 = vmatprep.subr.bf16.mxu0 %v20739_v0 }
 0x2f4   :  { %2452 = vmatprep.mubr.f32.mxu1 %v20740_v22  ;;  %11470 = vmatprep.mubr.msk.f32.mxu0 %vm17063_vm0, %v20740_v22 }
 0x2f6   :  { %13701 = vmatpush1.bf16.msra.mxu1 %v20807_v28  ;;  %13731 = vmatpush3.bf16.msra.mxu0 %v20808_v62 }
 0x2f7   :  { %13703 = vmatprep.subr.bf16.mxu1 %v20809_v51  ;;  %13732 = vmatprep.subr.bf16.mxu0 %v20739_v0  ;;  %v20816_v51 = vld [vmem:[#allocation104_spill] sm:$0xff] }
 0x2fa   :  { %13705 = vmatpush1.bf16.msra.mxu1 %v20810_v9  ;;  %13734 = vmatpush3.bf16.msra.mxu0 %v20811_v1  ;;  %v20817_v1 = vld [vmem:[#allocation86_spill] sm:$0xff] }
 0x2fb   :  { %13707 = vmatprep.subr.bf16.mxu1 %v20812_v47  ;;  %13735 = vmatprep.subr.bf16.mxu0 %v20739_v0  ;;  %v18286_v9 = vrot.slane %v875_v35, %v20817_v1  ;;  %v20822_v1 = vld [vmem:[#allocation108_spill] sm:$0xff] }
 0x2fd   :  { %20818 = vst [vmem:[#allocation89_spill] sm:$0xff] %v18286_v9 }
 0x2fe   :  { %13709 = vmatpush1.bf16.msra.mxu1 %v20814_v32  ;;  %13737 = vmatpush3.bf16.msra.mxu0 %v20815_v56  ;;  %v20821_v32 = vld [vmem:[#allocation107_spill] sm:$0xff] }
 0x2ff   :  { %13711 = vmatprep.subr.bf16.mxu1 %v20816_v51  ;;  %13738 = vmatprep.subr.bf16.mxu0 %v20739_v0 }
 0x301   :  { %v1957_v47 = vpop.f32.mrb[32].mxu1  ;;  %v2028_v62 = vpop.f32.mrb[50].mxu0 }
 0x302   :  { %v16430_v28 = vadd.f32 %v1957_v47, %v18279_v31  ;;  %v1959_v20 = vpop.f32.mrb[33].mxu1  ;;  %13713 = vmatpush1.bf16.msra.mxu1 %v20819_v17  ;;  %13740 = vmatpush3.bf16.msra.mxu0 %v20820_v42  ;;  %v11367_v18 = vpop.f32.mrb[51].mxu0  ;;  %v20825_v17 = vld [vmem:[#allocation111_spill] sm:$0xff]  ;;  %v20843_v42 = vld [vmem:[#allocation126_spill] sm:$0xff] }
 0x303   :  { %13715 = vmatprep.subr.bf16.mxu1 %v20821_v32  ;;  %13741 = vmatprep.subr.bf16.mxu0 %v20739_v0  ;;  %v16431_v56 = vadd.f32 %v1959_v20, %v18286_v9  ;;  %v20826_v18 = vld [vmem:[#allocation112_spill] sm:$0xff]  ;;  %v20827_v32 = vld [vmem:[#allocation113_spill] sm:$0xff]  ;;  %v20828_v20 = vld [vmem:[#allocation114_spill] sm:$0xff] }
 0x304   :  { %v9978_v51 = vmul.f32 -1.442695, %v16430_v28  ;;  %v20829_v28 = vld [vmem:[#allocation115_spill] sm:$0xff] }
 0x305   :  { %v9979_v47 = vmul.f32 -1.442695, %v16431_v56  ;;  %v20831_v56 = vld [vmem:[#allocation117_spill] sm:$0xff] }
 0x306   :  { %16591 = vpow2.f32 %v9978_v51  ;;  %13717 = vmatpush1.bf16.msra.mxu1 %v20822_v1  ;;  %13743 = vmatpush3.bf16.msra.mxu0 %v20823_v41  ;;  %v20830_v51 = vld [vmem:[#allocation116_spill] sm:$0xff] }
 0x307   :  { %13719 = vmatprep.subr.bf16.mxu1 %v20824_v52  ;;  %13744 = vmatprep.subr.bf16.mxu0 %v20739_v0  ;;  %16593 = vpow2.f32 %v9979_v47  ;;  %v20833_v47 = vld [vmem:[#allocation119_spill] sm:$0xff] }
 0x30a   :  { %13721 = vmatpush1.bf16.msra.mxu1 %v20825_v17  ;;  %13746 = vmatpush3.bf16.msra.mxu0 %v20826_v18  ;;  %v20840_v18 = vld [vmem:[#allocation123_spill] sm:$0xff]  ;;  %v20841_v17 = vld [vmem:[#allocation124_spill] sm:$0xff] }
 0x30b   :  { %13723 = vmatprep.subr.bf16.mxu1 %v20827_v32  ;;  %13747 = vmatprep.subr.bf16.mxu0 %v20739_v0  ;;  %v20832_v32 = vld [vmem:[#allocation118_spill] sm:$0xff] }
 0x30e   :  { %13725 = vmatpush1.bf16.msra.mxu1 %v20828_v20  ;;  %13749 = vmatpush3.bf16.msra.mxu0 %v20829_v28  ;;  %v20836_v20 = vld [vmem:[#allocation122_spill] sm:$0xff] }
 0x30f   :  { %13751 = vmatprep.subr.bf16.mxu1 %v20830_v51  ;;  %13782 = vmatprep.subr.bf16.mxu0 %v20739_v0  ;;  %v20834_v51 = vld [vmem:[#allocation120_spill] sm:$0xff] }
 0x310   :  { %v16592_v52 = vpop.eup %16591 }
 0x311   :  { %v2036_v41 = vadd.f32 1.0, %v16592_v52  ;;  %2453 = vmatmul.mubr.f32.vlgmr.msra.gmra.mrb[38].mxu1 %v18254_v53  ;;  %11471 = vmatmul.mubr.f32.vlgmr.msra.gmra.mrb[52].mxu0 %v18254_v53  ;;  %v20835_v52 = vld [vmem:[#allocation121_spill] sm:$0xff]  ;;  %v16594_v28 = vpop.eup %16593 }
 0x312   :  { %13753 = vmatpush1.bf16.msra.mxu1 %v20831_v56  ;;  %13784 = vmatpush3.bf16.msra.mxu0 %v20832_v32  ;;  %v2043_v56 = vadd.f32 1.0, %v16594_v28  ;;  %v20845_v28 = vld [vmem:[#allocation128_spill] sm:$0xff] }
 0x313   :  { %16595 = vrcp.f32 %v2036_v41  ;;  %13755 = vmatprep.subr.bf16.mxu1 %v20833_v47  ;;  %13785 = vmatprep.subr.bf16.mxu0 %v20739_v0  ;;  %v18322_v41 = vld [vmem:[%s20394_s13] ss:$0 sm:$0xff] }
 0x314   :  { %2593 = vmatprep.mubr.f32.mxu1 %v20740_v22  ;;  %11505 = vmatprep.mubr.msk.f32.mxu0 %vm17063_vm0, %v20740_v22  ;;  %20837 = vst [vmem:[#allocation63_spill] sm:$0xff] %v18322_v41  ;;  %v20838_v47 = vld [vmem:[#allocation62_spill] sm:$0xff]  ;;  %16597 = vrcp.f32 %v2043_v56 }
 0x315   :  { %v18325_v32 = vrot.slane %v875_v35, %v20838_v47  ;;  %v20844_v35 = vld [vmem:[#allocation127_spill] sm:$0xff] }
 0x316   :  { %13757 = vmatpush1.bf16.msra.mxu1 %v20834_v51  ;;  %13787 = vmatpush3.bf16.msra.mxu0 %v20835_v52  ;;  %v2046_v52 = vadd.f32 %v18322_v41, %v2028_v62  ;;  %v20842_v51 = vld [vmem:[#allocation125_spill] sm:$0xff]  ;;  %v20846_v62 = vld [vmem:[#allocation130_spill] sm:$0xff]  ;;  %v20847_v41 = vld [vmem:[#allocation131_spill] sm:$0xff] }
 0x317   :  { %13759 = vmatprep.subr.bf16.mxu1 %v20836_v20  ;;  %13788 = vmatprep.subr.bf16.mxu0 %v20739_v0  ;;  %20839 = vst [vmem:[#allocation70_spill] sm:$0xff] %v18325_v32  ;;  %v1840_v1 = vadd.f32 %v18237_v50, %v18325_v32 }
 0x31a   :  { %13761 = vmatpush1.bf16.msra.mxu1 %v20840_v18  ;;  %13790 = vmatpush3.bf16.msra.mxu0 %v20841_v17 }
 0x31b   :  { %13763 = vmatprep.subr.bf16.mxu1 %v20842_v51  ;;  %13791 = vmatprep.subr.bf16.mxu0 %v20739_v0 }
 0x31d   :  { %v16596_v20 = vpop.eup %16595 }
 0x31e   :  { %v2047_v9 = vmul.f32 %v16596_v20, %v2046_v52  ;;  %13765 = vmatpush1.bf16.msra.mxu1 %v20843_v42  ;;  %13793 = vmatpush3.bf16.msra.mxu0 %v20844_v35  ;;  %v16598_v50 = vpop.eup %16597 }
 0x31f   :  { %13767 = vmatprep.subr.bf16.mxu1 %v20845_v28  ;;  %13794 = vmatprep.subr.bf16.mxu0 %v20739_v0  ;;  %v2052_v56 = vmul.f32 0.0, %v16598_v50 }
 0x320   :  { %v2048_v47 = vadd.f32 %v2047_v9, %v1840_v1  ;;  %v2050_v9 = vsub.f32 1.0, %v16598_v50  ;;  %v20849_v50 = vld [vmem:[#allocation21_spill] sm:$0xff] }
 0x322   :  { %16599 = vtanh.f32 %v2048_v47  ;;  %13769 = vmatpush1.bf16.msra.mxu1 %v18127_v12  ;;  %13796 = vmatpush3.bf16.msra.mxu0 %v20846_v62  ;;  %v20848_v47 = vld [vmem:[#allocation20_spill] sm:$0xff] }
 0x323   :  { %13771 = vmatprep.subr.bf16.mxu1 %v20847_v41  ;;  %13797 = vmatprep.subr.bf16.mxu0 %v20739_v0 }
 0x326   :  { %13773 = vmatpush1.bf16.msra.mxu1 %v18137_v34  ;;  %13799 = vmatpush3.bf16.msra.mxu0 %v18140_v58 }
 0x327   :  { %13775 = vmatprep.subr.bf16.mxu1 %v18143_v3  ;;  %13800 = vmatprep.subr.bf16.mxu0 %v20739_v0 }
 0x32a   :  { %13777 = vmatpush1.bf16.msra.mxu1 %v18147_v19  ;;  %13802 = vmatpush3.bf16.msra.mxu0 %v18150_v10 }
 0x32b   :  { %13779 = vmatprep.subr.bf16.mxu1 %v18153_v8  ;;  %13803 = vmatprep.subr.bf16.mxu0 %v20739_v0 }
 0x32c   :  { %v16600_v1 = vpop.eup %16599 }
 0x32d   :  { %v2051_v20 = vmul.f32 %v16600_v1, %v2050_v9  ;;  %v20850_v9 = vld [vmem:[#allocation34_spill] sm:$0xff] }
 0x32e   :  { %13781 = vmatpush1.bf16.msra.mxu1 %v18157_v4  ;;  %13805 = vmatpush3.bf16.msra.mxu0 %v18160_v2  ;;  %v20851_v1 = vld [vmem:[#allocation22_spill] sm:$0xff] }
 0x32f   :  { %v18352_v52 = vadd.f32 %v2052_v56, %v2051_v20  ;;  %13807 = vmatprep.subr.bf16.mxu0 %v17415_v16  ;;  %13838 = vmatprep.subr.bf16.mxu1 %v20739_v0  ;;  %v20852_v20 = vld [vmem:[#allocation23_spill] sm:$0xff] }
 0x330   :  { %v20853_v56 = vld [vmem:[#allocation35_spill] sm:$0xff] }
 0x331   :  { %2594 = vmatmul.mubr.f32.vlgmr.msra.gmra.mrb[38].mxu1 %v18352_v52  ;;  %11506 = vmatmul.mubr.f32.vlgmr.msra.gmra.mrb[54].mxu0 %v18352_v52 }
 0x332   :  { %13809 = vmatpush1.bf16.msra.mxu0 %v17434_v23  ;;  %13840 = vmatpush3.bf16.msra.mxu1 %v17576_v15 }
 0x333   :  { %13811 = vmatprep.subr.bf16.mxu0 %v17437_v26  ;;  %13841 = vmatprep.subr.bf16.mxu1 %v20739_v0 }
 0x334   :  { %2760 = vmatprep.mubr.f32.mxu0 %v20740_v22  ;;  %11540 = vmatprep.mubr.msk.f32.mxu1 %vm17063_vm0, %v20740_v22 }
 0x336   :  { %13813 = vmatpush1.bf16.msra.mxu0 %v17458_v33  ;;  %13843 = vmatpush3.bf16.msra.mxu1 %v17604_v27 }
 0x337   :  { %13815 = vmatprep.subr.bf16.mxu0 %v17461_v36  ;;  %13844 = vmatprep.subr.bf16.mxu1 %v20739_v0  ;;  %v20854_v36 = vld [vmem:[#allocation24_spill] sm:$0xff] }
 0x33a   :  { %13817 = vmatpush1.bf16.msra.mxu0 %v17483_v43  ;;  %13846 = vmatpush3.bf16.msra.mxu1 %v17625_v37  ;;  %v20855_v37 = vld [vmem:[#allocation25_spill] sm:$0xff]  ;;  %v20857_v43 = vld [vmem:[#allocation26_spill] sm:$0xff] }
 0x33b   :  { %13819 = vmatprep.subr.bf16.mxu0 %v20848_v47  ;;  %13847 = vmatprep.subr.bf16.mxu1 %v20739_v0  ;;  %v20856_v47 = vld [vmem:[#allocation36_spill] sm:$0xff] }
 0x33e   :  { %13821 = vmatpush1.bf16.msra.mxu0 %v20849_v50  ;;  %13849 = vmatpush3.bf16.msra.mxu1 %v20850_v9  ;;  %v20858_v9 = vld [vmem:[#allocation28_spill] sm:$0xff]  ;;  %v20860_v50 = vld [vmem:[#allocation29_spill] sm:$0xff] }
 0x33f   :  { %13823 = vmatprep.subr.bf16.mxu0 %v20851_v1  ;;  %13850 = vmatprep.subr.bf16.mxu1 %v20739_v0  ;;  %v20859_v1 = vld [vmem:[#allocation37_spill] sm:$0xff] }
 0x342   :  { %13825 = vmatpush1.bf16.msra.mxu0 %v20852_v20  ;;  %13852 = vmatpush3.bf16.msra.mxu1 %v20853_v56  ;;  %v20861_v56 = vld [vmem:[#allocation31_spill] sm:$0xff]  ;;  %v20863_v20 = vld [vmem:[#allocation32_spill] sm:$0xff] }
 0x343   :  { %13827 = vmatprep.subr.bf16.mxu0 %v20854_v36  ;;  %13853 = vmatprep.subr.bf16.mxu1 %v20739_v0  ;;  %v20862_v36 = vld [vmem:[#allocation38_spill] sm:$0xff] }
 0x346   :  { %13829 = vmatpush1.bf16.msra.mxu0 %v20855_v37  ;;  %13855 = vmatpush3.bf16.msra.mxu1 %v20856_v47  ;;  %v20864_v37 = vld [vmem:[#allocation87_spill] sm:$0xff] }
 0x347   :  { %13831 = vmatprep.subr.bf16.mxu0 %v20857_v43  ;;  %13856 = vmatprep.subr.bf16.mxu1 %v20739_v0 }
 0x34a   :  { %13833 = vmatpush1.bf16.msra.mxu0 %v20858_v9  ;;  %13858 = vmatpush3.bf16.msra.mxu1 %v20859_v1 }
 0x34b   :  { %13835 = vmatprep.subr.bf16.mxu0 %v20860_v50  ;;  %13859 = vmatprep.subr.bf16.mxu1 %v20739_v0 }
 0x34e   :  { %13837 = vmatpush1.bf16.msra.mxu0 %v20861_v56  ;;  %13861 = vmatpush3.bf16.msra.mxu1 %v20862_v36 }
 0x34f   :  { %13863 = vmatprep.subr.bf16.mxu0 %v20863_v20  ;;  %13894 = vmatprep.subr.bf16.mxu1 %v20739_v0  ;;  %v18398_v20 = vld [vmem:[%s20386_s5] ss:$0 sm:$0xff] }
 0x3a4   :  { %v2124_v47 = vpop.f32.mrb[4].mxu0  ;;  %v2195_v43 = vpop.f32.mrb[34].mxu1 }
 0x3a5   :  { %v16386_v27 = vadd.f32 %v2124_v47, %v20864_v37  ;;  %v2126_v33 = vpop.f32.mrb[5].mxu0  ;;  %v11402_v9 = vpop.f32.mrb[35].mxu1  ;;  %v2213_v47 = vadd.f32 %v18398_v20, %v2195_v43 }
 0x3a6   :  { %v16387_v1 = vadd.f32 %v2126_v33, %v20796_v25 }
 0x3a7   :  { %v9980_v26 = vmul.f32 -1.442695, %v16386_v27  ;;  %v20865_v27 = vld [vmem:[#allocation65_spill] sm:$0xff] }
 0x3a8   :  { %v9981_v50 = vmul.f32 -1.442695, %v16387_v1 }
 0x3a9   :  { %16601 = vpow2.f32 %v9980_v26 }
 0x3aa   :  { %16603 = vpow2.f32 %v9981_v50 }
 0x3b3   :  { %v16602_v15 = vpop.eup %16601 }
 0x3b4   :  { %v2203_v56 = vadd.f32 1.0, %v16602_v15  ;;  %v16604_v36 = vpop.eup %16603 }
 0x3b5   :  { %v2210_v23 = vadd.f32 1.0, %v16604_v36 }
 0x3b6   :  { %16605 = vrcp.f32 %v2203_v56 }
 0x3b7   :  { %16607 = vrcp.f32 %v2210_v23 }
 0x3c0   :  { %v16606_v37 = vpop.eup %16605 }
 0x3c1   :  { %v2214_v9 = vmul.f32 %v16606_v37, %v2213_v47  ;;  %v16608_v16 = vpop.eup %16607 }
 0x3c2   :  { %v2217_v4 = vsub.f32 1.0, %v16608_v16  ;;  %v2219_v23 = vmul.f32 %v16608_v16, %v18212_v46 }
 0x3c3   :  { %v2215_v33 = vadd.f32 %v2214_v9, %v20865_v27 }
 0x3c4   :  { %v2291_v26 = vpop.f32.mrb[20].mxu0  ;;  %v2362_v1 = vpop.f32.mrb[36].mxu1 }
 0x3c5   :  { %16609 = vtanh.f32 %v2215_v33  ;;  %v16402_v15 = vadd.f32 %v2291_v26, %v17942_v49  ;;  %v2293_v50 = vpop.f32.mrb[21].mxu0  ;;  %v11437_v56 = vpop.f32.mrb[37].mxu1  ;;  %v20866_v26 = vld [vmem:[#allocation72_spill] sm:$0xff] }
 0x3c6   :  { %v16403_v25 = vadd.f32 %v2293_v50, %v17945_v59 }
 0x3c7   :  { %v9982_v36 = vmul.f32 -1.442695, %v16402_v15 }
 0x3c8   :  { %v9983_v2 = vmul.f32 -1.442695, %v16403_v25 }
 0x3c9   :  { %16611 = vpow2.f32 %v9982_v36 }
 0x3ca   :  { %16613 = vpow2.f32 %v9983_v2  ;;  %v18427_v2 = vld [vmem:[%s20390_s9] ss:$0 sm:$0xff] }
 0x3cb   :  { %v2380_v25 = vadd.f32 %v18427_v2, %v2362_v1 }
 0x3cf   :  { %v16610_v43 = vpop.eup %16609 }
 0x3d0   :  { %v2218_v37 = vmul.f32 %v16610_v43, %v2217_v4 }
 0x3d2   :  { %v18405_v47 = vadd.f32 %v2219_v23, %v2218_v37 }
 0x3d3   :  { %v16612_v9 = vpop.eup %16611 }
 0x3d4   :  { %v2370_v27 = vadd.f32 1.0, %v16612_v9  ;;  %2761 = vmatmul.mubr.f32.vlgmr.msra.gmra.mrb[6].mxu0 %v18405_v47  ;;  %11541 = vmatmul.mubr.f32.vlgmr.msra.gmra.mrb[40].mxu1 %v18405_v47  ;;  %v16614_v16 = vpop.eup %16613  ;;  %v20867_v9 = vld [vmem:[#allocation56_spill] sm:$0xff] }
 0x3d5   :  { %13865 = vmatpush1.bf16.msra.mxu0 %v17730_v29  ;;  %13896 = vmatpush3.bf16.msra.mxu1 %v17713_v6  ;;  %v2377_v4 = vadd.f32 1.0, %v16614_v16  ;;  %v20868_v16 = vld [vmem:[#allocation92_spill] sm:$0xff] }
 0x3d6   :  { %16615 = vrcp.f32 %v2370_v27  ;;  %13867 = vmatprep.subr.bf16.mxu0 %v17732_v30  ;;  %13897 = vmatprep.subr.bf16.mxu1 %v20739_v0 }
 0x3d7   :  { %2927 = vmatprep.mubr.f32.mxu0 %v20740_v22  ;;  %11575 = vmatprep.mubr.msk.f32.mxu1 %vm17063_vm0, %v20740_v22  ;;  %16617 = vrcp.f32 %v2377_v4  ;;  %v20869_v4 = vld [vmem:[#allocation93_spill] sm:$0xff] }
 0x3d9   :  { %13869 = vmatpush1.bf16.msra.mxu0 %v17740_v45  ;;  %13899 = vmatpush3.bf16.msra.mxu1 %v17719_v11 }
 0x3da   :  { %13871 = vmatprep.subr.bf16.mxu0 %v17744_v48  ;;  %13900 = vmatprep.subr.bf16.mxu1 %v20739_v0 }
 0x3dd   :  { %13873 = vmatpush1.bf16.msra.mxu0 %v17751_v60  ;;  %13902 = vmatpush3.bf16.msra.mxu1 %v17726_v24 }
 0x3de   :  { %13875 = vmatprep.subr.bf16.mxu0 %v17754_v61  ;;  %13903 = vmatprep.subr.bf16.mxu1 %v20739_v0 }
 0x3e0   :  { %v16616_v46 = vpop.eup %16615 }
 0x3e1   :  { %v2381_v33 = vmul.f32 %v16616_v46, %v2380_v25  ;;  %13877 = vmatpush1.bf16.msra.mxu0 %v17761_v13  ;;  %13905 = vmatpush3.bf16.msra.mxu1 %v17735_v40  ;;  %v16618_v1 = vpop.eup %16617  ;;  %v20870_v25 = vld [vmem:[#allocation94_spill] sm:$0xff]  ;;  %v20871_v46 = vld [vmem:[#allocation95_spill] sm:$0xff] }
 0x3e2   :  { %13879 = vmatprep.subr.bf16.mxu0 %v17764_v14  ;;  %13906 = vmatprep.subr.bf16.mxu1 %v20739_v0  ;;  %v2384_v36 = vsub.f32 1.0, %v16618_v1  ;;  %v2386_v23 = vmul.f32 %v16618_v1, %v18254_v53  ;;  %v20872_v53 = vld [vmem:[#allocation96_spill] sm:$0xff]  ;;  %v20877_v1 = vld [vmem:[#allocation101_spill] sm:$0xff] }
 0x3e3   :  { %v2382_v15 = vadd.f32 %v2381_v33, %v20866_v26  ;;  %v20873_v33 = vld [vmem:[#allocation97_spill] sm:$0xff]  ;;  %v20874_v26 = vld [vmem:[#allocation98_spill] sm:$0xff] }
 0x3e4   :  { %v18435_v50 = vpop.f32.mrb[52].mxu0 }
 0x3e5   :  { %16619 = vtanh.f32 %v2382_v15  ;;  %v11472_v56 = vpop.f32.mrb[53].mxu0  ;;  %13881 = vmatpush1.bf16.msra.mxu0 %v17771_v38  ;;  %13908 = vmatpush3.bf16.msra.mxu1 %v17747_v55  ;;  %v20875_v15 = vld [vmem:[#allocation99_spill] sm:$0xff] }
 0x3e6   :  { %13883 = vmatprep.subr.bf16.mxu0 %v17774_v39  ;;  %13909 = vmatprep.subr.bf16.mxu1 %v20739_v0  ;;  %v20876_v56 = vld [vmem:[#allocation100_spill] sm:$0xff] }
 0x3e9   :  { %13885 = vmatpush1.bf16.msra.mxu0 %v17781_v54  ;;  %13911 = vmatpush3.bf16.msra.mxu1 %v17757_v7 }
 0x3ea   :  { %13887 = vmatprep.subr.bf16.mxu0 %v17784_v57  ;;  %13912 = vmatprep.subr.bf16.mxu1 %v20739_v0 }
 0x3ed   :  { %13889 = vmatpush1.bf16.msra.mxu0 %v17789_v5  ;;  %13914 = vmatpush3.bf16.msra.mxu1 %v20800_v44 }
 0x3ee   :  { %13891 = vmatprep.subr.bf16.mxu0 %v20801_v21  ;;  %13915 = vmatprep.subr.bf16.mxu1 %v20739_v0 }
 0x3ef   :  { %v16620_v43 = vpop.eup %16619 }
 0x3f0   :  { %v2385_v37 = vmul.f32 %v16620_v43, %v2384_v36  ;;  %v20878_v36 = vld [vmem:[#allocation102_spill] sm:$0xff]  ;;  %v20879_v43 = vld [vmem:[#allocation103_spill] sm:$0xff] }
 0x3f1   :  { %13893 = vmatpush1.bf16.msra.mxu0 %v20802_v63  ;;  %13917 = vmatpush3.bf16.msra.mxu1 %v20867_v9 }
 0x3f2   :  { %v18452_v27 = vadd.f32 %v2386_v23, %v2385_v37  ;;  %13919 = vmatprep.subr.bf16.mxu1 %v20868_v16  ;;  %13950 = vmatprep.subr.bf16.mxu0 %v20739_v0  ;;  %v20880_v37 = vld [vmem:[#allocation104_spill] sm:$0xff]  ;;  %v20887_v16 = vld [vmem:[#allocation110_spill] sm:$0xff] }
 0x3f4   :  { %2928 = vmatmul.mubr.f32.vlgmr.msra.gmra.mrb[22].mxu0 %v18452_v27  ;;  %11576 = vmatmul.mubr.f32.vlgmr.msra.gmra.mrb[42].mxu1 %v18452_v27 }
 0x3f5   :  { %13921 = vmatpush1.bf16.msra.mxu1 %v20869_v4  ;;  %13952 = vmatpush3.bf16.msra.mxu0 %v20870_v25  ;;  %v20886_v4 = vld [vmem:[#allocation109_spill] sm:$0xff] }
 0x3f6   :  { %13923 = vmatprep.subr.bf16.mxu1 %v20871_v46  ;;  %13953 = vmatprep.subr.bf16.mxu0 %v20739_v0  ;;  %v20881_v46 = vld [vmem:[#allocation105_spill] sm:$0xff] }
 0x3f7   :  { %3090 = vmatprep.mubr.f32.mxu1 %v20740_v22  ;;  %11610 = vmatprep.mubr.msk.f32.mxu0 %vm17063_vm0, %v20740_v22 }
 0x3f9   :  { %13925 = vmatpush1.bf16.msra.mxu1 %v20872_v53  ;;  %13955 = vmatpush3.bf16.msra.mxu0 %v20873_v33 }
 0x3fa   :  { %13927 = vmatprep.subr.bf16.mxu1 %v20874_v26  ;;  %13956 = vmatprep.subr.bf16.mxu0 %v20739_v0 }
 0x3fd   :  { %13929 = vmatpush1.bf16.msra.mxu1 %v20875_v15  ;;  %13958 = vmatpush3.bf16.msra.mxu0 %v20876_v56  ;;  %v20882_v56 = vld [vmem:[#allocation106_spill] sm:$0xff] }
 0x3fe   :  { %13931 = vmatprep.subr.bf16.mxu1 %v20877_v1  ;;  %13959 = vmatprep.subr.bf16.mxu0 %v20739_v0  ;;  %v20883_v1 = vld [vmem:[#allocation107_spill] sm:$0xff] }
 0x401   :  { %13933 = vmatpush1.bf16.msra.mxu1 %v20878_v36  ;;  %13961 = vmatpush3.bf16.msra.mxu0 %v20879_v43  ;;  %v20884_v43 = vld [vmem:[#allocation89_spill] sm:$0xff] }
 0x402   :  { %13935 = vmatprep.subr.bf16.mxu1 %v20880_v37  ;;  %13962 = vmatprep.subr.bf16.mxu0 %v20739_v0  ;;  %v20885_v37 = vld [vmem:[#allocation108_spill] sm:$0xff] }
 0x404   :  { %v2595_v23 = vpop.f32.mrb[38].mxu1  ;;  %v2666_v26 = vpop.f32.mrb[54].mxu0 }
 0x405   :  { %v16432_v33 = vadd.f32 %v2595_v23, %v18279_v31  ;;  %v2597_v53 = vpop.f32.mrb[39].mxu1  ;;  %v11507_v15 = vpop.f32.mrb[55].mxu0  ;;  %13937 = vmatpush1.bf16.msra.mxu1 %v20881_v46  ;;  %13964 = vmatpush3.bf16.msra.mxu0 %v20882_v56  ;;  %v20888_v23 = vld [vmem:[#allocation111_spill] sm:$0xff]  ;;  %v20889_v56 = vld [vmem:[#allocation112_spill] sm:$0xff] }
 0x406   :  { %13939 = vmatprep.subr.bf16.mxu1 %v20883_v1  ;;  %13965 = vmatprep.subr.bf16.mxu0 %v20739_v0  ;;  %v16433_v25 = vadd.f32 %v2597_v53, %v20884_v43  ;;  %v20890_v1 = vld [vmem:[#allocation113_spill] sm:$0xff]  ;;  %v20891_v53 = vld [vmem:[#allocation114_spill] sm:$0xff] }
 0x407   :  { %v9984_v36 = vmul.f32 -1.442695, %v16432_v33  ;;  %v20892_v33 = vld [vmem:[#allocation115_spill] sm:$0xff] }
 0x408   :  { %v9985_v15 = vmul.f32 -1.442695, %v16433_v25  ;;  %v20894_v25 = vld [vmem:[#allocation117_spill] sm:$0xff] }
 0x409   :  { %16621 = vpow2.f32 %v9984_v36  ;;  %13941 = vmatpush1.bf16.msra.mxu1 %v20885_v37  ;;  %13967 = vmatpush3.bf16.msra.mxu0 %v20886_v4  ;;  %v20893_v36 = vld [vmem:[#allocation116_spill] sm:$0xff] }
 0x40a   :  { %13943 = vmatprep.subr.bf16.mxu1 %v20887_v16  ;;  %13968 = vmatprep.subr.bf16.mxu0 %v20739_v0  ;;  %16623 = vpow2.f32 %v9985_v15  ;;  %v20896_v15 = vld [vmem:[#allocation119_spill] sm:$0xff] }
 0x40d   :  { %13945 = vmatpush1.bf16.msra.mxu1 %v20888_v23  ;;  %13970 = vmatpush3.bf16.msra.mxu0 %v20889_v56 }
 0x40e   :  { %13947 = vmatprep.subr.bf16.mxu1 %v20890_v1  ;;  %13971 = vmatprep.subr.bf16.mxu0 %v20739_v0  ;;  %v20895_v1 = vld [vmem:[#allocation118_spill] sm:$0xff] }
 0x411   :  { %13949 = vmatpush1.bf16.msra.mxu1 %v20891_v53  ;;  %13973 = vmatpush3.bf16.msra.mxu0 %v20892_v33  ;;  %v20899_v53 = vld [vmem:[#allocation122_spill] sm:$0xff] }
 0x412   :  { %13975 = vmatprep.subr.bf16.mxu1 %v20893_v36  ;;  %14006 = vmatprep.subr.bf16.mxu0 %v20739_v0  ;;  %v20897_v36 = vld [vmem:[#allocation120_spill] sm:$0xff] }
 0x413   :  { %v16622_v16 = vpop.eup %16621 }
 0x414   :  { %v2674_v4 = vadd.f32 1.0, %v16622_v16  ;;  %3091 = vmatmul.mubr.f32.vlgmr.msra.gmra.mrb[44].mxu1 %v18452_v27  ;;  %11611 = vmatmul.mubr.f32.vlgmr.msra.gmra.mrb[56].mxu0 %v18452_v27  ;;  %v20898_v16 = vld [vmem:[#allocation121_spill] sm:$0xff]  ;;  %v16624_v33 = vpop.eup %16623 }
 0x415   :  { %13977 = vmatpush1.bf16.msra.mxu1 %v20894_v25  ;;  %14008 = vmatpush3.bf16.msra.mxu0 %v20895_v1  ;;  %v2681_v1 = vadd.f32 1.0, %v16624_v33 }
 0x416   :  { %16625 = vrcp.f32 %v2674_v4  ;;  %13979 = vmatprep.subr.bf16.mxu1 %v20896_v15  ;;  %14009 = vmatprep.subr.bf16.mxu0 %v20739_v0  ;;  %v20900_v4 = vld [vmem:[#allocation63_spill] sm:$0xff] }
 0x417   :  { %3231 = vmatprep.mubr.f32.mxu1 %v20740_v22  ;;  %11645 = vmatprep.mubr.msk.f32.mxu0 %vm17063_vm0, %v20740_v22  ;;  %v2684_v15 = vadd.f32 %v20900_v4, %v2666_v26  ;;  %16627 = vrcp.f32 %v2681_v1 }
 0x419   :  { %13981 = vmatpush1.bf16.msra.mxu1 %v20897_v36  ;;  %14011 = vmatpush3.bf16.msra.mxu0 %v20898_v16  ;;  %v2526_v16 = vadd.f32 %v18435_v50, %v18325_v32 }
 0x41a   :  { %13983 = vmatprep.subr.bf16.mxu1 %v20899_v53  ;;  %14012 = vmatprep.subr.bf16.mxu0 %v20739_v0 }
 0x41d   :  { %13985 = vmatpush1.bf16.msra.mxu1 %v20840_v18  ;;  %14014 = vmatpush3.bf16.msra.mxu0 %v20841_v17 }
 0x41e   :  { %13987 = vmatprep.subr.bf16.mxu1 %v20842_v51  ;;  %14015 = vmatprep.subr.bf16.mxu0 %v20739_v0 }
 0x420   :  { %v16626_v25 = vpop.eup %16625 }
 0x421   :  { %v2685_v36 = vmul.f32 %v16626_v25, %v2684_v15  ;;  %13989 = vmatpush1.bf16.msra.mxu1 %v20843_v42  ;;  %14017 = vmatpush3.bf16.msra.mxu0 %v20844_v35  ;;  %v16628_v50 = vpop.eup %16627  ;;  %v20901_v15 = vld [vmem:[#allocation138_spill] sm:$0xff] }
 0x422   :  { %13991 = vmatprep.subr.bf16.mxu1 %v20845_v28  ;;  %14018 = vmatprep.subr.bf16.mxu0 %v20739_v0  ;;  %v2688_v26 = vsub.f32 1.0, %v16628_v50  ;;  %v2690_v25 = vmul.f32 %v16628_v50, %v18352_v52  ;;  %v20908_v52 = vld [vmem:[#allocation17_spill] sm:$0xff]  ;;  %v20909_v50 = vld [vmem:[#allocation30_spill] sm:$0xff] }
 0x423   :  { %v2686_v33 = vadd.f32 %v2685_v36, %v2526_v16  ;;  %v20902_v16 = vld [vmem:[#allocation139_spill] sm:$0xff] }
 0x425   :  { %16629 = vtanh.f32 %v2686_v33  ;;  %13993 = vmatpush1.bf16.msra.mxu1 %v18127_v12  ;;  %14020 = vmatpush3.bf16.msra.mxu0 %v20846_v62  ;;  %v20931_v12 = vld [vmem:[#allocation64_spill] sm:$0xff] }
 0x426   :  { %13995 = vmatprep.subr.bf16.mxu1 %v20847_v41  ;;  %14021 = vmatprep.subr.bf16.mxu0 %v20739_v0 }
 0x429   :  { %13997 = vmatpush1.bf16.msra.mxu1 %v18137_v34  ;;  %14023 = vmatpush3.bf16.msra.mxu0 %v18140_v58 }
 0x42a   :  { %13999 = vmatprep.subr.bf16.mxu1 %v18143_v3  ;;  %14024 = vmatprep.subr.bf16.mxu0 %v20739_v0  ;;  %v20904_v3 = vld [vmem:[#allocation14_spill] sm:$0xff] }
 0x42d   :  { %14001 = vmatpush1.bf16.msra.mxu1 %v18147_v19  ;;  %14026 = vmatpush3.bf16.msra.mxu0 %v18150_v10  ;;  %v20906_v10 = vld [vmem:[#allocation27_spill] sm:$0xff] }
 0x42e   :  { %14003 = vmatprep.subr.bf16.mxu1 %v18153_v8  ;;  %14027 = vmatprep.subr.bf16.mxu0 %v20739_v0  ;;  %v20905_v8 = vld [vmem:[#allocation15_spill] sm:$0xff] }
 0x42f   :  { %v16630_v1 = vpop.eup %16629 }
 0x430   :  { %v2689_v36 = vmul.f32 %v16630_v1, %v2688_v26  ;;  %v20907_v26 = vld [vmem:[#allocation16_spill] sm:$0xff]  ;;  %v20910_v1 = vld [vmem:[#allocation18_spill] sm:$0xff] }
 0x431   :  { %14005 = vmatpush1.bf16.msra.mxu1 %v20901_v15  ;;  %14029 = vmatpush3.bf16.msra.mxu0 %v20902_v16 }
 0x432   :  { %v18534_v33 = vadd.f32 %v2690_v25, %v2689_v36  ;;  %14031 = vmatprep.subr.bf16.mxu0 %v20904_v3  ;;  %14062 = vmatprep.subr.bf16.mxu1 %v20739_v0  ;;  %v20911_v36 = vld [vmem:[#allocation19_spill] sm:$0xff]  ;;  %v20912_v25 = vld [vmem:[#allocation33_spill] sm:$0xff]  ;;  %v20916_v3 = vld [vmem:[#allocation22_spill] sm:$0xff] }
 0x434   :  { %20903 = vst [vmem:[#allocation85_spill] sm:$0xff] %v18534_v33  ;;  %3232 = vmatmul.mubr.f32.vlgmr.msra.gmra.mrb[44].mxu1 %v18534_v33  ;;  %11646 = vmatmul.mubr.f32.vlgmr.msra.gmra.mrb[58].mxu0 %v18534_v33 }
 0x435   :  { %14033 = vmatpush1.bf16.msra.mxu0 %v20905_v8  ;;  %14064 = vmatpush3.bf16.msra.mxu1 %v20906_v10  ;;  %v20914_v10 = vld [vmem:[#allocation21_spill] sm:$0xff]  ;;  %v20915_v8 = vld [vmem:[#allocation34_spill] sm:$0xff] }
 0x436   :  { %14035 = vmatprep.subr.bf16.mxu0 %v20907_v26  ;;  %14065 = vmatprep.subr.bf16.mxu1 %v20739_v0  ;;  %v20913_v26 = vld [vmem:[#allocation20_spill] sm:$0xff] }
 0x437   :  { %3398 = vmatprep.mubr.f32.mxu0 %v20740_v22  ;;  %11680 = vmatprep.mubr.msk.f32.mxu1 %vm17063_vm0, %v20740_v22 }
 0x439   :  { %14037 = vmatpush1.bf16.msra.mxu0 %v20908_v52  ;;  %14067 = vmatpush3.bf16.msra.mxu1 %v20909_v50  ;;  %v20917_v50 = vld [vmem:[#allocation23_spill] sm:$0xff]  ;;  %v20919_v52 = vld [vmem:[#allocation24_spill] sm:$0xff] }
 0x43a   :  { %14039 = vmatprep.subr.bf16.mxu0 %v20910_v1  ;;  %14068 = vmatprep.subr.bf16.mxu1 %v20739_v0  ;;  %v20918_v1 = vld [vmem:[#allocation35_spill] sm:$0xff] }
 0x43d   :  { %14041 = vmatpush1.bf16.msra.mxu0 %v20911_v36  ;;  %14070 = vmatpush3.bf16.msra.mxu1 %v20912_v25  ;;  %v20920_v25 = vld [vmem:[#allocation25_spill] sm:$0xff]  ;;  %v20922_v36 = vld [vmem:[#allocation26_spill] sm:$0xff] }
 0x43e   :  { %14043 = vmatprep.subr.bf16.mxu0 %v20913_v26  ;;  %14071 = vmatprep.subr.bf16.mxu1 %v20739_v0  ;;  %v20921_v26 = vld [vmem:[#allocation36_spill] sm:$0xff] }
 0x441   :  { %14045 = vmatpush1.bf16.msra.mxu0 %v20914_v10  ;;  %14073 = vmatpush3.bf16.msra.mxu1 %v20915_v8  ;;  %v20923_v8 = vld [vmem:[#allocation28_spill] sm:$0xff]  ;;  %v20925_v10 = vld [vmem:[#allocation29_spill] sm:$0xff] }
 0x442   :  { %14047 = vmatprep.subr.bf16.mxu0 %v20916_v3  ;;  %14074 = vmatprep.subr.bf16.mxu1 %v20739_v0  ;;  %v20924_v3 = vld [vmem:[#allocation37_spill] sm:$0xff] }
 0x445   :  { %14049 = vmatpush1.bf16.msra.mxu0 %v20917_v50  ;;  %14076 = vmatpush3.bf16.msra.mxu1 %v20918_v1  ;;  %v20926_v1 = vld [vmem:[#allocation31_spill] sm:$0xff]  ;;  %v20928_v50 = vld [vmem:[#allocation32_spill] sm:$0xff] }
 0x446   :  { %14051 = vmatprep.subr.bf16.mxu0 %v20919_v52  ;;  %14077 = vmatprep.subr.bf16.mxu1 %v20739_v0  ;;  %v20927_v52 = vld [vmem:[#allocation38_spill] sm:$0xff] }
 0x449   :  { %14053 = vmatpush1.bf16.msra.mxu0 %v20920_v25  ;;  %14079 = vmatpush3.bf16.msra.mxu1 %v20921_v26  ;;  %v20929_v25 = vld [vmem:[#allocation87_spill] sm:$0xff] }
 0x44a   :  { %14055 = vmatprep.subr.bf16.mxu0 %v20922_v36  ;;  %14080 = vmatprep.subr.bf16.mxu1 %v20739_v0 }
 0x44d   :  { %14057 = vmatpush1.bf16.msra.mxu0 %v20923_v8  ;;  %14082 = vmatpush3.bf16.msra.mxu1 %v20924_v3  ;;  %v20930_v3 = vld [vmem:[#allocation88_spill] sm:$0xff] }
 0x44e   :  { %14059 = vmatprep.subr.bf16.mxu0 %v20925_v10  ;;  %14083 = vmatprep.subr.bf16.mxu1 %v20739_v0 }
 0x451   :  { %14061 = vmatpush1.bf16.msra.mxu0 %v20926_v1  ;;  %14085 = vmatpush3.bf16.msra.mxu1 %v20927_v52 }
 0x452   :  { %14087 = vmatprep.subr.bf16.mxu0 %v20928_v50  ;;  %14118 = vmatprep.subr.bf16.mxu1 %v20739_v0 }
 0x4a7   :  { %v2762_v26 = vpop.f32.mrb[6].mxu0  ;;  %v2833_v36 = vpop.f32.mrb[40].mxu1 }
 0x4a8   :  { %v16388_v16 = vadd.f32 %v2762_v26, %v20929_v25  ;;  %v2764_v15 = vpop.f32.mrb[7].mxu0  ;;  %v11542_v8 = vpop.f32.mrb[41].mxu1  ;;  %v2851_v50 = vadd.f32 %v18398_v20, %v2833_v36 }
 0x4a9   :  { %v16389_v19 = vadd.f32 %v2764_v15, %v20930_v3 }
 0x4aa   :  { %v9986_v33 = vmul.f32 -1.442695, %v16388_v16 }
 0x4ab   :  { %v9987_v10 = vmul.f32 -1.442695, %v16389_v19 }
 0x4ac   :  { %16631 = vpow2.f32 %v9986_v33 }
 0x4ad   :  { %16633 = vpow2.f32 %v9987_v10 }
 0x4b6   :  { %v16632_v58 = vpop.eup %16631 }
 0x4b7   :  { %v2841_v1 = vadd.f32 1.0, %v16632_v58  ;;  %v16634_v52 = vpop.eup %16633 }
 0x4b8   :  { %v2848_v34 = vadd.f32 1.0, %v16634_v52 }
 0x4b9   :  { %16635 = vrcp.f32 %v2841_v1 }
 0x4ba   :  { %16637 = vrcp.f32 %v2848_v34 }
 0x4c3   :  { %v16636_v41 = vpop.eup %16635 }
 0x4c4   :  { %v2852_v62 = vmul.f32 %v16636_v41, %v2851_v50  ;;  %v16638_v33 = vpop.eup %16637 }
 0x4c5   :  { %v2855_v1 = vsub.f32 1.0, %v16638_v33  ;;  %v2857_v34 = vmul.f32 %v16638_v33, %v18405_v47 }
 0x4c6   :  { %v2853_v26 = vadd.f32 %v2852_v62, %v20931_v12 }
 0x4c7   :  { %v2929_v25 = vpop.f32.mrb[22].mxu0  ;;  %v3000_v8 = vpop.f32.mrb[42].mxu1 }
 0x4c8   :  { %16639 = vtanh.f32 %v2853_v26  ;;  %v16404_v15 = vadd.f32 %v2929_v25, %v17942_v49  ;;  %v2931_v16 = vpop.f32.mrb[23].mxu0  ;;  %v11577_v19 = vpop.f32.mrb[43].mxu1  ;;  %v3018_v26 = vadd.f32 %v18427_v2, %v3000_v8 }
 0x4c9   :  { %v16405_v58 = vadd.f32 %v2931_v16, %v17945_v59  ;;  %v20932_v19 = vld [vmem:[#allocation71_spill] sm:$0xff] }
 0x4ca   :  { %v9988_v10 = vmul.f32 -1.442695, %v16404_v15 }
 0x4cb   :  { %v9989_v52 = vmul.f32 -1.442695, %v16405_v58 }
 0x4cc   :  { %16641 = vpow2.f32 %v9988_v10 }
 0x4cd   :  { %16643 = vpow2.f32 %v9989_v52 }
 0x4d2   :  { %v16640_v36 = vpop.eup %16639 }
 0x4d3   :  { %v2856_v41 = vmul.f32 %v16640_v36, %v2855_v1 }
 0x4d5   :  { %v18582_v12 = vadd.f32 %v2857_v34, %v2856_v41 }
 0x4d6   :  { %v16642_v62 = vpop.eup %16641 }
 0x4d7   :  { %v3008_v50 = vadd.f32 1.0, %v16642_v62  ;;  %3399 = vmatmul.mubr.f32.vlgmr.msra.gmra.mrb[8].mxu0 %v18582_v12  ;;  %11681 = vmatmul.mubr.f32.vlgmr.msra.gmra.mrb[46].mxu1 %v18582_v12  ;;  %v16644_v47 = vpop.eup %16643  ;;  %v20933_v62 = vld [vmem:[#allocation92_spill] sm:$0xff] }
 0x4d8   :  { %14089 = vmatpush1.bf16.msra.mxu0 %v17730_v29  ;;  %14120 = vmatpush3.bf16.msra.mxu1 %v17713_v6  ;;  %v3015_v25 = vadd.f32 1.0, %v16644_v47  ;;  %v20935_v47 = vld [vmem:[#allocation94_spill] sm:$0xff] }
 0x4d9   :  { %16645 = vrcp.f32 %v3008_v50  ;;  %14091 = vmatprep.subr.bf16.mxu0 %v17732_v30  ;;  %14121 = vmatprep.subr.bf16.mxu1 %v20739_v0  ;;  %v20934_v50 = vld [vmem:[#allocation93_spill] sm:$0xff] }
 0x4da   :  { %3565 = vmatprep.mubr.f32.mxu0 %v20740_v22  ;;  %11715 = vmatprep.mubr.msk.f32.mxu1 %vm17063_vm0, %v20740_v22  ;;  %16647 = vrcp.f32 %v3015_v25  ;;  %v20936_v25 = vld [vmem:[#allocation95_spill] sm:$0xff] }
 0x4dc   :  { %14093 = vmatpush1.bf16.msra.mxu0 %v17740_v45  ;;  %14123 = vmatpush3.bf16.msra.mxu1 %v17719_v11 }
 0x4dd   :  { %14095 = vmatprep.subr.bf16.mxu0 %v17744_v48  ;;  %14124 = vmatprep.subr.bf16.mxu1 %v20739_v0 }
 0x4e0   :  { %14097 = vmatpush1.bf16.msra.mxu0 %v17751_v60  ;;  %14126 = vmatpush3.bf16.msra.mxu1 %v17726_v24 }
 0x4e1   :  { %14099 = vmatprep.subr.bf16.mxu0 %v17754_v61  ;;  %14127 = vmatprep.subr.bf16.mxu1 %v20739_v0 }
 0x4e3   :  { %v16646_v15 = vpop.eup %16645 }
 0x4e4   :  { %v3019_v16 = vmul.f32 %v16646_v15, %v3018_v26  ;;  %14101 = vmatpush1.bf16.msra.mxu0 %v17761_v13  ;;  %14129 = vmatpush3.bf16.msra.mxu1 %v17735_v40  ;;  %v16648_v8 = vpop.eup %16647  ;;  %v20938_v26 = vld [vmem:[#allocation97_spill] sm:$0xff]  ;;  %v20939_v15 = vld [vmem:[#allocation98_spill] sm:$0xff] }
 0x4e5   :  { %14103 = vmatprep.subr.bf16.mxu0 %v17764_v14  ;;  %14130 = vmatprep.subr.bf16.mxu1 %v20739_v0  ;;  %v3022_v52 = vsub.f32 1.0, %v16648_v8  ;;  %v3024_v41 = vmul.f32 %v16648_v8, %v18452_v27  ;;  %v20937_v27 = vld [vmem:[#allocation96_spill] sm:$0xff]  ;;  %v20944_v8 = vld [vmem:[#allocation103_spill] sm:$0xff] }
 0x4e6   :  { %v3020_v10 = vadd.f32 %v3019_v16, %v20932_v19  ;;  %v20940_v16 = vld [vmem:[#allocation99_spill] sm:$0xff]  ;;  %v20941_v19 = vld [vmem:[#allocation100_spill] sm:$0xff] }
 0x4e7   :  { %v18607_v58 = vpop.f32.mrb[56].mxu0 }
 0x4e8   :  { %16649 = vtanh.f32 %v3020_v10  ;;  %v11612_v33 = vpop.f32.mrb[57].mxu0  ;;  %14105 = vmatpush1.bf16.msra.mxu0 %v17771_v38  ;;  %14132 = vmatpush3.bf16.msra.mxu1 %v17747_v55  ;;  %v20942_v10 = vld [vmem:[#allocation101_spill] sm:$0xff] }
 0x4e9   :  { %14107 = vmatprep.subr.bf16.mxu0 %v17774_v39  ;;  %14133 = vmatprep.subr.bf16.mxu1 %v20739_v0  ;;  %v20943_v33 = vld [vmem:[#allocation102_spill] sm:$0xff] }
 0x4ec   :  { %14109 = vmatpush1.bf16.msra.mxu0 %v17781_v54  ;;  %14135 = vmatpush3.bf16.msra.mxu1 %v17757_v7 }
 0x4ed   :  { %14111 = vmatprep.subr.bf16.mxu0 %v17784_v57  ;;  %14136 = vmatprep.subr.bf16.mxu1 %v20739_v0 }
 0x4f0   :  { %14113 = vmatpush1.bf16.msra.mxu0 %v17789_v5  ;;  %14138 = vmatpush3.bf16.msra.mxu1 %v20800_v44 }
 0x4f1   :  { %14115 = vmatprep.subr.bf16.mxu0 %v20801_v21  ;;  %14139 = vmatprep.subr.bf16.mxu1 %v20739_v0 }
 0x4f2   :  { %v16650_v1 = vpop.eup %16649 }
 0x4f3   :  { %v3023_v36 = vmul.f32 %v16650_v1, %v3022_v52  ;;  %v20945_v52 = vld [vmem:[#allocation104_spill] sm:$0xff] }
 0x4f4   :  { %14117 = vmatpush1.bf16.msra.mxu0 %v20802_v63  ;;  %14141 = vmatpush3.bf16.msra.mxu1 %v20867_v9 }
 0x4f5   :  { %v18624_v34 = vadd.f32 %v3024_v41, %v3023_v36  ;;  %14143 = vmatprep.subr.bf16.mxu1 %v20933_v62  ;;  %14174 = vmatprep.subr.bf16.mxu0 %v20739_v0 }
 0x4f7   :  { %3566 = vmatmul.mubr.f32.vlgmr.msra.gmra.mrb[24].mxu0 %v18624_v34  ;;  %11716 = vmatmul.mubr.f32.vlgmr.msra.gmra.mrb[48].mxu1 %v18624_v34 }
 0x4f8   :  { %14145 = vmatpush1.bf16.msra.mxu1 %v20934_v50  ;;  %14176 = vmatpush3.bf16.msra.mxu0 %v20935_v47 }
 0x4f9   :  { %14147 = vmatprep.subr.bf16.mxu1 %v20936_v25  ;;  %14177 = vmatprep.subr.bf16.mxu0 %v20739_v0 }
 0x4fa   :  { %3728 = vmatprep.mubr.f32.mxu1 %v20740_v22  ;;  %11750 = vmatprep.mubr.msk.f32.mxu0 %vm17063_vm0, %v20740_v22 }
 0x4fc   :  { %14149 = vmatpush1.bf16.msra.mxu1 %v20937_v27  ;;  %14179 = vmatpush3.bf16.msra.mxu0 %v20938_v26  ;;  %v20949_v26 = vld [vmem:[#allocation110_spill] sm:$0xff] }
 0x4fd   :  { %14151 = vmatprep.subr.bf16.mxu1 %v20939_v15  ;;  %14180 = vmatprep.subr.bf16.mxu0 %v20739_v0 }
 0x500   :  { %14153 = vmatpush1.bf16.msra.mxu1 %v20940_v16  ;;  %14182 = vmatpush3.bf16.msra.mxu0 %v20941_v19  ;;  %v20946_v19 = vld [vmem:[#allocation106_spill] sm:$0xff] }
 0x501   :  { %14155 = vmatprep.subr.bf16.mxu1 %v20942_v10  ;;  %14183 = vmatprep.subr.bf16.mxu0 %v20739_v0  ;;  %v20947_v10 = vld [vmem:[#allocation107_spill] sm:$0xff] }
 0x504   :  { %14157 = vmatpush1.bf16.msra.mxu1 %v20943_v33  ;;  %14185 = vmatpush3.bf16.msra.mxu0 %v20944_v8 }
 0x505   :  { %14159 = vmatprep.subr.bf16.mxu1 %v20945_v52  ;;  %14186 = vmatprep.subr.bf16.mxu0 %v20739_v0  ;;  %v20948_v52 = vld [vmem:[#allocation109_spill] sm:$0xff] }
 0x507   :  { %v3233_v1 = vpop.f32.mrb[44].mxu1  ;;  %v3304_v36 = vpop.f32.mrb[58].mxu0 }
 0x508   :  { %v16434_v41 = vadd.f32 %v3233_v1, %v18279_v31  ;;  %v3235_v15 = vpop.f32.mrb[45].mxu1  ;;  %v11647_v16 = vpop.f32.mrb[59].mxu0  ;;  %14161 = vmatpush1.bf16.msra.mxu1 %v20881_v46  ;;  %14188 = vmatpush3.bf16.msra.mxu0 %v20946_v19  ;;  %v20950_v1 = vld [vmem:[#allocation113_spill] sm:$0xff] }
 0x509   :  { %14163 = vmatprep.subr.bf16.mxu1 %v20947_v10  ;;  %14189 = vmatprep.subr.bf16.mxu0 %v20739_v0  ;;  %v16435_v8 = vadd.f32 %v3235_v15, %v20884_v43  ;;  %v20951_v15 = vld [vmem:[#allocation114_spill] sm:$0xff] }
 0x50a   :  { %v9990_v33 = vmul.f32 -1.442695, %v16434_v41  ;;  %v20953_v41 = vld [vmem:[#allocation116_spill] sm:$0xff] }
 0x50b   :  { %v9991_v16 = vmul.f32 -1.442695, %v16435_v8  ;;  %v20954_v8 = vld [vmem:[#allocation117_spill] sm:$0xff] }
 0x50c   :  { %16651 = vpow2.f32 %v9990_v33  ;;  %14165 = vmatpush1.bf16.msra.mxu1 %v20885_v37  ;;  %14191 = vmatpush3.bf16.msra.mxu0 %v20948_v52  ;;  %v20952_v33 = vld [vmem:[#allocation115_spill] sm:$0xff] }
 0x50d   :  { %14167 = vmatprep.subr.bf16.mxu1 %v20949_v26  ;;  %14192 = vmatprep.subr.bf16.mxu0 %v20739_v0  ;;  %16653 = vpow2.f32 %v9991_v16  ;;  %v20956_v16 = vld [vmem:[#allocation119_spill] sm:$0xff] }
 0x510   :  { %14169 = vmatpush1.bf16.msra.mxu1 %v20888_v23  ;;  %14194 = vmatpush3.bf16.msra.mxu0 %v20889_v56 }
 0x511   :  { %14171 = vmatprep.subr.bf16.mxu1 %v20950_v1  ;;  %14195 = vmatprep.subr.bf16.mxu0 %v20739_v0  ;;  %v20955_v1 = vld [vmem:[#allocation118_spill] sm:$0xff] }
 0x514   :  { %14173 = vmatpush1.bf16.msra.mxu1 %v20951_v15  ;;  %14197 = vmatpush3.bf16.msra.mxu0 %v20952_v33 }
 0x515   :  { %14199 = vmatprep.subr.bf16.mxu1 %v20953_v41  ;;  %14230 = vmatprep.subr.bf16.mxu0 %v20739_v0  ;;  %v20957_v41 = vld [vmem:[#allocation120_spill] sm:$0xff] }
 0x516   :  { %v16652_v26 = vpop.eup %16651 }
 0x517   :  { %v3312_v52 = vadd.f32 1.0, %v16652_v26  ;;  %3729 = vmatmul.mubr.f32.vlgmr.msra.gmra.mrb[50].mxu1 %v18624_v34  ;;  %11751 = vmatmul.mubr.f32.vlgmr.msra.gmra.mrb[60].mxu0 %v18624_v34  ;;  %v20958_v26 = vld [vmem:[#allocation121_spill] sm:$0xff]  ;;  %v16654_v33 = vpop.eup %16653 }
 0x518   :  { %14201 = vmatpush1.bf16.msra.mxu1 %v20954_v8  ;;  %14232 = vmatpush3.bf16.msra.mxu0 %v20955_v1  ;;  %v3319_v1 = vadd.f32 1.0, %v16654_v33 }
 0x519   :  { %16655 = vrcp.f32 %v3312_v52  ;;  %14203 = vmatprep.subr.bf16.mxu1 %v20956_v16  ;;  %14233 = vmatprep.subr.bf16.mxu0 %v20739_v0  ;;  %v3322_v52 = vadd.f32 %v20900_v4, %v3304_v36  ;;  %v20961_v4 = vld [vmem:[#allocation131_spill] sm:$0xff]  ;;  %v20963_v36 = vld [vmem:[#allocation133_spill] sm:$0xff] }
 0x51a   :  { %3869 = vmatprep.mubr.f32.mxu1 %v20740_v22  ;;  %11785 = vmatprep.mubr.msk.f32.mxu0 %vm17063_vm0, %v20740_v22  ;;  %16657 = vrcp.f32 %v3319_v1  ;;  %v20964_v1 = vld [vmem:[#allocation134_spill] sm:$0xff] }
 0x51c   :  { %14205 = vmatpush1.bf16.msra.mxu1 %v20957_v41  ;;  %14235 = vmatpush3.bf16.msra.mxu0 %v20958_v26  ;;  %v3164_v26 = vadd.f32 %v18607_v58, %v18325_v32  ;;  %v20962_v58 = vld [vmem:[#allocation132_spill] sm:$0xff] }
 0x51d   :  { %14207 = vmatprep.subr.bf16.mxu1 %v20899_v53  ;;  %14236 = vmatprep.subr.bf16.mxu0 %v20739_v0  ;;  %v20998_v53 = vld [vmem:[#allocation67_spill] sm:$0xff] }
 0x520   :  { %14209 = vmatpush1.bf16.msra.mxu1 %v20840_v18  ;;  %14238 = vmatpush3.bf16.msra.mxu0 %v20841_v17  ;;  %v20960_v17 = vld [vmem:[#allocation130_spill] sm:$0xff] }
 0x521   :  { %14211 = vmatprep.subr.bf16.mxu1 %v20842_v51  ;;  %14239 = vmatprep.subr.bf16.mxu0 %v20739_v0  ;;  %v20959_v51 = vld [vmem:[#allocation129_spill] sm:$0xff] }
 0x523   :  { %v16656_v16 = vpop.eup %16655 }
 0x524   :  { %v3323_v41 = vmul.f32 %v16656_v16, %v3322_v52  ;;  %14213 = vmatpush1.bf16.msra.mxu1 %v20843_v42  ;;  %14241 = vmatpush3.bf16.msra.mxu0 %v20844_v35  ;;  %v16658_v16 = vpop.eup %16657  ;;  %v20965_v52 = vld [vmem:[#allocation135_spill] sm:$0xff]  ;;  %v20972_v35 = vld [vmem:[#allocation14_spill] sm:$0xff] }
 0x525   :  { %14215 = vmatprep.subr.bf16.mxu1 %v20845_v28  ;;  %14242 = vmatprep.subr.bf16.mxu0 %v20739_v0  ;;  %v20969_v28 = vld [vmem:[#allocation138_spill] sm:$0xff] }
 0x526   :  { %v3324_v33 = vadd.f32 %v3323_v41, %v3164_v26  ;;  %v20966_v41 = vld [vmem:[#allocation136_spill] sm:$0xff]  ;;  %v20967_v26 = vld [vmem:[#allocation137_spill] sm:$0xff] }
 0x528   :  { %16659 = vtanh.f32 %v3324_v33  ;;  %14217 = vmatpush1.bf16.msra.mxu1 %v20959_v51  ;;  %14244 = vmatpush3.bf16.msra.mxu0 %v20960_v17  ;;  %v3326_v33 = vsub.f32 1.0, %v16658_v16  ;;  %v20968_v51 = vld [vmem:[#allocation85_spill] sm:$0xff] }
 0x529   :  { %14219 = vmatprep.subr.bf16.mxu1 %v20961_v4  ;;  %14245 = vmatprep.subr.bf16.mxu0 %v20739_v0 }
 0x52c   :  { %14221 = vmatpush1.bf16.msra.mxu1 %v20962_v58  ;;  %14247 = vmatpush3.bf16.msra.mxu0 %v20963_v36  ;;  %v3328_v58 = vmul.f32 %v16658_v16, %v20968_v51  ;;  %v20970_v36 = vld [vmem:[#allocation139_spill] sm:$0xff]  ;;  %v20977_v51 = vld [vmem:[#allocation30_spill] sm:$0xff] }
 0x52d   :  { %14223 = vmatprep.subr.bf16.mxu1 %v20964_v1  ;;  %14248 = vmatprep.subr.bf16.mxu0 %v20739_v0  ;;  %v20979_v16 = vld [vmem:[#allocation19_spill] sm:$0xff] }
 0x530   :  { %14225 = vmatpush1.bf16.msra.mxu1 %v20965_v52  ;;  %14250 = vmatpush3.bf16.msra.mxu0 %v20966_v41  ;;  %v20974_v41 = vld [vmem:[#allocation27_spill] sm:$0xff] }
 0x531   :  { %14227 = vmatprep.subr.bf16.mxu1 %v20967_v26  ;;  %14251 = vmatprep.subr.bf16.mxu0 %v20739_v0  ;;  %v20973_v26 = vld [vmem:[#allocation15_spill] sm:$0xff] }
 0x532   :  { %v16660_v4 = vpop.eup %16659 }
 0x533   :  { %v3327_v17 = vmul.f32 %v16660_v4, %v3326_v33  ;;  %v20975_v4 = vld [vmem:[#allocation16_spill] sm:$0xff]  ;;  %v20980_v33 = vld [vmem:[#allocation33_spill] sm:$0xff] }
 0x534   :  { %14229 = vmatpush1.bf16.msra.mxu1 %v20969_v28  ;;  %14253 = vmatpush3.bf16.msra.mxu0 %v20970_v36 }
 0x535   :  { %v18706_v1 = vadd.f32 %v3328_v58, %v3327_v17  ;;  %14255 = vmatprep.subr.bf16.mxu0 %v20972_v35  ;;  %14286 = vmatprep.subr.bf16.mxu1 %v20739_v0  ;;  %v20976_v17 = vld [vmem:[#allocation17_spill] sm:$0xff]  ;;  %v20978_v58 = vld [vmem:[#allocation18_spill] sm:$0xff] }
 0x536   :  { %v20984_v35 = vld [vmem:[#allocation22_spill] sm:$0xff] }
 0x537   :  { %20971 = vst [vmem:[#allocation86_spill] sm:$0xff] %v18706_v1  ;;  %3870 = vmatmul.mubr.f32.vlgmr.msra.gmra.mrb[50].mxu1 %v18706_v1  ;;  %11786 = vmatmul.mubr.f32.vlgmr.msra.gmra.mrb[62].mxu0 %v18706_v1 }
 0x538   :  { %14257 = vmatpush1.bf16.msra.mxu0 %v20973_v26  ;;  %14288 = vmatpush3.bf16.msra.mxu1 %v20974_v41  ;;  %v20982_v41 = vld [vmem:[#allocation21_spill] sm:$0xff]  ;;  %v20983_v26 = vld [vmem:[#allocation34_spill] sm:$0xff] }
 0x539   :  { %14259 = vmatprep.subr.bf16.mxu0 %v20975_v4  ;;  %14289 = vmatprep.subr.bf16.mxu1 %v20739_v0  ;;  %v20981_v4 = vld [vmem:[#allocation20_spill] sm:$0xff] }
 0x53a   :  { %4036 = vmatprep.mubr.f32.mxu0 %v20740_v22  ;;  %11820 = vmatprep.mubr.msk.f32.mxu1 %vm17063_vm0, %v20740_v22 }
 0x53c   :  { %14261 = vmatpush1.bf16.msra.mxu0 %v20976_v17  ;;  %14291 = vmatpush3.bf16.msra.mxu1 %v20977_v51  ;;  %v20985_v51 = vld [vmem:[#allocation23_spill] sm:$0xff]  ;;  %v20987_v17 = vld [vmem:[#allocation24_spill] sm:$0xff] }
 0x53d   :  { %14263 = vmatprep.subr.bf16.mxu0 %v20978_v58  ;;  %14292 = vmatprep.subr.bf16.mxu1 %v20739_v0  ;;  %v20986_v58 = vld [vmem:[#allocation35_spill] sm:$0xff] }
 0x540   :  { %14265 = vmatpush1.bf16.msra.mxu0 %v20979_v16  ;;  %14294 = vmatpush3.bf16.msra.mxu1 %v20980_v33  ;;  %v20988_v33 = vld [vmem:[#allocation25_spill] sm:$0xff]  ;;  %v20990_v16 = vld [vmem:[#allocation26_spill] sm:$0xff] }
 0x541   :  { %14267 = vmatprep.subr.bf16.mxu0 %v20981_v4  ;;  %14295 = vmatprep.subr.bf16.mxu1 %v20739_v0  ;;  %v20989_v4 = vld [vmem:[#allocation36_spill] sm:$0xff] }
 0x544   :  { %14269 = vmatpush1.bf16.msra.mxu0 %v20982_v41  ;;  %14297 = vmatpush3.bf16.msra.mxu1 %v20983_v26  ;;  %v20991_v26 = vld [vmem:[#allocation28_spill] sm:$0xff]  ;;  %v20993_v41 = vld [vmem:[#allocation29_spill] sm:$0xff] }
 0x545   :  { %14271 = vmatprep.subr.bf16.mxu0 %v20984_v35  ;;  %14298 = vmatprep.subr.bf16.mxu1 %v20739_v0  ;;  %v20992_v35 = vld [vmem:[#allocation37_spill] sm:$0xff] }
 0x548   :  { %14273 = vmatpush1.bf16.msra.mxu0 %v20985_v51  ;;  %14300 = vmatpush3.bf16.msra.mxu1 %v20986_v58  ;;  %v20994_v58 = vld [vmem:[#allocation31_spill] sm:$0xff]  ;;  %v20996_v51 = vld [vmem:[#allocation32_spill] sm:$0xff] }
 0x549   :  { %14275 = vmatprep.subr.bf16.mxu0 %v20987_v17  ;;  %14301 = vmatprep.subr.bf16.mxu1 %v20739_v0  ;;  %v20995_v17 = vld [vmem:[#allocation38_spill] sm:$0xff] }
 0x54c   :  { %14277 = vmatpush1.bf16.msra.mxu0 %v20988_v33  ;;  %14303 = vmatpush3.bf16.msra.mxu1 %v20989_v4  ;;  %v20997_v33 = vld [vmem:[#allocation87_spill] sm:$0xff] }
 0x54d   :  { %14279 = vmatprep.subr.bf16.mxu0 %v20990_v16  ;;  %14304 = vmatprep.subr.bf16.mxu1 %v20739_v0 }
 0x550   :  { %14281 = vmatpush1.bf16.msra.mxu0 %v20991_v26  ;;  %14306 = vmatpush3.bf16.msra.mxu1 %v20992_v35 }
 0x551   :  { %14283 = vmatprep.subr.bf16.mxu0 %v20993_v41  ;;  %14307 = vmatprep.subr.bf16.mxu1 %v20739_v0 }
 0x554   :  { %14285 = vmatpush1.bf16.msra.mxu0 %v20994_v58  ;;  %14309 = vmatpush3.bf16.msra.mxu1 %v20995_v17 }
 0x555   :  { %14311 = vmatprep.subr.bf16.mxu0 %v20996_v51  ;;  %14342 = vmatprep.subr.bf16.mxu1 %v20739_v0 }
 0x5aa   :  { %v3400_v4 = vpop.f32.mrb[8].mxu0  ;;  %v3471_v16 = vpop.f32.mrb[46].mxu1 }
 0x5ab   :  { %v16390_v36 = vadd.f32 %v3400_v4, %v20997_v33  ;;  %v3402_v28 = vpop.f32.mrb[9].mxu0  ;;  %v11682_v26 = vpop.f32.mrb[47].mxu1  ;;  %v3489_v51 = vadd.f32 %v18398_v20, %v3471_v16 }
 0x5ac   :  { %v16391_v35 = vadd.f32 %v3402_v28, %v20930_v3 }
 0x5ad   :  { %v9992_v1 = vmul.f32 -1.442695, %v16390_v36 }
 0x5ae   :  { %v9993_v41 = vmul.f32 -1.442695, %v16391_v35 }
 0x5af   :  { %16661 = vpow2.f32 %v9992_v1 }
 0x5b0   :  { %16663 = vpow2.f32 %v9993_v41 }
 0x5b9   :  { %v16662_v52 = vpop.eup %16661 }
 0x5ba   :  { %v3479_v58 = vadd.f32 1.0, %v16662_v52  ;;  %v16664_v17 = vpop.eup %16663 }
 0x5bb   :  { %v3486_v42 = vadd.f32 1.0, %v16664_v17 }
 0x5bc   :  { %16665 = vrcp.f32 %v3479_v58 }
 0x5bd   :  { %16667 = vrcp.f32 %v3486_v42 }
 0x5c6   :  { %v16666_v32 = vpop.eup %16665 }
 0x5c7   :  { %v3490_v18 = vmul.f32 %v16666_v32, %v3489_v51  ;;  %v16668_v41 = vpop.eup %16667 }
 0x5c8   :  { %v3493_v58 = vsub.f32 1.0, %v16668_v41  ;;  %v3495_v42 = vmul.f32 %v16668_v41, %v18582_v12 }
 0x5c9   :  { %v3491_v4 = vadd.f32 %v3490_v18, %v20998_v53 }
 0x5ca   :  { %v3567_v33 = vpop.f32.mrb[24].mxu0  ;;  %v3638_v26 = vpop.f32.mrb[48].mxu1 }
 0x5cb   :  { %16669 = vtanh.f32 %v3491_v4  ;;  %v16406_v28 = vadd.f32 %v3567_v33, %v17942_v49  ;;  %v3569_v36 = vpop.f32.mrb[25].mxu0  ;;  %v11717_v35 = vpop.f32.mrb[49].mxu1  ;;  %v3656_v33 = vadd.f32 %v18427_v2, %v3638_v26 }
 0x5cc   :  { %v16407_v52 = vadd.f32 %v3569_v36, %v17945_v59  ;;  %v20999_v36 = vld [vmem:[#allocation74_spill] sm:$0xff] }
 0x5cd   :  { %v9994_v1 = vmul.f32 -1.442695, %v16406_v28 }
 0x5ce   :  { %v9995_v17 = vmul.f32 -1.442695, %v16407_v52 }
 0x5cf   :  { %16671 = vpow2.f32 %v9994_v1 }
 0x5d0   :  { %16673 = vpow2.f32 %v9995_v17 }
 0x5d5   :  { %v16670_v20 = vpop.eup %16669 }
 0x5d6   :  { %v3494_v32 = vmul.f32 %v16670_v20, %v3493_v58 }
 0x5d8   :  { %v18754_v18 = vadd.f32 %v3495_v42, %v3494_v32  ;;  %v21001_v32 = vld [vmem:[#allocation98_spill] sm:$0xff]  ;;  %v21002_v42 = vld [vmem:[#allocation99_spill] sm:$0xff] }
 0x5d9   :  { %v16672_v53 = vpop.eup %16671 }
 0x5da   :  { %v3646_v51 = vadd.f32 1.0, %v16672_v53  ;;  %4037 = vmatmul.mubr.f32.vlgmr.msra.gmra.mrb[10].mxu0 %v18754_v18  ;;  %11821 = vmatmul.mubr.f32.vlgmr.msra.gmra.mrb[52].mxu1 %v18754_v18  ;;  %v16674_v12 = vpop.eup %16673  ;;  %v21003_v53 = vld [vmem:[#allocation100_spill] sm:$0xff] }
 0x5db   :  { %14313 = vmatpush1.bf16.msra.mxu0 %v17730_v29  ;;  %14344 = vmatpush3.bf16.msra.mxu1 %v17713_v6  ;;  %v3653_v16 = vadd.f32 1.0, %v16674_v12  ;;  %v21005_v12 = vld [vmem:[#allocation102_spill] sm:$0xff] }
 0x5dc   :  { %16675 = vrcp.f32 %v3646_v51  ;;  %14315 = vmatprep.subr.bf16.mxu0 %v17732_v30  ;;  %14345 = vmatprep.subr.bf16.mxu1 %v20739_v0  ;;  %v21004_v51 = vld [vmem:[#allocation101_spill] sm:$0xff] }
 0x5dd   :  { %4203 = vmatprep.mubr.f32.mxu0 %v20740_v22  ;;  %11855 = vmatprep.mubr.msk.f32.mxu1 %vm17063_vm0, %v20740_v22  ;;  %16677 = vrcp.f32 %v3653_v16  ;;  %v21006_v16 = vld [vmem:[#allocation103_spill] sm:$0xff] }
 0x5df   :  { %14317 = vmatpush1.bf16.msra.mxu0 %v17740_v45  ;;  %14347 = vmatpush3.bf16.msra.mxu1 %v17719_v11 }
 0x5e0   :  { %14319 = vmatprep.subr.bf16.mxu0 %v17744_v48  ;;  %14348 = vmatprep.subr.bf16.mxu1 %v20739_v0 }
 0x5e3   :  { %14321 = vmatpush1.bf16.msra.mxu0 %v17751_v60  ;;  %14350 = vmatpush3.bf16.msra.mxu1 %v17726_v24 }
 0x5e4   :  { %14323 = vmatprep.subr.bf16.mxu0 %v17754_v61  ;;  %14351 = vmatprep.subr.bf16.mxu1 %v20739_v0 }
 0x5e6   :  { %v16676_v4 = vpop.eup %16675 }
 0x5e7   :  { %v3657_v28 = vmul.f32 %v16676_v4, %v3656_v33  ;;  %14325 = vmatpush1.bf16.msra.mxu0 %v17761_v13  ;;  %14353 = vmatpush3.bf16.msra.mxu1 %v17735_v40  ;;  %v16678_v2 = vpop.eup %16677  ;;  %v21007_v33 = vld [vmem:[#allocation104_spill] sm:$0xff] }
 0x5e8   :  { %14327 = vmatprep.subr.bf16.mxu0 %v17764_v14  ;;  %14354 = vmatprep.subr.bf16.mxu1 %v20739_v0  ;;  %v3660_v26 = vsub.f32 1.0, %v16678_v2  ;;  %v3662_v58 = vmul.f32 %v16678_v2, %v18624_v34  ;;  %v21000_v34 = vld [vmem:[#allocation97_spill] sm:$0xff] }
 0x5e9   :  { %v3658_v35 = vadd.f32 %v3657_v28, %v20999_v36 }
 0x5ea   :  { %v18779_v1 = vpop.f32.mrb[60].mxu0 }
 0x5eb   :  { %16679 = vtanh.f32 %v3658_v35  ;;  %v11752_v52 = vpop.f32.mrb[61].mxu0  ;;  %14329 = vmatpush1.bf16.msra.mxu0 %v17771_v38  ;;  %14356 = vmatpush3.bf16.msra.mxu1 %v17747_v55 }
 0x5ec   :  { %14331 = vmatprep.subr.bf16.mxu0 %v17774_v39  ;;  %14357 = vmatprep.subr.bf16.mxu1 %v20739_v0 }
 0x5ef   :  { %14333 = vmatpush1.bf16.msra.mxu0 %v17781_v54  ;;  %14359 = vmatpush3.bf16.msra.mxu1 %v17757_v7 }
 0x5f0   :  { %14335 = vmatprep.subr.bf16.mxu0 %v17784_v57  ;;  %14360 = vmatprep.subr.bf16.mxu1 %v20739_v0 }
 0x5f3   :  { %14337 = vmatpush1.bf16.msra.mxu0 %v17789_v5  ;;  %14362 = vmatpush3.bf16.msra.mxu1 %v20800_v44 }
 0x5f4   :  { %14339 = vmatprep.subr.bf16.mxu0 %v20801_v21  ;;  %14363 = vmatprep.subr.bf16.mxu1 %v20739_v0 }
 0x5f5   :  { %v16680_v41 = vpop.eup %16679 }
 0x5f6   :  { %v3661_v17 = vmul.f32 %v16680_v41, %v3660_v26  ;;  %v21008_v41 = vld [vmem:[#allocation109_spill] sm:$0xff] }
 0x5f7   :  { %14341 = vmatpush1.bf16.msra.mxu0 %v20802_v63  ;;  %14365 = vmatpush3.bf16.msra.mxu1 %v20867_v9 }
 0x5f8   :  { %v18796_v20 = vadd.f32 %v3662_v58, %v3661_v17  ;;  %14367 = vmatprep.subr.bf16.mxu1 %v20933_v62  ;;  %14398 = vmatprep.subr.bf16.mxu0 %v20739_v0  ;;  %v21009_v17 = vld [vmem:[#allocation110_spill] sm:$0xff] }
 0x5fa   :  { %4204 = vmatmul.mubr.f32.vlgmr.msra.gmra.mrb[26].mxu0 %v18796_v20  ;;  %11856 = vmatmul.mubr.f32.vlgmr.msra.gmra.mrb[54].mxu1 %v18796_v20 }
 0x5fb   :  { %14369 = vmatpush1.bf16.msra.mxu1 %v20934_v50  ;;  %14400 = vmatpush3.bf16.msra.mxu0 %v20935_v47 }
 0x5fc   :  { %14371 = vmatprep.subr.bf16.mxu1 %v20936_v25  ;;  %14401 = vmatprep.subr.bf16.mxu0 %v20739_v0 }
 0x5fd   :  { %4366 = vmatprep.mubr.f32.mxu1 %v20740_v22  ;;  %11890 = vmatprep.mubr.msk.f32.mxu0 %vm17063_vm0, %v20740_v22 }
 0x5ff   :  { %14373 = vmatpush1.bf16.msra.mxu1 %v20937_v27  ;;  %14403 = vmatpush3.bf16.msra.mxu0 %v21000_v34 }
 0x600   :  { %14375 = vmatprep.subr.bf16.mxu1 %v21001_v32  ;;  %14404 = vmatprep.subr.bf16.mxu0 %v20739_v0 }
 0x603   :  { %14377 = vmatpush1.bf16.msra.mxu1 %v21002_v42  ;;  %14406 = vmatpush3.bf16.msra.mxu0 %v21003_v53 }
 0x604   :  { %14379 = vmatprep.subr.bf16.mxu1 %v21004_v51  ;;  %14407 = vmatprep.subr.bf16.mxu0 %v20739_v0 }
 0x607   :  { %14381 = vmatpush1.bf16.msra.mxu1 %v21005_v12  ;;  %14409 = vmatpush3.bf16.msra.mxu0 %v21006_v16 }
 0x608   :  { %14383 = vmatprep.subr.bf16.mxu1 %v21007_v33  ;;  %14410 = vmatprep.subr.bf16.mxu0 %v20739_v0 }
 0x60a   :  { %v3871_v4 = vpop.f32.mrb[50].mxu1  ;;  %v3942_v28 = vpop.f32.mrb[62].mxu0 }
 0x60b   :  { %v16436_v36 = vadd.f32 %v3871_v4, %v18279_v31  ;;  %v3873_v35 = vpop.f32.mrb[51].mxu1  ;;  %v11787_v52 = vpop.f32.mrb[63].mxu0  ;;  %14385 = vmatpush1.bf16.msra.mxu1 %v20881_v46  ;;  %14412 = vmatpush3.bf16.msra.mxu0 %v20946_v19  ;;  %v21010_v4 = vld [vmem:[#allocation113_spill] sm:$0xff] }
 0x60c   :  { %14387 = vmatprep.subr.bf16.mxu1 %v20947_v10  ;;  %14413 = vmatprep.subr.bf16.mxu0 %v20739_v0  ;;  %v16437_v26 = vadd.f32 %v3873_v35, %v20884_v43  ;;  %v21012_v35 = vld [vmem:[#allocation116_spill] sm:$0xff] }
 0x60d   :  { %v9996_v2 = vmul.f32 -1.442695, %v16436_v36  ;;  %v21011_v36 = vld [vmem:[#allocation115_spill] sm:$0xff] }
 0x60e   :  { %v9997_v58 = vmul.f32 -1.442695, %v16437_v26  ;;  %v21013_v26 = vld [vmem:[#allocation118_spill] sm:$0xff] }
 0x60f   :  { %16681 = vpow2.f32 %v9996_v2  ;;  %14389 = vmatpush1.bf16.msra.mxu1 %v20885_v37  ;;  %14415 = vmatpush3.bf16.msra.mxu0 %v21008_v41  ;;  %v21027_v41 = vld [vmem:[#allocation130_spill] sm:$0xff] }
 0x610   :  { %14391 = vmatprep.subr.bf16.mxu1 %v21009_v17  ;;  %14416 = vmatprep.subr.bf16.mxu0 %v20739_v0  ;;  %16683 = vpow2.f32 %v9997_v58  ;;  %v21014_v58 = vld [vmem:[#allocation119_spill] sm:$0xff]  ;;  %v21026_v17 = vld [vmem:[#allocation129_spill] sm:$0xff] }
 0x613   :  { %14393 = vmatpush1.bf16.msra.mxu1 %v20888_v23  ;;  %14418 = vmatpush3.bf16.msra.mxu0 %v20889_v56 }
 0x614   :  { %14395 = vmatprep.subr.bf16.mxu1 %v21010_v4  ;;  %14419 = vmatprep.subr.bf16.mxu0 %v20739_v0 }
 0x617   :  { %14397 = vmatpush1.bf16.msra.mxu1 %v20951_v15  ;;  %14421 = vmatpush3.bf16.msra.mxu0 %v21011_v36  ;;  %v21017_v15 = vld [vmem:[#allocation122_spill] sm:$0xff] }
 0x618   :  { %14423 = vmatprep.subr.bf16.mxu1 %v21012_v35  ;;  %14454 = vmatprep.subr.bf16.mxu0 %v20739_v0  ;;  %v21015_v35 = vld [vmem:[#allocation120_spill] sm:$0xff] }
 0x619   :  { %v16682_v52 = vpop.eup %16681 }
 0x61a   :  { %v3950_v2 = vadd.f32 1.0, %v16682_v52  ;;  %4367 = vmatmul.mubr.f32.vlgmr.msra.gmra.mrb[56].mxu1 %v18796_v20  ;;  %11891 = vmatmul.mubr.f32.vlgmr.msra.gmra.mrb[64].mxu0 %v18796_v20  ;;  %v21016_v52 = vld [vmem:[#allocation121_spill] sm:$0xff]  ;;  %v16684_v36 = vpop.eup %16683 }
 0x61b   :  { %14425 = vmatpush1.bf16.msra.mxu1 %v20954_v8  ;;  %14456 = vmatpush3.bf16.msra.mxu0 %v21013_v26  ;;  %v3957_v26 = vadd.f32 1.0, %v16684_v36  ;;  %v21020_v8 = vld [vmem:[#allocation125_spill] sm:$0xff] }
 0x61c   :  { %16685 = vrcp.f32 %v3950_v2  ;;  %14427 = vmatprep.subr.bf16.mxu1 %v21014_v58  ;;  %14457 = vmatprep.subr.bf16.mxu0 %v20739_v0  ;;  %v21018_v2 = vld [vmem:[#allocation123_spill] sm:$0xff]  ;;  %v21019_v58 = vld [vmem:[#allocation124_spill] sm:$0xff] }
 0x61d   :  { %4507 = vmatprep.mubr.f32.mxu1 %v20740_v22  ;;  %11925 = vmatprep.mubr.msk.f32.mxu0 %vm17063_vm0, %v20740_v22  ;;  %16687 = vrcp.f32 %v3957_v26  ;;  %v21031_v26 = vld [vmem:[#allocation134_spill] sm:$0xff] }
 0x61f   :  { %14429 = vmatpush1.bf16.msra.mxu1 %v21015_v35  ;;  %14459 = vmatpush3.bf16.msra.mxu0 %v21016_v52  ;;  %v18859_v35 = vld [vmem:[%s20394_s13] ss:$0 sm:$0xff] }
 0x620   :  { %14431 = vmatprep.subr.bf16.mxu1 %v21017_v15  ;;  %14460 = vmatprep.subr.bf16.mxu0 %v20739_v0  ;;  %21021 = vst [vmem:[#allocation62_spill] sm:$0xff] %v18859_v35  ;;  %v3960_v52 = vadd.f32 %v18859_v35, %v3942_v28  ;;  %v21022_v15 = vld [vmem:[#allocation70_spill] sm:$0xff]  ;;  %v21028_v28 = vld [vmem:[#allocation131_spill] sm:$0xff] }
 0x621   :  { %v3802_v56 = vadd.f32 %v18779_v1, %v21022_v15  ;;  %v21029_v1 = vld [vmem:[#allocation132_spill] sm:$0xff] }
 0x623   :  { %14433 = vmatpush1.bf16.msra.mxu1 %v21018_v2  ;;  %14462 = vmatpush3.bf16.msra.mxu0 %v21019_v58  ;;  %v21023_v2 = vld [vmem:[#allocation126_spill] sm:$0xff]  ;;  %v21024_v58 = vld [vmem:[#allocation127_spill] sm:$0xff] }
 0x624   :  { %14435 = vmatprep.subr.bf16.mxu1 %v21020_v8  ;;  %14463 = vmatprep.subr.bf16.mxu0 %v20739_v0  ;;  %v21025_v8 = vld [vmem:[#allocation128_spill] sm:$0xff] }
 0x626   :  { %v16686_v4 = vpop.eup %16685 }
 0x627   :  { %v3961_v36 = vmul.f32 %v16686_v4, %v3960_v52  ;;  %14437 = vmatpush1.bf16.msra.mxu1 %v21023_v2  ;;  %14465 = vmatpush3.bf16.msra.mxu0 %v21024_v58  ;;  %v21030_v4 = vld [vmem:[#allocation133_spill] sm:$0xff]  ;;  %v16688_v52 = vpop.eup %16687  ;;  %v21036_v58 = vld [vmem:[#allocation138_spill] sm:$0xff] }
 0x628   :  { %14439 = vmatprep.subr.bf16.mxu1 %v21025_v8  ;;  %14466 = vmatprep.subr.bf16.mxu0 %v20739_v0  ;;  %v21032_v8 = vld [vmem:[#allocation135_spill] sm:$0xff]  ;;  %v21039_v2 = vld [vmem:[#allocation14_spill] sm:$0xff] }
 0x629   :  { %v3962_v23 = vadd.f32 %v3961_v36, %v3802_v56  ;;  %v21033_v56 = vld [vmem:[#allocation136_spill] sm:$0xff]  ;;  %v3964_v36 = vsub.f32 1.0, %v16688_v52 }
 0x62b   :  { %16689 = vtanh.f32 %v3962_v23  ;;  %14441 = vmatpush1.bf16.msra.mxu1 %v21026_v17  ;;  %14468 = vmatpush3.bf16.msra.mxu0 %v21027_v41  ;;  %v21034_v23 = vld [vmem:[#allocation137_spill] sm:$0xff]  ;;  %v21035_v17 = vld [vmem:[#allocation86_spill] sm:$0xff] }
 0x62c   :  { %14443 = vmatprep.subr.bf16.mxu1 %v21028_v28  ;;  %14469 = vmatprep.subr.bf16.mxu0 %v20739_v0 }
 0x62f   :  { %14445 = vmatpush1.bf16.msra.mxu1 %v21029_v1  ;;  %14471 = vmatpush3.bf16.msra.mxu0 %v21030_v4  ;;  %v3966_v1 = vmul.f32 %v16688_v52, %v21035_v17  ;;  %v21037_v4 = vld [vmem:[#allocation139_spill] sm:$0xff]  ;;  %v21044_v17 = vld [vmem:[#allocation30_spill] sm:$0xff] }
 0x630   :  { %14447 = vmatprep.subr.bf16.mxu1 %v21031_v26  ;;  %14472 = vmatprep.subr.bf16.mxu0 %v20739_v0  ;;  %v21046_v52 = vld [vmem:[#allocation19_spill] sm:$0xff] }
 0x633   :  { %14449 = vmatpush1.bf16.msra.mxu1 %v21032_v8  ;;  %14474 = vmatpush3.bf16.msra.mxu0 %v21033_v56  ;;  %v21041_v56 = vld [vmem:[#allocation27_spill] sm:$0xff] }
 0x634   :  { %14451 = vmatprep.subr.bf16.mxu1 %v21034_v23  ;;  %14475 = vmatprep.subr.bf16.mxu0 %v20739_v0  ;;  %v21040_v23 = vld [vmem:[#allocation15_spill] sm:$0xff] }
 0x635   :  { %v16690_v28 = vpop.eup %16689 }
 0x636   :  { %v3965_v41 = vmul.f32 %v16690_v28, %v3964_v36  ;;  %v21042_v28 = vld [vmem:[#allocation16_spill] sm:$0xff]  ;;  %v21047_v36 = vld [vmem:[#allocation33_spill] sm:$0xff] }
 0x637   :  { %14453 = vmatpush1.bf16.msra.mxu1 %v21036_v58  ;;  %14477 = vmatpush3.bf16.msra.mxu0 %v21037_v4 }
 0x638   :  { %v18883_v26 = vadd.f32 %v3966_v1, %v3965_v41  ;;  %14479 = vmatprep.subr.bf16.mxu0 %v21039_v2  ;;  %14510 = vmatprep.subr.bf16.mxu1 %v20739_v0  ;;  %v21043_v41 = vld [vmem:[#allocation17_spill] sm:$0xff]  ;;  %v21045_v1 = vld [vmem:[#allocation18_spill] sm:$0xff] }
 0x639   :  { %v21051_v2 = vld [vmem:[#allocation22_spill] sm:$0xff] }
 0x63a   :  { %21038 = vst [vmem:[#allocation65_spill] sm:$0xff] %v18883_v26  ;;  %4508 = vmatmul.mubr.f32.vlgmr.msra.gmra.mrb[56].mxu1 %v18883_v26  ;;  %11926 = vmatmul.mubr.f32.vlgmr.msra.gmra.mrb[66].mxu0 %v18883_v26 }
 0x63b   :  { %14481 = vmatpush1.bf16.msra.mxu0 %v21040_v23  ;;  %14512 = vmatpush3.bf16.msra.mxu1 %v21041_v56  ;;  %v21049_v56 = vld [vmem:[#allocation21_spill] sm:$0xff]  ;;  %v21050_v23 = vld [vmem:[#allocation34_spill] sm:$0xff] }
 0x63c   :  { %14483 = vmatprep.subr.bf16.mxu0 %v21042_v28  ;;  %14513 = vmatprep.subr.bf16.mxu1 %v20739_v0  ;;  %v21048_v28 = vld [vmem:[#allocation20_spill] sm:$0xff] }
 0x63d   :  { %4674 = vmatprep.mubr.f32.mxu0 %v20740_v22  ;;  %11960 = vmatprep.mubr.msk.f32.mxu1 %vm17063_vm0, %v20740_v22 }
 0x63f   :  { %14485 = vmatpush1.bf16.msra.mxu0 %v21043_v41  ;;  %14515 = vmatpush3.bf16.msra.mxu1 %v21044_v17  ;;  %v21052_v17 = vld [vmem:[#allocation23_spill] sm:$0xff]  ;;  %v21054_v41 = vld [vmem:[#allocation24_spill] sm:$0xff] }
 0x640   :  { %14487 = vmatprep.subr.bf16.mxu0 %v21045_v1  ;;  %14516 = vmatprep.subr.bf16.mxu1 %v20739_v0  ;;  %v21053_v1 = vld [vmem:[#allocation35_spill] sm:$0xff] }
 0x643   :  { %14489 = vmatpush1.bf16.msra.mxu0 %v21046_v52  ;;  %14518 = vmatpush3.bf16.msra.mxu1 %v21047_v36  ;;  %v21055_v36 = vld [vmem:[#allocation25_spill] sm:$0xff]  ;;  %v21057_v52 = vld [vmem:[#allocation26_spill] sm:$0xff] }
 0x644   :  { %14491 = vmatprep.subr.bf16.mxu0 %v21048_v28  ;;  %14519 = vmatprep.subr.bf16.mxu1 %v20739_v0  ;;  %v21056_v28 = vld [vmem:[#allocation36_spill] sm:$0xff] }
 0x647   :  { %14493 = vmatpush1.bf16.msra.mxu0 %v21049_v56  ;;  %14521 = vmatpush3.bf16.msra.mxu1 %v21050_v23  ;;  %v21058_v23 = vld [vmem:[#allocation28_spill] sm:$0xff]  ;;  %v21060_v56 = vld [vmem:[#allocation29_spill] sm:$0xff] }
 0x648   :  { %14495 = vmatprep.subr.bf16.mxu0 %v21051_v2  ;;  %14522 = vmatprep.subr.bf16.mxu1 %v20739_v0  ;;  %v21059_v2 = vld [vmem:[#allocation37_spill] sm:$0xff] }
 0x64b   :  { %14497 = vmatpush1.bf16.msra.mxu0 %v21052_v17  ;;  %14524 = vmatpush3.bf16.msra.mxu1 %v21053_v1  ;;  %v21061_v1 = vld [vmem:[#allocation31_spill] sm:$0xff]  ;;  %v21063_v17 = vld [vmem:[#allocation32_spill] sm:$0xff] }
 0x64c   :  { %14499 = vmatprep.subr.bf16.mxu0 %v21054_v41  ;;  %14525 = vmatprep.subr.bf16.mxu1 %v20739_v0  ;;  %v21062_v41 = vld [vmem:[#allocation38_spill] sm:$0xff] }
 0x64f   :  { %14501 = vmatpush1.bf16.msra.mxu0 %v21055_v36  ;;  %14527 = vmatpush3.bf16.msra.mxu1 %v21056_v28  ;;  %v21064_v36 = vld [vmem:[#allocation87_spill] sm:$0xff] }
 0x650   :  { %14503 = vmatprep.subr.bf16.mxu0 %v21057_v52  ;;  %14528 = vmatprep.subr.bf16.mxu1 %v20739_v0 }
 0x653   :  { %14505 = vmatpush1.bf16.msra.mxu0 %v21058_v23  ;;  %14530 = vmatpush3.bf16.msra.mxu1 %v21059_v2 }
 0x654   :  { %14507 = vmatprep.subr.bf16.mxu0 %v21060_v56  ;;  %14531 = vmatprep.subr.bf16.mxu1 %v20739_v0 }
 0x657   :  { %14509 = vmatpush1.bf16.msra.mxu0 %v21061_v1  ;;  %14533 = vmatpush3.bf16.msra.mxu1 %v21062_v41 }
 0x658   :  { %14535 = vmatprep.subr.bf16.mxu0 %v21063_v17  ;;  %14566 = vmatprep.subr.bf16.mxu1 %v20739_v0  ;;  %v18929_v17 = vld [vmem:[%s20386_s5] ss:$0 sm:$0xff] }
 0x6ad   :  { %v4038_v28 = vpop.f32.mrb[10].mxu0  ;;  %v4109_v52 = vpop.f32.mrb[52].mxu1 }
 0x6ae   :  { %v16392_v4 = vadd.f32 %v4038_v28, %v21064_v36  ;;  %v4040_v58 = vpop.f32.mrb[11].mxu0  ;;  %v11822_v23 = vpop.f32.mrb[53].mxu1  ;;  %v4127_v28 = vadd.f32 %v18929_v17, %v4109_v52 }
 0x6af   :  { %v16393_v2 = vadd.f32 %v4040_v58, %v20930_v3 }
 0x6b0   :  { %v9998_v26 = vmul.f32 -1.442695, %v16392_v4  ;;  %v21065_v4 = vld [vmem:[#allocation66_spill] sm:$0xff] }
 0x6b1   :  { %v9999_v56 = vmul.f32 -1.442695, %v16393_v2 }
 0x6b2   :  { %16691 = vpow2.f32 %v9998_v26 }
 0x6b3   :  { %16693 = vpow2.f32 %v9999_v56 }
 0x6bc   :  { %v16692_v8 = vpop.eup %16691 }
 0x6bd   :  { %v4117_v1 = vadd.f32 1.0, %v16692_v8  ;;  %v16694_v41 = vpop.eup %16693 }
 0x6be   :  { %v4124_v15 = vadd.f32 1.0, %v16694_v41 }
 0x6bf   :  { %16695 = vrcp.f32 %v4117_v1 }
 0x6c0   :  { %16697 = vrcp.f32 %v4124_v15 }
 0x6c9   :  { %v16696_v36 = vpop.eup %16695 }
 0x6ca   :  { %v4128_v23 = vmul.f32 %v16696_v36, %v4127_v28  ;;  %v16698_v35 = vpop.eup %16697 }
 0x6cb   :  { %v4131_v43 = vsub.f32 1.0, %v16698_v35  ;;  %v4133_v15 = vmul.f32 %v16698_v35, %v18754_v18 }
 0x6cc   :  { %v4129_v58 = vadd.f32 %v4128_v23, %v21065_v4 }
 0x6cd   :  { %v4205_v26 = vpop.f32.mrb[26].mxu0  ;;  %v4276_v2 = vpop.f32.mrb[54].mxu1 }
 0x6ce   :  { %16699 = vtanh.f32 %v4129_v58  ;;  %v16408_v8 = vadd.f32 %v4205_v26, %v17942_v49  ;;  %v4207_v56 = vpop.f32.mrb[27].mxu0  ;;  %v11857_v1 = vpop.f32.mrb[55].mxu1  ;;  %v21066_v26 = vld [vmem:[#allocation73_spill] sm:$0xff] }
 0x6cf   :  { %v16409_v3 = vadd.f32 %v4207_v56, %v17945_v59 }
 0x6d0   :  { %v10000_v41 = vmul.f32 -1.442695, %v16408_v8 }
 0x6d1   :  { %v10001_v37 = vmul.f32 -1.442695, %v16409_v3 }
 0x6d2   :  { %16701 = vpow2.f32 %v10000_v41 }
 0x6d3   :  { %16703 = vpow2.f32 %v10001_v37  ;;  %v18958_v37 = vld [vmem:[%s20390_s9] ss:$0 sm:$0xff] }
 0x6d4   :  { %v4294_v18 = vadd.f32 %v18958_v37, %v4276_v2 }
 0x6d8   :  { %v16700_v52 = vpop.eup %16699 }
 0x6d9   :  { %v4132_v36 = vmul.f32 %v16700_v52, %v4131_v43 }
 0x6db   :  { %v18936_v28 = vadd.f32 %v4133_v15, %v4132_v36 }
 0x6dc   :  { %v16702_v23 = vpop.eup %16701 }
 0x6dd   :  { %v4284_v4 = vadd.f32 1.0, %v16702_v23  ;;  %4675 = vmatmul.mubr.f32.vlgmr.msra.gmra.mrb[12].mxu0 %v18936_v28  ;;  %11961 = vmatmul.mubr.f32.vlgmr.msra.gmra.mrb[58].mxu1 %v18936_v28  ;;  %v16704_v3 = vpop.eup %16703 }
 0x6de   :  { %14537 = vmatpush1.bf16.msra.mxu0 %v17730_v29  ;;  %14568 = vmatpush3.bf16.msra.mxu1 %v17713_v6  ;;  %v4291_v43 = vadd.f32 1.0, %v16704_v3 }
 0x6df   :  { %16705 = vrcp.f32 %v4284_v4  ;;  %14539 = vmatprep.subr.bf16.mxu0 %v17732_v30  ;;  %14569 = vmatprep.subr.bf16.mxu1 %v20739_v0 }
 0x6e0   :  { %4841 = vmatprep.mubr.f32.mxu0 %v20740_v22  ;;  %11995 = vmatprep.mubr.msk.f32.mxu1 %vm17063_vm0, %v20740_v22  ;;  %16707 = vrcp.f32 %v4291_v43 }
 0x6e2   :  { %14541 = vmatpush1.bf16.msra.mxu0 %v17740_v45  ;;  %14571 = vmatpush3.bf16.msra.mxu1 %v17719_v11 }
 0x6e3   :  { %14543 = vmatprep.subr.bf16.mxu0 %v17744_v48  ;;  %14572 = vmatprep.subr.bf16.mxu1 %v20739_v0 }
 0x6e6   :  { %14545 = vmatpush1.bf16.msra.mxu0 %v17751_v60  ;;  %14574 = vmatpush3.bf16.msra.mxu1 %v17726_v24 }
 0x6e7   :  { %14547 = vmatprep.subr.bf16.mxu0 %v17754_v61  ;;  %14575 = vmatprep.subr.bf16.mxu1 %v20739_v0 }
 0x6e9   :  { %v16706_v35 = vpop.eup %16705 }
 0x6ea   :  { %v4295_v58 = vmul.f32 %v16706_v35, %v4294_v18  ;;  %14549 = vmatpush1.bf16.msra.mxu0 %v17761_v13  ;;  %14577 = vmatpush3.bf16.msra.mxu1 %v17735_v40  ;;  %v16708_v2 = vpop.eup %16707 }
 0x6eb   :  { %14551 = vmatprep.subr.bf16.mxu0 %v17764_v14  ;;  %14578 = vmatprep.subr.bf16.mxu1 %v20739_v0  ;;  %v4298_v41 = vsub.f32 1.0, %v16708_v2  ;;  %v4300_v15 = vmul.f32 %v16708_v2, %v18796_v20  ;;  %v21070_v2 = vld [vmem:[#allocation110_spill] sm:$0xff] }
 0x6ec   :  { %v4296_v8 = vadd.f32 %v4295_v58, %v21066_v26  ;;  %v21067_v58 = vld [vmem:[#allocation89_spill] sm:$0xff] }
 0x6ed   :  { %v18966_v56 = vpop.f32.mrb[64].mxu0 }
 0x6ee   :  { %16709 = vtanh.f32 %v4296_v8  ;;  %v11892_v1 = vpop.f32.mrb[65].mxu0  ;;  %14553 = vmatpush1.bf16.msra.mxu0 %v17771_v38  ;;  %14580 = vmatpush3.bf16.msra.mxu1 %v17747_v55  ;;  %v21068_v8 = vld [vmem:[#allocation108_spill] sm:$0xff] }
 0x6ef   :  { %14555 = vmatprep.subr.bf16.mxu0 %v17774_v39  ;;  %14581 = vmatprep.subr.bf16.mxu1 %v20739_v0  ;;  %v21069_v1 = vld [vmem:[#allocation109_spill] sm:$0xff] }
 0x6f2   :  { %14557 = vmatpush1.bf16.msra.mxu0 %v17781_v54  ;;  %14583 = vmatpush3.bf16.msra.mxu1 %v17757_v7 }
 0x6f3   :  { %14559 = vmatprep.subr.bf16.mxu0 %v17784_v57  ;;  %14584 = vmatprep.subr.bf16.mxu1 %v20739_v0 }
 0x6f6   :  { %14561 = vmatpush1.bf16.msra.mxu0 %v17789_v5  ;;  %14586 = vmatpush3.bf16.msra.mxu1 %v20800_v44 }
 0x6f7   :  { %14563 = vmatprep.subr.bf16.mxu0 %v20801_v21  ;;  %14587 = vmatprep.subr.bf16.mxu1 %v20739_v0 }
 0x6f8   :  { %v16710_v52 = vpop.eup %16709 }
 0x6f9   :  { %v4299_v36 = vmul.f32 %v16710_v52, %v4298_v41  ;;  %v21071_v52 = vld [vmem:[#allocation111_spill] sm:$0xff] }
 0x6fa   :  { %14565 = vmatpush1.bf16.msra.mxu0 %v20802_v63  ;;  %14589 = vmatpush3.bf16.msra.mxu1 %v20867_v9 }
 0x6fb   :  { %v18983_v23 = vadd.f32 %v4300_v15, %v4299_v36  ;;  %14591 = vmatprep.subr.bf16.mxu1 %v20933_v62  ;;  %14622 = vmatprep.subr.bf16.mxu0 %v20739_v0  ;;  %v21072_v36 = vld [vmem:[#allocation112_spill] sm:$0xff]  ;;  %v21073_v15 = vld [vmem:[#allocation113_spill] sm:$0xff] }
 0x6fd   :  { %4842 = vmatmul.mubr.f32.vlgmr.msra.gmra.mrb[28].mxu0 %v18983_v23  ;;  %11996 = vmatmul.mubr.f32.vlgmr.msra.gmra.mrb[60].mxu1 %v18983_v23 }
 0x6fe   :  { %14593 = vmatpush1.bf16.msra.mxu1 %v20934_v50  ;;  %14624 = vmatpush3.bf16.msra.mxu0 %v20935_v47 }
 0x6ff   :  { %14595 = vmatprep.subr.bf16.mxu1 %v20936_v25  ;;  %14625 = vmatprep.subr.bf16.mxu0 %v20739_v0 }
 0x700   :  { %5004 = vmatprep.mubr.f32.mxu1 %v20740_v22  ;;  %12030 = vmatprep.mubr.msk.f32.mxu0 %vm17063_vm0, %v20740_v22 }
 0x702   :  { %14597 = vmatpush1.bf16.msra.mxu1 %v20937_v27  ;;  %14627 = vmatpush3.bf16.msra.mxu0 %v21000_v34 }
 0x703   :  { %14599 = vmatprep.subr.bf16.mxu1 %v21001_v32  ;;  %14628 = vmatprep.subr.bf16.mxu0 %v20739_v0 }
 0x706   :  { %14601 = vmatpush1.bf16.msra.mxu1 %v21002_v42  ;;  %14630 = vmatpush3.bf16.msra.mxu0 %v21003_v53 }
 0x707   :  { %14603 = vmatprep.subr.bf16.mxu1 %v21004_v51  ;;  %14631 = vmatprep.subr.bf16.mxu0 %v20739_v0 }
 0x70a   :  { %14605 = vmatpush1.bf16.msra.mxu1 %v21005_v12  ;;  %14633 = vmatpush3.bf16.msra.mxu0 %v21006_v16 }
 0x70b   :  { %14607 = vmatprep.subr.bf16.mxu1 %v21007_v33  ;;  %14634 = vmatprep.subr.bf16.mxu0 %v20739_v0 }
 0x70d   :  { %v4509_v20 = vpop.f32.mrb[56].mxu1  ;;  %v4580_v4 = vpop.f32.mrb[66].mxu0 }
 0x70e   :  { %v16438_v3 = vadd.f32 %v4509_v20, %v18279_v31  ;;  %v4511_v43 = vpop.f32.mrb[57].mxu1  ;;  %v11927_v18 = vpop.f32.mrb[67].mxu0  ;;  %14609 = vmatpush1.bf16.msra.mxu1 %v20881_v46  ;;  %14636 = vmatpush3.bf16.msra.mxu0 %v20946_v19  ;;  %v21074_v20 = vld [vmem:[#allocation114_spill] sm:$0xff]  ;;  %v21131_v19 = vld [vmem:[#allocation69_spill] sm:$0xff] }
 0x70f   :  { %14611 = vmatprep.subr.bf16.mxu1 %v20947_v10  ;;  %14637 = vmatprep.subr.bf16.mxu0 %v20739_v0  ;;  %v16439_v26 = vadd.f32 %v4511_v43, %v21067_v58  ;;  %v21076_v43 = vld [vmem:[#allocation116_spill] sm:$0xff] }
 0x710   :  { %v10002_v35 = vmul.f32 -1.442695, %v16438_v3  ;;  %v21075_v3 = vld [vmem:[#allocation115_spill] sm:$0xff] }
 0x711   :  { %v10003_v41 = vmul.f32 -1.442695, %v16439_v26  ;;  %v21077_v26 = vld [vmem:[#allocation117_spill] sm:$0xff] }
 0x712   :  { %16711 = vpow2.f32 %v10002_v35  ;;  %14613 = vmatpush1.bf16.msra.mxu1 %v21068_v8  ;;  %14639 = vmatpush3.bf16.msra.mxu0 %v21069_v1  ;;  %v21089_v8 = vld [vmem:[#allocation127_spill] sm:$0xff] }
 0x713   :  { %14615 = vmatprep.subr.bf16.mxu1 %v21070_v2  ;;  %14640 = vmatprep.subr.bf16.mxu0 %v20739_v0  ;;  %16713 = vpow2.f32 %v10003_v41  ;;  %v21079_v41 = vld [vmem:[#allocation119_spill] sm:$0xff] }
 0x716   :  { %14617 = vmatpush1.bf16.msra.mxu1 %v21071_v52  ;;  %14642 = vmatpush3.bf16.msra.mxu0 %v21072_v36  ;;  %v21086_v36 = vld [vmem:[#allocation62_spill] sm:$0xff] }
 0x717   :  { %14619 = vmatprep.subr.bf16.mxu1 %v21073_v15  ;;  %14643 = vmatprep.subr.bf16.mxu0 %v20739_v0  ;;  %v21078_v15 = vld [vmem:[#allocation118_spill] sm:$0xff]  ;;  %v4598_v52 = vadd.f32 %v21086_v36, %v4580_v4  ;;  %v21093_v4 = vld [vmem:[#allocation131_spill] sm:$0xff] }
 0x71a   :  { %14621 = vmatpush1.bf16.msra.mxu1 %v21074_v20  ;;  %14645 = vmatpush3.bf16.msra.mxu0 %v21075_v3  ;;  %v21082_v20 = vld [vmem:[#allocation122_spill] sm:$0xff] }
 0x71b   :  { %14647 = vmatprep.subr.bf16.mxu1 %v21076_v43  ;;  %14678 = vmatprep.subr.bf16.mxu0 %v20739_v0  ;;  %v21080_v43 = vld [vmem:[#allocation120_spill] sm:$0xff] }
 0x71c   :  { %v16712_v18 = vpop.eup %16711 }
 0x71d   :  { %v4588_v35 = vadd.f32 1.0, %v16712_v18  ;;  %5005 = vmatmul.mubr.f32.vlgmr.msra.gmra.mrb[62].mxu1 %v18983_v23  ;;  %12031 = vmatmul.mubr.f32.vlgmr.msra.gmra.mrb[68].mxu0 %v18983_v23  ;;  %v21081_v18 = vld [vmem:[#allocation121_spill] sm:$0xff]  ;;  %v16714_v3 = vpop.eup %16713 }
 0x71e   :  { %14649 = vmatpush1.bf16.msra.mxu1 %v21077_v26  ;;  %14680 = vmatpush3.bf16.msra.mxu0 %v21078_v15  ;;  %v4595_v15 = vadd.f32 1.0, %v16714_v3  ;;  %v21085_v26 = vld [vmem:[#allocation125_spill] sm:$0xff]  ;;  %v21090_v3 = vld [vmem:[#allocation128_spill] sm:$0xff] }
 0x71f   :  { %16715 = vrcp.f32 %v4588_v35  ;;  %14651 = vmatprep.subr.bf16.mxu1 %v21079_v41  ;;  %14681 = vmatprep.subr.bf16.mxu0 %v20739_v0  ;;  %v21083_v35 = vld [vmem:[#allocation123_spill] sm:$0xff]  ;;  %v21084_v41 = vld [vmem:[#allocation124_spill] sm:$0xff] }
 0x720   :  { %5145 = vmatprep.mubr.f32.mxu1 %v20740_v22  ;;  %12065 = vmatprep.mubr.msk.f32.mxu0 %vm17063_vm0, %v20740_v22  ;;  %16717 = vrcp.f32 %v4595_v15 }
 0x722   :  { %14653 = vmatpush1.bf16.msra.mxu1 %v21080_v43  ;;  %14683 = vmatpush3.bf16.msra.mxu0 %v21081_v18  ;;  %v21087_v43 = vld [vmem:[#allocation70_spill] sm:$0xff] }
 0x723   :  { %14655 = vmatprep.subr.bf16.mxu1 %v21082_v20  ;;  %14684 = vmatprep.subr.bf16.mxu0 %v20739_v0  ;;  %v4440_v18 = vadd.f32 %v18966_v56, %v21087_v43  ;;  %v21088_v20 = vld [vmem:[#allocation126_spill] sm:$0xff]  ;;  %v21094_v56 = vld [vmem:[#allocation132_spill] sm:$0xff] }
 0x726   :  { %14657 = vmatpush1.bf16.msra.mxu1 %v21083_v35  ;;  %14686 = vmatpush3.bf16.msra.mxu0 %v21084_v41  ;;  %v21092_v35 = vld [vmem:[#allocation130_spill] sm:$0xff] }
 0x727   :  { %14659 = vmatprep.subr.bf16.mxu1 %v21085_v26  ;;  %14687 = vmatprep.subr.bf16.mxu0 %v20739_v0  ;;  %v21091_v26 = vld [vmem:[#allocation129_spill] sm:$0xff] }
 0x729   :  { %v16716_v2 = vpop.eup %16715 }
 0x72a   :  { %v4599_v1 = vmul.f32 %v16716_v2, %v4598_v52  ;;  %14661 = vmatpush1.bf16.msra.mxu1 %v21088_v20  ;;  %14689 = vmatpush3.bf16.msra.mxu0 %v21089_v8  ;;  %v21095_v2 = vld [vmem:[#allocation133_spill] sm:$0xff]  ;;  %v21096_v52 = vld [vmem:[#allocation134_spill] sm:$0xff]  ;;  %v16718_v15 = vpop.eup %16717 }
 0x72b   :  { %14663 = vmatprep.subr.bf16.mxu1 %v21090_v3  ;;  %14690 = vmatprep.subr.bf16.mxu0 %v20739_v0  ;;  %v21097_v3 = vld [vmem:[#allocation135_spill] sm:$0xff]  ;;  %v21101_v8 = vld [vmem:[#allocation138_spill] sm:$0xff] }
 0x72c   :  { %v4600_v41 = vadd.f32 %v4599_v1, %v4440_v18  ;;  %v21098_v1 = vld [vmem:[#allocation136_spill] sm:$0xff]  ;;  %v4602_v18 = vsub.f32 1.0, %v16718_v15  ;;  %v21104_v20 = vld [vmem:[#allocation14_spill] sm:$0xff] }
 0x72e   :  { %16719 = vtanh.f32 %v4600_v41  ;;  %14665 = vmatpush1.bf16.msra.mxu1 %v21091_v26  ;;  %14692 = vmatpush3.bf16.msra.mxu0 %v21092_v35  ;;  %v21099_v41 = vld [vmem:[#allocation137_spill] sm:$0xff] }
 0x72f   :  { %14667 = vmatprep.subr.bf16.mxu1 %v21093_v4  ;;  %14693 = vmatprep.subr.bf16.mxu0 %v20739_v0  ;;  %v21100_v26 = vld [vmem:[#allocation65_spill] sm:$0xff] }
 0x732   :  { %14669 = vmatpush1.bf16.msra.mxu1 %v21094_v56  ;;  %14695 = vmatpush3.bf16.msra.mxu0 %v21095_v2  ;;  %v4604_v56 = vmul.f32 %v16718_v15, %v21100_v26  ;;  %v21102_v2 = vld [vmem:[#allocation139_spill] sm:$0xff]  ;;  %v21109_v26 = vld [vmem:[#allocation30_spill] sm:$0xff]  ;;  %v21112_v15 = vld [vmem:[#allocation33_spill] sm:$0xff] }
 0x733   :  { %14671 = vmatprep.subr.bf16.mxu1 %v21096_v52  ;;  %14696 = vmatprep.subr.bf16.mxu0 %v20739_v0 }
 0x736   :  { %14673 = vmatpush1.bf16.msra.mxu1 %v21097_v3  ;;  %14698 = vmatpush3.bf16.msra.mxu0 %v21098_v1  ;;  %v21106_v1 = vld [vmem:[#allocation27_spill] sm:$0xff] }
 0x737   :  { %14675 = vmatprep.subr.bf16.mxu1 %v21099_v41  ;;  %14699 = vmatprep.subr.bf16.mxu0 %v20739_v0  ;;  %v21105_v41 = vld [vmem:[#allocation15_spill] sm:$0xff] }
 0x738   :  { %v16720_v4 = vpop.eup %16719 }
 0x739   :  { %v4603_v35 = vmul.f32 %v16720_v4, %v4602_v18  ;;  %v21107_v4 = vld [vmem:[#allocation16_spill] sm:$0xff]  ;;  %v21115_v18 = vld [vmem:[#allocation34_spill] sm:$0xff] }
 0x73a   :  { %14677 = vmatpush1.bf16.msra.mxu1 %v21101_v8  ;;  %14701 = vmatpush3.bf16.msra.mxu0 %v21102_v2 }
 0x73b   :  { %v19065_v52 = vadd.f32 %v4604_v56, %v4603_v35  ;;  %14703 = vmatprep.subr.bf16.mxu0 %v21104_v20  ;;  %14734 = vmatprep.subr.bf16.mxu1 %v20739_v0  ;;  %v21108_v20 = vld [vmem:[#allocation17_spill] sm:$0xff]  ;;  %v21110_v35 = vld [vmem:[#allocation18_spill] sm:$0xff]  ;;  %v21111_v56 = vld [vmem:[#allocation19_spill] sm:$0xff] }
 0x73d   :  { %21103 = vst [vmem:[#allocation72_spill] sm:$0xff] %v19065_v52  ;;  %5146 = vmatmul.mubr.f32.vlgmr.msra.gmra.mrb[62].mxu1 %v19065_v52  ;;  %12066 = vmatmul.mubr.f32.vlgmr.msra.gmra.mrb[70].mxu0 %v19065_v52 }
 0x73e   :  { %14705 = vmatpush1.bf16.msra.mxu0 %v21105_v41  ;;  %14736 = vmatpush3.bf16.msra.mxu1 %v21106_v1  ;;  %v21113_v1 = vld [vmem:[#allocation20_spill] sm:$0xff]  ;;  %v21114_v41 = vld [vmem:[#allocation21_spill] sm:$0xff] }
 0x73f   :  { %14707 = vmatprep.subr.bf16.mxu0 %v21107_v4  ;;  %14737 = vmatprep.subr.bf16.mxu1 %v20739_v0  ;;  %v21116_v4 = vld [vmem:[#allocation22_spill] sm:$0xff] }
 0x740   :  { %5312 = vmatprep.mubr.f32.mxu0 %v20740_v22  ;;  %12100 = vmatprep.mubr.msk.f32.mxu1 %vm17063_vm0, %v20740_v22 }
 0x742   :  { %14709 = vmatpush1.bf16.msra.mxu0 %v21108_v20  ;;  %14739 = vmatpush3.bf16.msra.mxu1 %v21109_v26  ;;  %v21117_v20 = vld [vmem:[#allocation23_spill] sm:$0xff] }
 0x743   :  { %14711 = vmatprep.subr.bf16.mxu0 %v21110_v35  ;;  %14740 = vmatprep.subr.bf16.mxu1 %v20739_v0  ;;  %v21118_v26 = vld [vmem:[#allocation35_spill] sm:$0xff]  ;;  %v21119_v35 = vld [vmem:[#allocation24_spill] sm:$0xff] }
 0x746   :  { %14713 = vmatpush1.bf16.msra.mxu0 %v21111_v56  ;;  %14742 = vmatpush3.bf16.msra.mxu1 %v21112_v15  ;;  %v21120_v56 = vld [vmem:[#allocation25_spill] sm:$0xff]  ;;  %v21121_v15 = vld [vmem:[#allocation36_spill] sm:$0xff] }
 0x747   :  { %14715 = vmatprep.subr.bf16.mxu0 %v21113_v1  ;;  %14743 = vmatprep.subr.bf16.mxu1 %v20739_v0  ;;  %v21122_v1 = vld [vmem:[#allocation26_spill] sm:$0xff] }
 0x74a   :  { %14717 = vmatpush1.bf16.msra.mxu0 %v21114_v41  ;;  %14745 = vmatpush3.bf16.msra.mxu1 %v21115_v18  ;;  %v21123_v41 = vld [vmem:[#allocation28_spill] sm:$0xff]  ;;  %v21124_v18 = vld [vmem:[#allocation37_spill] sm:$0xff] }
 0x74b   :  { %14719 = vmatprep.subr.bf16.mxu0 %v21116_v4  ;;  %14746 = vmatprep.subr.bf16.mxu1 %v20739_v0  ;;  %v21125_v4 = vld [vmem:[#allocation29_spill] sm:$0xff] }
 0x74e   :  { %14721 = vmatpush1.bf16.msra.mxu0 %v21117_v20  ;;  %14748 = vmatpush3.bf16.msra.mxu1 %v21118_v26  ;;  %v21126_v20 = vld [vmem:[#allocation31_spill] sm:$0xff]  ;;  %v21127_v26 = vld [vmem:[#allocation38_spill] sm:$0xff] }
 0x74f   :  { %14723 = vmatprep.subr.bf16.mxu0 %v21119_v35  ;;  %14749 = vmatprep.subr.bf16.mxu1 %v20739_v0  ;;  %v21128_v35 = vld [vmem:[#allocation32_spill] sm:$0xff] }
 0x752   :  { %14725 = vmatpush1.bf16.msra.mxu0 %v21120_v56  ;;  %14751 = vmatpush3.bf16.msra.mxu1 %v21121_v15 }
 0x753   :  { %14727 = vmatprep.subr.bf16.mxu0 %v21122_v1  ;;  %14752 = vmatprep.subr.bf16.mxu1 %v20739_v0  ;;  %v21129_v1 = vld [vmem:[#allocation87_spill] sm:$0xff] }
 0x756   :  { %14729 = vmatpush1.bf16.msra.mxu0 %v21123_v41  ;;  %14754 = vmatpush3.bf16.msra.mxu1 %v21124_v18  ;;  %v21130_v18 = vld [vmem:[#allocation88_spill] sm:$0xff] }
 0x757   :  { %14731 = vmatprep.subr.bf16.mxu0 %v21125_v4  ;;  %14755 = vmatprep.subr.bf16.mxu1 %v20739_v0 }
 0x75a   :  { %14733 = vmatpush1.bf16.msra.mxu0 %v21126_v20  ;;  %14757 = vmatpush3.bf16.msra.mxu1 %v21127_v26 }
 0x75b   :  { %14759 = vmatprep.subr.bf16.mxu0 %v21128_v35  ;;  %14790 = vmatprep.subr.bf16.mxu1 %v20739_v0 }
 0x7b0   :  { %v4676_v56 = vpop.f32.mrb[12].mxu0  ;;  %v4747_v15 = vpop.f32.mrb[58].mxu1 }
 0x7b1   :  { %v16394_v2 = vadd.f32 %v4676_v56, %v21129_v1  ;;  %v4678_v8 = vpop.f32.mrb[13].mxu0  ;;  %v11962_v41 = vpop.f32.mrb[59].mxu1  ;;  %v4765_v35 = vadd.f32 %v18929_v17, %v4747_v15 }
 0x7b2   :  { %v16395_v3 = vadd.f32 %v4678_v8, %v21130_v18 }
 0x7b3   :  { %v10004_v52 = vmul.f32 -1.442695, %v16394_v2 }
 0x7b4   :  { %v10005_v4 = vmul.f32 -1.442695, %v16395_v3 }
 0x7b5   :  { %16721 = vpow2.f32 %v10004_v52 }
 0x7b6   :  { %16723 = vpow2.f32 %v10005_v4 }
 0x7bf   :  { %v16722_v43 = vpop.eup %16721 }
 0x7c0   :  { %v4755_v20 = vadd.f32 1.0, %v16722_v43  ;;  %v16724_v26 = vpop.eup %16723 }
 0x7c1   :  { %v4762_v36 = vadd.f32 1.0, %v16724_v26 }
 0x7c2   :  { %16725 = vrcp.f32 %v4755_v20 }
 0x7c3   :  { %16727 = vrcp.f32 %v4762_v36 }
 0x7cc   :  { %v16726_v58 = vpop.eup %16725 }
 0x7cd   :  { %v4766_v10 = vmul.f32 %v16726_v58, %v4765_v35  ;;  %v16728_v4 = vpop.eup %16727 }
 0x7ce   :  { %v4769_v26 = vsub.f32 1.0, %v16728_v4  ;;  %v4771_v36 = vmul.f32 %v16728_v4, %v18936_v28 }
 0x7cf   :  { %v4767_v56 = vadd.f32 %v4766_v10, %v21131_v19 }
 0x7d0   :  { %v4843_v1 = vpop.f32.mrb[28].mxu0  ;;  %v4914_v41 = vpop.f32.mrb[60].mxu1 }
 0x7d1   :  { %16729 = vtanh.f32 %v4767_v56  ;;  %v16410_v8 = vadd.f32 %v4843_v1, %v17942_v49  ;;  %v4845_v2 = vpop.f32.mrb[29].mxu0  ;;  %v11997_v3 = vpop.f32.mrb[61].mxu1  ;;  %v4932_v56 = vadd.f32 %v18958_v37, %v4914_v41 }
 0x7d2   :  { %v16411_v43 = vadd.f32 %v4845_v2, %v17945_v59  ;;  %v21132_v3 = vld [vmem:[#allocation76_spill] sm:$0xff] }
 0x7d3   :  { %v10006_v52 = vmul.f32 -1.442695, %v16410_v8 }
 0x7d4   :  { %v10007_v20 = vmul.f32 -1.442695, %v16411_v43 }
 0x7d5   :  { %16731 = vpow2.f32 %v10006_v52 }
 0x7d6   :  { %16733 = vpow2.f32 %v10007_v20 }
 0x7db   :  { %v16730_v15 = vpop.eup %16729 }
 0x7dc   :  { %v4770_v58 = vmul.f32 %v16730_v15, %v4769_v26 }
 0x7de   :  { %v19113_v19 = vadd.f32 %v4771_v36, %v4770_v58 }
 0x7df   :  { %v16732_v10 = vpop.eup %16731 }
 0x7e0   :  { %v4922_v35 = vadd.f32 1.0, %v16732_v10  ;;  %5313 = vmatmul.mubr.f32.vlgmr.msra.gmra.mrb[14].mxu0 %v19113_v19  ;;  %12101 = vmatmul.mubr.f32.vlgmr.msra.gmra.mrb[64].mxu1 %v19113_v19  ;;  %v16734_v28 = vpop.eup %16733 }
 0x7e1   :  { %14761 = vmatpush1.bf16.msra.mxu0 %v17730_v29  ;;  %14792 = vmatpush3.bf16.msra.mxu1 %v17713_v6  ;;  %v4929_v1 = vadd.f32 1.0, %v16734_v28 }
 0x7e2   :  { %16735 = vrcp.f32 %v4922_v35  ;;  %14763 = vmatprep.subr.bf16.mxu0 %v17732_v30  ;;  %14793 = vmatprep.subr.bf16.mxu1 %v20739_v0 }
 0x7e3   :  { %5479 = vmatprep.mubr.f32.mxu0 %v20740_v22  ;;  %12135 = vmatprep.mubr.msk.f32.mxu1 %vm17063_vm0, %v20740_v22  ;;  %16737 = vrcp.f32 %v4929_v1 }
 0x7e5   :  { %14765 = vmatpush1.bf16.msra.mxu0 %v17740_v45  ;;  %14795 = vmatpush3.bf16.msra.mxu1 %v17719_v11 }
 0x7e6   :  { %14767 = vmatprep.subr.bf16.mxu0 %v17744_v48  ;;  %14796 = vmatprep.subr.bf16.mxu1 %v20739_v0 }
 0x7e9   :  { %14769 = vmatpush1.bf16.msra.mxu0 %v17751_v60  ;;  %14798 = vmatpush3.bf16.msra.mxu1 %v17726_v24 }
 0x7ea   :  { %14771 = vmatprep.subr.bf16.mxu0 %v17754_v61  ;;  %14799 = vmatprep.subr.bf16.mxu1 %v20739_v0 }
 0x7ec   :  { %v16736_v8 = vpop.eup %16735 }
 0x7ed   :  { %v4933_v2 = vmul.f32 %v16736_v8, %v4932_v56  ;;  %14773 = vmatpush1.bf16.msra.mxu0 %v17761_v13  ;;  %14801 = vmatpush3.bf16.msra.mxu1 %v17735_v40  ;;  %v16738_v41 = vpop.eup %16737  ;;  %v21133_v56 = vld [vmem:[#allocation106_spill] sm:$0xff]  ;;  %v21134_v8 = vld [vmem:[#allocation107_spill] sm:$0xff] }
 0x7ee   :  { %14775 = vmatprep.subr.bf16.mxu0 %v17764_v14  ;;  %14802 = vmatprep.subr.bf16.mxu1 %v20739_v0  ;;  %v4936_v20 = vsub.f32 1.0, %v16738_v41  ;;  %v4938_v58 = vmul.f32 %v16738_v41, %v18983_v23  ;;  %v21137_v41 = vld [vmem:[#allocation109_spill] sm:$0xff] }
 0x7ef   :  { %v4934_v52 = vadd.f32 %v4933_v2, %v21132_v3  ;;  %v21135_v3 = vld [vmem:[#allocation89_spill] sm:$0xff] }
 0x7f0   :  { %v19138_v43 = vpop.f32.mrb[68].mxu0 }
 0x7f1   :  { %16739 = vtanh.f32 %v4934_v52  ;;  %v12032_v4 = vpop.f32.mrb[69].mxu0  ;;  %14777 = vmatpush1.bf16.msra.mxu0 %v17771_v38  ;;  %14804 = vmatpush3.bf16.msra.mxu1 %v17747_v55 }
 0x7f2   :  { %14779 = vmatprep.subr.bf16.mxu0 %v17774_v39  ;;  %14805 = vmatprep.subr.bf16.mxu1 %v20739_v0  ;;  %v21136_v4 = vld [vmem:[#allocation108_spill] sm:$0xff] }
 0x7f5   :  { %14781 = vmatpush1.bf16.msra.mxu0 %v17781_v54  ;;  %14807 = vmatpush3.bf16.msra.mxu1 %v17757_v7 }
 0x7f6   :  { %14783 = vmatprep.subr.bf16.mxu0 %v17784_v57  ;;  %14808 = vmatprep.subr.bf16.mxu1 %v20739_v0 }
 0x7f9   :  { %14785 = vmatpush1.bf16.msra.mxu0 %v17789_v5  ;;  %14810 = vmatpush3.bf16.msra.mxu1 %v20800_v44 }
 0x7fa   :  { %14787 = vmatprep.subr.bf16.mxu0 %v20801_v21  ;;  %14811 = vmatprep.subr.bf16.mxu1 %v20739_v0 }
 0x7fb   :  { %v16740_v26 = vpop.eup %16739 }
 0x7fc   :  { %v4937_v15 = vmul.f32 %v16740_v26, %v4936_v20  ;;  %v21138_v20 = vld [vmem:[#allocation110_spill] sm:$0xff] }
 0x7fd   :  { %14789 = vmatpush1.bf16.msra.mxu0 %v20802_v63  ;;  %14813 = vmatpush3.bf16.msra.mxu1 %v20867_v9 }
 0x7fe   :  { %v19155_v36 = vadd.f32 %v4938_v58, %v4937_v15  ;;  %14815 = vmatprep.subr.bf16.mxu1 %v20933_v62  ;;  %14846 = vmatprep.subr.bf16.mxu0 %v20739_v0  ;;  %v21139_v15 = vld [vmem:[#allocation111_spill] sm:$0xff]  ;;  %v21140_v58 = vld [vmem:[#allocation112_spill] sm:$0xff] }
 0x800   :  { %5480 = vmatmul.mubr.f32.vlgmr.msra.gmra.mrb[30].mxu0 %v19155_v36  ;;  %12136 = vmatmul.mubr.f32.vlgmr.msra.gmra.mrb[66].mxu1 %v19155_v36 }
 0x801   :  { %14817 = vmatpush1.bf16.msra.mxu1 %v20934_v50  ;;  %14848 = vmatpush3.bf16.msra.mxu0 %v20935_v47 }
 0x802   :  { %14819 = vmatprep.subr.bf16.mxu1 %v20936_v25  ;;  %14849 = vmatprep.subr.bf16.mxu0 %v20739_v0 }
 0x803   :  { %5642 = vmatprep.mubr.f32.mxu1 %v20740_v22  ;;  %12170 = vmatprep.mubr.msk.f32.mxu0 %vm17063_vm0, %v20740_v22 }
 0x805   :  { %14821 = vmatpush1.bf16.msra.mxu1 %v20937_v27  ;;  %14851 = vmatpush3.bf16.msra.mxu0 %v21000_v34 }
 0x806   :  { %14823 = vmatprep.subr.bf16.mxu1 %v21001_v32  ;;  %14852 = vmatprep.subr.bf16.mxu0 %v20739_v0 }
 0x809   :  { %14825 = vmatpush1.bf16.msra.mxu1 %v21002_v42  ;;  %14854 = vmatpush3.bf16.msra.mxu0 %v21003_v53 }
 0x80a   :  { %14827 = vmatprep.subr.bf16.mxu1 %v21004_v51  ;;  %14855 = vmatprep.subr.bf16.mxu0 %v20739_v0 }
 0x80d   :  { %14829 = vmatpush1.bf16.msra.mxu1 %v21005_v12  ;;  %14857 = vmatpush3.bf16.msra.mxu0 %v21006_v16 }
 0x80e   :  { %14831 = vmatprep.subr.bf16.mxu1 %v21007_v33  ;;  %14858 = vmatprep.subr.bf16.mxu0 %v20739_v0 }
 0x810   :  { %v5147_v23 = vpop.f32.mrb[62].mxu1  ;;  %v5218_v10 = vpop.f32.mrb[70].mxu0 }
 0x811   :  { %v16440_v35 = vadd.f32 %v5147_v23, %v18279_v31  ;;  %v5149_v28 = vpop.f32.mrb[63].mxu1  ;;  %v12067_v1 = vpop.f32.mrb[71].mxu0  ;;  %14833 = vmatpush1.bf16.msra.mxu1 %v20881_v46  ;;  %14860 = vmatpush3.bf16.msra.mxu0 %v21133_v56  ;;  %v21141_v23 = vld [vmem:[#allocation113_spill] sm:$0xff] }
 0x812   :  { %14835 = vmatprep.subr.bf16.mxu1 %v21134_v8  ;;  %14861 = vmatprep.subr.bf16.mxu0 %v20739_v0  ;;  %v16441_v52 = vadd.f32 %v5149_v28, %v21135_v3  ;;  %v21143_v28 = vld [vmem:[#allocation115_spill] sm:$0xff]  ;;  %v21144_v1 = vld [vmem:[#allocation116_spill] sm:$0xff] }
 0x813   :  { %v10008_v2 = vmul.f32 -1.442695, %v16440_v35  ;;  %v21142_v35 = vld [vmem:[#allocation114_spill] sm:$0xff]  ;;  %v21157_v3 = vld [vmem:[#allocation127_spill] sm:$0xff] }
 0x814   :  { %v10009_v26 = vmul.f32 -1.442695, %v16441_v52  ;;  %v21145_v52 = vld [vmem:[#allocation117_spill] sm:$0xff] }
 0x815   :  { %16741 = vpow2.f32 %v10008_v2  ;;  %14837 = vmatpush1.bf16.msra.mxu1 %v21136_v4  ;;  %14863 = vmatpush3.bf16.msra.mxu0 %v21137_v41 }
 0x816   :  { %14839 = vmatprep.subr.bf16.mxu1 %v21138_v20  ;;  %14864 = vmatprep.subr.bf16.mxu0 %v20739_v0  ;;  %16743 = vpow2.f32 %v10009_v26  ;;  %v21147_v26 = vld [vmem:[#allocation119_spill] sm:$0xff] }
 0x819   :  { %14841 = vmatpush1.bf16.msra.mxu1 %v21139_v15  ;;  %14866 = vmatpush3.bf16.msra.mxu0 %v21140_v58  ;;  %v21154_v58 = vld [vmem:[#allocation62_spill] sm:$0xff] }
 0x81a   :  { %14843 = vmatprep.subr.bf16.mxu1 %v21141_v23  ;;  %14867 = vmatprep.subr.bf16.mxu0 %v20739_v0  ;;  %v21146_v23 = vld [vmem:[#allocation118_spill] sm:$0xff]  ;;  %v5236_v15 = vadd.f32 %v21154_v58, %v5218_v10  ;;  %v21161_v10 = vld [vmem:[#allocation131_spill] sm:$0xff] }
 0x81d   :  { %14845 = vmatpush1.bf16.msra.mxu1 %v21142_v35  ;;  %14869 = vmatpush3.bf16.msra.mxu0 %v21143_v28  ;;  %v21150_v35 = vld [vmem:[#allocation122_spill] sm:$0xff] }
 0x81e   :  { %14871 = vmatprep.subr.bf16.mxu1 %v21144_v1  ;;  %14902 = vmatprep.subr.bf16.mxu0 %v20739_v0  ;;  %v21148_v1 = vld [vmem:[#allocation120_spill] sm:$0xff] }
 0x81f   :  { %v16742_v2 = vpop.eup %16741 }
 0x820   :  { %v5226_v20 = vadd.f32 1.0, %v16742_v2  ;;  %5643 = vmatmul.mubr.f32.vlgmr.msra.gmra.mrb[68].mxu1 %v19155_v36  ;;  %12171 = vmatmul.mubr.f32.vlgmr.msra.gmra.mrb[72].mxu0 %v19155_v36  ;;  %v21149_v2 = vld [vmem:[#allocation121_spill] sm:$0xff]  ;;  %v16744_v28 = vpop.eup %16743 }
 0x821   :  { %14873 = vmatpush1.bf16.msra.mxu1 %v21145_v52  ;;  %14904 = vmatpush3.bf16.msra.mxu0 %v21146_v23  ;;  %v5233_v23 = vadd.f32 1.0, %v16744_v28  ;;  %v21153_v52 = vld [vmem:[#allocation125_spill] sm:$0xff]  ;;  %v21158_v28 = vld [vmem:[#allocation128_spill] sm:$0xff] }
 0x822   :  { %16745 = vrcp.f32 %v5226_v20  ;;  %14875 = vmatprep.subr.bf16.mxu1 %v21147_v26  ;;  %14905 = vmatprep.subr.bf16.mxu0 %v20739_v0  ;;  %v21151_v20 = vld [vmem:[#allocation123_spill] sm:$0xff]  ;;  %v21152_v26 = vld [vmem:[#allocation124_spill] sm:$0xff] }
 0x823   :  { %5783 = vmatprep.mubr.f32.mxu1 %v20740_v22  ;;  %12205 = vmatprep.mubr.msk.f32.mxu0 %vm17063_vm0, %v20740_v22  ;;  %16747 = vrcp.f32 %v5233_v23  ;;  %v21165_v23 = vld [vmem:[#allocation135_spill] sm:$0xff] }
 0x825   :  { %14877 = vmatpush1.bf16.msra.mxu1 %v21148_v1  ;;  %14907 = vmatpush3.bf16.msra.mxu0 %v21149_v2  ;;  %v21155_v1 = vld [vmem:[#allocation70_spill] sm:$0xff] }
 0x826   :  { %14879 = vmatprep.subr.bf16.mxu1 %v21150_v35  ;;  %14908 = vmatprep.subr.bf16.mxu0 %v20739_v0  ;;  %v5078_v2 = vadd.f32 %v19138_v43, %v21155_v1  ;;  %v21156_v35 = vld [vmem:[#allocation126_spill] sm:$0xff]  ;;  %v21162_v43 = vld [vmem:[#allocation132_spill] sm:$0xff] }
 0x829   :  { %14881 = vmatpush1.bf16.msra.mxu1 %v21151_v20  ;;  %14910 = vmatpush3.bf16.msra.mxu0 %v21152_v26  ;;  %v21160_v20 = vld [vmem:[#allocation130_spill] sm:$0xff] }
 0x82a   :  { %14883 = vmatprep.subr.bf16.mxu1 %v21153_v52  ;;  %14911 = vmatprep.subr.bf16.mxu0 %v20739_v0  ;;  %v21159_v52 = vld [vmem:[#allocation129_spill] sm:$0xff] }
 0x82c   :  { %v16746_v41 = vpop.eup %16745 }
 0x82d   :  { %v5237_v4 = vmul.f32 %v16746_v41, %v5236_v15  ;;  %14885 = vmatpush1.bf16.msra.mxu1 %v21156_v35  ;;  %14913 = vmatpush3.bf16.msra.mxu0 %v21157_v3  ;;  %v21163_v41 = vld [vmem:[#allocation133_spill] sm:$0xff]  ;;  %v21164_v15 = vld [vmem:[#allocation134_spill] sm:$0xff]  ;;  %v16748_v58 = vpop.eup %16747  ;;  %v21171_v3 = vld [vmem:[#allocation32_spill] sm:$0xff] }
 0x82e   :  { %14887 = vmatprep.subr.bf16.mxu1 %v21158_v28  ;;  %14914 = vmatprep.subr.bf16.mxu0 %v20739_v0  ;;  %v21169_v28 = vld [vmem:[#allocation138_spill] sm:$0xff] }
 0x82f   :  { %v5238_v26 = vadd.f32 %v5237_v4, %v5078_v2  ;;  %v21166_v4 = vld [vmem:[#allocation136_spill] sm:$0xff]  ;;  %v5240_v2 = vsub.f32 1.0, %v16748_v58 }
 0x831   :  { %16749 = vtanh.f32 %v5238_v26  ;;  %14889 = vmatpush1.bf16.msra.mxu1 %v21159_v52  ;;  %14916 = vmatpush3.bf16.msra.mxu0 %v21160_v20  ;;  %v21167_v26 = vld [vmem:[#allocation137_spill] sm:$0xff]  ;;  %v21168_v52 = vld [vmem:[#allocation72_spill] sm:$0xff] }
 0x832   :  { %14891 = vmatprep.subr.bf16.mxu1 %v21161_v10  ;;  %14917 = vmatprep.subr.bf16.mxu0 %v20739_v0 }
 0x835   :  { %14893 = vmatpush1.bf16.msra.mxu1 %v21162_v43  ;;  %14919 = vmatpush3.bf16.msra.mxu0 %v21163_v41  ;;  %v5242_v43 = vmul.f32 %v16748_v58, %v21168_v52  ;;  %v21170_v41 = vld [vmem:[#allocation139_spill] sm:$0xff] }
 0x836   :  { %14895 = vmatprep.subr.bf16.mxu1 %v21164_v15  ;;  %14920 = vmatprep.subr.bf16.mxu0 %v20739_v0 }
 0x839   :  { %14897 = vmatpush1.bf16.msra.mxu1 %v21165_v23  ;;  %14922 = vmatpush3.bf16.msra.mxu0 %v21166_v4 }
 0x83a   :  { %14899 = vmatprep.subr.bf16.mxu1 %v21167_v26  ;;  %14923 = vmatprep.subr.bf16.mxu0 %v20739_v0 }
 0x83b   :  { %v16750_v10 = vpop.eup %16749 }
 0x83c   :  { %v5241_v20 = vmul.f32 %v16750_v10, %v5240_v2  ;;  %v21172_v10 = vld [vmem:[#allocation87_spill] sm:$0xff] }
 0x83d   :  { %14901 = vmatpush1.bf16.msra.mxu1 %v21169_v28  ;;  %14925 = vmatpush3.bf16.msra.mxu0 %v21170_v41 }
 0x83e   :  { %v19237_v15 = vadd.f32 %v5242_v43, %v5241_v20  ;;  %14927 = vmatprep.subr.bf16.mxu0 %v21171_v3  ;;  %14958 = vmatprep.subr.bf16.mxu1 %v20739_v0 }
 0x840   :  { %5784 = vmatmul.mubr.f32.vlgmr.msra.gmra.mrb[68].mxu1 %v19237_v15  ;;  %12206 = vmatmul.mubr.f32.vlgmr.msra.gmra.mrb[74].mxu0 %v19237_v15 }
 0x841   :  { %14929 = vmatpush1.bf16.msra.mxu0 %v17730_v29  ;;  %14960 = vmatpush3.bf16.msra.mxu1 %v17713_v6 }
 0x842   :  { %14931 = vmatprep.subr.bf16.mxu0 %v17732_v30  ;;  %14961 = vmatprep.subr.bf16.mxu1 %v20739_v0 }
 0x843   :  { %5950 = vmatprep.mubr.f32.mxu0 %v20740_v22  ;;  %12240 = vmatprep.mubr.msk.f32.mxu1 %vm17063_vm0, %v20740_v22 }
 0x845   :  { %14933 = vmatpush1.bf16.msra.mxu0 %v17740_v45  ;;  %14963 = vmatpush3.bf16.msra.mxu1 %v17719_v11 }
 0x846   :  { %14935 = vmatprep.subr.bf16.mxu0 %v17744_v48  ;;  %14964 = vmatprep.subr.bf16.mxu1 %v20739_v0 }
 0x849   :  { %14937 = vmatpush1.bf16.msra.mxu0 %v17751_v60  ;;  %14966 = vmatpush3.bf16.msra.mxu1 %v17726_v24 }
 0x84a   :  { %14939 = vmatprep.subr.bf16.mxu0 %v17754_v61  ;;  %14967 = vmatprep.subr.bf16.mxu1 %v20739_v0 }
 0x84d   :  { %14941 = vmatpush1.bf16.msra.mxu0 %v17761_v13  ;;  %14969 = vmatpush3.bf16.msra.mxu1 %v17735_v40 }
 0x84e   :  { %14943 = vmatprep.subr.bf16.mxu0 %v17764_v14  ;;  %14970 = vmatprep.subr.bf16.mxu1 %v20739_v0 }
 0x851   :  { %14945 = vmatpush1.bf16.msra.mxu0 %v17771_v38  ;;  %14972 = vmatpush3.bf16.msra.mxu1 %v17747_v55  ;;  %v21173_v55 = vld [vmem:[#allocation68_spill] sm:$0xff] }
 0x852   :  { %14947 = vmatprep.subr.bf16.mxu0 %v17774_v39  ;;  %14973 = vmatprep.subr.bf16.mxu1 %v20739_v0 }
 0x855   :  { %14949 = vmatpush1.bf16.msra.mxu0 %v17781_v54  ;;  %14975 = vmatpush3.bf16.msra.mxu1 %v17757_v7 }
 0x856   :  { %14951 = vmatprep.subr.bf16.mxu0 %v17784_v57  ;;  %14976 = vmatprep.subr.bf16.mxu1 %v20739_v0 }
 0x859   :  { %14953 = vmatpush1.bf16.msra.mxu0 %v17789_v5  ;;  %14978 = vmatpush3.bf16.msra.mxu1 %v20800_v44 }
 0x85a   :  { %14955 = vmatprep.subr.bf16.mxu0 %v20801_v21  ;;  %14979 = vmatprep.subr.bf16.mxu1 %v20739_v0 }
 0x85d   :  { %14957 = vmatpush1.bf16.msra.mxu0 %v20802_v63  ;;  %14981 = vmatpush3.bf16.msra.mxu1 %v20867_v9 }
 0x85e   :  { %14983 = vmatprep.subr.bf16.mxu1 %v20933_v62  ;;  %15014 = vmatprep.subr.bf16.mxu0 %v20739_v0 }
 0x8b3   :  { %v5314_v52 = vpop.f32.mrb[14].mxu0  ;;  %v5385_v20 = vpop.f32.mrb[64].mxu1 }
 0x8b4   :  { %v16396_v43 = vadd.f32 %v5314_v52, %v21172_v10  ;;  %v5316_v58 = vpop.f32.mrb[15].mxu0  ;;  %v12102_v2 = vpop.f32.mrb[65].mxu1  ;;  %v5403_v62 = vadd.f32 %v18929_v17, %v5385_v20 }
 0x8b5   :  { %v16397_v44 = vadd.f32 %v5316_v58, %v21130_v18 }
 0x8b6   :  { %v10010_v5 = vmul.f32 -1.442695, %v16396_v43 }
 0x8b7   :  { %v10011_v21 = vmul.f32 -1.442695, %v16397_v44 }
 0x8b8   :  { %16751 = vpow2.f32 %v10010_v5 }
 0x8b9   :  { %16753 = vpow2.f32 %v10011_v21 }
 0x8c2   :  { %v16752_v57 = vpop.eup %16751 }
 0x8c3   :  { %v5393_v63 = vadd.f32 1.0, %v16752_v57  ;;  %v16754_v9 = vpop.eup %16753 }
 0x8c4   :  { %v5400_v7 = vadd.f32 1.0, %v16754_v9 }
 0x8c5   :  { %16755 = vrcp.f32 %v5393_v63 }
 0x8c6   :  { %16757 = vrcp.f32 %v5400_v7 }
 0x8cf   :  { %v16756_v54 = vpop.eup %16755 }
 0x8d0   :  { %v5404_v39 = vmul.f32 %v16756_v54, %v5403_v62  ;;  %v16758_v63 = vpop.eup %16757 }
 0x8d1   :  { %v5407_v43 = vsub.f32 1.0, %v16758_v63  ;;  %v5409_v7 = vmul.f32 %v16758_v63, %v19113_v19 }
 0x8d2   :  { %v5405_v52 = vadd.f32 %v5404_v39, %v21173_v55 }
 0x8d3   :  { %v5481_v10 = vpop.f32.mrb[30].mxu0  ;;  %v5552_v2 = vpop.f32.mrb[66].mxu1 }
 0x8d4   :  { %16759 = vtanh.f32 %v5405_v52  ;;  %v16412_v18 = vadd.f32 %v5481_v10, %v17942_v49  ;;  %v5483_v5 = vpop.f32.mrb[31].mxu0  ;;  %v12137_v44 = vpop.f32.mrb[67].mxu1  ;;  %v5570_v52 = vadd.f32 %v18958_v37, %v5552_v2 }
 0x8d5   :  { %v16413_v57 = vadd.f32 %v5483_v5, %v17945_v59  ;;  %v21174_v5 = vld [vmem:[#allocation75_spill] sm:$0xff] }
 0x8d6   :  { %v10012_v21 = vmul.f32 -1.442695, %v16412_v18 }
 0x8d7   :  { %v10013_v9 = vmul.f32 -1.442695, %v16413_v57 }
 0x8d8   :  { %16761 = vpow2.f32 %v10012_v21 }
 0x8d9   :  { %16763 = vpow2.f32 %v10013_v9 }
 0x8de   :  { %v16760_v17 = vpop.eup %16759 }
 0x8df   :  { %v5408_v20 = vmul.f32 %v16760_v17, %v5407_v43 }
 0x8e1   :  { %v5410_v55 = vadd.f32 %v5409_v7, %v5408_v20 }
 0x8e2   :  { %v16762_v39 = vpop.eup %16761 }
 0x8e3   :  { %9954 = vst [vmem:[%s20395_s14] sm:$0xff] %v5410_v55  ;;  %v5560_v54 = vadd.f32 1.0, %v16762_v39  ;;  %v16764_v62 = vpop.eup %16763 }
 0x8e4   :  { %v5567_v58 = vadd.f32 1.0, %v16764_v62 }
 0x8e5   :  { %16765 = vrcp.f32 %v5560_v54  ;;  %v21175_v54 = vld [vmem:[#allocation89_spill] sm:$0xff] }
 0x8e6   :  { %16767 = vrcp.f32 %v5567_v58  ;;  %v21176_v58 = vld [vmem:[#allocation108_spill] sm:$0xff] }
 0x8ef   :  { %v16766_v10 = vpop.eup %16765 }
 0x8f0   :  { %v5571_v18 = vmul.f32 %v16766_v10, %v5570_v52  ;;  %v16768_v57 = vpop.eup %16767  ;;  %v21177_v52 = vld [vmem:[#allocation109_spill] sm:$0xff]  ;;  %v21178_v10 = vld [vmem:[#allocation110_spill] sm:$0xff] }
 0x8f1   :  { %v5574_v63 = vsub.f32 1.0, %v16768_v57  ;;  %v5576_v17 = vmul.f32 %v16768_v57, %v19155_v36  ;;  %v21182_v57 = vld [vmem:[#allocation114_spill] sm:$0xff] }
 0x8f2   :  { %v5572_v44 = vadd.f32 %v5571_v18, %v21174_v5  ;;  %v21179_v5 = vld [vmem:[#allocation111_spill] sm:$0xff] }
 0x8f3   :  { %v19290_v21 = vpop.f32.mrb[72].mxu0 }
 0x8f4   :  { %16769 = vtanh.f32 %v5572_v44  ;;  %v12172_v19 = vpop.f32.mrb[73].mxu0  ;;  %v21180_v44 = vld [vmem:[#allocation112_spill] sm:$0xff] }
 0x8f5   :  { %v21181_v19 = vld [vmem:[#allocation113_spill] sm:$0xff] }
 0x8fe   :  { %v16770_v9 = vpop.eup %16769 }
 0x8ff   :  { %v5575_v43 = vmul.f32 %v16770_v9, %v5574_v63  ;;  %v21183_v63 = vld [vmem:[#allocation115_spill] sm:$0xff]  ;;  %v21184_v9 = vld [vmem:[#allocation116_spill] sm:$0xff] }
 0x901   :  { %v19293_v20 = vadd.f32 %v5576_v17, %v5575_v43 }
 0x903   :  { %5951 = vmatmul.mubr.f32.vlgmr.msra.gmra.mrb[32].mxu0 %v19293_v20  ;;  %12241 = vmatmul.mubr.f32.vlgmr.msra.gmra.mrb[70].mxu1 %v19293_v20 }
 0x904   :  { %14985 = vmatpush1.bf16.msra.mxu1 %v20934_v50  ;;  %15016 = vmatpush3.bf16.msra.mxu0 %v20935_v47 }
 0x905   :  { %14987 = vmatprep.subr.bf16.mxu1 %v20936_v25  ;;  %15017 = vmatprep.subr.bf16.mxu0 %v20739_v0 }
 0x906   :  { %6113 = vmatprep.mubr.f32.mxu1 %v20740_v22  ;;  %12275 = vmatprep.mubr.msk.f32.mxu0 %vm17063_vm0, %v20740_v22 }
 0x908   :  { %14989 = vmatpush1.bf16.msra.mxu1 %v20937_v27  ;;  %15019 = vmatpush3.bf16.msra.mxu0 %v21000_v34 }
 0x909   :  { %14991 = vmatprep.subr.bf16.mxu1 %v21001_v32  ;;  %15020 = vmatprep.subr.bf16.mxu0 %v20739_v0 }
 0x90c   :  { %14993 = vmatpush1.bf16.msra.mxu1 %v21002_v42  ;;  %15022 = vmatpush3.bf16.msra.mxu0 %v21003_v53 }
 0x90d   :  { %14995 = vmatprep.subr.bf16.mxu1 %v21004_v51  ;;  %15023 = vmatprep.subr.bf16.mxu0 %v20739_v0 }
 0x910   :  { %14997 = vmatpush1.bf16.msra.mxu1 %v21005_v12  ;;  %15025 = vmatpush3.bf16.msra.mxu0 %v21006_v16 }
 0x911   :  { %14999 = vmatprep.subr.bf16.mxu1 %v21007_v33  ;;  %15026 = vmatprep.subr.bf16.mxu0 %v20739_v0 }
 0x913   :  { %v5785_v37 = vpop.f32.mrb[68].mxu1  ;;  %v5856_v36 = vpop.f32.mrb[74].mxu0 }
 0x914   :  { %v16442_v2 = vadd.f32 %v5785_v37, %v18279_v31  ;;  %15001 = vmatpush1.bf16.msra.mxu1 %v20881_v46  ;;  %15028 = vmatpush3.bf16.msra.mxu0 %v21133_v56  ;;  %v5787_v7 = vpop.f32.mrb[69].mxu1  ;;  %v12207_v55 = vpop.f32.mrb[75].mxu0  ;;  %v21185_v37 = vld [vmem:[#allocation117_spill] sm:$0xff] }
 0x915   :  { %15003 = vmatprep.subr.bf16.mxu1 %v21134_v8  ;;  %15029 = vmatprep.subr.bf16.mxu0 %v20739_v0  ;;  %v16443_v62 = vadd.f32 %v5787_v7, %v21175_v54  ;;  %v21187_v7 = vld [vmem:[#allocation119_spill] sm:$0xff]  ;;  %v21188_v55 = vld [vmem:[#allocation120_spill] sm:$0xff] }
 0x916   :  { %v10014_v39 = vmul.f32 -1.442695, %v16442_v2  ;;  %v21186_v2 = vld [vmem:[#allocation118_spill] sm:$0xff] }
 0x917   :  { %v10015_v18 = vmul.f32 -1.442695, %v16443_v62 }
 0x918   :  { %16771 = vpow2.f32 %v10014_v39  ;;  %15005 = vmatpush1.bf16.msra.mxu1 %v21176_v58  ;;  %15031 = vmatpush3.bf16.msra.mxu0 %v21177_v52  ;;  %v21189_v39 = vld [vmem:[#allocation121_spill] sm:$0xff] }
 0x919   :  { %15007 = vmatprep.subr.bf16.mxu1 %v21178_v10  ;;  %15032 = vmatprep.subr.bf16.mxu0 %v20739_v0  ;;  %16773 = vpow2.f32 %v10015_v18  ;;  %v21190_v18 = vld [vmem:[#allocation122_spill] sm:$0xff] }
 0x91c   :  { %15009 = vmatpush1.bf16.msra.mxu1 %v21179_v5  ;;  %15034 = vmatpush3.bf16.msra.mxu0 %v21180_v44 }
 0x91d   :  { %15011 = vmatprep.subr.bf16.mxu1 %v21181_v19  ;;  %15035 = vmatprep.subr.bf16.mxu0 %v20739_v0 }
 0x920   :  { %15013 = vmatpush1.bf16.msra.mxu1 %v21182_v57  ;;  %15037 = vmatpush3.bf16.msra.mxu0 %v21183_v63  ;;  %v21197_v63 = vld [vmem:[#allocation130_spill] sm:$0xff] }
 0x921   :  { %15039 = vmatprep.subr.bf16.mxu1 %v21184_v9  ;;  %15070 = vmatprep.subr.bf16.mxu0 %v20739_v0  ;;  %v21196_v9 = vld [vmem:[#allocation129_spill] sm:$0xff] }
 0x922   :  { %v16772_v43 = vpop.eup %16771 }
 0x923   :  { %v5864_v17 = vadd.f32 1.0, %v16772_v43  ;;  %6114 = vmatmul.mubr.f32.vlgmr.msra.gmra.mrb[72].mxu1 %v19293_v20  ;;  %12276 = vmatmul.mubr.f32.vlgmr.msra.gmra.mrb[76].mxu0 %v19293_v20  ;;  %v16774_v62 = vpop.eup %16773 }
 0x924   :  { %15041 = vmatpush1.bf16.msra.mxu1 %v21185_v37  ;;  %15072 = vmatpush3.bf16.msra.mxu0 %v21186_v2  ;;  %v5871_v43 = vadd.f32 1.0, %v16774_v62  ;;  %v21193_v2 = vld [vmem:[#allocation125_spill] sm:$0xff] }
 0x925   :  { %16775 = vrcp.f32 %v5864_v17  ;;  %15043 = vmatprep.subr.bf16.mxu1 %v21187_v7  ;;  %15073 = vmatprep.subr.bf16.mxu0 %v20739_v0  ;;  %v21191_v17 = vld [vmem:[#allocation123_spill] sm:$0xff]  ;;  %v21192_v7 = vld [vmem:[#allocation124_spill] sm:$0xff] }
 0x926   :  { %6254 = vmatprep.mubr.f32.mxu1 %v20740_v22  ;;  %12310 = vmatprep.mubr.msk.f32.mxu0 %vm17063_vm0, %v20740_v22  ;;  %16777 = vrcp.f32 %v5871_v43 }
 0x928   :  { %15045 = vmatpush1.bf16.msra.mxu1 %v21188_v55  ;;  %15075 = vmatpush3.bf16.msra.mxu0 %v21189_v39  ;;  %v19354_v55 = vld [vmem:[%s20394_s13] ss:$0 sm:$0xff] }
 0x929   :  { %15047 = vmatprep.subr.bf16.mxu1 %v21190_v18  ;;  %15076 = vmatprep.subr.bf16.mxu0 %v20739_v0  ;;  %v5874_v39 = vadd.f32 %v19354_v55, %v5856_v36  ;;  %v5716_v18 = vadd.f32 %v19290_v21, %v21155_v1  ;;  %v21198_v36 = vld [vmem:[#allocation131_spill] sm:$0xff]  ;;  %v21199_v21 = vld [vmem:[#allocation132_spill] sm:$0xff] }
 0x92c   :  { %15049 = vmatpush1.bf16.msra.mxu1 %v21191_v17  ;;  %15078 = vmatpush3.bf16.msra.mxu0 %v21192_v7  ;;  %v21194_v7 = vld [vmem:[#allocation127_spill] sm:$0xff] }
 0x92d   :  { %15051 = vmatprep.subr.bf16.mxu1 %v21193_v2  ;;  %15079 = vmatprep.subr.bf16.mxu0 %v20739_v0  ;;  %v21195_v2 = vld [vmem:[#allocation128_spill] sm:$0xff] }
 0x92f   :  { %v16776_v37 = vpop.eup %16775 }
 0x930   :  { %v5875_v62 = vmul.f32 %v16776_v37, %v5874_v39  ;;  %15053 = vmatpush1.bf16.msra.mxu1 %v21156_v35  ;;  %15081 = vmatpush3.bf16.msra.mxu0 %v21194_v7  ;;  %v21200_v37 = vld [vmem:[#allocation133_spill] sm:$0xff]  ;;  %v21201_v39 = vld [vmem:[#allocation134_spill] sm:$0xff]  ;;  %v16778_v43 = vpop.eup %16777 }
 0x931   :  { %15055 = vmatprep.subr.bf16.mxu1 %v21195_v2  ;;  %15082 = vmatprep.subr.bf16.mxu0 %v20739_v0 }
 0x932   :  { %v5876_v17 = vadd.f32 %v5875_v62, %v5716_v18  ;;  %v5878_v18 = vsub.f32 1.0, %v16778_v43 }
 0x934   :  { %16779 = vtanh.f32 %v5876_v17  ;;  %15057 = vmatpush1.bf16.msra.mxu1 %v21196_v9  ;;  %15084 = vmatpush3.bf16.msra.mxu0 %v21197_v63 }
 0x935   :  { %15059 = vmatprep.subr.bf16.mxu1 %v21198_v36  ;;  %15085 = vmatprep.subr.bf16.mxu0 %v20739_v0 }
 0x938   :  { %15061 = vmatpush1.bf16.msra.mxu1 %v21199_v21  ;;  %15087 = vmatpush3.bf16.msra.mxu0 %v21200_v37  ;;  %v5880_v21 = vmul.f32 %v16778_v43, %v19237_v15  ;;  %v21202_v15 = vld [vmem:[#allocation47_spill] sm:$0xff]  ;;  %v21204_v43 = vld [vmem:[#allocation57_spill] sm:$0xff] }
 0x939   :  { %15063 = vmatprep.subr.bf16.mxu1 %v21201_v39  ;;  %15088 = vmatprep.subr.bf16.mxu0 %v20739_v0 }
 0x93c   :  { %15065 = vmatpush1.bf16.msra.mxu1 %v21165_v23  ;;  %15090 = vmatpush3.bf16.msra.mxu0 %v21166_v4 }
 0x93d   :  { %15067 = vmatprep.subr.bf16.mxu1 %v21167_v26  ;;  %15091 = vmatprep.subr.bf16.mxu0 %v20739_v0 }
 0x93e   :  { %v16780_v17 = vpop.eup %16779 }
 0x93f   :  { %v5879_v62 = vmul.f32 %v16780_v17, %v5878_v18  ;;  %v21205_v18 = vld [vmem:[#allocation50_spill] sm:$0xff] }
 0x940   :  { %15069 = vmatpush1.bf16.msra.mxu1 %v21169_v28  ;;  %15093 = vmatpush3.bf16.msra.mxu0 %v21170_v41  ;;  %v21206_v17 = vld [vmem:[#allocation58_spill] sm:$0xff] }
 0x941   :  { %v19378_v39 = vadd.f32 %v5880_v21, %v5879_v62  ;;  %15095 = vmatprep.subr.bf16.mxu0 %v21171_v3  ;;  %15126 = vmatprep.subr.bf16.mxu1 %v20739_v0  ;;  %v21203_v21 = vld [vmem:[#allocation55_spill] sm:$0xff] }
 0x942   :  { %v21207_v62 = vld [vmem:[#allocation59_spill] sm:$0xff] }
 0x943   :  { %6255 = vmatmul.mubr.f32.vlgmr.msra.gmra.mrb[72].mxu1 %v19378_v39  ;;  %12311 = vmatmul.mubr.f32.vlgmr.msra.gmra.mrb[78].mxu0 %v19378_v39 }
 0x944   :  { %15097 = vmatpush1.bf16.msra.mxu0 %v17730_v29  ;;  %15128 = vmatpush3.bf16.msra.mxu1 %v17713_v6 }
 0x945   :  { %15099 = vmatprep.subr.bf16.mxu0 %v17732_v30  ;;  %15129 = vmatprep.subr.bf16.mxu1 %v20739_v0 }
 0x946   :  { %6421 = vmatprep.mubr.f32.mxu0 %v20740_v22  ;;  %12345 = vmatprep.mubr.msk.f32.mxu1 %vm17063_vm0, %v20740_v22 }
 0x948   :  { %15101 = vmatpush1.bf16.msra.mxu0 %v17740_v45  ;;  %15131 = vmatpush3.bf16.msra.mxu1 %v17719_v11 }
 0x949   :  { %15103 = vmatprep.subr.bf16.mxu0 %v17744_v48  ;;  %15132 = vmatprep.subr.bf16.mxu1 %v20739_v0 }
 0x94c   :  { %15105 = vmatpush1.bf16.msra.mxu0 %v17751_v60  ;;  %15134 = vmatpush3.bf16.msra.mxu1 %v17726_v24 }
 0x94d   :  { %15107 = vmatprep.subr.bf16.mxu0 %v17754_v61  ;;  %15135 = vmatprep.subr.bf16.mxu1 %v20739_v0 }
 0x950   :  { %15109 = vmatpush1.bf16.msra.mxu0 %v17761_v13  ;;  %15137 = vmatpush3.bf16.msra.mxu1 %v17735_v40  ;;  %v21209_v40 = vld [vmem:[#allocation60_spill] sm:$0xff] }
 0x951   :  { %15111 = vmatprep.subr.bf16.mxu0 %v17764_v14  ;;  %15138 = vmatprep.subr.bf16.mxu1 %v20739_v0  ;;  %v21208_v14 = vld [vmem:[#allocation53_spill] sm:$0xff] }
 0x954   :  { %15113 = vmatpush1.bf16.msra.mxu0 %v17771_v38  ;;  %15140 = vmatpush3.bf16.msra.mxu1 %v21202_v15  ;;  %v21210_v15 = vld [vmem:[#allocation61_spill] sm:$0xff]  ;;  %v21212_v38 = vld [vmem:[#allocation92_spill] sm:$0xff] }
 0x955   :  { %15115 = vmatprep.subr.bf16.mxu0 %v21203_v21  ;;  %15141 = vmatprep.subr.bf16.mxu1 %v20739_v0  ;;  %v21211_v21 = vld [vmem:[#allocation56_spill] sm:$0xff] }
 0x958   :  { %15117 = vmatpush1.bf16.msra.mxu0 %v21204_v43  ;;  %15143 = vmatpush3.bf16.msra.mxu1 %v21205_v18 }
 0x959   :  { %15119 = vmatprep.subr.bf16.mxu0 %v21206_v17  ;;  %15144 = vmatprep.subr.bf16.mxu1 %v20739_v0 }
 0x95c   :  { %15121 = vmatpush1.bf16.msra.mxu0 %v21207_v62  ;;  %15146 = vmatpush3.bf16.msra.mxu1 %v21208_v14 }
 0x95d   :  { %15123 = vmatprep.subr.bf16.mxu0 %v21209_v40  ;;  %15147 = vmatprep.subr.bf16.mxu1 %v20739_v0 }
 0x960   :  { %15125 = vmatpush1.bf16.msra.mxu0 %v21210_v15  ;;  %15149 = vmatpush3.bf16.msra.mxu1 %v21211_v21 }
 0x961   :  { %15151 = vmatprep.subr.bf16.mxu1 %v21212_v38  ;;  %15182 = vmatprep.subr.bf16.mxu0 %v20739_v0  ;;  %v19424_v38 = vld [vmem:[%s20390_s9] ss:$0 sm:$0xff] }
 0x9d6   :  { %v5952_v18 = vpop.f32.mrb[32].mxu0  ;;  %v6023_v17 = vpop.f32.mrb[70].mxu1 }
 0x9d7   :  { %v16414_v43 = vadd.f32 %v5952_v18, %v17942_v49  ;;  %v5954_v13 = vpop.f32.mrb[33].mxu0  ;;  %v12242_v62 = vpop.f32.mrb[71].mxu1  ;;  %v6041_v18 = vadd.f32 %v19424_v38, %v6023_v17 }
 0x9d8   :  { %v16415_v14 = vadd.f32 %v5954_v13, %v17945_v59 }
 0x9d9   :  { %v10016_v61 = vmul.f32 -1.442695, %v16414_v43  ;;  %v21213_v43 = vld [vmem:[#allocation78_spill] sm:$0xff] }
 0x9da   :  { %v10017_v40 = vmul.f32 -1.442695, %v16415_v14 }
 0x9db   :  { %16781 = vpow2.f32 %v10016_v61 }
 0x9dc   :  { %16783 = vpow2.f32 %v10017_v40 }
 0x9e5   :  { %v16782_v24 = vpop.eup %16781 }
 0x9e6   :  { %v6031_v15 = vadd.f32 1.0, %v16782_v24  ;;  %v16784_v21 = vpop.eup %16783 }
 0x9e7   :  { %v6038_v60 = vadd.f32 1.0, %v16784_v21 }
 0x9e8   :  { %16785 = vrcp.f32 %v6031_v15 }
 0x9e9   :  { %16787 = vrcp.f32 %v6038_v60 }
 0x9f2   :  { %v16786_v49 = vpop.eup %16785 }
 0x9f3   :  { %v6042_v62 = vmul.f32 %v16786_v49, %v6041_v18  ;;  %v16788_v24 = vpop.eup %16787 }
 0x9f4   :  { %v6045_v14 = vsub.f32 1.0, %v16788_v24  ;;  %v6047_v59 = vmul.f32 %v16788_v24, %v19293_v20 }
 0x9f5   :  { %v6043_v13 = vadd.f32 %v6042_v62, %v21213_v43 }
 0x9f6   :  { %v19428_v61 = vpop.f32.mrb[76].mxu0 }
 0x9f7   :  { %16789 = vtanh.f32 %v6043_v13  ;;  %v12277_v40 = vpop.f32.mrb[77].mxu0  ;;  %v21214_v13 = vld [vmem:[#allocation115_spill] sm:$0xff] }
 0x9f8   :  { %v21215_v40 = vld [vmem:[#allocation116_spill] sm:$0xff] }
 0xa01   :  { %v16790_v15 = vpop.eup %16789 }
 0xa02   :  { %v6046_v21 = vmul.f32 %v16790_v15, %v6045_v14  ;;  %v21216_v15 = vld [vmem:[#allocation117_spill] sm:$0xff] }
 0xa04   :  { %v19431_v48 = vadd.f32 %v6047_v59, %v6046_v21  ;;  %v21217_v21 = vld [vmem:[#allocation118_spill] sm:$0xff] }
 0xa06   :  { %6422 = vmatmul.mubr.f32.vlgmr.msra.gmra.mrb[34].mxu0 %v19431_v48  ;;  %12346 = vmatmul.mubr.f32.vlgmr.msra.gmra.mrb[74].mxu1 %v19431_v48 }
 0xa07   :  { %15153 = vmatpush1.bf16.msra.mxu1 %v20934_v50  ;;  %15184 = vmatpush3.bf16.msra.mxu0 %v20935_v47 }
 0xa08   :  { %15155 = vmatprep.subr.bf16.mxu1 %v20936_v25  ;;  %15185 = vmatprep.subr.bf16.mxu0 %v20739_v0 }
 0xa09   :  { %6584 = vmatprep.mubr.f32.mxu1 %v20740_v22  ;;  %12380 = vmatprep.mubr.msk.f32.mxu0 %vm17063_vm0, %v20740_v22 }
 0xa0b   :  { %15157 = vmatpush1.bf16.msra.mxu1 %v20937_v27  ;;  %15187 = vmatpush3.bf16.msra.mxu0 %v21000_v34 }
 0xa0c   :  { %15159 = vmatprep.subr.bf16.mxu1 %v21001_v32  ;;  %15188 = vmatprep.subr.bf16.mxu0 %v20739_v0 }
 0xa0f   :  { %15161 = vmatpush1.bf16.msra.mxu1 %v21002_v42  ;;  %15190 = vmatpush3.bf16.msra.mxu0 %v21003_v53 }
 0xa10   :  { %15163 = vmatprep.subr.bf16.mxu1 %v21004_v51  ;;  %15191 = vmatprep.subr.bf16.mxu0 %v20739_v0 }
 0xa13   :  { %15165 = vmatpush1.bf16.msra.mxu1 %v21005_v12  ;;  %15193 = vmatpush3.bf16.msra.mxu0 %v21006_v16 }
 0xa14   :  { %15167 = vmatprep.subr.bf16.mxu1 %v21007_v33  ;;  %15194 = vmatprep.subr.bf16.mxu0 %v20739_v0 }
 0xa16   :  { %v6256_v60 = vpop.f32.mrb[72].mxu1  ;;  %v6327_v49 = vpop.f32.mrb[78].mxu0 }
 0xa17   :  { %v16444_v59 = vadd.f32 %v6256_v60, %v18279_v31  ;;  %15169 = vmatpush1.bf16.msra.mxu1 %v20881_v46  ;;  %15196 = vmatpush3.bf16.msra.mxu0 %v21133_v56  ;;  %v6258_v20 = vpop.f32.mrb[73].mxu1  ;;  %v12312_v17 = vpop.f32.mrb[79].mxu0  ;;  %v21218_v60 = vld [vmem:[#allocation119_spill] sm:$0xff] }
 0xa18   :  { %15171 = vmatprep.subr.bf16.mxu1 %v21134_v8  ;;  %15197 = vmatprep.subr.bf16.mxu0 %v20739_v0  ;;  %v16445_v62 = vadd.f32 %v6258_v20, %v21175_v54  ;;  %v21220_v20 = vld [vmem:[#allocation121_spill] sm:$0xff] }
 0xa19   :  { %v10018_v18 = vmul.f32 -1.442695, %v16444_v59  ;;  %v21219_v59 = vld [vmem:[#allocation120_spill] sm:$0xff] }
 0xa1a   :  { %v10019_v43 = vmul.f32 -1.442695, %v16445_v62 }
 0xa1b   :  { %16791 = vpow2.f32 %v10018_v18  ;;  %15173 = vmatpush1.bf16.msra.mxu1 %v21176_v58  ;;  %15199 = vmatpush3.bf16.msra.mxu0 %v21177_v52  ;;  %v21221_v18 = vld [vmem:[#allocation122_spill] sm:$0xff] }
 0xa1c   :  { %15175 = vmatprep.subr.bf16.mxu1 %v21178_v10  ;;  %15200 = vmatprep.subr.bf16.mxu0 %v20739_v0  ;;  %16793 = vpow2.f32 %v10019_v43  ;;  %v21222_v43 = vld [vmem:[#allocation123_spill] sm:$0xff] }
 0xa1f   :  { %15177 = vmatpush1.bf16.msra.mxu1 %v21179_v5  ;;  %15202 = vmatpush3.bf16.msra.mxu0 %v21180_v44 }
 0xa20   :  { %15179 = vmatprep.subr.bf16.mxu1 %v21181_v19  ;;  %15203 = vmatprep.subr.bf16.mxu0 %v20739_v0 }
 0xa23   :  { %15181 = vmatpush1.bf16.msra.mxu1 %v21182_v57  ;;  %15205 = vmatpush3.bf16.msra.mxu0 %v21214_v13 }
 0xa24   :  { %15207 = vmatprep.subr.bf16.mxu1 %v21215_v40  ;;  %15238 = vmatprep.subr.bf16.mxu0 %v20739_v0 }
 0xa25   :  { %v16792_v24 = vpop.eup %16791 }
 0xa26   :  { %v6335_v14 = vadd.f32 1.0, %v16792_v24  ;;  %6585 = vmatmul.mubr.f32.vlgmr.msra.gmra.mrb[76].mxu1 %v19431_v48  ;;  %12381 = vmatmul.mubr.f32.vlgmr.msra.gmra.mrb[80].mxu0 %v19431_v48  ;;  %v16794_v17 = vpop.eup %16793  ;;  %v21223_v24 = vld [vmem:[#allocation124_spill] sm:$0xff] }
 0xa27   :  { %15209 = vmatpush1.bf16.msra.mxu1 %v21216_v15  ;;  %15240 = vmatpush3.bf16.msra.mxu0 %v21217_v21  ;;  %v6342_v62 = vadd.f32 1.0, %v16794_v17 }
 0xa28   :  { %16795 = vrcp.f32 %v6335_v14  ;;  %15211 = vmatprep.subr.bf16.mxu1 %v21218_v60  ;;  %15241 = vmatprep.subr.bf16.mxu0 %v20739_v0  ;;  %v21224_v14 = vld [vmem:[#allocation125_spill] sm:$0xff]  ;;  %v6345_v60 = vadd.f32 %v19354_v55, %v6327_v49  ;;  %v21226_v49 = vld [vmem:[#allocation134_spill] sm:$0xff] }
 0xa29   :  { %6725 = vmatprep.mubr.f32.mxu1 %v20740_v22  ;;  %12415 = vmatprep.mubr.msk.f32.mxu0 %vm17063_vm0, %v20740_v22  ;;  %16797 = vrcp.f32 %v6342_v62 }
 0xa2b   :  { %15213 = vmatpush1.bf16.msra.mxu1 %v21219_v59  ;;  %15243 = vmatpush3.bf16.msra.mxu0 %v21220_v20  ;;  %v6187_v20 = vadd.f32 %v19428_v61, %v21155_v1  ;;  %v21225_v61 = vld [vmem:[#allocation132_spill] sm:$0xff] }
 0xa2c   :  { %15215 = vmatprep.subr.bf16.mxu1 %v21221_v18  ;;  %15244 = vmatprep.subr.bf16.mxu0 %v20739_v0 }
 0xa2f   :  { %15217 = vmatpush1.bf16.msra.mxu1 %v21222_v43  ;;  %15246 = vmatpush3.bf16.msra.mxu0 %v21223_v24 }
 0xa30   :  { %15219 = vmatprep.subr.bf16.mxu1 %v21224_v14  ;;  %15247 = vmatprep.subr.bf16.mxu0 %v20739_v0 }
 0xa32   :  { %v16796_v21 = vpop.eup %16795 }
 0xa33   :  { %v6346_v59 = vmul.f32 %v16796_v21, %v6345_v60  ;;  %15221 = vmatpush1.bf16.msra.mxu1 %v21156_v35  ;;  %15249 = vmatpush3.bf16.msra.mxu0 %v21194_v7  ;;  %v16798_v21 = vpop.eup %16797 }
 0xa34   :  { %15223 = vmatprep.subr.bf16.mxu1 %v21195_v2  ;;  %15250 = vmatprep.subr.bf16.mxu0 %v20739_v0  ;;  %v6349_v60 = vsub.f32 1.0, %v16798_v21  ;;  %v6351_v62 = vmul.f32 %v16798_v21, %v19378_v39  ;;  %v21228_v39 = vld [vmem:[#allocation46_spill] sm:$0xff]  ;;  %v21229_v21 = vld [vmem:[#allocation48_spill] sm:$0xff] }
 0xa35   :  { %v6347_v17 = vadd.f32 %v6346_v59, %v6187_v20 }
 0xa37   :  { %16799 = vtanh.f32 %v6347_v17  ;;  %15225 = vmatpush1.bf16.msra.mxu1 %v21196_v9  ;;  %15252 = vmatpush3.bf16.msra.mxu0 %v21197_v63 }
 0xa38   :  { %15227 = vmatprep.subr.bf16.mxu1 %v21198_v36  ;;  %15253 = vmatprep.subr.bf16.mxu0 %v20739_v0 }
 0xa3b   :  { %15229 = vmatpush1.bf16.msra.mxu1 %v21225_v61  ;;  %15255 = vmatpush3.bf16.msra.mxu0 %v21200_v37 }
 0xa3c   :  { %15231 = vmatprep.subr.bf16.mxu1 %v21226_v49  ;;  %15256 = vmatprep.subr.bf16.mxu0 %v20739_v0 }
 0xa3f   :  { %15233 = vmatpush1.bf16.msra.mxu1 %v21165_v23  ;;  %15258 = vmatpush3.bf16.msra.mxu0 %v21166_v4  ;;  %v21249_v23 = vld [vmem:[#allocation77_spill] sm:$0xff] }
 0xa40   :  { %15235 = vmatprep.subr.bf16.mxu1 %v21167_v26  ;;  %15259 = vmatprep.subr.bf16.mxu0 %v20739_v0 }
 0xa41   :  { %v16800_v59 = vpop.eup %16799 }
 0xa42   :  { %v6350_v20 = vmul.f32 %v16800_v59, %v6349_v60  ;;  %v21230_v60 = vld [vmem:[#allocation41_spill] sm:$0xff] }
 0xa43   :  { %15237 = vmatpush1.bf16.msra.mxu1 %v21169_v28  ;;  %15261 = vmatpush3.bf16.msra.mxu0 %v21170_v41  ;;  %v21231_v59 = vld [vmem:[#allocation49_spill] sm:$0xff] }
 0xa44   :  { %v19511_v17 = vadd.f32 %v6351_v62, %v6350_v20  ;;  %15263 = vmatprep.subr.bf16.mxu0 %v21171_v3  ;;  %15294 = vmatprep.subr.bf16.mxu1 %v20739_v0  ;;  %v21232_v20 = vld [vmem:[#allocation51_spill] sm:$0xff]  ;;  %v21233_v62 = vld [vmem:[#allocation44_spill] sm:$0xff] }
 0xa46   :  { %21227 = vst [vmem:[#allocation105_spill] sm:$0xff] %v19511_v17  ;;  %6726 = vmatmul.mubr.f32.vlgmr.msra.gmra.mrb[76].mxu1 %v19511_v17  ;;  %12416 = vmatmul.mubr.f32.vlgmr.msra.gmra.mrb[82].mxu0 %v19511_v17 }
 0xa47   :  { %15265 = vmatpush1.bf16.msra.mxu0 %v17730_v29  ;;  %15296 = vmatpush3.bf16.msra.mxu1 %v17713_v6 }
 0xa48   :  { %15267 = vmatprep.subr.bf16.mxu0 %v17732_v30  ;;  %15297 = vmatprep.subr.bf16.mxu1 %v20739_v0  ;;  %v21234_v30 = vld [vmem:[#allocation52_spill] sm:$0xff] }
 0xa49   :  { %6892 = vmatprep.mubr.f32.mxu0 %v20740_v22  ;;  %12450 = vmatprep.mubr.msk.f32.mxu1 %vm17063_vm0, %v20740_v22 }
 0xa4b   :  { %15269 = vmatpush1.bf16.msra.mxu0 %v17740_v45  ;;  %15299 = vmatpush3.bf16.msra.mxu1 %v17719_v11  ;;  %v21235_v11 = vld [vmem:[#allocation54_spill] sm:$0xff]  ;;  %v21237_v45 = vld [vmem:[#allocation55_spill] sm:$0xff] }
 0xa4c   :  { %15271 = vmatprep.subr.bf16.mxu0 %v21228_v39  ;;  %15300 = vmatprep.subr.bf16.mxu1 %v20739_v0  ;;  %v21236_v39 = vld [vmem:[#allocation47_spill] sm:$0xff] }
 0xa4f   :  { %15273 = vmatpush1.bf16.msra.mxu0 %v21229_v21  ;;  %15302 = vmatpush3.bf16.msra.mxu1 %v21230_v60  ;;  %v21238_v60 = vld [vmem:[#allocation57_spill] sm:$0xff]  ;;  %v21240_v21 = vld [vmem:[#allocation58_spill] sm:$0xff] }
 0xa50   :  { %15275 = vmatprep.subr.bf16.mxu0 %v21231_v59  ;;  %15303 = vmatprep.subr.bf16.mxu1 %v20739_v0  ;;  %v21239_v59 = vld [vmem:[#allocation50_spill] sm:$0xff] }
 0xa53   :  { %15277 = vmatpush1.bf16.msra.mxu0 %v21232_v20  ;;  %15305 = vmatpush3.bf16.msra.mxu1 %v21233_v62  ;;  %v21241_v62 = vld [vmem:[#allocation59_spill] sm:$0xff]  ;;  %v21243_v20 = vld [vmem:[#allocation60_spill] sm:$0xff] }
 0xa54   :  { %15279 = vmatprep.subr.bf16.mxu0 %v21234_v30  ;;  %15306 = vmatprep.subr.bf16.mxu1 %v20739_v0  ;;  %v21242_v30 = vld [vmem:[#allocation53_spill] sm:$0xff] }
 0xa57   :  { %15281 = vmatpush1.bf16.msra.mxu0 %v21235_v11  ;;  %15308 = vmatpush3.bf16.msra.mxu1 %v21236_v39  ;;  %v21244_v39 = vld [vmem:[#allocation61_spill] sm:$0xff]  ;;  %v21246_v11 = vld [vmem:[#allocation92_spill] sm:$0xff] }
 0xa58   :  { %15283 = vmatprep.subr.bf16.mxu0 %v21237_v45  ;;  %15309 = vmatprep.subr.bf16.mxu1 %v20739_v0  ;;  %v21245_v45 = vld [vmem:[#allocation56_spill] sm:$0xff] }
 0xa5b   :  { %15285 = vmatpush1.bf16.msra.mxu0 %v21238_v60  ;;  %15311 = vmatpush3.bf16.msra.mxu1 %v21239_v59  ;;  %v21247_v60 = vld [vmem:[#allocation90_spill] sm:$0xff] }
 0xa5c   :  { %15287 = vmatprep.subr.bf16.mxu0 %v21240_v21  ;;  %15312 = vmatprep.subr.bf16.mxu1 %v20739_v0 }
 0xa5f   :  { %15289 = vmatpush1.bf16.msra.mxu0 %v21241_v62  ;;  %15314 = vmatpush3.bf16.msra.mxu1 %v21242_v30  ;;  %v21248_v30 = vld [vmem:[#allocation91_spill] sm:$0xff] }
 0xa60   :  { %15291 = vmatprep.subr.bf16.mxu0 %v21243_v20  ;;  %15315 = vmatprep.subr.bf16.mxu1 %v20739_v0 }
 0xa63   :  { %15293 = vmatpush1.bf16.msra.mxu0 %v21244_v39  ;;  %15317 = vmatpush3.bf16.msra.mxu1 %v21245_v45 }
 0xa64   :  { %15319 = vmatprep.subr.bf16.mxu1 %v21246_v11  ;;  %15350 = vmatprep.subr.bf16.mxu0 %v20739_v0 }
 0xad9   :  { %v6423_v59 = vpop.f32.mrb[34].mxu0  ;;  %v6494_v21 = vpop.f32.mrb[74].mxu1 }
 0xada   :  { %v16416_v6 = vadd.f32 %v6423_v59, %v21247_v60  ;;  %v6425_v29 = vpop.f32.mrb[35].mxu0  ;;  %v12347_v62 = vpop.f32.mrb[75].mxu1  ;;  %v6512_v11 = vadd.f32 %v19424_v38, %v6494_v21 }
 0xadb   :  { %v16417_v41 = vadd.f32 %v6425_v29, %v21248_v30 }
 0xadc   :  { %v10020_v3 = vmul.f32 -1.442695, %v16416_v6 }
 0xadd   :  { %v10021_v20 = vmul.f32 -1.442695, %v16417_v41 }
 0xade   :  { %16801 = vpow2.f32 %v10020_v3 }
 0xadf   :  { %16803 = vpow2.f32 %v10021_v20 }
 0xae8   :  { %v16802_v28 = vpop.eup %16801 }
 0xae9   :  { %v6502_v39 = vadd.f32 1.0, %v16802_v28  ;;  %v16804_v45 = vpop.eup %16803 }
 0xaea   :  { %v6509_v17 = vadd.f32 1.0, %v16804_v45 }
 0xaeb   :  { %16805 = vrcp.f32 %v6502_v39 }
 0xaec   :  { %16807 = vrcp.f32 %v6509_v17 }
 0xaf5   :  { %v16806_v26 = vpop.eup %16805 }
 0xaf6   :  { %v6513_v4 = vmul.f32 %v16806_v26, %v6512_v11  ;;  %v16808_v29 = vpop.eup %16807 }
 0xaf7   :  { %v6516_v3 = vsub.f32 1.0, %v16808_v29  ;;  %v6518_v28 = vmul.f32 %v16808_v29, %v19431_v48  ;;  %v21251_v29 = vld [vmem:[#allocation119_spill] sm:$0xff] }
 0xaf8   :  { %v6514_v59 = vadd.f32 %v6513_v4, %v21249_v23 }
 0xaf9   :  { %v19556_v60 = vpop.f32.mrb[80].mxu0 }
 0xafa   :  { %16809 = vtanh.f32 %v6514_v59  ;;  %v12382_v6 = vpop.f32.mrb[81].mxu0 }
 0xafb   :  { %v21250_v6 = vld [vmem:[#allocation118_spill] sm:$0xff] }
 0xb04   :  { %v16810_v41 = vpop.eup %16809 }
 0xb05   :  { %v6517_v20 = vmul.f32 %v16810_v41, %v6516_v3  ;;  %v21252_v3 = vld [vmem:[#allocation120_spill] sm:$0xff]  ;;  %v21253_v41 = vld [vmem:[#allocation121_spill] sm:$0xff] }
 0xb07   :  { %v19559_v39 = vadd.f32 %v6518_v28, %v6517_v20 }
 0xb09   :  { %6893 = vmatmul.mubr.f32.vlgmr.msra.gmra.mrb[36].mxu0 %v19559_v39  ;;  %12451 = vmatmul.mubr.f32.vlgmr.msra.gmra.mrb[78].mxu1 %v19559_v39 }
 0xb0a   :  { %15321 = vmatpush1.bf16.msra.mxu1 %v20934_v50  ;;  %15352 = vmatpush3.bf16.msra.mxu0 %v20935_v47 }
 0xb0b   :  { %15323 = vmatprep.subr.bf16.mxu1 %v20936_v25  ;;  %15353 = vmatprep.subr.bf16.mxu0 %v20739_v0 }
 0xb0c   :  { %7055 = vmatprep.mubr.f32.mxu1 %v20740_v22  ;;  %12485 = vmatprep.mubr.msk.f32.mxu0 %vm17063_vm0, %v20740_v22 }
 0xb0e   :  { %15325 = vmatpush1.bf16.msra.mxu1 %v20937_v27  ;;  %15355 = vmatpush3.bf16.msra.mxu0 %v21000_v34 }
 0xb0f   :  { %15327 = vmatprep.subr.bf16.mxu1 %v21001_v32  ;;  %15356 = vmatprep.subr.bf16.mxu0 %v20739_v0 }
 0xb12   :  { %15329 = vmatpush1.bf16.msra.mxu1 %v21002_v42  ;;  %15358 = vmatpush3.bf16.msra.mxu0 %v21003_v53 }
 0xb13   :  { %15331 = vmatprep.subr.bf16.mxu1 %v21004_v51  ;;  %15359 = vmatprep.subr.bf16.mxu0 %v20739_v0 }
 0xb16   :  { %15333 = vmatpush1.bf16.msra.mxu1 %v21005_v12  ;;  %15361 = vmatpush3.bf16.msra.mxu0 %v21006_v16 }
 0xb17   :  { %15335 = vmatprep.subr.bf16.mxu1 %v21007_v33  ;;  %15362 = vmatprep.subr.bf16.mxu0 %v20739_v0 }
 0xb19   :  { %v6727_v11 = vpop.f32.mrb[76].mxu1  ;;  %v6798_v45 = vpop.f32.mrb[82].mxu0 }
 0xb1a   :  { %v16446_v48 = vadd.f32 %v6727_v11, %v18279_v31  ;;  %15337 = vmatpush1.bf16.msra.mxu1 %v20881_v46  ;;  %15364 = vmatpush3.bf16.msra.mxu0 %v21133_v56  ;;  %v6729_v23 = vpop.f32.mrb[77].mxu1  ;;  %v12417_v4 = vpop.f32.mrb[83].mxu0  ;;  %v6816_v11 = vadd.f32 %v19354_v55, %v6798_v45  ;;  %v21254_v45 = vld [vmem:[#allocation135_spill] sm:$0xff] }
 0xb1b   :  { %15339 = vmatprep.subr.bf16.mxu1 %v21134_v8  ;;  %15365 = vmatprep.subr.bf16.mxu0 %v20739_v0  ;;  %v16447_v17 = vadd.f32 %v6729_v23, %v21175_v54  ;;  %v6658_v23 = vadd.f32 %v19556_v60, %v21155_v1 }
 0xb1c   :  { %v10022_v26 = vmul.f32 -1.442695, %v16446_v48 }
 0xb1d   :  { %v10023_v21 = vmul.f32 -1.442695, %v16447_v17  ;;  %v21255_v17 = vld [vmem:[#allocation136_spill] sm:$0xff] }
 0xb1e   :  { %16811 = vpow2.f32 %v10022_v26  ;;  %15341 = vmatpush1.bf16.msra.mxu1 %v21176_v58  ;;  %15367 = vmatpush3.bf16.msra.mxu0 %v21177_v52 }
 0xb1f   :  { %15343 = vmatprep.subr.bf16.mxu1 %v21178_v10  ;;  %15368 = vmatprep.subr.bf16.mxu0 %v20739_v0  ;;  %16813 = vpow2.f32 %v10023_v21  ;;  %v21256_v21 = vld [vmem:[#allocation137_spill] sm:$0xff] }
 0xb22   :  { %15345 = vmatpush1.bf16.msra.mxu1 %v21179_v5  ;;  %15370 = vmatpush3.bf16.msra.mxu0 %v21180_v44 }
 0xb23   :  { %15347 = vmatprep.subr.bf16.mxu1 %v21181_v19  ;;  %15371 = vmatprep.subr.bf16.mxu0 %v20739_v0 }
 0xb26   :  { %15349 = vmatpush1.bf16.msra.mxu1 %v21182_v57  ;;  %15373 = vmatpush3.bf16.msra.mxu0 %v21214_v13 }
 0xb27   :  { %15375 = vmatprep.subr.bf16.mxu1 %v21215_v40  ;;  %15406 = vmatprep.subr.bf16.mxu0 %v20739_v0 }
 0xb28   :  { %v16812_v62 = vpop.eup %16811 }
 0xb29   :  { %v6806_v59 = vadd.f32 1.0, %v16812_v62  ;;  %7056 = vmatmul.mubr.f32.vlgmr.msra.gmra.mrb[80].mxu1 %v19559_v39  ;;  %12486 = vmatmul.mubr.f32.vlgmr.msra.gmra.mrb[84].mxu0 %v19559_v39  ;;  %v16814_v20 = vpop.eup %16813 }
 0xb2a   :  { %15377 = vmatpush1.bf16.msra.mxu1 %v21216_v15  ;;  %15408 = vmatpush3.bf16.msra.mxu0 %v21250_v6  ;;  %v6813_v28 = vadd.f32 1.0, %v16814_v20 }
 0xb2b   :  { %16815 = vrcp.f32 %v6806_v59  ;;  %15379 = vmatprep.subr.bf16.mxu1 %v21251_v29  ;;  %15409 = vmatprep.subr.bf16.mxu0 %v20739_v0 }
 0xb2c   :  { %7196 = vmatprep.mubr.f32.mxu1 %v20740_v22  ;;  %12520 = vmatprep.mubr.msk.f32.mxu0 %vm17063_vm0, %v20740_v22  ;;  %16817 = vrcp.f32 %v6813_v28  ;;  %v21257_v28 = vld [vmem:[#allocation105_spill] sm:$0xff] }
 0xb2e   :  { %15381 = vmatpush1.bf16.msra.mxu1 %v21252_v3  ;;  %15411 = vmatpush3.bf16.msra.mxu0 %v21253_v41 }
 0xb2f   :  { %15383 = vmatprep.subr.bf16.mxu1 %v21221_v18  ;;  %15412 = vmatprep.subr.bf16.mxu0 %v20739_v0 }
 0xb32   :  { %15385 = vmatpush1.bf16.msra.mxu1 %v21222_v43  ;;  %15414 = vmatpush3.bf16.msra.mxu0 %v21223_v24 }
 0xb33   :  { %15387 = vmatprep.subr.bf16.mxu1 %v21224_v14  ;;  %15415 = vmatprep.subr.bf16.mxu0 %v20739_v0 }
 0xb35   :  { %v16816_v48 = vpop.eup %16815 }
 0xb36   :  { %v6817_v4 = vmul.f32 %v16816_v48, %v6816_v11  ;;  %15389 = vmatpush1.bf16.msra.mxu1 %v21156_v35  ;;  %15417 = vmatpush3.bf16.msra.mxu0 %v21194_v7  ;;  %v16818_v60 = vpop.eup %16817  ;;  %v21258_v48 = vld [vmem:[#allocation138_spill] sm:$0xff] }
 0xb37   :  { %15391 = vmatprep.subr.bf16.mxu1 %v21195_v2  ;;  %15418 = vmatprep.subr.bf16.mxu0 %v20739_v0  ;;  %v6820_v62 = vsub.f32 1.0, %v16818_v60  ;;  %v6822_v11 = vmul.f32 %v16818_v60, %v21257_v28  ;;  %v21265_v60 = vld [vmem:[#allocation45_spill] sm:$0xff]  ;;  %v21268_v28 = vld [vmem:[#allocation48_spill] sm:$0xff] }
 0xb38   :  { %v6818_v26 = vadd.f32 %v6817_v4, %v6658_v23  ;;  %v21259_v23 = vld [vmem:[#allocation139_spill] sm:$0xff] }
 0xb3a   :  { %16819 = vtanh.f32 %v6818_v26  ;;  %15393 = vmatpush1.bf16.msra.mxu1 %v21196_v9  ;;  %15420 = vmatpush3.bf16.msra.mxu0 %v21197_v63  ;;  %v21261_v26 = vld [vmem:[#allocation32_spill] sm:$0xff] }
 0xb3b   :  { %15395 = vmatprep.subr.bf16.mxu1 %v21198_v36  ;;  %15421 = vmatprep.subr.bf16.mxu0 %v20739_v0  ;;  %v21287_v36 = vld [vmem:[#allocation80_spill] sm:$0xff] }
 0xb3e   :  { %15397 = vmatpush1.bf16.msra.mxu1 %v21225_v61  ;;  %15423 = vmatpush3.bf16.msra.mxu0 %v21200_v37 }
 0xb3f   :  { %15399 = vmatprep.subr.bf16.mxu1 %v21226_v49  ;;  %15424 = vmatprep.subr.bf16.mxu0 %v20739_v0 }
 0xb42   :  { %15401 = vmatpush1.bf16.msra.mxu1 %v21254_v45  ;;  %15426 = vmatpush3.bf16.msra.mxu0 %v21255_v17  ;;  %v21263_v17 = vld [vmem:[#allocation39_spill] sm:$0xff] }
 0xb43   :  { %15403 = vmatprep.subr.bf16.mxu1 %v21256_v21  ;;  %15427 = vmatprep.subr.bf16.mxu0 %v20739_v0  ;;  %v21262_v21 = vld [vmem:[#allocation42_spill] sm:$0xff] }
 0xb44   :  { %v16820_v59 = vpop.eup %16819 }
 0xb45   :  { %v6821_v20 = vmul.f32 %v16820_v59, %v6820_v62  ;;  %v21264_v62 = vld [vmem:[#allocation43_spill] sm:$0xff]  ;;  %v21266_v59 = vld [vmem:[#allocation40_spill] sm:$0xff] }
 0xb46   :  { %15405 = vmatpush1.bf16.msra.mxu1 %v21258_v48  ;;  %15429 = vmatpush3.bf16.msra.mxu0 %v21259_v23 }
 0xb47   :  { %v19639_v4 = vadd.f32 %v6822_v11, %v6821_v20  ;;  %15431 = vmatprep.subr.bf16.mxu0 %v21261_v26  ;;  %15462 = vmatprep.subr.bf16.mxu1 %v20739_v0  ;;  %v21267_v20 = vld [vmem:[#allocation46_spill] sm:$0xff]  ;;  %v21269_v11 = vld [vmem:[#allocation41_spill] sm:$0xff]  ;;  %v21273_v26 = vld [vmem:[#allocation52_spill] sm:$0xff] }
 0xb49   :  { %21260 = vst [vmem:[#allocation63_spill] sm:$0xff] %v19639_v4  ;;  %7197 = vmatmul.mubr.f32.vlgmr.msra.gmra.mrb[80].mxu1 %v19639_v4  ;;  %12521 = vmatmul.mubr.f32.vlgmr.msra.gmra.mrb[86].mxu0 %v19639_v4 }
 0xb4a   :  { %15433 = vmatpush1.bf16.msra.mxu0 %v21262_v21  ;;  %15464 = vmatpush3.bf16.msra.mxu1 %v21263_v17  ;;  %v21271_v17 = vld [vmem:[#allocation51_spill] sm:$0xff]  ;;  %v21272_v21 = vld [vmem:[#allocation44_spill] sm:$0xff] }
 0xb4b   :  { %15435 = vmatprep.subr.bf16.mxu0 %v21264_v62  ;;  %15465 = vmatprep.subr.bf16.mxu1 %v20739_v0  ;;  %v21270_v62 = vld [vmem:[#allocation49_spill] sm:$0xff] }
 0xb4c   :  { %7363 = vmatprep.mubr.f32.mxu0 %v20740_v22  ;;  %12555 = vmatprep.mubr.msk.f32.mxu1 %vm17063_vm0, %v20740_v22 }
 0xb4e   :  { %15437 = vmatpush1.bf16.msra.mxu0 %v21265_v60  ;;  %15467 = vmatpush3.bf16.msra.mxu1 %v21266_v59  ;;  %v21274_v59 = vld [vmem:[#allocation54_spill] sm:$0xff]  ;;  %v21276_v60 = vld [vmem:[#allocation55_spill] sm:$0xff] }
 0xb4f   :  { %15439 = vmatprep.subr.bf16.mxu0 %v21267_v20  ;;  %15468 = vmatprep.subr.bf16.mxu1 %v20739_v0  ;;  %v21275_v20 = vld [vmem:[#allocation47_spill] sm:$0xff] }
 0xb52   :  { %15441 = vmatpush1.bf16.msra.mxu0 %v21268_v28  ;;  %15470 = vmatpush3.bf16.msra.mxu1 %v21269_v11  ;;  %v21277_v11 = vld [vmem:[#allocation57_spill] sm:$0xff]  ;;  %v21279_v28 = vld [vmem:[#allocation58_spill] sm:$0xff] }
 0xb53   :  { %15443 = vmatprep.subr.bf16.mxu0 %v21270_v62  ;;  %15471 = vmatprep.subr.bf16.mxu1 %v20739_v0  ;;  %v21278_v62 = vld [vmem:[#allocation50_spill] sm:$0xff] }
 0xb56   :  { %15445 = vmatpush1.bf16.msra.mxu0 %v21271_v17  ;;  %15473 = vmatpush3.bf16.msra.mxu1 %v21272_v21  ;;  %v21280_v21 = vld [vmem:[#allocation59_spill] sm:$0xff]  ;;  %v21282_v17 = vld [vmem:[#allocation60_spill] sm:$0xff] }
 0xb57   :  { %15447 = vmatprep.subr.bf16.mxu0 %v21273_v26  ;;  %15474 = vmatprep.subr.bf16.mxu1 %v20739_v0  ;;  %v21281_v26 = vld [vmem:[#allocation53_spill] sm:$0xff] }
 0xb5a   :  { %15449 = vmatpush1.bf16.msra.mxu0 %v21274_v59  ;;  %15476 = vmatpush3.bf16.msra.mxu1 %v21275_v20  ;;  %v21283_v20 = vld [vmem:[#allocation61_spill] sm:$0xff]  ;;  %v21285_v59 = vld [vmem:[#allocation92_spill] sm:$0xff] }
 0xb5b   :  { %15451 = vmatprep.subr.bf16.mxu0 %v21276_v60  ;;  %15477 = vmatprep.subr.bf16.mxu1 %v20739_v0  ;;  %v21284_v60 = vld [vmem:[#allocation56_spill] sm:$0xff] }
 0xb5e   :  { %15453 = vmatpush1.bf16.msra.mxu0 %v21277_v11  ;;  %15479 = vmatpush3.bf16.msra.mxu1 %v21278_v62  ;;  %v21286_v11 = vld [vmem:[#allocation90_spill] sm:$0xff] }
 0xb5f   :  { %15455 = vmatprep.subr.bf16.mxu0 %v21279_v28  ;;  %15480 = vmatprep.subr.bf16.mxu1 %v20739_v0 }
 0xb62   :  { %15457 = vmatpush1.bf16.msra.mxu0 %v21280_v21  ;;  %15482 = vmatpush3.bf16.msra.mxu1 %v21281_v26 }
 0xb63   :  { %15459 = vmatprep.subr.bf16.mxu0 %v21282_v17  ;;  %15483 = vmatprep.subr.bf16.mxu1 %v20739_v0 }
 0xb66   :  { %15461 = vmatpush1.bf16.msra.mxu0 %v21283_v20  ;;  %15485 = vmatpush3.bf16.msra.mxu1 %v21284_v60 }
 0xb67   :  { %15487 = vmatprep.subr.bf16.mxu1 %v21285_v59  ;;  %15518 = vmatprep.subr.bf16.mxu0 %v20739_v0 }
 0xbdc   :  { %v6894_v62 = vpop.f32.mrb[36].mxu0  ;;  %v6965_v28 = vpop.f32.mrb[78].mxu1 }
 0xbdd   :  { %v16418_v23 = vadd.f32 %v6894_v62, %v21286_v11  ;;  %v6896_v48 = vpop.f32.mrb[37].mxu0  ;;  %v12452_v21 = vpop.f32.mrb[79].mxu1  ;;  %v6983_v59 = vadd.f32 %v19424_v38, %v6965_v28 }
 0xbde   :  { %v16419_v26 = vadd.f32 %v6896_v48, %v21248_v30 }
 0xbdf   :  { %v10024_v4 = vmul.f32 -1.442695, %v16418_v23 }
 0xbe0   :  { %v10025_v17 = vmul.f32 -1.442695, %v16419_v26 }
 0xbe1   :  { %16821 = vpow2.f32 %v10024_v4 }
 0xbe2   :  { %16823 = vpow2.f32 %v10025_v17 }
 0xbeb   :  { %v16822_v45 = vpop.eup %16821 }
 0xbec   :  { %v6973_v20 = vadd.f32 1.0, %v16822_v45  ;;  %v16824_v60 = vpop.eup %16823 }
 0xbed   :  { %v6980_v49 = vadd.f32 1.0, %v16824_v60 }
 0xbee   :  { %16825 = vrcp.f32 %v6973_v20 }
 0xbef   :  { %16827 = vrcp.f32 %v6980_v49 }
 0xbf8   :  { %v16826_v37 = vpop.eup %16825 }
 0xbf9   :  { %v6984_v61 = vmul.f32 %v16826_v37, %v6983_v59  ;;  %v16828_v48 = vpop.eup %16827 }
 0xbfa   :  { %v6987_v23 = vsub.f32 1.0, %v16828_v48  ;;  %v6989_v45 = vmul.f32 %v16828_v48, %v19559_v39 }
 0xbfb   :  { %v6985_v62 = vadd.f32 %v6984_v61, %v21287_v36 }
 0xbfc   :  { %v19684_v11 = vpop.f32.mrb[84].mxu0 }
 0xbfd   :  { %16829 = vtanh.f32 %v6985_v62  ;;  %v12487_v21 = vpop.f32.mrb[85].mxu0 }
 0xc07   :  { %v16830_v4 = vpop.eup %16829 }
 0xc08   :  { %v6988_v17 = vmul.f32 %v16830_v4, %v6987_v23 }
 0xc0a   :  { %v19687_v26 = vadd.f32 %v6989_v45, %v6988_v17  ;;  %v7129_v17 = vadd.f32 %v19684_v11, %v21155_v1  ;;  %v21289_v11 = vld [vmem:[#allocation132_spill] sm:$0xff] }
 0xc0c   :  { %7364 = vmatmul.mubr.f32.vlgmr.msra.gmra.mrb[38].mxu0 %v19687_v26  ;;  %12556 = vmatmul.mubr.f32.vlgmr.msra.gmra.mrb[82].mxu1 %v19687_v26 }
 0xc0d   :  { %15489 = vmatpush1.bf16.msra.mxu1 %v20934_v50  ;;  %15520 = vmatpush3.bf16.msra.mxu0 %v20935_v47 }
 0xc0e   :  { %15491 = vmatprep.subr.bf16.mxu1 %v20936_v25  ;;  %15521 = vmatprep.subr.bf16.mxu0 %v20739_v0 }
 0xc0f   :  { %7526 = vmatprep.mubr.f32.mxu1 %v20740_v22  ;;  %12590 = vmatprep.mubr.msk.f32.mxu0 %vm17063_vm0, %v20740_v22 }
 0xc11   :  { %15493 = vmatpush1.bf16.msra.mxu1 %v20937_v27  ;;  %15523 = vmatpush3.bf16.msra.mxu0 %v21000_v34 }
 0xc12   :  { %15495 = vmatprep.subr.bf16.mxu1 %v21001_v32  ;;  %15524 = vmatprep.subr.bf16.mxu0 %v20739_v0 }
 0xc15   :  { %15497 = vmatpush1.bf16.msra.mxu1 %v21002_v42  ;;  %15526 = vmatpush3.bf16.msra.mxu0 %v21003_v53 }
 0xc16   :  { %15499 = vmatprep.subr.bf16.mxu1 %v21004_v51  ;;  %15527 = vmatprep.subr.bf16.mxu0 %v20739_v0 }
 0xc19   :  { %15501 = vmatpush1.bf16.msra.mxu1 %v21005_v12  ;;  %15529 = vmatpush3.bf16.msra.mxu0 %v21006_v16 }
 0xc1a   :  { %15503 = vmatprep.subr.bf16.mxu1 %v21007_v33  ;;  %15530 = vmatprep.subr.bf16.mxu0 %v20739_v0 }
 0xc1c   :  { %v7198_v36 = vpop.f32.mrb[80].mxu1  ;;  %v7269_v37 = vpop.f32.mrb[86].mxu0 }
 0xc1d   :  { %v16448_v61 = vadd.f32 %v7198_v36, %v18279_v31  ;;  %15505 = vmatpush1.bf16.msra.mxu1 %v20881_v46  ;;  %15532 = vmatpush3.bf16.msra.mxu0 %v21133_v56  ;;  %v7200_v49 = vpop.f32.mrb[81].mxu1  ;;  %v12522_v39 = vpop.f32.mrb[87].mxu0  ;;  %v7287_v23 = vadd.f32 %v19354_v55, %v7269_v37  ;;  %v21288_v55 = vld [vmem:[#allocation131_spill] sm:$0xff]  ;;  %v21290_v37 = vld [vmem:[#allocation133_spill] sm:$0xff] }
 0xc1e   :  { %15507 = vmatprep.subr.bf16.mxu1 %v21134_v8  ;;  %15533 = vmatprep.subr.bf16.mxu0 %v20739_v0  ;;  %v16449_v59 = vadd.f32 %v7200_v49, %v21175_v54  ;;  %v21292_v39 = vld [vmem:[#allocation135_spill] sm:$0xff] }
 0xc1f   :  { %v10026_v60 = vmul.f32 -1.442695, %v16448_v61  ;;  %v21291_v61 = vld [vmem:[#allocation134_spill] sm:$0xff] }
 0xc20   :  { %v10027_v20 = vmul.f32 -1.442695, %v16449_v59  ;;  %v21294_v59 = vld [vmem:[#allocation137_spill] sm:$0xff] }
 0xc21   :  { %16831 = vpow2.f32 %v10026_v60  ;;  %15509 = vmatpush1.bf16.msra.mxu1 %v21176_v58  ;;  %15535 = vmatpush3.bf16.msra.mxu0 %v21177_v52  ;;  %v21293_v60 = vld [vmem:[#allocation136_spill] sm:$0xff] }
 0xc22   :  { %15511 = vmatprep.subr.bf16.mxu1 %v21178_v10  ;;  %15536 = vmatprep.subr.bf16.mxu0 %v20739_v0  ;;  %16833 = vpow2.f32 %v10027_v20 }
 0xc25   :  { %15513 = vmatpush1.bf16.msra.mxu1 %v21179_v5  ;;  %15538 = vmatpush3.bf16.msra.mxu0 %v21180_v44 }
 0xc26   :  { %15515 = vmatprep.subr.bf16.mxu1 %v21181_v19  ;;  %15539 = vmatprep.subr.bf16.mxu0 %v20739_v0 }
 0xc29   :  { %15517 = vmatpush1.bf16.msra.mxu1 %v21182_v57  ;;  %15541 = vmatpush3.bf16.msra.mxu0 %v21214_v13 }
 0xc2a   :  { %15543 = vmatprep.subr.bf16.mxu1 %v21215_v40  ;;  %15574 = vmatprep.subr.bf16.mxu0 %v20739_v0 }
 0xc2b   :  { %v16832_v28 = vpop.eup %16831 }
 0xc2c   :  { %v7277_v62 = vadd.f32 1.0, %v16832_v28  ;;  %7527 = vmatmul.mubr.f32.vlgmr.msra.gmra.mrb[84].mxu1 %v19687_v26  ;;  %12591 = vmatmul.mubr.f32.vlgmr.msra.gmra.mrb[88].mxu0 %v19687_v26  ;;  %v16834_v21 = vpop.eup %16833 }
 0xc2d   :  { %15545 = vmatpush1.bf16.msra.mxu1 %v21216_v15  ;;  %15576 = vmatpush3.bf16.msra.mxu0 %v21250_v6  ;;  %v7284_v48 = vadd.f32 1.0, %v16834_v21  ;;  %v21295_v21 = vld [vmem:[#allocation63_spill] sm:$0xff] }
 0xc2e   :  { %16835 = vrcp.f32 %v7277_v62  ;;  %15547 = vmatprep.subr.bf16.mxu1 %v21251_v29  ;;  %15577 = vmatprep.subr.bf16.mxu0 %v20739_v0 }
 0xc2f   :  { %7667 = vmatprep.mubr.f32.mxu1 %v20740_v22  ;;  %12625 = vmatprep.mubr.msk.f32.mxu0 %vm17063_vm0, %v20740_v22  ;;  %16837 = vrcp.f32 %v7284_v48 }
 0xc31   :  { %15549 = vmatpush1.bf16.msra.mxu1 %v21252_v3  ;;  %15579 = vmatpush3.bf16.msra.mxu0 %v21253_v41 }
 0xc32   :  { %15551 = vmatprep.subr.bf16.mxu1 %v21221_v18  ;;  %15580 = vmatprep.subr.bf16.mxu0 %v20739_v0 }
 0xc35   :  { %15553 = vmatpush1.bf16.msra.mxu1 %v21222_v43  ;;  %15582 = vmatpush3.bf16.msra.mxu0 %v21223_v24 }
 0xc36   :  { %15555 = vmatprep.subr.bf16.mxu1 %v21224_v14  ;;  %15583 = vmatprep.subr.bf16.mxu0 %v20739_v0 }
 0xc38   :  { %v16836_v4 = vpop.eup %16835 }
 0xc39   :  { %v7288_v45 = vmul.f32 %v16836_v4, %v7287_v23  ;;  %15557 = vmatpush1.bf16.msra.mxu1 %v21156_v35  ;;  %15585 = vmatpush3.bf16.msra.mxu0 %v21194_v7  ;;  %v16838_v49 = vpop.eup %16837  ;;  %v21296_v23 = vld [vmem:[#allocation138_spill] sm:$0xff]  ;;  %v21297_v4 = vld [vmem:[#allocation139_spill] sm:$0xff] }
 0xc3a   :  { %15559 = vmatprep.subr.bf16.mxu1 %v21195_v2  ;;  %15586 = vmatprep.subr.bf16.mxu0 %v20739_v0  ;;  %v7291_v20 = vsub.f32 1.0, %v16838_v49  ;;  %v7293_v48 = vmul.f32 %v16838_v49, %v21295_v21  ;;  %v21303_v49 = vld [vmem:[#allocation45_spill] sm:$0xff]  ;;  %v21306_v21 = vld [vmem:[#allocation48_spill] sm:$0xff] }
 0xc3b   :  { %v7289_v36 = vadd.f32 %v7288_v45, %v7129_v17  ;;  %v21299_v45 = vld [vmem:[#allocation32_spill] sm:$0xff] }
 0xc3d   :  { %16839 = vtanh.f32 %v7289_v36  ;;  %15561 = vmatpush1.bf16.msra.mxu1 %v21196_v9  ;;  %15588 = vmatpush3.bf16.msra.mxu0 %v21197_v63  ;;  %v21300_v36 = vld [vmem:[#allocation42_spill] sm:$0xff] }
 0xc3e   :  { %15563 = vmatprep.subr.bf16.mxu1 %v21288_v55  ;;  %15589 = vmatprep.subr.bf16.mxu0 %v20739_v0 }
 0xc41   :  { %15565 = vmatpush1.bf16.msra.mxu1 %v21289_v11  ;;  %15591 = vmatpush3.bf16.msra.mxu0 %v21290_v37  ;;  %v21325_v11 = vld [vmem:[#allocation79_spill] sm:$0xff] }
 0xc42   :  { %15567 = vmatprep.subr.bf16.mxu1 %v21291_v61  ;;  %15592 = vmatprep.subr.bf16.mxu0 %v20739_v0 }
 0xc45   :  { %15569 = vmatpush1.bf16.msra.mxu1 %v21292_v39  ;;  %15594 = vmatpush3.bf16.msra.mxu0 %v21293_v60 }
 0xc46   :  { %15571 = vmatprep.subr.bf16.mxu1 %v21294_v59  ;;  %15595 = vmatprep.subr.bf16.mxu0 %v20739_v0  ;;  %v21301_v59 = vld [vmem:[#allocation39_spill] sm:$0xff] }
 0xc47   :  { %v16840_v28 = vpop.eup %16839 }
 0xc48   :  { %v7292_v62 = vmul.f32 %v16840_v28, %v7291_v20  ;;  %v21302_v20 = vld [vmem:[#allocation43_spill] sm:$0xff]  ;;  %v21304_v28 = vld [vmem:[#allocation40_spill] sm:$0xff] }
 0xc49   :  { %15573 = vmatpush1.bf16.msra.mxu1 %v21296_v23  ;;  %15597 = vmatpush3.bf16.msra.mxu0 %v21297_v4 }
 0xc4a   :  { %v19767_v17 = vadd.f32 %v7293_v48, %v7292_v62  ;;  %15599 = vmatprep.subr.bf16.mxu0 %v21299_v45  ;;  %15630 = vmatprep.subr.bf16.mxu1 %v20739_v0  ;;  %v21305_v62 = vld [vmem:[#allocation46_spill] sm:$0xff]  ;;  %v21307_v48 = vld [vmem:[#allocation41_spill] sm:$0xff]  ;;  %v21311_v45 = vld [vmem:[#allocation52_spill] sm:$0xff] }
 0xc4c   :  { %21298 = vst [vmem:[#allocation64_spill] sm:$0xff] %v19767_v17  ;;  %7668 = vmatmul.mubr.f32.vlgmr.msra.gmra.mrb[84].mxu1 %v19767_v17  ;;  %12626 = vmatmul.mubr.f32.vlgmr.msra.gmra.mrb[90].mxu0 %v19767_v17 }
 0xc4d   :  { %15601 = vmatpush1.bf16.msra.mxu0 %v21300_v36  ;;  %15632 = vmatpush3.bf16.msra.mxu1 %v21301_v59  ;;  %v21309_v59 = vld [vmem:[#allocation51_spill] sm:$0xff]  ;;  %v21310_v36 = vld [vmem:[#allocation44_spill] sm:$0xff] }
 0xc4e   :  { %15603 = vmatprep.subr.bf16.mxu0 %v21302_v20  ;;  %15633 = vmatprep.subr.bf16.mxu1 %v20739_v0  ;;  %v21308_v20 = vld [vmem:[#allocation49_spill] sm:$0xff] }
 0xc4f   :  { %7834 = vmatprep.mubr.f32.mxu0 %v20740_v22  ;;  %12660 = vmatprep.mubr.msk.f32.mxu1 %vm17063_vm0, %v20740_v22 }
 0xc51   :  { %15605 = vmatpush1.bf16.msra.mxu0 %v21303_v49  ;;  %15635 = vmatpush3.bf16.msra.mxu1 %v21304_v28  ;;  %v21312_v28 = vld [vmem:[#allocation54_spill] sm:$0xff]  ;;  %v21314_v49 = vld [vmem:[#allocation55_spill] sm:$0xff] }
 0xc52   :  { %15607 = vmatprep.subr.bf16.mxu0 %v21305_v62  ;;  %15636 = vmatprep.subr.bf16.mxu1 %v20739_v0  ;;  %v21313_v62 = vld [vmem:[#allocation47_spill] sm:$0xff] }
 0xc55   :  { %15609 = vmatpush1.bf16.msra.mxu0 %v21306_v21  ;;  %15638 = vmatpush3.bf16.msra.mxu1 %v21307_v48  ;;  %v21315_v48 = vld [vmem:[#allocation57_spill] sm:$0xff]  ;;  %v21317_v21 = vld [vmem:[#allocation58_spill] sm:$0xff] }
 0xc56   :  { %15611 = vmatprep.subr.bf16.mxu0 %v21308_v20  ;;  %15639 = vmatprep.subr.bf16.mxu1 %v20739_v0  ;;  %v21316_v20 = vld [vmem:[#allocation50_spill] sm:$0xff] }
 0xc59   :  { %15613 = vmatpush1.bf16.msra.mxu0 %v21309_v59  ;;  %15641 = vmatpush3.bf16.msra.mxu1 %v21310_v36  ;;  %v21318_v36 = vld [vmem:[#allocation59_spill] sm:$0xff]  ;;  %v21320_v59 = vld [vmem:[#allocation60_spill] sm:$0xff] }
 0xc5a   :  { %15615 = vmatprep.subr.bf16.mxu0 %v21311_v45  ;;  %15642 = vmatprep.subr.bf16.mxu1 %v20739_v0  ;;  %v21319_v45 = vld [vmem:[#allocation53_spill] sm:$0xff] }
 0xc5d   :  { %15617 = vmatpush1.bf16.msra.mxu0 %v21312_v28  ;;  %15644 = vmatpush3.bf16.msra.mxu1 %v21313_v62  ;;  %v21321_v62 = vld [vmem:[#allocation61_spill] sm:$0xff]  ;;  %v21323_v28 = vld [vmem:[#allocation92_spill] sm:$0xff] }
 0xc5e   :  { %15619 = vmatprep.subr.bf16.mxu0 %v21314_v49  ;;  %15645 = vmatprep.subr.bf16.mxu1 %v20739_v0  ;;  %v21322_v49 = vld [vmem:[#allocation56_spill] sm:$0xff] }
 0xc61   :  { %15621 = vmatpush1.bf16.msra.mxu0 %v21315_v48  ;;  %15647 = vmatpush3.bf16.msra.mxu1 %v21316_v20  ;;  %v21324_v48 = vld [vmem:[#allocation90_spill] sm:$0xff] }
 0xc62   :  { %15623 = vmatprep.subr.bf16.mxu0 %v21317_v21  ;;  %15648 = vmatprep.subr.bf16.mxu1 %v20739_v0 }
 0xc65   :  { %15625 = vmatpush1.bf16.msra.mxu0 %v21318_v36  ;;  %15650 = vmatpush3.bf16.msra.mxu1 %v21319_v45 }
 0xc66   :  { %15627 = vmatprep.subr.bf16.mxu0 %v21320_v59  ;;  %15651 = vmatprep.subr.bf16.mxu1 %v20739_v0 }
 0xc69   :  { %15629 = vmatpush1.bf16.msra.mxu0 %v21321_v62  ;;  %15653 = vmatpush3.bf16.msra.mxu1 %v21322_v49 }
 0xc6a   :  { %15655 = vmatprep.subr.bf16.mxu1 %v21323_v28  ;;  %15686 = vmatprep.subr.bf16.mxu0 %v20739_v0 }
 0xcdf   :  { %v7365_v20 = vpop.f32.mrb[38].mxu0  ;;  %v7436_v21 = vpop.f32.mrb[82].mxu1 }
 0xce0   :  { %v16420_v4 = vadd.f32 %v7365_v20, %v21324_v48  ;;  %v7367_v23 = vpop.f32.mrb[39].mxu0  ;;  %v12557_v36 = vpop.f32.mrb[83].mxu1  ;;  %v7454_v28 = vadd.f32 %v19424_v38, %v7436_v21 }
 0xce1   :  { %v16421_v45 = vadd.f32 %v7367_v23, %v21248_v30 }
 0xce2   :  { %v10028_v17 = vmul.f32 -1.442695, %v16420_v4 }
 0xce3   :  { %v10029_v59 = vmul.f32 -1.442695, %v16421_v45 }
 0xce4   :  { %16841 = vpow2.f32 %v10028_v17 }
 0xce5   :  { %16843 = vpow2.f32 %v10029_v59 }
 0xcee   :  { %v16842_v60 = vpop.eup %16841 }
 0xcef   :  { %v7444_v62 = vadd.f32 1.0, %v16842_v60  ;;  %v16844_v49 = vpop.eup %16843 }
 0xcf0   :  { %v7451_v39 = vadd.f32 1.0, %v16844_v49 }
 0xcf1   :  { %16845 = vrcp.f32 %v7444_v62 }
 0xcf2   :  { %16847 = vrcp.f32 %v7451_v39 }
 0xcfb   :  { %v16846_v61 = vpop.eup %16845 }
 0xcfc   :  { %v7455_v37 = vmul.f32 %v16846_v61, %v7454_v28  ;;  %v16848_v23 = vpop.eup %16847 }
 0xcfd   :  { %v7458_v17 = vsub.f32 1.0, %v16848_v23  ;;  %v7460_v60 = vmul.f32 %v16848_v23, %v19687_v26  ;;  %v19876_v23 = vld [vmem:[%s20394_s13] ss:$0 sm:$0xff] }
 0xcfe   :  { %v7456_v20 = vadd.f32 %v7455_v37, %v21325_v11 }
 0xcff   :  { %v19812_v48 = vpop.f32.mrb[88].mxu0 }
 0xd00   :  { %16849 = vtanh.f32 %v7456_v20  ;;  %v12592_v4 = vpop.f32.mrb[89].mxu0 }
 0xd0a   :  { %v16850_v45 = vpop.eup %16849 }
 0xd0b   :  { %v7459_v59 = vmul.f32 %v16850_v45, %v7458_v17 }
 0xd0d   :  { %v19815_v36 = vadd.f32 %v7460_v60, %v7459_v59  ;;  %v7600_v59 = vadd.f32 %v19812_v48, %v21155_v1  ;;  %v21326_v48 = vld [vmem:[#allocation132_spill] sm:$0xff] }
 0xd0f   :  { %7835 = vmatmul.mubr.f32.vlgmr.msra.gmra.mrb[40].mxu0 %v19815_v36  ;;  %12661 = vmatmul.mubr.f32.vlgmr.msra.gmra.mrb[86].mxu1 %v19815_v36 }
 0xd10   :  { %15657 = vmatpush1.bf16.msra.mxu1 %v20934_v50  ;;  %15688 = vmatpush3.bf16.msra.mxu0 %v20935_v47 }
 0xd11   :  { %15659 = vmatprep.subr.bf16.mxu1 %v20936_v25  ;;  %15689 = vmatprep.subr.bf16.mxu0 %v20739_v0 }
 0xd12   :  { %7997 = vmatprep.mubr.f32.mxu1 %v20740_v22  ;;  %12695 = vmatprep.mubr.msk.f32.mxu0 %vm17063_vm0, %v20740_v22 }
 0xd14   :  { %15661 = vmatpush1.bf16.msra.mxu1 %v20937_v27  ;;  %15691 = vmatpush3.bf16.msra.mxu0 %v21000_v34 }
 0xd15   :  { %15663 = vmatprep.subr.bf16.mxu1 %v21001_v32  ;;  %15692 = vmatprep.subr.bf16.mxu0 %v20739_v0 }
 0xd18   :  { %15665 = vmatpush1.bf16.msra.mxu1 %v21002_v42  ;;  %15694 = vmatpush3.bf16.msra.mxu0 %v21003_v53 }
 0xd19   :  { %15667 = vmatprep.subr.bf16.mxu1 %v21004_v51  ;;  %15695 = vmatprep.subr.bf16.mxu0 %v20739_v0 }
 0xd1c   :  { %15669 = vmatpush1.bf16.msra.mxu1 %v21005_v12  ;;  %15697 = vmatpush3.bf16.msra.mxu0 %v21006_v16 }
 0xd1d   :  { %15671 = vmatprep.subr.bf16.mxu1 %v21007_v33  ;;  %15698 = vmatprep.subr.bf16.mxu0 %v20739_v0 }
 0xd1f   :  { %v7669_v38 = vpop.f32.mrb[84].mxu1  ;;  %v7740_v26 = vpop.f32.mrb[90].mxu0 }
 0xd20   :  { %v16450_v11 = vadd.f32 %v7669_v38, %v18279_v31  ;;  %15673 = vmatpush1.bf16.msra.mxu1 %v20881_v46  ;;  %15700 = vmatpush3.bf16.msra.mxu0 %v21133_v56  ;;  %v7671_v37 = vpop.f32.mrb[85].mxu1  ;;  %v12627_v61 = vpop.f32.mrb[91].mxu0  ;;  %v7758_v17 = vadd.f32 %v19876_v23, %v7740_v26  ;;  %v21327_v26 = vld [vmem:[#allocation133_spill] sm:$0xff] }
 0xd21   :  { %15675 = vmatprep.subr.bf16.mxu1 %v21134_v8  ;;  %15701 = vmatprep.subr.bf16.mxu0 %v20739_v0  ;;  %v16451_v49 = vadd.f32 %v7671_v37, %v21175_v54  ;;  %v21329_v61 = vld [vmem:[#allocation135_spill] sm:$0xff] }
 0xd22   :  { %v10030_v39 = vmul.f32 -1.442695, %v16450_v11  ;;  %v21328_v11 = vld [vmem:[#allocation134_spill] sm:$0xff] }
 0xd23   :  { %v10031_v28 = vmul.f32 -1.442695, %v16451_v49  ;;  %v21331_v49 = vld [vmem:[#allocation137_spill] sm:$0xff] }
 0xd24   :  { %16851 = vpow2.f32 %v10030_v39  ;;  %15677 = vmatpush1.bf16.msra.mxu1 %v21176_v58  ;;  %15703 = vmatpush3.bf16.msra.mxu0 %v21177_v52  ;;  %v21330_v39 = vld [vmem:[#allocation136_spill] sm:$0xff] }
 0xd25   :  { %15679 = vmatprep.subr.bf16.mxu1 %v21178_v10  ;;  %15704 = vmatprep.subr.bf16.mxu0 %v20739_v0  ;;  %16853 = vpow2.f32 %v10031_v28 }
 0xd28   :  { %15681 = vmatpush1.bf16.msra.mxu1 %v21179_v5  ;;  %15706 = vmatpush3.bf16.msra.mxu0 %v21180_v44 }
 0xd29   :  { %15683 = vmatprep.subr.bf16.mxu1 %v21181_v19  ;;  %15707 = vmatprep.subr.bf16.mxu0 %v20739_v0 }
 0xd2c   :  { %15685 = vmatpush1.bf16.msra.mxu1 %v21182_v57  ;;  %15709 = vmatpush3.bf16.msra.mxu0 %v21214_v13 }
 0xd2d   :  { %15711 = vmatprep.subr.bf16.mxu1 %v21215_v40  ;;  %15742 = vmatprep.subr.bf16.mxu0 %v20739_v0 }
 0xd2e   :  { %v16852_v62 = vpop.eup %16851 }
 0xd2f   :  { %v7748_v21 = vadd.f32 1.0, %v16852_v62  ;;  %7998 = vmatmul.mubr.f32.vlgmr.msra.gmra.mrb[88].mxu1 %v19815_v36  ;;  %12696 = vmatmul.mubr.f32.vlgmr.msra.gmra.mrb[92].mxu0 %v19815_v36  ;;  %v16854_v20 = vpop.eup %16853 }
 0xd30   :  { %15713 = vmatpush1.bf16.msra.mxu1 %v21216_v15  ;;  %15744 = vmatpush3.bf16.msra.mxu0 %v21250_v6  ;;  %v7755_v4 = vadd.f32 1.0, %v16854_v20  ;;  %v21332_v20 = vld [vmem:[#allocation64_spill] sm:$0xff] }
 0xd31   :  { %16855 = vrcp.f32 %v7748_v21  ;;  %15715 = vmatprep.subr.bf16.mxu1 %v21251_v29  ;;  %15745 = vmatprep.subr.bf16.mxu0 %v20739_v0 }
 0xd32   :  { %8138 = vmatprep.mubr.f32.mxu1 %v20740_v22  ;;  %12730 = vmatprep.mubr.msk.f32.mxu0 %vm17063_vm0, %v20740_v22  ;;  %16857 = vrcp.f32 %v7755_v4 }
 0xd34   :  { %15717 = vmatpush1.bf16.msra.mxu1 %v21252_v3  ;;  %15747 = vmatpush3.bf16.msra.mxu0 %v21253_v41 }
 0xd35   :  { %15719 = vmatprep.subr.bf16.mxu1 %v21221_v18  ;;  %15748 = vmatprep.subr.bf16.mxu0 %v20739_v0 }
 0xd38   :  { %15721 = vmatpush1.bf16.msra.mxu1 %v21222_v43  ;;  %15750 = vmatpush3.bf16.msra.mxu0 %v21223_v24 }
 0xd39   :  { %15723 = vmatprep.subr.bf16.mxu1 %v21224_v14  ;;  %15751 = vmatprep.subr.bf16.mxu0 %v20739_v0 }
 0xd3b   :  { %v16856_v45 = vpop.eup %16855 }
 0xd3c   :  { %v7759_v60 = vmul.f32 %v16856_v45, %v7758_v17  ;;  %15725 = vmatpush1.bf16.msra.mxu1 %v21156_v35  ;;  %15753 = vmatpush3.bf16.msra.mxu0 %v21194_v7  ;;  %v16858_v37 = vpop.eup %16857  ;;  %v21333_v17 = vld [vmem:[#allocation138_spill] sm:$0xff]  ;;  %v21334_v45 = vld [vmem:[#allocation139_spill] sm:$0xff] }
 0xd3d   :  { %15727 = vmatprep.subr.bf16.mxu1 %v21195_v2  ;;  %15754 = vmatprep.subr.bf16.mxu0 %v20739_v0  ;;  %v7762_v28 = vsub.f32 1.0, %v16858_v37  ;;  %v7764_v4 = vmul.f32 %v16858_v37, %v21332_v20  ;;  %v21340_v37 = vld [vmem:[#allocation45_spill] sm:$0xff]  ;;  %v21343_v20 = vld [vmem:[#allocation48_spill] sm:$0xff] }
 0xd3e   :  { %v7760_v38 = vadd.f32 %v7759_v60, %v7600_v59  ;;  %v21336_v60 = vld [vmem:[#allocation32_spill] sm:$0xff] }
 0xd40   :  { %16859 = vtanh.f32 %v7760_v38  ;;  %15729 = vmatpush1.bf16.msra.mxu1 %v21196_v9  ;;  %15756 = vmatpush3.bf16.msra.mxu0 %v21197_v63  ;;  %v21337_v38 = vld [vmem:[#allocation42_spill] sm:$0xff] }
 0xd41   :  { %15731 = vmatprep.subr.bf16.mxu1 %v21288_v55  ;;  %15757 = vmatprep.subr.bf16.mxu0 %v20739_v0 }
 0xd44   :  { %15733 = vmatpush1.bf16.msra.mxu1 %v21326_v48  ;;  %15759 = vmatpush3.bf16.msra.mxu0 %v21327_v26 }
 0xd45   :  { %15735 = vmatprep.subr.bf16.mxu1 %v21328_v11  ;;  %15760 = vmatprep.subr.bf16.mxu0 %v20739_v0 }
 0xd48   :  { %15737 = vmatpush1.bf16.msra.mxu1 %v21329_v61  ;;  %15762 = vmatpush3.bf16.msra.mxu0 %v21330_v39 }
 0xd49   :  { %15739 = vmatprep.subr.bf16.mxu1 %v21331_v49  ;;  %15763 = vmatprep.subr.bf16.mxu0 %v20739_v0  ;;  %v21338_v49 = vld [vmem:[#allocation39_spill] sm:$0xff] }
 0xd4a   :  { %v16860_v62 = vpop.eup %16859 }
 0xd4b   :  { %v7763_v21 = vmul.f32 %v16860_v62, %v7762_v28  ;;  %v21339_v28 = vld [vmem:[#allocation43_spill] sm:$0xff]  ;;  %v21341_v62 = vld [vmem:[#allocation40_spill] sm:$0xff] }
 0xd4c   :  { %15741 = vmatpush1.bf16.msra.mxu1 %v21333_v17  ;;  %15765 = vmatpush3.bf16.msra.mxu0 %v21334_v45 }
 0xd4d   :  { %v19900_v59 = vadd.f32 %v7764_v4, %v7763_v21  ;;  %15767 = vmatprep.subr.bf16.mxu0 %v21336_v60  ;;  %15798 = vmatprep.subr.bf16.mxu1 %v20739_v0  ;;  %v21342_v21 = vld [vmem:[#allocation46_spill] sm:$0xff]  ;;  %v21344_v4 = vld [vmem:[#allocation41_spill] sm:$0xff]  ;;  %v21348_v60 = vld [vmem:[#allocation52_spill] sm:$0xff] }
 0xd4f   :  { %21335 = vst [vmem:[#allocation71_spill] sm:$0xff] %v19900_v59  ;;  %8139 = vmatmul.mubr.f32.vlgmr.msra.gmra.mrb[88].mxu1 %v19900_v59  ;;  %12731 = vmatmul.mubr.f32.vlgmr.msra.gmra.mrb[94].mxu0 %v19900_v59 }
 0xd50   :  { %15769 = vmatpush1.bf16.msra.mxu0 %v21337_v38  ;;  %15800 = vmatpush3.bf16.msra.mxu1 %v21338_v49  ;;  %v21346_v49 = vld [vmem:[#allocation51_spill] sm:$0xff]  ;;  %v21347_v38 = vld [vmem:[#allocation44_spill] sm:$0xff] }
 0xd51   :  { %15771 = vmatprep.subr.bf16.mxu0 %v21339_v28  ;;  %15801 = vmatprep.subr.bf16.mxu1 %v20739_v0  ;;  %v21345_v28 = vld [vmem:[#allocation49_spill] sm:$0xff] }
 0xd52   :  { %8305 = vmatprep.mubr.f32.mxu0 %v20740_v22  ;;  %12765 = vmatprep.mubr.msk.f32.mxu1 %vm17063_vm0, %v20740_v22 }
 0xd54   :  { %15773 = vmatpush1.bf16.msra.mxu0 %v21340_v37  ;;  %15803 = vmatpush3.bf16.msra.mxu1 %v21341_v62  ;;  %v21349_v62 = vld [vmem:[#allocation54_spill] sm:$0xff]  ;;  %v21351_v37 = vld [vmem:[#allocation55_spill] sm:$0xff] }
 0xd55   :  { %15775 = vmatprep.subr.bf16.mxu0 %v21342_v21  ;;  %15804 = vmatprep.subr.bf16.mxu1 %v20739_v0  ;;  %v21350_v21 = vld [vmem:[#allocation47_spill] sm:$0xff] }
 0xd58   :  { %15777 = vmatpush1.bf16.msra.mxu0 %v21343_v20  ;;  %15806 = vmatpush3.bf16.msra.mxu1 %v21344_v4  ;;  %v21352_v4 = vld [vmem:[#allocation57_spill] sm:$0xff]  ;;  %v21354_v20 = vld [vmem:[#allocation58_spill] sm:$0xff] }
 0xd59   :  { %15779 = vmatprep.subr.bf16.mxu0 %v21345_v28  ;;  %15807 = vmatprep.subr.bf16.mxu1 %v20739_v0  ;;  %v21353_v28 = vld [vmem:[#allocation50_spill] sm:$0xff] }
 0xd5c   :  { %15781 = vmatpush1.bf16.msra.mxu0 %v21346_v49  ;;  %15809 = vmatpush3.bf16.msra.mxu1 %v21347_v38  ;;  %v21355_v38 = vld [vmem:[#allocation59_spill] sm:$0xff]  ;;  %v21357_v49 = vld [vmem:[#allocation60_spill] sm:$0xff] }
 0xd5d   :  { %15783 = vmatprep.subr.bf16.mxu0 %v21348_v60  ;;  %15810 = vmatprep.subr.bf16.mxu1 %v20739_v0  ;;  %v21356_v60 = vld [vmem:[#allocation53_spill] sm:$0xff] }
 0xd60   :  { %15785 = vmatpush1.bf16.msra.mxu0 %v21349_v62  ;;  %15812 = vmatpush3.bf16.msra.mxu1 %v21350_v21  ;;  %v21358_v21 = vld [vmem:[#allocation61_spill] sm:$0xff]  ;;  %v21360_v62 = vld [vmem:[#allocation92_spill] sm:$0xff] }
 0xd61   :  { %15787 = vmatprep.subr.bf16.mxu0 %v21351_v37  ;;  %15813 = vmatprep.subr.bf16.mxu1 %v20739_v0  ;;  %v21359_v37 = vld [vmem:[#allocation56_spill] sm:$0xff] }
 0xd64   :  { %15789 = vmatpush1.bf16.msra.mxu0 %v21352_v4  ;;  %15815 = vmatpush3.bf16.msra.mxu1 %v21353_v28  ;;  %v21361_v4 = vld [vmem:[#allocation90_spill] sm:$0xff] }
 0xd65   :  { %15791 = vmatprep.subr.bf16.mxu0 %v21354_v20  ;;  %15816 = vmatprep.subr.bf16.mxu1 %v20739_v0 }
 0xd68   :  { %15793 = vmatpush1.bf16.msra.mxu0 %v21355_v38  ;;  %15818 = vmatpush3.bf16.msra.mxu1 %v21356_v60 }
 0xd69   :  { %15795 = vmatprep.subr.bf16.mxu0 %v21357_v49  ;;  %15819 = vmatprep.subr.bf16.mxu1 %v20739_v0 }
 0xd6c   :  { %15797 = vmatpush1.bf16.msra.mxu0 %v21358_v21  ;;  %15821 = vmatpush3.bf16.msra.mxu1 %v21359_v37 }
 0xd6d   :  { %15823 = vmatprep.subr.bf16.mxu1 %v21360_v62  ;;  %15854 = vmatprep.subr.bf16.mxu0 %v20739_v0  ;;  %v19946_v62 = vld [vmem:[%s20390_s9] ss:$0 sm:$0xff] }
 0xde2   :  { %v7836_v28 = vpop.f32.mrb[40].mxu0  ;;  %v7907_v20 = vpop.f32.mrb[86].mxu1 }
 0xde3   :  { %v16422_v45 = vadd.f32 %v7836_v28, %v21361_v4  ;;  %v7838_v17 = vpop.f32.mrb[41].mxu0  ;;  %v12662_v38 = vpop.f32.mrb[87].mxu1  ;;  %v7925_v28 = vadd.f32 %v19946_v62, %v7907_v20 }
 0xde4   :  { %v16423_v60 = vadd.f32 %v7838_v17, %v21248_v30 }
 0xde5   :  { %v10032_v59 = vmul.f32 -1.442695, %v16422_v45  ;;  %v21362_v45 = vld [vmem:[#allocation82_spill] sm:$0xff] }
 0xde6   :  { %v10033_v49 = vmul.f32 -1.442695, %v16423_v60 }
 0xde7   :  { %16861 = vpow2.f32 %v10032_v59 }
 0xde8   :  { %16863 = vpow2.f32 %v10033_v49 }
 0xdf1   :  { %v16862_v39 = vpop.eup %16861 }
 0xdf2   :  { %v7915_v21 = vadd.f32 1.0, %v16862_v39  ;;  %v16864_v37 = vpop.eup %16863 }
 0xdf3   :  { %v7922_v61 = vadd.f32 1.0, %v16864_v37 }
 0xdf4   :  { %16865 = vrcp.f32 %v7915_v21 }
 0xdf5   :  { %16867 = vrcp.f32 %v7922_v61 }
 0xdfe   :  { %v16866_v4 = vpop.eup %16865 }
 0xdff   :  { %v7926_v38 = vmul.f32 %v16866_v4, %v7925_v28  ;;  %v16868_v39 = vpop.eup %16867 }
 0xe00   :  { %v7929_v60 = vsub.f32 1.0, %v16868_v39  ;;  %v7931_v30 = vmul.f32 %v16868_v39, %v19815_v36 }
 0xe01   :  { %v7927_v17 = vadd.f32 %v7926_v38, %v21362_v45 }
 0xe02   :  { %v19950_v59 = vpop.f32.mrb[92].mxu0 }
 0xe03   :  { %16869 = vtanh.f32 %v7927_v17  ;;  %v12697_v49 = vpop.f32.mrb[93].mxu0 }
 0xe0d   :  { %v16870_v21 = vpop.eup %16869 }
 0xe0e   :  { %v7930_v37 = vmul.f32 %v16870_v21, %v7929_v60 }
 0xe10   :  { %v19953_v11 = vadd.f32 %v7931_v30, %v7930_v37 }
 0xe12   :  { %8306 = vmatmul.mubr.f32.vlgmr.msra.gmra.mrb[42].mxu0 %v19953_v11  ;;  %12766 = vmatmul.mubr.f32.vlgmr.msra.gmra.mrb[90].mxu1 %v19953_v11 }
 0xe13   :  { %15825 = vmatpush1.bf16.msra.mxu1 %v20934_v50  ;;  %15856 = vmatpush3.bf16.msra.mxu0 %v20935_v47 }
 0xe14   :  { %15827 = vmatprep.subr.bf16.mxu1 %v20936_v25  ;;  %15857 = vmatprep.subr.bf16.mxu0 %v20739_v0 }
 0xe15   :  { %8468 = vmatprep.mubr.f32.mxu1 %v20740_v22  ;;  %12800 = vmatprep.mubr.msk.f32.mxu0 %vm17063_vm0, %v20740_v22 }
 0xe17   :  { %15829 = vmatpush1.bf16.msra.mxu1 %v20937_v27  ;;  %15859 = vmatpush3.bf16.msra.mxu0 %v21000_v34 }
 0xe18   :  { %15831 = vmatprep.subr.bf16.mxu1 %v21001_v32  ;;  %15860 = vmatprep.subr.bf16.mxu0 %v20739_v0 }
 0xe1b   :  { %15833 = vmatpush1.bf16.msra.mxu1 %v21002_v42  ;;  %15862 = vmatpush3.bf16.msra.mxu0 %v21003_v53 }
 0xe1c   :  { %15835 = vmatprep.subr.bf16.mxu1 %v21004_v51  ;;  %15863 = vmatprep.subr.bf16.mxu0 %v20739_v0 }
 0xe1f   :  { %15837 = vmatpush1.bf16.msra.mxu1 %v21005_v12  ;;  %15865 = vmatpush3.bf16.msra.mxu0 %v21006_v16 }
 0xe20   :  { %15839 = vmatprep.subr.bf16.mxu1 %v21007_v33  ;;  %15866 = vmatprep.subr.bf16.mxu0 %v20739_v0 }
 0xe22   :  { %v8140_v30 = vpop.f32.mrb[88].mxu1  ;;  %v8211_v36 = vpop.f32.mrb[94].mxu0 }
 0xe23   :  { %v16452_v61 = vadd.f32 %v8140_v30, %v18279_v31  ;;  %15841 = vmatpush1.bf16.msra.mxu1 %v20881_v46  ;;  %15868 = vmatpush3.bf16.msra.mxu0 %v21133_v56  ;;  %v8142_v20 = vpop.f32.mrb[89].mxu1  ;;  %v12732_v4 = vpop.f32.mrb[95].mxu0  ;;  %v8229_v21 = vadd.f32 %v19876_v23, %v8211_v36  ;;  %v8071_v30 = vadd.f32 %v19950_v59, %v21155_v1  ;;  %v21363_v59 = vld [vmem:[#allocation134_spill] sm:$0xff] }
 0xe24   :  { %15843 = vmatprep.subr.bf16.mxu1 %v21134_v8  ;;  %15869 = vmatprep.subr.bf16.mxu0 %v20739_v0  ;;  %v16453_v38 = vadd.f32 %v8142_v20, %v21175_v54  ;;  %v21364_v4 = vld [vmem:[#allocation135_spill] sm:$0xff] }
 0xe25   :  { %v10034_v28 = vmul.f32 -1.442695, %v16452_v61 }
 0xe26   :  { %v10035_v45 = vmul.f32 -1.442695, %v16453_v38  ;;  %v21366_v38 = vld [vmem:[#allocation137_spill] sm:$0xff] }
 0xe27   :  { %16871 = vpow2.f32 %v10034_v28  ;;  %15845 = vmatpush1.bf16.msra.mxu1 %v21176_v58  ;;  %15871 = vmatpush3.bf16.msra.mxu0 %v21177_v52  ;;  %v21365_v28 = vld [vmem:[#allocation136_spill] sm:$0xff] }
 0xe28   :  { %15847 = vmatprep.subr.bf16.mxu1 %v21178_v10  ;;  %15872 = vmatprep.subr.bf16.mxu0 %v20739_v0  ;;  %16873 = vpow2.f32 %v10035_v45 }
 0xe2b   :  { %15849 = vmatpush1.bf16.msra.mxu1 %v21179_v5  ;;  %15874 = vmatpush3.bf16.msra.mxu0 %v21180_v44 }
 0xe2c   :  { %15851 = vmatprep.subr.bf16.mxu1 %v21181_v19  ;;  %15875 = vmatprep.subr.bf16.mxu0 %v20739_v0 }
 0xe2f   :  { %15853 = vmatpush1.bf16.msra.mxu1 %v21182_v57  ;;  %15877 = vmatpush3.bf16.msra.mxu0 %v21214_v13 }
 0xe30   :  { %15879 = vmatprep.subr.bf16.mxu1 %v21215_v40  ;;  %15910 = vmatprep.subr.bf16.mxu0 %v20739_v0 }
 0xe31   :  { %v16872_v17 = vpop.eup %16871 }
 0xe32   :  { %v8219_v49 = vadd.f32 1.0, %v16872_v17  ;;  %8469 = vmatmul.mubr.f32.vlgmr.msra.gmra.mrb[92].mxu1 %v19953_v11  ;;  %12801 = vmatmul.mubr.f32.vlgmr.msra.gmra.mrb[96].mxu0 %v19953_v11  ;;  %v16874_v39 = vpop.eup %16873 }
 0xe33   :  { %15881 = vmatpush1.bf16.msra.mxu1 %v21216_v15  ;;  %15912 = vmatpush3.bf16.msra.mxu0 %v21250_v6  ;;  %v8226_v60 = vadd.f32 1.0, %v16874_v39  ;;  %v21367_v39 = vld [vmem:[#allocation71_spill] sm:$0xff] }
 0xe34   :  { %16875 = vrcp.f32 %v8219_v49  ;;  %15883 = vmatprep.subr.bf16.mxu1 %v21251_v29  ;;  %15913 = vmatprep.subr.bf16.mxu0 %v20739_v0 }
 0xe35   :  { %8609 = vmatprep.mubr.f32.mxu1 %v20740_v22  ;;  %12835 = vmatprep.mubr.msk.f32.mxu0 %vm17063_vm0, %v20740_v22  ;;  %16877 = vrcp.f32 %v8226_v60 }
 0xe37   :  { %15885 = vmatpush1.bf16.msra.mxu1 %v21252_v3  ;;  %15915 = vmatpush3.bf16.msra.mxu0 %v21253_v41 }
 0xe38   :  { %15887 = vmatprep.subr.bf16.mxu1 %v21221_v18  ;;  %15916 = vmatprep.subr.bf16.mxu0 %v20739_v0 }
 0xe3b   :  { %15889 = vmatpush1.bf16.msra.mxu1 %v21222_v43  ;;  %15918 = vmatpush3.bf16.msra.mxu0 %v21223_v24 }
 0xe3c   :  { %15891 = vmatprep.subr.bf16.mxu1 %v21224_v14  ;;  %15919 = vmatprep.subr.bf16.mxu0 %v20739_v0 }
 0xe3e   :  { %v16876_v37 = vpop.eup %16875 }
 0xe3f   :  { %v8230_v61 = vmul.f32 %v16876_v37, %v8229_v21  ;;  %15893 = vmatpush1.bf16.msra.mxu1 %v21156_v35  ;;  %15921 = vmatpush3.bf16.msra.mxu0 %v21194_v7  ;;  %v16878_v36 = vpop.eup %16877  ;;  %v21368_v21 = vld [vmem:[#allocation138_spill] sm:$0xff]  ;;  %v21369_v37 = vld [vmem:[#allocation139_spill] sm:$0xff] }
 0xe40   :  { %15895 = vmatprep.subr.bf16.mxu1 %v21195_v2  ;;  %15922 = vmatprep.subr.bf16.mxu0 %v20739_v0  ;;  %v8233_v45 = vsub.f32 1.0, %v16878_v36  ;;  %v8235_v60 = vmul.f32 %v16878_v36, %v21367_v39  ;;  %v21375_v36 = vld [vmem:[#allocation45_spill] sm:$0xff]  ;;  %v21378_v39 = vld [vmem:[#allocation48_spill] sm:$0xff] }
 0xe41   :  { %v8231_v20 = vadd.f32 %v8230_v61, %v8071_v30  ;;  %v21371_v61 = vld [vmem:[#allocation32_spill] sm:$0xff] }
 0xe43   :  { %16879 = vtanh.f32 %v8231_v20  ;;  %15897 = vmatpush1.bf16.msra.mxu1 %v21196_v9  ;;  %15924 = vmatpush3.bf16.msra.mxu0 %v21197_v63  ;;  %v21372_v20 = vld [vmem:[#allocation42_spill] sm:$0xff] }
 0xe44   :  { %15899 = vmatprep.subr.bf16.mxu1 %v21288_v55  ;;  %15925 = vmatprep.subr.bf16.mxu0 %v20739_v0  ;;  %v21398_v55 = vld [vmem:[#allocation81_spill] sm:$0xff] }
 0xe47   :  { %15901 = vmatpush1.bf16.msra.mxu1 %v21326_v48  ;;  %15927 = vmatpush3.bf16.msra.mxu0 %v21327_v26 }
 0xe48   :  { %15903 = vmatprep.subr.bf16.mxu1 %v21363_v59  ;;  %15928 = vmatprep.subr.bf16.mxu0 %v20739_v0 }
 0xe4b   :  { %15905 = vmatpush1.bf16.msra.mxu1 %v21364_v4  ;;  %15930 = vmatpush3.bf16.msra.mxu0 %v21365_v28 }
 0xe4c   :  { %15907 = vmatprep.subr.bf16.mxu1 %v21366_v38  ;;  %15931 = vmatprep.subr.bf16.mxu0 %v20739_v0  ;;  %v21373_v38 = vld [vmem:[#allocation39_spill] sm:$0xff] }
 0xe4d   :  { %v16880_v17 = vpop.eup %16879 }
 0xe4e   :  { %v8234_v49 = vmul.f32 %v16880_v17, %v8233_v45  ;;  %v21374_v45 = vld [vmem:[#allocation43_spill] sm:$0xff]  ;;  %v21376_v17 = vld [vmem:[#allocation40_spill] sm:$0xff] }
 0xe4f   :  { %15909 = vmatpush1.bf16.msra.mxu1 %v21368_v21  ;;  %15933 = vmatpush3.bf16.msra.mxu0 %v21369_v37 }
 0xe50   :  { %v20033_v30 = vadd.f32 %v8235_v60, %v8234_v49  ;;  %15935 = vmatprep.subr.bf16.mxu0 %v21371_v61  ;;  %15966 = vmatprep.subr.bf16.mxu1 %v20739_v0  ;;  %v21377_v49 = vld [vmem:[#allocation46_spill] sm:$0xff]  ;;  %v21379_v60 = vld [vmem:[#allocation41_spill] sm:$0xff]  ;;  %v21383_v61 = vld [vmem:[#allocation52_spill] sm:$0xff] }
 0xe52   :  { %21370 = vst [vmem:[#allocation93_spill] sm:$0xff] %v20033_v30  ;;  %8610 = vmatmul.mubr.f32.vlgmr.msra.gmra.mrb[92].mxu1 %v20033_v30  ;;  %12836 = vmatmul.mubr.f32.vlgmr.msra.gmra.mrb[98].mxu0 %v20033_v30 }
 0xe53   :  { %15937 = vmatpush1.bf16.msra.mxu0 %v21372_v20  ;;  %15968 = vmatpush3.bf16.msra.mxu1 %v21373_v38  ;;  %v21381_v38 = vld [vmem:[#allocation51_spill] sm:$0xff]  ;;  %v21382_v20 = vld [vmem:[#allocation44_spill] sm:$0xff] }
 0xe54   :  { %15939 = vmatprep.subr.bf16.mxu0 %v21374_v45  ;;  %15969 = vmatprep.subr.bf16.mxu1 %v20739_v0  ;;  %v21380_v45 = vld [vmem:[#allocation49_spill] sm:$0xff] }
 0xe55   :  { %8776 = vmatprep.mubr.f32.mxu0 %v20740_v22  ;;  %12870 = vmatprep.mubr.msk.f32.mxu1 %vm17063_vm0, %v20740_v22 }
 0xe57   :  { %15941 = vmatpush1.bf16.msra.mxu0 %v21375_v36  ;;  %15971 = vmatpush3.bf16.msra.mxu1 %v21376_v17  ;;  %v21384_v17 = vld [vmem:[#allocation54_spill] sm:$0xff]  ;;  %v21386_v36 = vld [vmem:[#allocation55_spill] sm:$0xff] }
 0xe58   :  { %15943 = vmatprep.subr.bf16.mxu0 %v21377_v49  ;;  %15972 = vmatprep.subr.bf16.mxu1 %v20739_v0  ;;  %v21385_v49 = vld [vmem:[#allocation47_spill] sm:$0xff] }
 0xe5b   :  { %15945 = vmatpush1.bf16.msra.mxu0 %v21378_v39  ;;  %15974 = vmatpush3.bf16.msra.mxu1 %v21379_v60  ;;  %v21387_v60 = vld [vmem:[#allocation57_spill] sm:$0xff]  ;;  %v21389_v39 = vld [vmem:[#allocation58_spill] sm:$0xff] }
 0xe5c   :  { %15947 = vmatprep.subr.bf16.mxu0 %v21380_v45  ;;  %15975 = vmatprep.subr.bf16.mxu1 %v20739_v0  ;;  %v21388_v45 = vld [vmem:[#allocation50_spill] sm:$0xff] }
 0xe5f   :  { %15949 = vmatpush1.bf16.msra.mxu0 %v21381_v38  ;;  %15977 = vmatpush3.bf16.msra.mxu1 %v21382_v20  ;;  %v21390_v20 = vld [vmem:[#allocation59_spill] sm:$0xff]  ;;  %v21392_v38 = vld [vmem:[#allocation60_spill] sm:$0xff] }
 0xe60   :  { %15951 = vmatprep.subr.bf16.mxu0 %v21383_v61  ;;  %15978 = vmatprep.subr.bf16.mxu1 %v20739_v0  ;;  %v21391_v61 = vld [vmem:[#allocation53_spill] sm:$0xff] }
 0xe63   :  { %15953 = vmatpush1.bf16.msra.mxu0 %v21384_v17  ;;  %15980 = vmatpush3.bf16.msra.mxu1 %v21385_v49  ;;  %v21393_v49 = vld [vmem:[#allocation61_spill] sm:$0xff]  ;;  %v21395_v17 = vld [vmem:[#allocation92_spill] sm:$0xff] }
 0xe64   :  { %15955 = vmatprep.subr.bf16.mxu0 %v21386_v36  ;;  %15981 = vmatprep.subr.bf16.mxu1 %v20739_v0  ;;  %v21394_v36 = vld [vmem:[#allocation56_spill] sm:$0xff] }
 0xe67   :  { %15957 = vmatpush1.bf16.msra.mxu0 %v21387_v60  ;;  %15983 = vmatpush3.bf16.msra.mxu1 %v21388_v45  ;;  %v21396_v60 = vld [vmem:[#allocation90_spill] sm:$0xff] }
 0xe68   :  { %15959 = vmatprep.subr.bf16.mxu0 %v21389_v39  ;;  %15984 = vmatprep.subr.bf16.mxu1 %v20739_v0 }
 0xe6b   :  { %15961 = vmatpush1.bf16.msra.mxu0 %v21390_v20  ;;  %15986 = vmatpush3.bf16.msra.mxu1 %v21391_v61  ;;  %v21397_v61 = vld [vmem:[#allocation91_spill] sm:$0xff] }
 0xe6c   :  { %15963 = vmatprep.subr.bf16.mxu0 %v21392_v38  ;;  %15987 = vmatprep.subr.bf16.mxu1 %v20739_v0 }
 0xe6f   :  { %15965 = vmatpush1.bf16.msra.mxu0 %v21393_v49  ;;  %15989 = vmatpush3.bf16.msra.mxu1 %v21394_v36 }
 0xe70   :  { %15991 = vmatprep.subr.bf16.mxu1 %v21395_v17  ;;  %16022 = vmatprep.subr.bf16.mxu0 %v20739_v0 }
 0xee5   :  { %v8307_v45 = vpop.f32.mrb[42].mxu0  ;;  %v8378_v39 = vpop.f32.mrb[90].mxu1 }
 0xee6   :  { %v16424_v37 = vadd.f32 %v8307_v45, %v21396_v60  ;;  %v8309_v21 = vpop.f32.mrb[43].mxu0  ;;  %v12767_v20 = vpop.f32.mrb[91].mxu1  ;;  %v8396_v17 = vadd.f32 %v19946_v62, %v8378_v39 }
 0xee7   :  { %v16425_v28 = vadd.f32 %v8309_v21, %v21397_v61 }
 0xee8   :  { %v10036_v30 = vmul.f32 -1.442695, %v16424_v37 }
 0xee9   :  { %v10037_v38 = vmul.f32 -1.442695, %v16425_v28 }
 0xeea   :  { %16881 = vpow2.f32 %v10036_v30 }
 0xeeb   :  { %16883 = vpow2.f32 %v10037_v38 }
 0xef4   :  { %v16882_v4 = vpop.eup %16881 }
 0xef5   :  { %v8386_v49 = vadd.f32 1.0, %v16882_v4  ;;  %v16884_v36 = vpop.eup %16883 }
 0xef6   :  { %v8393_v59 = vadd.f32 1.0, %v16884_v36 }
 0xef7   :  { %16885 = vrcp.f32 %v8386_v49 }
 0xef8   :  { %16887 = vrcp.f32 %v8393_v59 }
 0xf01   :  { %v16886_v26 = vpop.eup %16885 }
 0xf02   :  { %v8397_v48 = vmul.f32 %v16886_v26, %v8396_v17  ;;  %v16888_v21 = vpop.eup %16887 }
 0xf03   :  { %v8400_v30 = vsub.f32 1.0, %v16888_v21  ;;  %v8402_v4 = vmul.f32 %v16888_v21, %v19953_v11 }
 0xf04   :  { %v8398_v45 = vadd.f32 %v8397_v48, %v21398_v55 }
 0xf05   :  { %v20078_v60 = vpop.f32.mrb[96].mxu0 }
 0xf06   :  { %16889 = vtanh.f32 %v8398_v45  ;;  %v12802_v37 = vpop.f32.mrb[97].mxu0 }
 0xf10   :  { %v16890_v28 = vpop.eup %16889 }
 0xf11   :  { %v8401_v38 = vmul.f32 %v16890_v28, %v8400_v30 }
 0xf13   :  { %v20081_v20 = vadd.f32 %v8402_v4, %v8401_v38  ;;  %v8542_v38 = vadd.f32 %v20078_v60, %v21155_v1  ;;  %v21400_v60 = vld [vmem:[#allocation132_spill] sm:$0xff] }
 0xf15   :  { %8777 = vmatmul.mubr.f32.vlgmr.msra.gmra.mrb[44].mxu0 %v20081_v20  ;;  %12871 = vmatmul.mubr.f32.vlgmr.msra.gmra.mrb[94].mxu1 %v20081_v20 }
 0xf16   :  { %15993 = vmatpush1.bf16.msra.mxu1 %v20934_v50  ;;  %16024 = vmatpush3.bf16.msra.mxu0 %v20935_v47 }
 0xf17   :  { %15995 = vmatprep.subr.bf16.mxu1 %v20936_v25  ;;  %16025 = vmatprep.subr.bf16.mxu0 %v20739_v0 }
 0xf18   :  { %8939 = vmatprep.mubr.f32.mxu1 %v20740_v22  ;;  %12905 = vmatprep.mubr.msk.f32.mxu0 %vm17063_vm0, %v20740_v22 }
 0xf1a   :  { %15997 = vmatpush1.bf16.msra.mxu1 %v20937_v27  ;;  %16027 = vmatpush3.bf16.msra.mxu0 %v21000_v34 }
 0xf1b   :  { %15999 = vmatprep.subr.bf16.mxu1 %v21001_v32  ;;  %16028 = vmatprep.subr.bf16.mxu0 %v20739_v0 }
 0xf1e   :  { %16001 = vmatpush1.bf16.msra.mxu1 %v21002_v42  ;;  %16030 = vmatpush3.bf16.msra.mxu0 %v21003_v53 }
 0xf1f   :  { %16003 = vmatprep.subr.bf16.mxu1 %v21004_v51  ;;  %16031 = vmatprep.subr.bf16.mxu0 %v20739_v0 }
 0xf22   :  { %16005 = vmatpush1.bf16.msra.mxu1 %v21005_v12  ;;  %16033 = vmatpush3.bf16.msra.mxu0 %v21006_v16 }
 0xf23   :  { %16007 = vmatprep.subr.bf16.mxu1 %v21007_v33  ;;  %16034 = vmatprep.subr.bf16.mxu0 %v20739_v0 }
 0xf25   :  { %v8611_v55 = vpop.f32.mrb[92].mxu1  ;;  %v8682_v48 = vpop.f32.mrb[98].mxu0 }
 0xf26   :  { %v16454_v26 = vadd.f32 %v8611_v55, %v18279_v31  ;;  %16009 = vmatpush1.bf16.msra.mxu1 %v20881_v46  ;;  %16036 = vmatpush3.bf16.msra.mxu0 %v21133_v56  ;;  %v8613_v11 = vpop.f32.mrb[93].mxu1  ;;  %v12837_v59 = vpop.f32.mrb[99].mxu0  ;;  %v8700_v30 = vadd.f32 %v19876_v23, %v8682_v48  ;;  %v21399_v48 = vld [vmem:[#allocation131_spill] sm:$0xff] }
 0xf27   :  { %16011 = vmatprep.subr.bf16.mxu1 %v21134_v8  ;;  %16037 = vmatprep.subr.bf16.mxu0 %v20739_v0  ;;  %v16455_v17 = vadd.f32 %v8613_v11, %v21175_v54  ;;  %v21402_v11 = vld [vmem:[#allocation134_spill] sm:$0xff] }
 0xf28   :  { %v10038_v36 = vmul.f32 -1.442695, %v16454_v26  ;;  %v21401_v26 = vld [vmem:[#allocation133_spill] sm:$0xff] }
 0xf29   :  { %v10039_v49 = vmul.f32 -1.442695, %v16455_v17  ;;  %v21404_v17 = vld [vmem:[#allocation136_spill] sm:$0xff] }
 0xf2a   :  { %16891 = vpow2.f32 %v10038_v36  ;;  %16013 = vmatpush1.bf16.msra.mxu1 %v21176_v58  ;;  %16039 = vmatpush3.bf16.msra.mxu0 %v21177_v52  ;;  %v21403_v36 = vld [vmem:[#allocation135_spill] sm:$0xff] }
 0xf2b   :  { %16015 = vmatprep.subr.bf16.mxu1 %v21178_v10  ;;  %16040 = vmatprep.subr.bf16.mxu0 %v20739_v0  ;;  %16893 = vpow2.f32 %v10039_v49  ;;  %v21405_v49 = vld [vmem:[#allocation137_spill] sm:$0xff] }
 0xf2e   :  { %16017 = vmatpush1.bf16.msra.mxu1 %v21179_v5  ;;  %16042 = vmatpush3.bf16.msra.mxu0 %v21180_v44 }
 0xf2f   :  { %16019 = vmatprep.subr.bf16.mxu1 %v21181_v19  ;;  %16043 = vmatprep.subr.bf16.mxu0 %v20739_v0 }
 0xf32   :  { %16021 = vmatpush1.bf16.msra.mxu1 %v21182_v57  ;;  %16045 = vmatpush3.bf16.msra.mxu0 %v21214_v13 }
 0xf33   :  { %16047 = vmatprep.subr.bf16.mxu1 %v21215_v40  ;;  %16078 = vmatprep.subr.bf16.mxu0 %v20739_v0 }
 0xf34   :  { %v16892_v39 = vpop.eup %16891 }
 0xf35   :  { %v8690_v45 = vadd.f32 1.0, %v16892_v39  ;;  %8940 = vmatmul.mubr.f32.vlgmr.msra.gmra.mrb[96].mxu1 %v20081_v20  ;;  %12906 = vmatmul.mubr.f32.vlgmr.msra.gmra.mrb[100].mxu0 %v20081_v20  ;;  %v16894_v37 = vpop.eup %16893 }
 0xf36   :  { %16049 = vmatpush1.bf16.msra.mxu1 %v21216_v15  ;;  %16080 = vmatpush3.bf16.msra.mxu0 %v21250_v6  ;;  %v8697_v21 = vadd.f32 1.0, %v16894_v37 }
 0xf37   :  { %16895 = vrcp.f32 %v8690_v45  ;;  %16051 = vmatprep.subr.bf16.mxu1 %v21251_v29  ;;  %16081 = vmatprep.subr.bf16.mxu0 %v20739_v0 }
 0xf38   :  { %9080 = vmatprep.mubr.f32.mxu1 %v20740_v22  ;;  %12940 = vmatprep.mubr.msk.f32.mxu0 %vm17063_vm0, %v20740_v22  ;;  %16897 = vrcp.f32 %v8697_v21  ;;  %v21406_v21 = vld [vmem:[#allocation93_spill] sm:$0xff] }
 0xf3a   :  { %16053 = vmatpush1.bf16.msra.mxu1 %v21252_v3  ;;  %16083 = vmatpush3.bf16.msra.mxu0 %v21253_v41 }
 0xf3b   :  { %16055 = vmatprep.subr.bf16.mxu1 %v21221_v18  ;;  %16084 = vmatprep.subr.bf16.mxu0 %v20739_v0 }
 0xf3e   :  { %16057 = vmatpush1.bf16.msra.mxu1 %v21222_v43  ;;  %16086 = vmatpush3.bf16.msra.mxu0 %v21223_v24 }
 0xf3f   :  { %16059 = vmatprep.subr.bf16.mxu1 %v21224_v14  ;;  %16087 = vmatprep.subr.bf16.mxu0 %v20739_v0 }
 0xf41   :  { %v16896_v28 = vpop.eup %16895 }
 0xf42   :  { %v8701_v4 = vmul.f32 %v16896_v28, %v8700_v30  ;;  %16061 = vmatpush1.bf16.msra.mxu1 %v21156_v35  ;;  %16089 = vmatpush3.bf16.msra.mxu0 %v21194_v7  ;;  %v16898_v59 = vpop.eup %16897  ;;  %v21407_v28 = vld [vmem:[#allocation138_spill] sm:$0xff] }
 0xf43   :  { %16063 = vmatprep.subr.bf16.mxu1 %v21195_v2  ;;  %16090 = vmatprep.subr.bf16.mxu0 %v20739_v0  ;;  %v8704_v39 = vsub.f32 1.0, %v16898_v59  ;;  %v8706_v30 = vmul.f32 %v16898_v59, %v21406_v21  ;;  %v21414_v59 = vld [vmem:[#allocation45_spill] sm:$0xff] }
 0xf44   :  { %v8702_v55 = vadd.f32 %v8701_v4, %v8542_v38  ;;  %v21408_v38 = vld [vmem:[#allocation139_spill] sm:$0xff]  ;;  %v21419_v21 = vld [vmem:[#allocation49_spill] sm:$0xff] }
 0xf46   :  { %16899 = vtanh.f32 %v8702_v55  ;;  %16065 = vmatpush1.bf16.msra.mxu1 %v21196_v9  ;;  %16092 = vmatpush3.bf16.msra.mxu0 %v21197_v63  ;;  %v21410_v55 = vld [vmem:[#allocation32_spill] sm:$0xff] }
 0xf47   :  { %16067 = vmatprep.subr.bf16.mxu1 %v21399_v48  ;;  %16093 = vmatprep.subr.bf16.mxu0 %v20739_v0  ;;  %v21436_v48 = vld [vmem:[#allocation84_spill] sm:$0xff] }
 0xf4a   :  { %16069 = vmatpush1.bf16.msra.mxu1 %v21400_v60  ;;  %16095 = vmatpush3.bf16.msra.mxu0 %v21401_v26 }
 0xf4b   :  { %16071 = vmatprep.subr.bf16.mxu1 %v21402_v11  ;;  %16096 = vmatprep.subr.bf16.mxu0 %v20739_v0 }
 0xf4e   :  { %16073 = vmatpush1.bf16.msra.mxu1 %v21403_v36  ;;  %16098 = vmatpush3.bf16.msra.mxu0 %v21404_v17  ;;  %v21412_v17 = vld [vmem:[#allocation39_spill] sm:$0xff] }
 0xf4f   :  { %16075 = vmatprep.subr.bf16.mxu1 %v21405_v49  ;;  %16099 = vmatprep.subr.bf16.mxu0 %v20739_v0  ;;  %v21411_v49 = vld [vmem:[#allocation42_spill] sm:$0xff] }
 0xf50   :  { %v16900_v45 = vpop.eup %16899 }
 0xf51   :  { %v8705_v37 = vmul.f32 %v16900_v45, %v8704_v39  ;;  %v21413_v39 = vld [vmem:[#allocation43_spill] sm:$0xff]  ;;  %v21415_v45 = vld [vmem:[#allocation40_spill] sm:$0xff] }
 0xf52   :  { %16077 = vmatpush1.bf16.msra.mxu1 %v21407_v28  ;;  %16101 = vmatpush3.bf16.msra.mxu0 %v21408_v38 }
 0xf53   :  { %v20161_v4 = vadd.f32 %v8706_v30, %v8705_v37  ;;  %16103 = vmatprep.subr.bf16.mxu0 %v21410_v55  ;;  %16134 = vmatprep.subr.bf16.mxu1 %v20739_v0  ;;  %v21416_v37 = vld [vmem:[#allocation46_spill] sm:$0xff]  ;;  %v21420_v30 = vld [vmem:[#allocation51_spill] sm:$0xff]  ;;  %v21421_v55 = vld [vmem:[#allocation44_spill] sm:$0xff] }
 0xf55   :  { %21409 = vst [vmem:[#allocation94_spill] sm:$0xff] %v20161_v4  ;;  %9081 = vmatmul.mubr.f32.vlgmr.msra.gmra.mrb[96].mxu1 %v20161_v4  ;;  %12941 = vmatmul.mubr.f32.vlgmr.msra.gmra.mrb[102].mxu0 %v20161_v4 }
 0xf56   :  { %16105 = vmatpush1.bf16.msra.mxu0 %v21411_v49  ;;  %16136 = vmatpush3.bf16.msra.mxu1 %v21412_v17  ;;  %v21417_v49 = vld [vmem:[#allocation48_spill] sm:$0xff]  ;;  %v21418_v17 = vld [vmem:[#allocation41_spill] sm:$0xff] }
 0xf57   :  { %16107 = vmatprep.subr.bf16.mxu0 %v21413_v39  ;;  %16137 = vmatprep.subr.bf16.mxu1 %v20739_v0  ;;  %v21422_v39 = vld [vmem:[#allocation52_spill] sm:$0xff] }
 0xf58   :  { %9247 = vmatprep.mubr.f32.mxu0 %v20740_v22  ;;  %12975 = vmatprep.mubr.msk.f32.mxu1 %vm17063_vm0, %v20740_v22 }
 0xf5a   :  { %16109 = vmatpush1.bf16.msra.mxu0 %v21414_v59  ;;  %16139 = vmatpush3.bf16.msra.mxu1 %v21415_v45  ;;  %v21423_v59 = vld [vmem:[#allocation54_spill] sm:$0xff]  ;;  %v21424_v45 = vld [vmem:[#allocation47_spill] sm:$0xff] }
 0xf5b   :  { %16111 = vmatprep.subr.bf16.mxu0 %v21416_v37  ;;  %16140 = vmatprep.subr.bf16.mxu1 %v20739_v0  ;;  %v21425_v37 = vld [vmem:[#allocation55_spill] sm:$0xff] }
 0xf5e   :  { %16113 = vmatpush1.bf16.msra.mxu0 %v21417_v49  ;;  %16142 = vmatpush3.bf16.msra.mxu1 %v21418_v17  ;;  %v21426_v49 = vld [vmem:[#allocation57_spill] sm:$0xff]  ;;  %v21427_v17 = vld [vmem:[#allocation50_spill] sm:$0xff] }
 0xf5f   :  { %16115 = vmatprep.subr.bf16.mxu0 %v21419_v21  ;;  %16143 = vmatprep.subr.bf16.mxu1 %v20739_v0  ;;  %v21428_v21 = vld [vmem:[#allocation58_spill] sm:$0xff] }
 0xf62   :  { %16117 = vmatpush1.bf16.msra.mxu0 %v21420_v30  ;;  %16145 = vmatpush3.bf16.msra.mxu1 %v21421_v55  ;;  %v21429_v30 = vld [vmem:[#allocation59_spill] sm:$0xff]  ;;  %v21430_v55 = vld [vmem:[#allocation53_spill] sm:$0xff] }
 0xf63   :  { %16119 = vmatprep.subr.bf16.mxu0 %v21422_v39  ;;  %16146 = vmatprep.subr.bf16.mxu1 %v20739_v0  ;;  %v21431_v39 = vld [vmem:[#allocation60_spill] sm:$0xff] }
 0xf66   :  { %16121 = vmatpush1.bf16.msra.mxu0 %v21423_v59  ;;  %16148 = vmatpush3.bf16.msra.mxu1 %v21424_v45  ;;  %v21432_v59 = vld [vmem:[#allocation61_spill] sm:$0xff]  ;;  %v21433_v45 = vld [vmem:[#allocation56_spill] sm:$0xff] }
 0xf67   :  { %16123 = vmatprep.subr.bf16.mxu0 %v21425_v37  ;;  %16149 = vmatprep.subr.bf16.mxu1 %v20739_v0  ;;  %v21434_v37 = vld [vmem:[#allocation92_spill] sm:$0xff] }
 0xf6a   :  { %16125 = vmatpush1.bf16.msra.mxu0 %v21426_v49  ;;  %16151 = vmatpush3.bf16.msra.mxu1 %v21427_v17 }
 0xf6b   :  { %16127 = vmatprep.subr.bf16.mxu0 %v21428_v21  ;;  %16152 = vmatprep.subr.bf16.mxu1 %v20739_v0  ;;  %v21435_v21 = vld [vmem:[#allocation90_spill] sm:$0xff] }
 0xf6e   :  { %16129 = vmatpush1.bf16.msra.mxu0 %v21429_v30  ;;  %16154 = vmatpush3.bf16.msra.mxu1 %v21430_v55 }
 0xf6f   :  { %16131 = vmatprep.subr.bf16.mxu0 %v21431_v39  ;;  %16155 = vmatprep.subr.bf16.mxu1 %v20739_v0 }
 0xf72   :  { %16133 = vmatpush1.bf16.msra.mxu0 %v21432_v59  ;;  %16157 = vmatpush3.bf16.msra.mxu1 %v21433_v45 }
 0xf73   :  { %16159 = vmatprep.subr.bf16.mxu1 %v21434_v37  ;;  %16190 = vmatprep.subr.bf16.mxu0 %v20739_v0 }
 0xfe8   :  { %v8778_v49 = vpop.f32.mrb[44].mxu0  ;;  %v8849_v17 = vpop.f32.mrb[94].mxu1 }
 0xfe9   :  { %v16426_v38 = vadd.f32 %v8778_v49, %v21435_v21  ;;  %v8780_v28 = vpop.f32.mrb[45].mxu0  ;;  %v12872_v30 = vpop.f32.mrb[95].mxu1  ;;  %v8867_v37 = vadd.f32 %v19946_v62, %v8849_v17 }
 0xfea   :  { %v16427_v55 = vadd.f32 %v8780_v28, %v21397_v61 }
 0xfeb   :  { %v10040_v4 = vmul.f32 -1.442695, %v16426_v38 }
 0xfec   :  { %v10041_v39 = vmul.f32 -1.442695, %v16427_v55 }
 0xfed   :  { %16901 = vpow2.f32 %v10040_v4 }
 0xfee   :  { %16903 = vpow2.f32 %v10041_v39 }
 0xff7   :  { %v16902_v36 = vpop.eup %16901 }
 0xff8   :  { %v8857_v59 = vadd.f32 1.0, %v16902_v36  ;;  %v16904_v45 = vpop.eup %16903 }
 0xff9   :  { %v8864_v11 = vadd.f32 1.0, %v16904_v45 }
 0xffa   :  { %16905 = vrcp.f32 %v8857_v59 }
 0xffb   :  { %16907 = vrcp.f32 %v8864_v11 }
0x1004   :  { %v16906_v26 = vpop.eup %16905 }
0x1005   :  { %v8868_v60 = vmul.f32 %v16906_v26, %v8867_v37  ;;  %v16908_v28 = vpop.eup %16907 }
0x1006   :  { %v8871_v4 = vsub.f32 1.0, %v16908_v28  ;;  %v8873_v36 = vmul.f32 %v16908_v28, %v20081_v20 }
0x1007   :  { %v8869_v49 = vadd.f32 %v8868_v60, %v21436_v48 }
0x1008   :  { %v20206_v21 = vpop.f32.mrb[100].mxu0 }
0x1009   :  { %16909 = vtanh.f32 %v8869_v49  ;;  %v12907_v38 = vpop.f32.mrb[101].mxu0 }
0x1013   :  { %v16910_v30 = vpop.eup %16909 }
0x1014   :  { %v8872_v55 = vmul.f32 %v16910_v30, %v8871_v4 }
0x1016   :  { %v20209_v39 = vadd.f32 %v8873_v36, %v8872_v55  ;;  %v9013_v55 = vadd.f32 %v20206_v21, %v21155_v1  ;;  %v21438_v21 = vld [vmem:[#allocation132_spill] sm:$0xff] }
0x1018   :  { %9248 = vmatmul.mubr.f32.vlgmr.msra.gmra.mrb[46].mxu0 %v20209_v39  ;;  %12976 = vmatmul.mubr.f32.vlgmr.msra.gmra.mrb[98].mxu1 %v20209_v39 }
0x1019   :  { %16161 = vmatpush1.bf16.msra.mxu1 %v20934_v50  ;;  %16192 = vmatpush3.bf16.msra.mxu0 %v20935_v47 }
0x101a   :  { %16163 = vmatprep.subr.bf16.mxu1 %v20936_v25  ;;  %16193 = vmatprep.subr.bf16.mxu0 %v20739_v0 }
0x101b   :  { %9410 = vmatprep.mubr.f32.mxu1 %v20740_v22  ;;  %13010 = vmatprep.mubr.msk.f32.mxu0 %vm17063_vm0, %v20740_v22 }
0x101d   :  { %16165 = vmatpush1.bf16.msra.mxu1 %v20937_v27  ;;  %16195 = vmatpush3.bf16.msra.mxu0 %v21000_v34 }
0x101e   :  { %16167 = vmatprep.subr.bf16.mxu1 %v21001_v32  ;;  %16196 = vmatprep.subr.bf16.mxu0 %v20739_v0 }
0x1021   :  { %16169 = vmatpush1.bf16.msra.mxu1 %v21002_v42  ;;  %16198 = vmatpush3.bf16.msra.mxu0 %v21003_v53 }
0x1022   :  { %16171 = vmatprep.subr.bf16.mxu1 %v21004_v51  ;;  %16199 = vmatprep.subr.bf16.mxu0 %v20739_v0 }
0x1025   :  { %16173 = vmatpush1.bf16.msra.mxu1 %v21005_v12  ;;  %16201 = vmatpush3.bf16.msra.mxu0 %v21006_v16 }
0x1026   :  { %16175 = vmatprep.subr.bf16.mxu1 %v21007_v33  ;;  %16202 = vmatprep.subr.bf16.mxu0 %v20739_v0 }
0x1028   :  { %v9082_v20 = vpop.f32.mrb[96].mxu1  ;;  %v9153_v48 = vpop.f32.mrb[102].mxu0 }
0x1029   :  { %v16456_v60 = vadd.f32 %v9082_v20, %v18279_v31  ;;  %16177 = vmatpush1.bf16.msra.mxu1 %v20881_v46  ;;  %16204 = vmatpush3.bf16.msra.mxu0 %v21133_v56  ;;  %v9084_v26 = vpop.f32.mrb[97].mxu1  ;;  %v12942_v11 = vpop.f32.mrb[103].mxu0  ;;  %v9171_v4 = vadd.f32 %v19876_v23, %v9153_v48  ;;  %v21437_v23 = vld [vmem:[#allocation131_spill] sm:$0xff]  ;;  %v21439_v48 = vld [vmem:[#allocation133_spill] sm:$0xff] }
0x102a   :  { %16179 = vmatprep.subr.bf16.mxu1 %v21134_v8  ;;  %16205 = vmatprep.subr.bf16.mxu0 %v20739_v0  ;;  %v16457_v17 = vadd.f32 %v9084_v26, %v21175_v54  ;;  %v21441_v11 = vld [vmem:[#allocation135_spill] sm:$0xff] }
0x102b   :  { %v10042_v37 = vmul.f32 -1.442695, %v16456_v60  ;;  %v21440_v60 = vld [vmem:[#allocation134_spill] sm:$0xff] }
0x102c   :  { %v10043_v59 = vmul.f32 -1.442695, %v16457_v17  ;;  %v21443_v17 = vld [vmem:[#allocation137_spill] sm:$0xff] }
0x102d   :  { %16911 = vpow2.f32 %v10042_v37  ;;  %16181 = vmatpush1.bf16.msra.mxu1 %v21176_v58  ;;  %16207 = vmatpush3.bf16.msra.mxu0 %v21177_v52  ;;  %v21442_v37 = vld [vmem:[#allocation136_spill] sm:$0xff] }
0x102e   :  { %16183 = vmatprep.subr.bf16.mxu1 %v21178_v10  ;;  %16208 = vmatprep.subr.bf16.mxu0 %v20739_v0  ;;  %16913 = vpow2.f32 %v10043_v59 }
0x1031   :  { %16185 = vmatpush1.bf16.msra.mxu1 %v21179_v5  ;;  %16210 = vmatpush3.bf16.msra.mxu0 %v21180_v44 }
0x1032   :  { %16187 = vmatprep.subr.bf16.mxu1 %v21181_v19  ;;  %16211 = vmatprep.subr.bf16.mxu0 %v20739_v0 }
0x1035   :  { %16189 = vmatpush1.bf16.msra.mxu1 %v21182_v57  ;;  %16213 = vmatpush3.bf16.msra.mxu0 %v21214_v13 }
0x1036   :  { %16215 = vmatprep.subr.bf16.mxu1 %v21215_v40  ;;  %16246 = vmatprep.subr.bf16.mxu0 %v20739_v0 }
0x1037   :  { %v16912_v45 = vpop.eup %16911 }
0x1038   :  { %v9161_v49 = vadd.f32 1.0, %v16912_v45  ;;  %9411 = vmatmul.mubr.f32.vlgmr.msra.gmra.mrb[100].mxu1 %v20209_v39  ;;  %13011 = vmatmul.mubr.f32.vlgmr.msra.gmra.mrb[104].mxu0 %v20209_v39  ;;  %v16914_v38 = vpop.eup %16913 }
0x1039   :  { %16217 = vmatpush1.bf16.msra.mxu1 %v21216_v15  ;;  %16248 = vmatpush3.bf16.msra.mxu0 %v21250_v6  ;;  %v9168_v28 = vadd.f32 1.0, %v16914_v38  ;;  %v21444_v38 = vld [vmem:[#allocation94_spill] sm:$0xff] }
0x103a   :  { %16915 = vrcp.f32 %v9161_v49  ;;  %16219 = vmatprep.subr.bf16.mxu1 %v21251_v29  ;;  %16249 = vmatprep.subr.bf16.mxu0 %v20739_v0 }
0x103b   :  { %9551 = vmatprep.mubr.f32.mxu1 %v20740_v22  ;;  %13045 = vmatprep.mubr.msk.f32.mxu0 %vm17063_vm0, %v20740_v22  ;;  %16917 = vrcp.f32 %v9168_v28 }
0x103d   :  { %16221 = vmatpush1.bf16.msra.mxu1 %v21252_v3  ;;  %16251 = vmatpush3.bf16.msra.mxu0 %v21253_v41 }
0x103e   :  { %16223 = vmatprep.subr.bf16.mxu1 %v21221_v18  ;;  %16252 = vmatprep.subr.bf16.mxu0 %v20739_v0 }
0x1041   :  { %16225 = vmatpush1.bf16.msra.mxu1 %v21222_v43  ;;  %16254 = vmatpush3.bf16.msra.mxu0 %v21223_v24 }
0x1042   :  { %16227 = vmatprep.subr.bf16.mxu1 %v21224_v14  ;;  %16255 = vmatprep.subr.bf16.mxu0 %v20739_v0 }
0x1044   :  { %v16916_v30 = vpop.eup %16915 }
0x1045   :  { %v9172_v36 = vmul.f32 %v16916_v30, %v9171_v4  ;;  %16229 = vmatpush1.bf16.msra.mxu1 %v21156_v35  ;;  %16257 = vmatpush3.bf16.msra.mxu0 %v21194_v7  ;;  %v16918_v26 = vpop.eup %16917  ;;  %v21445_v4 = vld [vmem:[#allocation138_spill] sm:$0xff]  ;;  %v21446_v30 = vld [vmem:[#allocation139_spill] sm:$0xff] }
0x1046   :  { %16231 = vmatprep.subr.bf16.mxu1 %v21195_v2  ;;  %16258 = vmatprep.subr.bf16.mxu0 %v20739_v0  ;;  %v9175_v59 = vsub.f32 1.0, %v16918_v26  ;;  %v9177_v28 = vmul.f32 %v16918_v26, %v21444_v38 }
0x1047   :  { %v9173_v20 = vadd.f32 %v9172_v36, %v9013_v55  ;;  %v21447_v36 = vld [vmem:[#allocation92_spill] sm:$0xff] }
0x1049   :  { %16919 = vtanh.f32 %v9173_v20  ;;  %16233 = vmatpush1.bf16.msra.mxu1 %v21196_v9  ;;  %16260 = vmatpush3.bf16.msra.mxu0 %v21197_v63 }
0x104a   :  { %16235 = vmatprep.subr.bf16.mxu1 %v21437_v23  ;;  %16261 = vmatprep.subr.bf16.mxu0 %v20739_v0 }
0x104d   :  { %16237 = vmatpush1.bf16.msra.mxu1 %v21438_v21  ;;  %16263 = vmatpush3.bf16.msra.mxu0 %v21439_v48 }
0x104e   :  { %16239 = vmatprep.subr.bf16.mxu1 %v21440_v60  ;;  %16264 = vmatprep.subr.bf16.mxu0 %v20739_v0 }
0x1051   :  { %16241 = vmatpush1.bf16.msra.mxu1 %v21441_v11  ;;  %16266 = vmatpush3.bf16.msra.mxu0 %v21442_v37 }
0x1052   :  { %16243 = vmatprep.subr.bf16.mxu1 %v21443_v17  ;;  %16267 = vmatprep.subr.bf16.mxu0 %v20739_v0 }
0x1053   :  { %v16920_v45 = vpop.eup %16919 }
0x1054   :  { %v9176_v49 = vmul.f32 %v16920_v45, %v9175_v59 }
0x1055   :  { %16245 = vmatpush1.bf16.msra.mxu1 %v21445_v4  ;;  %16269 = vmatpush3.bf16.msra.mxu0 %v21446_v30 }
0x1056   :  { %v20289_v55 = vadd.f32 %v9177_v28, %v9176_v49  ;;  %16271 = vmatprep.subr.bf16.mxu1 %v21447_v36  ;;  %16302 = vmatprep.subr.bf16.mxu0 %v20739_v0 }
0x1058   :  { %9552 = vmatmul.mubr.f32.vlgmr.msra.gmra.mrb[100].mxu1 %v20289_v55  ;;  %13046 = vmatmul.mubr.f32.vlgmr.msra.gmra.mrb[106].mxu0 %v20289_v55 }
0x1059   :  { %16273 = vmatpush1.bf16.msra.mxu1 %v20934_v50  ;;  %16304 = vmatpush3.bf16.msra.mxu0 %v20935_v47  ;;  %v21448_v47 = vld [vmem:[#allocation90_spill] sm:$0xff] }
0x105a   :  { %16275 = vmatprep.subr.bf16.mxu1 %v20936_v25  ;;  %16305 = vmatprep.subr.bf16.mxu0 %v20739_v0 }
0x105b   :  { %9714 = vmatprep.mubr.f32.mxu1 %v20740_v22  ;;  %13080 = vmatprep.mubr.msk.f32.mxu0 %vm17063_vm0, %v20740_v22 }
0x105d   :  { %16277 = vmatpush1.bf16.msra.mxu1 %v20937_v27  ;;  %16307 = vmatpush3.bf16.msra.mxu0 %v21000_v34 }
0x105e   :  { %16279 = vmatprep.subr.bf16.mxu1 %v21001_v32  ;;  %16308 = vmatprep.subr.bf16.mxu0 %v20739_v0 }
0x1061   :  { %16281 = vmatpush1.bf16.msra.mxu1 %v21002_v42  ;;  %16310 = vmatpush3.bf16.msra.mxu0 %v21003_v53 }
0x1062   :  { %16283 = vmatprep.subr.bf16.mxu1 %v21004_v51  ;;  %16311 = vmatprep.subr.bf16.mxu0 %v20739_v0 }
0x1065   :  { %16285 = vmatpush1.bf16.msra.mxu1 %v21005_v12  ;;  %16313 = vmatpush3.bf16.msra.mxu0 %v21006_v16 }
0x1066   :  { %16287 = vmatprep.subr.bf16.mxu1 %v21007_v33  ;;  %16314 = vmatprep.subr.bf16.mxu0 %v20739_v0 }
0x1069   :  { %16289 = vmatpush1.bf16.msra.mxu1 %v20881_v46  ;;  %16316 = vmatpush3.bf16.msra.mxu0 %v21133_v56 }
0x106a   :  { %16291 = vmatprep.subr.bf16.mxu1 %v21134_v8  ;;  %16317 = vmatprep.subr.bf16.mxu0 %v20739_v0 }
0x106d   :  { %16293 = vmatpush1.bf16.msra.mxu1 %v21176_v58  ;;  %16319 = vmatpush3.bf16.msra.mxu0 %v21177_v52  ;;  %v21449_v52 = vld [vmem:[#allocation83_spill] sm:$0xff] }
0x106e   :  { %16295 = vmatprep.subr.bf16.mxu1 %v21178_v10  ;;  %16320 = vmatprep.subr.bf16.mxu0 %v20739_v0 }
0x1071   :  { %16297 = vmatpush1.bf16.msra.mxu1 %v21179_v5  ;;  %16322 = vmatpush3.bf16.msra.mxu0 %v21180_v44 }
0x1072   :  { %16299 = vmatprep.subr.bf16.mxu1 %v21181_v19  ;;  %16323 = vmatprep.subr.bf16.mxu0 %v20739_v0 }
0x1075   :  { %16301 = vmatpush1.bf16.msra.mxu1 %v21182_v57  ;;  %16325 = vmatpush3.bf16.msra.mxu0 %v21214_v13 }
0x1076   :  { %16327 = vmatprep.subr.bf16.mxu1 %v21215_v40  ;;  %16358 = vmatprep.subr.bf16.mxu0 %v20739_v0 }
0x10eb   :  { %v9249_v46 = vpop.f32.mrb[46].mxu0  ;;  %v9320_v50 = vpop.f32.mrb[98].mxu1 }
0x10ec   :  { %v16428_v25 = vadd.f32 %v9249_v46, %v21448_v47  ;;  %v9251_v27 = vpop.f32.mrb[47].mxu0  ;;  %v12977_v34 = vpop.f32.mrb[99].mxu1  ;;  %v9338_v56 = vadd.f32 %v19946_v62, %v9320_v50 }
0x10ed   :  { %v16429_v42 = vadd.f32 %v9251_v27, %v21397_v61 }
0x10ee   :  { %v10044_v32 = vmul.f32 -1.442695, %v16428_v25 }
0x10ef   :  { %v10045_v53 = vmul.f32 -1.442695, %v16429_v42 }
0x10f0   :  { %16921 = vpow2.f32 %v10044_v32 }
0x10f1   :  { %16923 = vpow2.f32 %v10045_v53 }
0x10fa   :  { %v16922_v51 = vpop.eup %16921 }
0x10fb   :  { %v9328_v12 = vadd.f32 1.0, %v16922_v51  ;;  %v16924_v16 = vpop.eup %16923 }
0x10fc   :  { %v9335_v33 = vadd.f32 1.0, %v16924_v16 }
0x10fd   :  { %16925 = vrcp.f32 %v9328_v12 }
0x10fe   :  { %16927 = vrcp.f32 %v9335_v33 }
0x1107   :  { %v16926_v8 = vpop.eup %16925 }
0x1108   :  { %v9339_v58 = vmul.f32 %v16926_v8, %v9338_v56  ;;  %v16928_v19 = vpop.eup %16927 }
0x1109   :  { %v9342_v57 = vsub.f32 1.0, %v16928_v19  ;;  %v9344_v61 = vmul.f32 %v16928_v19, %v20209_v39 }
0x110a   :  { %v9340_v10 = vadd.f32 %v9339_v58, %v21449_v52 }
0x110b   :  { %v9483_v5 = vpop.f32.mrb[104].mxu0 }
0x110c   :  { %16929 = vtanh.f32 %v9340_v10  ;;  %v13012_v44 = vpop.f32.mrb[105].mxu0  ;;  %v9484_v62 = vadd.f32 %v9483_v5, %v21155_v1 }
0x1116   :  { %v16930_v13 = vpop.eup %16929 }
0x1117   :  { %v9343_v40 = vmul.f32 %v16930_v13, %v9342_v57 }
0x1119   :  { %v9345_v20 = vadd.f32 %v9344_v61, %v9343_v40 }
0x111b   :  { %9715 = vmatmul.mubr.f32.vlgmr.msra.gmra.mrb[102].mxu1 %v9345_v20  ;;  %13081 = vmatmul.mubr.f32.vlgmr.msra.gmra.mrb[108].mxu0 %v9345_v20 }
0x111c   :  { %16329 = vmatpush1.bf16.msra.mxu1 %v21216_v15  ;;  %16360 = vmatpush3.bf16.msra.mxu0 %v21250_v6 }
0x111d   :  { %16331 = vmatprep.subr.bf16.mxu1 %v21251_v29  ;;  %16361 = vmatprep.subr.bf16.mxu0 %v20739_v0  ;;  %v16960_v29 = vld [vmem:[%s20394_s13] ss:$0 sm:$0xff] }
0x111e   :  { %9855 = vmatprep.mubr.f32.mxu1 %v20740_v22  ;;  %13115 = vmatprep.mubr.msk.f32.mxu0 %vm17063_vm0, %v20740_v22 }
0x1120   :  { %16333 = vmatpush1.bf16.msra.mxu1 %v21252_v3  ;;  %16363 = vmatpush3.bf16.msra.mxu0 %v21253_v41 }
0x1121   :  { %16335 = vmatprep.subr.bf16.mxu1 %v21221_v18  ;;  %16364 = vmatprep.subr.bf16.mxu0 %v20739_v0 }
0x1124   :  { %16337 = vmatpush1.bf16.msra.mxu1 %v21222_v43  ;;  %16366 = vmatpush3.bf16.msra.mxu0 %v21223_v24 }
0x1125   :  { %16339 = vmatprep.subr.bf16.mxu1 %v21224_v14  ;;  %16367 = vmatprep.subr.bf16.mxu0 %v20739_v0 }
0x1128   :  { %16341 = vmatpush1.bf16.msra.mxu1 %v21156_v35  ;;  %16369 = vmatpush3.bf16.msra.mxu0 %v21194_v7 }
0x1129   :  { %16343 = vmatprep.subr.bf16.mxu1 %v21195_v2  ;;  %16370 = vmatprep.subr.bf16.mxu0 %v20739_v0 }
0x112b   :  { %v9553_v22 = vpop.f32.mrb[100].mxu1  ;;  %v9624_v15 = vpop.f32.mrb[106].mxu0 }
0x112c   :  { %v16458_v18 = vadd.f32 %v9553_v22, %v18279_v31  ;;  %v9555_v6 = vpop.f32.mrb[101].mxu1  ;;  %v13047_v43 = vpop.f32.mrb[107].mxu0  ;;  %16345 = vmatpush1.bf16.msra.mxu1 %v21196_v9  ;;  %16372 = vmatpush3.bf16.msra.mxu0 %v21197_v63  ;;  %v9642_v3 = vadd.f32 %v16960_v29, %v9624_v15 }
0x112d   :  { %16347 = vmatprep.subr.bf16.mxu1 %v21437_v23  ;;  %16373 = vmatprep.subr.bf16.mxu0 %v20739_v0  ;;  %v16459_v7 = vadd.f32 %v9555_v6, %v21175_v54 }
0x112e   :  { %v10046_v35 = vmul.f32 -1.442695, %v16458_v18 }
0x112f   :  { %v10047_v2 = vmul.f32 -1.442695, %v16459_v7 }
0x1130   :  { %16931 = vpow2.f32 %v10046_v35  ;;  %16349 = vmatpush1.bf16.msra.mxu1 %v21438_v21  ;;  %16375 = vmatpush3.bf16.msra.mxu0 %v21439_v48 }
0x1131   :  { %16351 = vmatprep.subr.bf16.mxu1 %v21440_v60  ;;  %16376 = vmatprep.subr.bf16.mxu0 %v20739_v0  ;;  %16933 = vpow2.f32 %v10047_v2 }
0x1134   :  { %16353 = vmatpush1.bf16.msra.mxu1 %v21441_v11  ;;  %16378 = vmatpush3.bf16.msra.mxu0 %v21442_v37 }
0x1135   :  { %16355 = vmatprep.subr.bf16.mxu1 %v21443_v17  ;;  %16379 = vmatprep.subr.bf16.mxu0 %v20739_v0 }
0x1138   :  { %16357 = vmatpush1.bf16.msra.mxu1 %v21445_v4  ;;  %16381 = vmatpush3.bf16.msra.mxu0 %v21446_v30 }
0x113a   :  { %v16932_v63 = vpop.eup %16931 }
0x113b   :  { %v9632_v9 = vadd.f32 1.0, %v16932_v63  ;;  %v16934_v24 = vpop.eup %16933 }
0x113c   :  { %v9639_v14 = vadd.f32 1.0, %v16934_v24 }
0x113d   :  { %16935 = vrcp.f32 %v9632_v9 }
0x113e   :  { %16937 = vrcp.f32 %v9639_v14 }
0x1147   :  { %v16936_v41 = vpop.eup %16935 }
0x1148   :  { %v9643_v39 = vmul.f32 %v16936_v41, %v9642_v3  ;;  %v16938_v23 = vpop.eup %16937 }
0x1149   :  { %v9646_v21 = vsub.f32 1.0, %v16938_v23  ;;  %v9648_v26 = vmul.f32 %v16938_v23, %v20289_v55 }
0x114a   :  { %v9644_v0 = vadd.f32 %v9643_v39, %v9484_v62 }
0x114c   :  { %16939 = vtanh.f32 %v9644_v0 }
0x1156   :  { %v16940_v48 = vpop.eup %16939 }
0x1157   :  { %v9647_v60 = vmul.f32 %v16940_v48, %v9646_v21 }
0x1159   :  { %v9649_v11 = vadd.f32 %v9648_v26, %v9647_v60 }
0x115b   :  { %9856 = vmatmul.mubr.f32.vlgmr.msra.gmra.mrb[102].mxu1 %v9649_v11  ;;  %13116 = vmatmul.mubr.f32.vlgmr.msra.gmra.mrb[110].mxu0 %v9649_v11 }
0x11ee   :  { %v9787_v37 = vpop.f32.mrb[108].mxu0 }
0x11ef   :  { %v13082_v17 = vpop.f32.mrb[109].mxu0  ;;  %v9788_v34 = vadd.f32 %v9787_v37, %v21155_v1 }
0x122e   :  { %v9857_v59 = vpop.f32.mrb[102].mxu1  ;;  %v9928_v45 = vpop.f32.mrb[110].mxu0 }
0x122f   :  { %v16460_v49 = vadd.f32 %v9857_v59, %v18279_v31  ;;  %v9859_v38 = vpop.f32.mrb[103].mxu1  ;;  %v13117_v28 = vpop.f32.mrb[111].mxu0  ;;  %v9946_v25 = vadd.f32 %v16960_v29, %v9928_v45 }
0x1230   :  { %v16461_v30 = vadd.f32 %v9859_v38, %v21175_v54 }
0x1231   :  { %v10048_v4 = vmul.f32 -1.442695, %v16460_v49 }
0x1232   :  { %v10049_v36 = vmul.f32 -1.442695, %v16461_v30 }
0x1233   :  { %16941 = vpow2.f32 %v10048_v4 }
0x1234   :  { %16943 = vpow2.f32 %v10049_v36 }
0x123d   :  { %v16942_v46 = vpop.eup %16941 }
0x123e   :  { %v9936_v50 = vadd.f32 1.0, %v16942_v46  ;;  %v16944_v55 = vpop.eup %16943 }
0x123f   :  { %v9943_v47 = vadd.f32 1.0, %v16944_v55 }
0x1240   :  { %16945 = vrcp.f32 %v9936_v50 }
0x1241   :  { %16947 = vrcp.f32 %v9943_v47 }
0x124a   :  { %v16946_v27 = vpop.eup %16945 }
0x124b   :  { %v9947_v32 = vmul.f32 %v16946_v27, %v9946_v25  ;;  %v16948_v42 = vpop.eup %16947 }
0x124c   :  { %v9950_v53 = vsub.f32 1.0, %v16948_v42  ;;  %v9952_v12 = vmul.f32 %v16948_v42, %v9649_v11 }
0x124d   :  { %v9948_v31 = vadd.f32 %v9947_v32, %v9788_v34 }
0x124f   :  { %16949 = vtanh.f32 %v9948_v31 }
0x1259   :  { %v16950_v51 = vpop.eup %16949 }
0x125a   :  { %v9951_v54 = vmul.f32 %v16950_v51, %v9950_v53 }
0x125c   :  { %v9953_v16 = vadd.f32 %v9952_v12, %v9951_v54 }
0x125e   :  { %9955 = vst [vmem:[%s20396_s15] sm:$0xff] %v9953_v16 }
0x125f   :  { %9964 = vsyncpa [#allocation5], 1 }
0x1260   :  { %9965 = vsyncpa [#allocation7], 1 }
0x1261   :  { %9966 = vsyncpa [#allocation10], 1 }

</bundles_post_ra>
